<compile_context>
chip_gen: v7x
topology: tpu7x:2x2x1
jax: 0.10.0
libtpu: 0.0.40
codegen_flags: <defaults>
</compile_context>

<pallas_src>
import jax
import jax.numpy as jnp
from jax.experimental import pallas as pl
from jax.experimental.pallas import tpu as pltpu


def _round_up(x, m):
    return ((x + m - 1) // m) * m


def _pad(x, shape):
    return jnp.pad(x, [(0, t - s) for s, t in zip(x.shape, shape)])


# --------------------------------------------------------------------------- #
# Kernel 1: attention + GRU (small, everything resident in VMEM)
# --------------------------------------------------------------------------- #
def _attn_gru_kernel(emb_ref, hid_ref, enc_ref, mask_ref,
                     wa_h_ref, wa_e_ref, ba_ref, va_ref,
                     wi_e_ref, wi_w_ref, wh_ref,
                     b_r_ref, b_z_ref, b_in_ref, b_hn_ref,
                     h_out_ref, wgt_out_ref, attn_out_ref):
    S, B, H2 = enc_ref.shape          # seq-major encoder outputs
    H = hid_ref.shape[1]

    emb = emb_ref[...]                # [B, E]  f32
    hid = hid_ref[...]                # [B, H]  f32
    enc = enc_ref[...]                # [S, B, 2H] bf16 (no HBM-side transpose)
    mask = mask_ref[...]              # [S, B]  f32  (1.0 = valid, 0.0 = pad)

    hid_b = hid.astype(jnp.bfloat16)

    # ---- Bahdanau attention: energy = tanh([hid; enc] @ Wa + ba); score = energy . va
    term_h = jnp.dot(hid_b, wa_h_ref[...], preferred_element_type=jnp.float32)      # [B, H]
    term_e = jnp.dot(enc.reshape(S * B, H2), wa_e_ref[...],
                     preferred_element_type=jnp.float32).reshape(S, B, H)            # [S, B, H]
    energy = jnp.tanh(term_e + term_h[None, :, :] + ba_ref[...][None, :, :])
    scores = jnp.sum(energy * va_ref[...][None, :, :], axis=-1)                      # [S, B]
    scores = jnp.where(mask == 0.0, jnp.float32(-1e10), scores)
    scores = scores - jnp.max(scores, axis=0, keepdims=True)
    es = jnp.exp(scores)
    inv = pl.reciprocal(jnp.sum(es, axis=0, keepdims=True), approx=True)             # EUP slot
    a = es * inv                                                                      # [S, B]
    attn_out_ref[...] = a

    # ---- weighted = sum_s a[s,b] * enc[s,b,:]   (VPU + XLU; keeps MXU free)
    weighted = jnp.sum(a[:, :, None] * enc, axis=0)                                   # [B, 2H] f32
    wgt_out_ref[...] = weighted

    # ---- single-step GRU, gates (r|z|n) fused into one N=3H matmul per operand
    gi = (jnp.dot(emb.astype(jnp.bfloat16), wi_e_ref[...],
                  preferred_element_type=jnp.float32)
          + jnp.dot(weighted.astype(jnp.bfloat16), wi_w_ref[...],
                    preferred_element_type=jnp.float32))                              # [B, 3H]
    gh = jnp.dot(hid_b, wh_ref[...], preferred_element_type=jnp.float32)              # [B, 3H]
    r = jax.nn.sigmoid(gi[:, :H] + gh[:, :H] + b_r_ref[...])
    z = jax.nn.sigmoid(gi[:, H:2 * H] + gh[:, H:2 * H] + b_z_ref[...])
    n = jnp.tanh(gi[:, 2 * H:] + b_in_ref[...] + r * (gh[:, 2 * H:] + b_hn_ref[...]))
    h_out_ref[...] = (1.0 - z) * n + z * hid


# --------------------------------------------------------------------------- #
# Kernel 2: fc projection, gridded over vocab tiles (weight streaming)
# --------------------------------------------------------------------------- #
def _fc_kernel(h_ref, wgt_ref, emb_ref, wfo_ref, wfw_ref, wfe_ref, bfc_ref, pred_ref):
    h = h_ref[...].astype(jnp.bfloat16)
    w = wgt_ref[...].astype(jnp.bfloat16)
    e = emb_ref[...].astype(jnp.bfloat16)
    pred_ref[...] = (jnp.dot(h, wfo_ref[...], preferred_element_type=jnp.float32)
                     + jnp.dot(w, wfw_ref[...], preferred_element_type=jnp.float32)
                     + jnp.dot(e, wfe_ref[...], preferred_element_type=jnp.float32)
                     + bfc_ref[...])


# --------------------------------------------------------------------------- #
# Wrapper
# --------------------------------------------------------------------------- #
def decoder_forward(params, token_ids, hidden, encoder_outputs, mask, *, tile_v=512):
    """token_ids [B] int, hidden [B,H], encoder_outputs [S,B,2H], mask [B,S]."""
    B = token_ids.shape[0]
    S, _, H2 = encoder_outputs.shape
    H = hidden.shape[1]
    V, E = params['embedding'].shape

    f32, bf16 = jnp.float32, jnp.bfloat16

    # lane/sublane-dense padded sizes
    Bp = _round_up(B, 8)
    Sp = _round_up(S, 128)
    Hp = _round_up(H, 128)
    Ep = _round_up(E, 128)
    H2p = 2 * Hp
    tv = min(tile_v, _round_up(V, 128))     # TILE_V: multiple of 128, v7x-safe sizes
    Vp = _round_up(V, tv)

    # --- glue: embedding gather (eval-mode dropout == identity), pad + bf16 cast ---
    # TODO(synk): train-mode stochastic dropout(p=0.5) not applied (inference semantics).
    embedded = _pad(params['embedding'][token_ids].astype(f32), (Bp, Ep))            # [Bp, Ep]
    hid = _pad(hidden.astype(f32), (Bp, Hp))                                         # [Bp, Hp]
    enc = _pad(encoder_outputs, (Sp, Bp, H2p)).astype(bf16)                          # [Sp, Bp, 2Hp]
    mask_sb = _pad(jnp.transpose(mask.astype(f32)), (Sp, Bp))                        # [Sp, Bp] (tiny)

    # attention weights (pre-transposed, padded, bf16 for the MXU path)
    wa_h = _pad(params['wa_h'], (Hp, Hp)).astype(bf16)
    wa_e = _pad(params['wa_e'], (H2p, Hp)).astype(bf16)
    ba = _pad(params['ba'], (1, Hp)).astype(f32)
    va = _pad(params['va'], (1, Hp)).astype(f32)

    # GRU weights: fuse gates (r|z|n) -> one [K, 3Hp] matrix; split input path into
    # an `emb` segment and a `weighted` segment so the concat disappears.
    def gate_pack(ws, Kp):
        return jnp.concatenate([_pad(w, (Kp, Hp)) for w in ws], axis=1).astype(bf16)

    wi_e = gate_pack([params['w_ir'][:E], params['w_iz'][:E], params['w_in'][:E]], Ep)
    wi_w = gate_pack([params['w_ir'][E:], params['w_iz'][E:], params['w_in'][E:]], H2p)
    wh = gate_pack([params['w_hr'], params['w_hz'], params['w_hn']], Hp)
    b_r = _pad(params['b_r'], (1, Hp)).astype(f32)
    b_z = _pad(params['b_z'], (1, Hp)).astype(f32)
    b_in = _pad(params['b_in'], (1, Hp)).astype(f32)
    b_hn = _pad(params['b_hn'], (1, Hp)).astype(f32)

    # fc weights: padded + bf16, streamed per vocab tile by kernel 2
    wf_o = _pad(params['wf_o'], (Hp, Vp)).astype(bf16)
    wf_w = _pad(params['wf_w'], (H2p, Vp)).astype(bf16)
    wf_e = _pad(params['wf_e'], (Ep, Vp)).astype(bf16)
    b_fc = _pad(params['b_fc'], (1, Vp)).astype(f32)

    vmem = pl.BlockSpec(memory_space=pltpu.MemorySpace.VMEM)
    attn_gru_operands = (embedded, hid, enc, mask_sb,
                         wa_h, wa_e, ba, va,
                         wi_e, wi_w, wh,
                         b_r, b_z, b_in, b_hn)

    # ---- kernel 1: attention + GRU ----
    # TODO(synk): for very long S on v7x (64 MiB VMEM), tile the attention over S
    #             with a grid axis instead of holding enc whole.
    h_new, weighted, attn_sb = pl.pallas_call(
        _attn_gru_kernel,
        out_shape=(jax.ShapeDtypeStruct((Bp, Hp), f32),
                   jax.ShapeDtypeStruct((Bp, H2p), f32),
                   jax.ShapeDtypeStruct((Sp, Bp), f32)),
        in_specs=[vmem] * len(attn_gru_operands),
        out_specs=(vmem, vmem, vmem),
        compiler_params=pltpu.CompilerParams(vmem_limit_bytes=64 * 1024 * 1024),
    )(*attn_gru_operands)

    # ---- kernel 2: vocab-tiled fc projection (weight streaming, megacore-parallel) ----
    rep = lambda shape: pl.BlockSpec(shape, lambda j: (0, 0))       # replicated activations
    col = lambda rows: pl.BlockSpec((rows, tv), lambda j: (0, j))   # streamed weight tiles
    pred_pad = pl.pallas_call(
        _fc_kernel,
        grid=(Vp // tv,),
        out_shape=jax.ShapeDtypeStruct((Bp, Vp), f32),
        in_specs=[rep((Bp, Hp)), rep((Bp, H2p)), rep((Bp, Ep)),
                  col(Hp), col(H2p), col(Ep), col(1)],
        out_specs=pl.BlockSpec((Bp, tv), lambda j: (0, j)),
        compiler_params=pltpu.CompilerParams(
            dimension_semantics=("parallel",),            # 2x on v7x megacore
            vmem_limit_bytes=64 * 1024 * 1024),           # raise scoped limit (v5e default 16 MiB)
    )(h_new, weighted, embedded, wf_o, wf_w, wf_e, b_fc)

    # un-pad / reorient (tiny glue)
    pred = pred_pad[:B, :V]
    hidden_new = h_new[:B, :H]
    attn = jnp.transpose(attn_sb)[:B, :S]
    return pred, hidden_new, attn


# --------------------------------------------------------------------------- #
# Pure-JAX reference (f32, mirrors the PyTorch forward in eval mode)
# --------------------------------------------------------------------------- #
def decoder_reference(params, token_ids, hidden, encoder_outputs, mask):
    embedded = params['embedding'][token_ids]
    enc = jnp.transpose(encoder_outputs, (1, 0, 2))
    term_h = hidden @ params['wa_h']
    term_e = jnp.einsum('bsh,hk->bsk', enc, params['wa_e'])
    energy = jnp.tanh(term_e + term_h[:, None, :] + params['ba'][None, :, :])
    scores = jnp.sum(energy * params['va'][None, :, :], axis=-1)
    scores = jnp.where(mask.astype(jnp.float32) == 0.0, -1e10, scores)
    a = jax.nn.softmax(scores, axis=1)
    weighted = jnp.einsum('bs,bsh->bh', a, enc)
    x = jnp.concatenate([embedded, weighted], axis=1)
    r = jax.nn.sigmoid(x @ params['w_ir'] + hidden @ params['w_hr'] + params['b_r'])
    z = jax.nn.sigmoid(x @ params['w_iz'] + hidden @ params['w_hz'] + params['b_z'])
    n = jnp.tanh(x @ params['w_in'] + params['b_in']
                 + r * (hidden @ params['w_hn'] + params['b_hn']))
    h_new = (1.0 - z) * n + z * hidden
    pred = (h_new @ params['wf_o'] + weighted @ params['wf_w']
            + embedded @ params['wf_e'] + params['b_fc'])
    return pred, h_new, a


def init_params(key, V, E, H):
    ks = jax.random.split(key, 19)
    w = lambda k, shape: (0.1 * jax.random.normal(k, shape)).astype(jnp.float32)
    p = {}
    p['embedding'] = w(ks[0], (V, E))                 # nn.Embedding(V, E).weight
    # attention: Linear(3H->H) split into hidden / encoder parts (pre-transposed)
    p['wa_h'] = w(ks[1], (H, H))
    p['wa_e'] = w(ks[2], (2 * H, H))
    p['ba'] = w(ks[3], (1, H))
    p['va'] = w(ks[4], (1, H))                        # Linear(H->1, bias=False).weight
    # GRU(E+2H -> H): weight_ih/weight_hh split per gate (r, z, n), pre-transposed
    p['w_ir'] = w(ks[5], (E + 2 * H, H))
    p['w_iz'] = w(ks[6], (E + 2 * H, H))
    p['w_in'] = w(ks[7], (E + 2 * H, H))
    p['w_hr'] = w(ks[8], (H, H))
    p['w_hz'] = w(ks[9], (H, H))
    p['w_hn'] = w(ks[10], (H, H))
    p['b_r'] = w(ks[11], (1, H))                      # b_ir + b_hr (combined)
    p['b_z'] = w(ks[12], (1, H))                      # b_iz + b_hz (combined)
    p['b_in'] = w(ks[13], (1, H))
    p['b_hn'] = w(ks[14], (1, H))
    # fc: Linear(H + 2H + E -> V) split by concat segment (output, weighted, embedded)
    p['wf_o'] = w(ks[15], (H, V))
    p['wf_w'] = w(ks[16], (2 * H, V))
    p['wf_e'] = w(ks[17], (E, V))
    p['b_fc'] = w(ks[18], (1, V))
    return p


if __name__ == "__main__":
    # small synthetic shapes; V=300 with tile_v=128 exercises a 3-step vocab grid
    B, S, E, H, V = 2, 8, 32, 32, 300

    key = jax.random.PRNGKey(0)
    kp, k1, k2, k3 = jax.random.split(key, 4)
    params = init_params(kp, V, E, H)

    token_ids = jax.random.randint(k1, (B,), 0, V, dtype=jnp.int32)                    # input [B]
    hidden = (0.1 * jax.random.normal(k2, (B, H))).astype(jnp.float32)                 # [B, H]
    encoder_outputs = (0.1 * jax.random.normal(k3, (S, B, 2 * H))).astype(jnp.float32)  # [S, B, 2H]
    mask = jnp.ones((B, S), dtype=jnp.float32).at[1, S - 3:].set(0.0)                  # [B, S]

    pred, h_new, attn = decoder_forward(params, token_ids, hidden, encoder_outputs,
                                        mask, tile_v=128)
    jax.block_until_ready((pred, h_new, attn))

    pred_r, h_r, attn_r = decoder_reference(params, token_ids, hidden, encoder_outputs, mask)
    assert pred.shape == (B, V) and h_new.shape == (B, H) and attn.shape == (B, S)
    # bf16 weight stream + approx reciprocal -> loosened tolerances vs the f32 reference
    assert jnp.allclose(pred, pred_r, atol=2e-2, rtol=2e-2)
    assert jnp.allclose(h_new, h_r, atol=2e-2, rtol=2e-2)
    assert jnp.allclose(attn, attn_r, atol=2e-2, rtol=2e-2)

    print("KERNEL_OK")
</pallas_src>

<mosaic_0001>
module attributes {stable_mosaic.version = 11 : i64} {
  func.func @_attn_gru_kernel(%arg0: memref<8x128xf32, #tpu.memory_space<vmem>>, %arg1: memref<8x128xf32, #tpu.memory_space<vmem>>, %arg2: memref<128x8x256xbf16, #tpu.memory_space<vmem>>, %arg3: memref<128x8xf32, #tpu.memory_space<vmem>>, %arg4: memref<128x128xbf16, #tpu.memory_space<vmem>>, %arg5: memref<256x128xbf16, #tpu.memory_space<vmem>>, %arg6: memref<1x128xf32, #tpu.memory_space<vmem>>, %arg7: memref<1x128xf32, #tpu.memory_space<vmem>>, %arg8: memref<128x384xbf16, #tpu.memory_space<vmem>>, %arg9: memref<256x384xbf16, #tpu.memory_space<vmem>>, %arg10: memref<128x384xbf16, #tpu.memory_space<vmem>>, %arg11: memref<1x128xf32, #tpu.memory_space<vmem>>, %arg12: memref<1x128xf32, #tpu.memory_space<vmem>>, %arg13: memref<1x128xf32, #tpu.memory_space<vmem>>, %arg14: memref<1x128xf32, #tpu.memory_space<vmem>>, %arg15: memref<8x128xf32, #tpu.memory_space<vmem>>, %arg16: memref<8x256xf32, #tpu.memory_space<vmem>>, %arg17: memref<128x8xf32, #tpu.memory_space<vmem>>) attributes {dimension_semantics = [], scalar_prefetch = 0 : i64, scratch_operands = 0 : i64, tpu.core_type = #tpu.core_type<tc>} {
    %c0 = arith.constant 0 : index
    %c0_0 = arith.constant 0 : index
    %0 = vector.load %arg0[%c0, %c0_0] : memref<8x128xf32, #tpu.memory_space<vmem>>, vector<8x128xf32>
    %c0_1 = arith.constant 0 : index
    %c0_2 = arith.constant 0 : index
    %1 = vector.load %arg1[%c0_1, %c0_2] : memref<8x128xf32, #tpu.memory_space<vmem>>, vector<8x128xf32>
    %c0_3 = arith.constant 0 : index
    %c0_4 = arith.constant 0 : index
    %c0_5 = arith.constant 0 : index
    %2 = vector.load %arg2[%c0_3, %c0_4, %c0_5] : memref<128x8x256xbf16, #tpu.memory_space<vmem>>, vector<128x8x256xbf16>
    %c0_6 = arith.constant 0 : index
    %c0_7 = arith.constant 0 : index
    %3 = vector.load %arg3[%c0_6, %c0_7] : memref<128x8xf32, #tpu.memory_space<vmem>>, vector<128x8xf32>
    %4 = arith.truncf %1 : vector<8x128xf32> to vector<8x128xbf16>
    %c0_8 = arith.constant 0 : index
    %c0_9 = arith.constant 0 : index
    %5 = vector.load %arg4[%c0_8, %c0_9] : memref<128x128xbf16, #tpu.memory_space<vmem>>, vector<128x128xbf16>
    %cst = arith.constant dense<0.000000e+00> : vector<8x128xf32>
    %6 = tpu.matmul %4, %5, %cst {dimension_numbers = #tpu.dot_dimension_numbers<[1], [0], [0], [1], [0, 0, 1, 1], [], []>} : vector<8x128xbf16>, vector<128x128xbf16>, vector<8x128xf32> -> vector<8x128xf32>
    %7 = vector.shape_cast %2 : vector<128x8x256xbf16> to vector<1024x256xbf16>
    %c0_10 = arith.constant 0 : index
    %c0_11 = arith.constant 0 : index
    %8 = vector.load %arg5[%c0_10, %c0_11] : memref<256x128xbf16, #tpu.memory_space<vmem>>, vector<256x128xbf16>
    %cst_12 = arith.constant dense<0.000000e+00> : vector<1024x128xf32>
    %9 = tpu.matmul %7, %8, %cst_12 {dimension_numbers = #tpu.dot_dimension_numbers<[1], [0], [0], [1], [0, 0, 1, 1], [], []>} : vector<1024x256xbf16>, vector<256x128xbf16>, vector<1024x128xf32> -> vector<1024x128xf32>
    %10 = vector.shape_cast %9 : vector<1024x128xf32> to vector<128x8x128xf32>
    %11 = vector.shape_cast %6 : vector<8x128xf32> to vector<1x8x128xf32>
    %12 = vector.broadcast %11 : vector<1x8x128xf32> to vector<128x8x128xf32>
    %13 = arith.addf %10, %12 : vector<128x8x128xf32>
    %c0_13 = arith.constant 0 : index
    %c0_14 = arith.constant 0 : index
    %14 = vector.load %arg6[%c0_13, %c0_14] : memref<1x128xf32, #tpu.memory_space<vmem>>, vector<1x128xf32>
    %15 = vector.shape_cast %14 : vector<1x128xf32> to vector<1x1x128xf32>
    %16 = vector.broadcast %15 : vector<1x1x128xf32> to vector<128x8x128xf32>
    %17 = arith.addf %13, %16 : vector<128x8x128xf32>
    %18 = math.tanh %17 : vector<128x8x128xf32>
    %c0_15 = arith.constant 0 : index
    %c0_16 = arith.constant 0 : index
    %19 = vector.load %arg7[%c0_15, %c0_16] : memref<1x128xf32, #tpu.memory_space<vmem>>, vector<1x128xf32>
    %20 = vector.shape_cast %19 : vector<1x128xf32> to vector<1x1x128xf32>
    %21 = vector.broadcast %20 : vector<1x1x128xf32> to vector<128x8x128xf32>
    %22 = arith.mulf %18, %21 : vector<128x8x128xf32>
    %cst_17 = arith.constant dense<0.000000e+00> : vector<128x8xf32>
    %23 = vector.multi_reduction <add>, %22, %cst_17 [2] : vector<128x8x128xf32> to vector<128x8xf32>
    %cst_18 = arith.constant 0.000000e+00 : f32
    %24 = vector.broadcast %cst_18 : f32 to vector<128x8xf32>
    %25 = arith.cmpf oeq, %3, %24 : vector<128x8xf32>
    %cst_19 = arith.constant -1.000000e+10 : f32
    %26 = vector.broadcast %cst_19 : f32 to vector<128x8xf32>
    %27 = arith.select %25, %26, %23 : vector<128x8xi1>, vector<128x8xf32>
    %cst_20 = arith.constant dense<0xFF800000> : vector<8xf32>
    %28 = vector.multi_reduction <maximumf>, %27, %cst_20 [0] : vector<128x8xf32> to vector<8xf32>
    %29 = vector.shape_cast %28 : vector<8xf32> to vector<1x8xf32>
    %30 = vector.broadcast %29 : vector<1x8xf32> to vector<128x8xf32>
    %31 = arith.subf %27, %30 : vector<128x8xf32>
    %32 = math.exp %31 : vector<128x8xf32>
    %cst_21 = arith.constant dense<0.000000e+00> : vector<8xf32>
    %33 = vector.multi_reduction <add>, %32, %cst_21 [0] : vector<128x8xf32> to vector<8xf32>
    %34 = vector.shape_cast %33 : vector<8xf32> to vector<1x8xf32>
    %35 = tpu.reciprocal %34 {approx = true} : vector<1x8xf32> -> vector<1x8xf32>
    %36 = vector.broadcast %35 : vector<1x8xf32> to vector<128x8xf32>
    %37 = arith.mulf %32, %36 : vector<128x8xf32>
    %c0_22 = arith.constant 0 : index
    %c0_23 = arith.constant 0 : index
    %38 = vector.load %arg17[%c0_22, %c0_23] : memref<128x8xf32, #tpu.memory_space<vmem>>, vector<128x8xf32>
    tpu.vector_store %arg17[%c0_22, %c0_23], %37 {strides = array<i32>} : memref<128x8xf32, #tpu.memory_space<vmem>>, vector<128x8xf32>,
    %39 = vector.shape_cast %37 : vector<128x8xf32> to vector<128x8x1xf32>
    %40 = arith.extf %2 : vector<128x8x256xbf16> to vector<128x8x256xf32>
    %41 = vector.broadcast %39 : vector<128x8x1xf32> to vector<128x8x256xf32>
    %42 = arith.mulf %41, %40 : vector<128x8x256xf32>
    %cst_24 = arith.constant dense<0.000000e+00> : vector<8x256xf32>
    %43 = vector.multi_reduction <add>, %42, %cst_24 [0] : vector<128x8x256xf32> to vector<8x256xf32>
    %c0_25 = arith.constant 0 : index
    %c0_26 = arith.constant 0 : index
    %44 = vector.load %arg16[%c0_25, %c0_26] : memref<8x256xf32, #tpu.memory_space<vmem>>, vector<8x256xf32>
    tpu.vector_store %arg16[%c0_25, %c0_26], %43 {strides = array<i32>} : memref<8x256xf32, #tpu.memory_space<vmem>>, vector<8x256xf32>,
    %45 = arith.truncf %0 : vector<8x128xf32> to vector<8x128xbf16>
    %c0_27 = arith.constant 0 : index
    %c0_28 = arith.constant 0 : index
    %46 = vector.load %arg8[%c0_27, %c0_28] : memref<128x384xbf16, #tpu.memory_space<vmem>>, vector<128x384xbf16>
    %cst_29 = arith.constant dense<0.000000e+00> : vector<8x384xf32>
    %47 = tpu.matmul %45, %46, %cst_29 {dimension_numbers = #tpu.dot_dimension_numbers<[1], [0], [0], [1], [0, 0, 1, 1], [], []>} : vector<8x128xbf16>, vector<128x384xbf16>, vector<8x384xf32> -> vector<8x384xf32>
    %48 = arith.truncf %43 : vector<8x256xf32> to vector<8x256xbf16>
    %c0_30 = arith.constant 0 : index
    %c0_31 = arith.constant 0 : index
    %49 = vector.load %arg9[%c0_30, %c0_31] : memref<256x384xbf16, #tpu.memory_space<vmem>>, vector<256x384xbf16>
    %cst_32 = arith.constant dense<0.000000e+00> : vector<8x384xf32>
    %50 = tpu.matmul %48, %49, %cst_32 {dimension_numbers = #tpu.dot_dimension_numbers<[1], [0], [0], [1], [0, 0, 1, 1], [], []>} : vector<8x256xbf16>, vector<256x384xbf16>, vector<8x384xf32> -> vector<8x384xf32>
    %51 = arith.addf %47, %50 : vector<8x384xf32>
    %c0_33 = arith.constant 0 : index
    %c0_34 = arith.constant 0 : index
    %52 = vector.load %arg10[%c0_33, %c0_34] : memref<128x384xbf16, #tpu.memory_space<vmem>>, vector<128x384xbf16>
    %cst_35 = arith.constant dense<0.000000e+00> : vector<8x384xf32>
    %53 = tpu.matmul %4, %52, %cst_35 {dimension_numbers = #tpu.dot_dimension_numbers<[1], [0], [0], [1], [0, 0, 1, 1], [], []>} : vector<8x128xbf16>, vector<128x384xbf16>, vector<8x384xf32> -> vector<8x384xf32>
    %54 = vector.extract_strided_slice %51 {offsets = [0, 0], sizes = [8, 128], strides = [1, 1]} : vector<8x384xf32> to vector<8x128xf32>
    %55 = vector.extract_strided_slice %53 {offsets = [0, 0], sizes = [8, 128], strides = [1, 1]} : vector<8x384xf32> to vector<8x128xf32>
    %56 = arith.addf %54, %55 : vector<8x128xf32>
    %c0_36 = arith.constant 0 : index
    %c0_37 = arith.constant 0 : index
    %57 = vector.load %arg11[%c0_36, %c0_37] : memref<1x128xf32, #tpu.memory_space<vmem>>, vector<1x128xf32>
    %58 = vector.broadcast %57 : vector<1x128xf32> to vector<8x128xf32>
    %59 = arith.addf %56, %58 : vector<8x128xf32>
    %60 = arith.negf %59 : vector<8x128xf32>
    %61 = math.exp %60 : vector<8x128xf32>
    %cst_38 = arith.constant 1.000000e+00 : f32
    %62 = vector.broadcast %cst_38 : f32 to vector<8x128xf32>
    %63 = arith.addf %62, %61 : vector<8x128xf32>
    %64 = arith.divf %62, %63 : vector<8x128xf32>
    %65 = vector.extract_strided_slice %51 {offsets = [0, 128], sizes = [8, 128], strides = [1, 1]} : vector<8x384xf32> to vector<8x128xf32>
    %66 = vector.extract_strided_slice %53 {offsets = [0, 128], sizes = [8, 128], strides = [1, 1]} : vector<8x384xf32> to vector<8x128xf32>
    %67 = arith.addf %65, %66 : vector<8x128xf32>
    %c0_39 = arith.constant 0 : index
    %c0_40 = arith.constant 0 : index
    %68 = vector.load %arg12[%c0_39, %c0_40] : memref<1x128xf32, #tpu.memory_space<vmem>>, vector<1x128xf32>
    %69 = vector.broadcast %68 : vector<1x128xf32> to vector<8x128xf32>
    %70 = arith.addf %67, %69 : vector<8x128xf32>
    %71 = arith.negf %70 : vector<8x128xf32>
    %72 = math.exp %71 : vector<8x128xf32>
    %cst_41 = arith.constant 1.000000e+00 : f32
    %73 = vector.broadcast %cst_41 : f32 to vector<8x128xf32>
    %74 = arith.addf %73, %72 : vector<8x128xf32>
    %75 = arith.divf %73, %74 : vector<8x128xf32>
    %76 = vector.extract_strided_slice %51 {offsets = [0, 256], sizes = [8, 128], strides = [1, 1]} : vector<8x384xf32> to vector<8x128xf32>
    %c0_42 = arith.constant 0 : index
    %c0_43 = arith.constant 0 : index
    %77 = vector.load %arg13[%c0_42, %c0_43] : memref<1x128xf32, #tpu.memory_space<vmem>>, vector<1x128xf32>
    %78 = vector.broadcast %77 : vector<1x128xf32> to vector<8x128xf32>
    %79 = arith.addf %76, %78 : vector<8x128xf32>
    %80 = vector.extract_strided_slice %53 {offsets = [0, 256], sizes = [8, 128], strides = [1, 1]} : vector<8x384xf32> to vector<8x128xf32>
    %c0_44 = arith.constant 0 : index
    %c0_45 = arith.constant 0 : index
    %81 = vector.load %arg14[%c0_44, %c0_45] : memref<1x128xf32, #tpu.memory_space<vmem>>, vector<1x128xf32>
    %82 = vector.broadcast %81 : vector<1x128xf32> to vector<8x128xf32>
    %83 = arith.addf %80, %82 : vector<8x128xf32>
    %84 = arith.mulf %64, %83 : vector<8x128xf32>
    %85 = arith.addf %79, %84 : vector<8x128xf32>
    %86 = math.tanh %85 : vector<8x128xf32>
    %cst_46 = arith.constant 1.000000e+00 : f32
    %87 = vector.broadcast %cst_46 : f32 to vector<8x128xf32>
    %88 = arith.subf %87, %75 : vector<8x128xf32>
    %89 = arith.mulf %88, %86 : vector<8x128xf32>
    %90 = arith.mulf %75, %1 : vector<8x128xf32>
    %91 = arith.addf %89, %90 : vector<8x128xf32>
    %c0_47 = arith.constant 0 : index
    %c0_48 = arith.constant 0 : index
    %92 = vector.load %arg15[%c0_47, %c0_48] : memref<8x128xf32, #tpu.memory_space<vmem>>, vector<8x128xf32>
    tpu.vector_store %arg15[%c0_47, %c0_48], %91 {strides = array<i32>} : memref<8x128xf32, #tpu.memory_space<vmem>>, vector<8x128xf32>,
    return
  }
}

</mosaic_0001>

<bundles_post_ra>
// kernel: tpu_custom_call.1
= control target key start
LH: loop header
LB: loop body
LE: loop exit
PB: predicated region body
PF: predicated region fallthrough
CT: control target
= control target key end

     0   :  { %s10227_s0 = inlined_call_operand.hbm [shape: f32[8,128], index: 0, kind: input, shape index: {}]   ;;  %s10228_s1 = inlined_call_operand.hbm [shape: f32[8,128], index: 1, kind: input, shape index: {}]   ;;  %s10229_s2 = inlined_call_operand.hbm [shape: bf16[128,8,256], index: 2, kind: input, shape index: {}]   ;;  %s10230_s3 = inlined_call_operand.hbm [shape: f32[128,8], index: 3, kind: input, shape index: {}]   ;;  %s10231_s4 = inlined_call_operand.hbm [shape: bf16[128,128], index: 4, kind: input, shape index: {}]   ;;  %s10232_s5 = inlined_call_operand.hbm [shape: bf16[256,128], index: 5, kind: input, shape index: {}]   ;;  %s10233_s6 = inlined_call_operand.hbm [shape: f32[1,128], index: 6, kind: input, shape index: {}]   ;;  %s10234_s7 = inlined_call_operand.hbm [shape: f32[1,128], index: 7, kind: input, shape index: {}]   ;;  %s10235_s8 = inlined_call_operand.hbm [shape: bf16[128,384], index: 8, kind: input, shape index: {}]   ;;  %s10236_s9 = inlined_call_operand.hbm [shape: bf16[256,384], index: 9, kind: input, shape index: {}]   ;;  %s10237_s10 = inlined_call_operand.hbm [shape: bf16[128,384], index: 10, kind: input, shape index: {}]   ;;  %s10238_s11 = inlined_call_operand.hbm [shape: f32[1,128], index: 11, kind: input, shape index: {}]   ;;  %s10239_s12 = inlined_call_operand.hbm [shape: f32[1,128], index: 12, kind: input, shape index: {}]   ;;  %s10240_s13 = inlined_call_operand.hbm [shape: f32[1,128], index: 13, kind: input, shape index: {}]   ;;  %s10241_s14 = inlined_call_operand.hbm [shape: f32[1,128], index: 14, kind: input, shape index: {}]   ;;  %s10242_s15 = inlined_call_operand.hbm [shape: f32[8,128], index: 15, kind: output, shape index: {0}]   ;;  %s10243_s16 = inlined_call_operand.hbm [shape: f32[8,256], index: 16, kind: output, shape index: {1}]   ;;  %s10244_s17 = inlined_call_operand.hbm [shape: f32[128,8], index: 17, kind: output, shape index: {2}]  }
   0x1   :  { %10256 = sst [smem:[#allocation86_spill]] %s10227_s0 }
   0x2   :  { %10257 = sst [smem:[#allocation87_spill]] %s10228_s1 }
   0x3   :  { %10258 = sst [smem:[#allocation88_spill]] %s10242_s15 }
   0x4   :  { %23 = vsyncpa [#allocation3], 0 }
   0x5   :  { %24 = vsyncpa [#allocation6], 0 }
   0x6   :  { %25 = vsyncpa [#allocation9], 0 }
   0x7   :  { %26 = vsyncpa [#allocation12], 0 }
   0x8   :  { %27 = vsyncpa [#allocation15], 0 }
   0x9   :  { %28 = vsyncpa [#allocation18], 0 }
   0xa   :  { %29 = vsyncpa [#allocation21], 0 }
   0xb   :  { %30 = vsyncpa [#allocation24], 0 }
   0xc   :  { %31 = vsyncpa [#allocation4], 0 }
   0xd   :  { %32 = vsyncpa [#allocation28], 0  ;;  %s7762_s24 = smov [#allocation5]   ;;  %s10259_s28 = sld [smem:[#allocation87_spill]] }
   0xe   :  { %s49_s25 = sshll.u32 %s7762_s24, 4  ;;  %s50_s25 = int_to_ptr.vmem [resolvable:$true] %s49_s25 }
  0x13   :  { %s7346_s29 = scalar_lea.hbm %s10259_s28, 128 }
  0x14   :  { %p7347_p0 = scmp.ne.s32.totalorder %s10259_s28, %s7346_s29  ;;  %p7350_p1 = scmp.lt.u32.totalorder %s7346_s29, %s10259_s28 }
  0x16   :  { %p7352_p2 = pnand %p7350_p1, %p7347_p0 }
  0x18   :  { %7355 = shalt.err (!%p7352_p2)
}
  0x19   :  { %s7356_s1 = scalar_lea.vmem %s50_s25, 128  ;;  %p7361_p4 = scmp.lt.s32.totalorder %s50_s25, %s50_s25 }
  0x1a   :  { %p7357_p3 = scmp.ne.s32.totalorder %s50_s25, %s7356_s1  ;;  %p7362_p5 = scmp.lt.s32.totalorder %s7356_s1, %s7356_s1 }
  0x1c   :  { %p7363_p6 = por %p7362_p5, %p7361_p4 }
  0x1e   :  { %p7364_p7 = pnand %p7363_p6, %p7357_p3 }
  0x20   :  { %7367 = shalt.err (!%p7364_p7)
}
  0x21   :  { %52 = dma.hbm_to_vmem [thread:$0]  %s10259_s28, 128, %s50_s25, [#allocation6]  }
  0x22   :  { %s7763_s22 = smov [#allocation8]   ;;  %s7368_s27 = scalar_lea.hbm %s10230_s3, 2048 }
  0x23   :  { %s70_s23 = sshll.u32 %s7763_s22, 4  ;;  %p7369_p8 = scmp.ne.s32.totalorder %s10230_s3, %s7368_s27  ;;  %s71_s23 = int_to_ptr.vmem [resolvable:$true] %s70_s23 }
  0x24   :  { %p7372_p9 = scmp.lt.u32.totalorder %s7368_s27, %s10230_s3 }
  0x26   :  { %p7374_p10 = pnand %p7372_p9, %p7369_p8 }
  0x28   :  { %7377 = shalt.err (!%p7374_p10)
}
  0x29   :  { %s7378_s19 = scalar_lea.vmem %s71_s23, 2048  ;;  %p7383_p12 = scmp.lt.s32.totalorder %s71_s23, %s71_s23 }
  0x2a   :  { %p7379_p11 = scmp.ne.s32.totalorder %s71_s23, %s7378_s19  ;;  %p7384_p13 = scmp.lt.s32.totalorder %s7378_s19, %s7378_s19 }
  0x2c   :  { %p7385_p0 = por %p7384_p13, %p7383_p12 }
  0x2e   :  { %p7386_p1 = pnand %p7385_p0, %p7379_p11 }
  0x30   :  { %7389 = shalt.err (!%p7386_p1)
}
  0x31   :  { %s7764_s25 = smov 128   ;;  %s7765_s28 = smov 8  }
  0x32   :  { %76 = dma.hbm_to_vmem [thread:$0]  %s10230_s3, 2048, %s71_s23, [#allocation9], %s7764_s25, %s7764_s25, %s7765_s28  }
  0x33   :  { %s7766_s21 = smov [#allocation11]   ;;  %s7767_s24 = smov [#allocation14]  }
  0x34   :  { %s94_s22 = sshll.u32 %s7766_s21, 4  ;;  %s117_s26 = sshll.u32 %s7767_s24, 4  ;;  %s95_s22 = int_to_ptr.vmem [resolvable:$true] %s94_s22  ;;  %s7906_s26 = int_to_ptr.vmem [resolvable:$true] %s117_s26 }
  0x35   :  { %s7390_s0 = scalar_lea.hbm %s10232_s5, 2048 }
  0x36   :  { %p7391_p2 = scmp.ne.s32.totalorder %s10232_s5, %s7390_s0  ;;  %p7394_p3 = scmp.lt.u32.totalorder %s7390_s0, %s10232_s5 }
  0x38   :  { %p7396_p4 = pnand %p7394_p3, %p7391_p2 }
  0x3a   :  { %7399 = shalt.err (!%p7396_p4)
}
  0x3b   :  { %s7400_s3 = scalar_lea.vmem %s95_s22, 2048  ;;  %p7405_p6 = scmp.lt.s32.totalorder %s95_s22, %s95_s22 }
  0x3c   :  { %p7401_p5 = scmp.ne.s32.totalorder %s95_s22, %s7400_s3  ;;  %p7406_p7 = scmp.lt.s32.totalorder %s7400_s3, %s7400_s3 }
  0x3e   :  { %p7407_p8 = por %p7406_p7, %p7405_p6 }
  0x40   :  { %p7408_p9 = pnand %p7407_p8, %p7401_p5 }
  0x42   :  { %7411 = shalt.err (!%p7408_p9)
}
  0x43   :  { %s7768_s23 = smov 64   ;;  %s7769_s1 = smov 4  }
  0x44   :  { %100 = dma.hbm_to_vmem [thread:$0]  %s10232_s5, 2048, %s95_s22, [#allocation12], %s7768_s23, %s7768_s23, %s7769_s1  }
  0x45   :  { %s7412_s27 = scalar_lea.hbm %s10234_s7, 16 }
  0x46   :  { %p7413_p10 = scmp.ne.s32.totalorder %s10234_s7, %s7412_s27  ;;  %p7416_p11 = scmp.lt.u32.totalorder %s7412_s27, %s10234_s7 }
  0x48   :  { %p7418_p12 = pnand %p7416_p11, %p7413_p10 }
  0x4a   :  { %7421 = shalt.err (!%p7418_p12)
}
  0x4b   :  { %s7422_s19 = scalar_lea.vmem %s7906_s26, 16  ;;  %s7426_s5 = scalar_lea.vmem %s7906_s26, 32 }
  0x4c   :  { %p7423_p13 = scmp.ne.s32.totalorder %s7906_s26, %s7422_s19  ;;  %p7427_p0 = scmp.lt.s32.totalorder %s7906_s26, %s7906_s26 }
  0x4d   :  { %p7428_p1 = scmp.lt.s32.totalorder %s7426_s5, %s7422_s19 }
  0x4f   :  { %p7429_p2 = por %p7428_p1, %p7427_p0 }
  0x51   :  { %p7430_p3 = pnand %p7429_p2, %p7423_p13 }
  0x53   :  { %7433 = shalt.err (!%p7430_p3)
}
  0x54   :  { %120 = dma.hbm_to_vmem [thread:$0]  %s10234_s7, 16, %s7906_s26, [#allocation15]  }
  0x55   :  { %s7770_s20 = smov [#allocation17]   ;;  %s7771_s15 = smov [#allocation20]  }
  0x56   :  { %s138_s21 = sshll.u32 %s7770_s20, 4  ;;  %s163_s24 = sshll.u32 %s7771_s15, 4  ;;  %s139_s21 = int_to_ptr.vmem [resolvable:$true] %s138_s21  ;;  %s7941_s24 = int_to_ptr.vmem [resolvable:$true] %s163_s24 }
  0x57   :  { %s7434_s0 = scalar_lea.hbm %s10236_s9, 6144 }
  0x58   :  { %p7435_p4 = scmp.ne.s32.totalorder %s10236_s9, %s7434_s0  ;;  %p7438_p5 = scmp.lt.u32.totalorder %s7434_s0, %s10236_s9 }
  0x5a   :  { %p7440_p6 = pnand %p7438_p5, %p7435_p4 }
  0x5c   :  { %7443 = shalt.err (!%p7440_p6)
}
  0x5d   :  { %s7444_s7 = scalar_lea.vmem %s139_s21, 6144  ;;  %p7449_p8 = scmp.lt.s32.totalorder %s139_s21, %s139_s21 }
  0x5e   :  { %p7445_p7 = scmp.ne.s32.totalorder %s139_s21, %s7444_s7  ;;  %p7450_p9 = scmp.lt.s32.totalorder %s7444_s7, %s7444_s7 }
  0x60   :  { %p7451_p10 = por %p7450_p9, %p7449_p8 }
  0x62   :  { %p7452_p11 = pnand %p7451_p10, %p7445_p7 }
  0x64   :  { %7455 = shalt.err (!%p7452_p11)
}
  0x65   :  { %s7772_s26 = smov 192   ;;  %s7773_s22 = smov 12  }
  0x66   :  { %144 = dma.hbm_to_vmem [thread:$0]  %s10236_s9, 6144, %s139_s21, [#allocation18], %s7772_s26, %s7772_s26, %s7773_s22  }
  0x67   :  { %s7456_s29 = scalar_lea.hbm %s10238_s11, 16 }
  0x68   :  { %p7457_p12 = scmp.ne.s32.totalorder %s10238_s11, %s7456_s29  ;;  %p7460_p13 = scmp.lt.u32.totalorder %s7456_s29, %s10238_s11 }
  0x6a   :  { %p7462_p0 = pnand %p7460_p13, %p7457_p12 }
  0x6c   :  { %7465 = shalt.err (!%p7462_p0)
}
  0x6d   :  { %s7466_s5 = scalar_lea.vmem %s7941_s24, 16  ;;  %s7470_s9 = scalar_lea.vmem %s7941_s24, 32 }
  0x6e   :  { %p7467_p1 = scmp.ne.s32.totalorder %s7941_s24, %s7466_s5  ;;  %p7471_p2 = scmp.lt.s32.totalorder %s7941_s24, %s7941_s24 }
  0x6f   :  { %p7472_p3 = scmp.lt.s32.totalorder %s7470_s9, %s7466_s5 }
  0x71   :  { %p7473_p4 = por %p7472_p3, %p7471_p2 }
  0x73   :  { %p7474_p5 = pnand %p7473_p4, %p7467_p1 }
  0x75   :  { %7477 = shalt.err (!%p7474_p5)
}
  0x76   :  { %166 = dma.hbm_to_vmem [thread:$0]  %s10238_s11, 16, %s7941_s24, [#allocation21]  }
  0x77   :  { %s7774_s3 = smov [#allocation23]   ;;  %s7775_s15 = smov [#allocation2]  }
  0x78   :  { %s183_s20 = sshll.u32 %s7774_s3, 4  ;;  %s39_s27 = sshll.u32 %s7775_s15, 4  ;;  %s184_s20 = int_to_ptr.vmem [resolvable:$true] %s183_s20  ;;  %s40_s27 = int_to_ptr.vmem [resolvable:$true] %s39_s27 }
  0x79   :  { %s7478_s30 = scalar_lea.hbm %s10240_s13, 16 }
  0x7a   :  { %p7479_p6 = scmp.ne.s32.totalorder %s10240_s13, %s7478_s30  ;;  %p7482_p7 = scmp.lt.u32.totalorder %s7478_s30, %s10240_s13 }
  0x7c   :  { %p7484_p8 = pnand %p7482_p7, %p7479_p6 }
  0x7e   :  { %7487 = shalt.err (!%p7484_p8)
}
  0x7f   :  { %s7488_s11 = scalar_lea.vmem %s184_s20, 16  ;;  %s7492_s24 = scalar_lea.vmem %s184_s20, 32 }
  0x80   :  { %p7489_p9 = scmp.ne.s32.totalorder %s184_s20, %s7488_s11  ;;  %p7493_p10 = scmp.lt.s32.totalorder %s184_s20, %s184_s20 }
  0x81   :  { %p7494_p11 = scmp.lt.s32.totalorder %s7492_s24, %s7488_s11 }
  0x83   :  { %p7495_p12 = por %p7494_p11, %p7493_p10 }
  0x85   :  { %p7496_p13 = pnand %p7495_p12, %p7489_p9 }
  0x87   :  { %7499 = shalt.err (!%p7496_p13)
}
  0x88   :  { %186 = dma.hbm_to_vmem [thread:$0]  %s10240_s13, 16, %s184_s20, [#allocation24]  }
  0x89   :  { %s10260_s29 = sld [smem:[#allocation86_spill]] }
  0x8f   :  { %s7500_s0 = scalar_lea.hbm %s10260_s29, 128 }
  0x90   :  { %p7501_p0 = scmp.ne.s32.totalorder %s10260_s29, %s7500_s0  ;;  %p7504_p1 = scmp.lt.u32.totalorder %s7500_s0, %s10260_s29 }
  0x92   :  { %p7506_p2 = pnand %p7504_p1, %p7501_p0 }
  0x94   :  { %7509 = shalt.err (!%p7506_p2)
}
  0x95   :  { %s7510_s9 = scalar_lea.vmem %s40_s27, 128  ;;  %p7515_p4 = scmp.lt.s32.totalorder %s40_s27, %s40_s27 }
  0x96   :  { %p7511_p3 = scmp.ne.s32.totalorder %s40_s27, %s7510_s9  ;;  %p7516_p5 = scmp.lt.s32.totalorder %s7510_s9, %s7510_s9 }
  0x98   :  { %p7517_p6 = por %p7516_p5, %p7515_p4 }
  0x9a   :  { %p7518_p7 = pnand %p7517_p6, %p7511_p3 }
  0x9c   :  { %7521 = shalt.err (!%p7518_p7)
}
  0x9d   :  { %42 = dma.hbm_to_vmem [thread:$0]  %s10260_s29, 128, %s40_s27, [#allocation3]  }
  0x9e   :  { %s7776_s11 = smov [#allocation7]   ;;  %s7777_s21 = smov [#allocation10]  }
  0x9f   :  { %s58_s24 = sshll.u32 %s7776_s11, 4  ;;  %s82_s7 = sshll.u32 %s7777_s21, 4  ;;  %s59_s24 = int_to_ptr.vmem [resolvable:$true] %s58_s24  ;;  %s8000_s7 = int_to_ptr.vmem [resolvable:$true] %s82_s7 }
  0xa0   :  { %s7522_s0 = scalar_lea.hbm %s10229_s2, 16384 }
  0xa1   :  { %p7523_p8 = scmp.ne.s32.totalorder %s10229_s2, %s7522_s0  ;;  %p7526_p9 = scmp.lt.u32.totalorder %s7522_s0, %s10229_s2 }
  0xa3   :  { %p7528_p10 = pnand %p7526_p9, %p7523_p8 }
  0xa5   :  { %7531 = shalt.err (!%p7528_p10)
}
  0xa6   :  { %s7532_s27 = scalar_lea.vmem %s59_s24, 16384  ;;  %p7537_p12 = scmp.lt.s32.totalorder %s59_s24, %s59_s24 }
  0xa7   :  { %p7533_p11 = scmp.ne.s32.totalorder %s59_s24, %s7532_s27  ;;  %p7538_p13 = scmp.lt.s32.totalorder %s7532_s27, %s7532_s27 }
  0xa9   :  { %p7539_p0 = por %p7538_p13, %p7537_p12 }
  0xab   :  { %p7540_p1 = pnand %p7539_p0, %p7533_p11 }
  0xad   :  { %7543 = shalt.err (!%p7540_p1)
}
  0xae   :  { %64 = dma.hbm_to_vmem [thread:$0]  %s10229_s2, 16384, %s59_s24, [#allocation6], %s7764_s25, %s7764_s25, %s7765_s28  }
  0xaf   :  { %s7544_s11 = scalar_lea.hbm %s10231_s4, 1024 }
  0xb0   :  { %p7545_p2 = scmp.ne.s32.totalorder %s10231_s4, %s7544_s11  ;;  %p7548_p3 = scmp.lt.u32.totalorder %s7544_s11, %s10231_s4 }
  0xb2   :  { %p7550_p4 = pnand %p7548_p3, %p7545_p2 }
  0xb4   :  { %7553 = shalt.err (!%p7550_p4)
}
  0xb5   :  { %s7554_s18 = scalar_lea.vmem %s8000_s7, 1024  ;;  %p7559_p6 = scmp.lt.s32.totalorder %s8000_s7, %s8000_s7 }
  0xb6   :  { %p7555_p5 = scmp.ne.s32.totalorder %s8000_s7, %s7554_s18  ;;  %p7560_p7 = scmp.lt.s32.totalorder %s7554_s18, %s7554_s18 }
  0xb8   :  { %p7561_p8 = por %p7560_p7, %p7559_p6 }
  0xba   :  { %p7562_p9 = pnand %p7561_p8, %p7555_p5 }
  0xbc   :  { %7565 = shalt.err (!%p7562_p9)
}
  0xbd   :  { %88 = dma.hbm_to_vmem [thread:$0]  %s10231_s4, 1024, %s8000_s7, [#allocation9], %s7768_s23, %s7768_s23, %s7769_s1  }
  0xbe   :  { %s7778_s30 = smov [#allocation13]   ;;  %s7779_s5 = smov [#allocation16]  }
  0xbf   :  { %s107_s19 = sshll.u32 %s7778_s30, 4  ;;  %s126_s27 = sshll.u32 %s7779_s5, 4  ;;  %s108_s19 = int_to_ptr.vmem [resolvable:$true] %s107_s19  ;;  %s8037_s27 = int_to_ptr.vmem [resolvable:$true] %s126_s27 }
  0xc0   :  { %s7566_s13 = scalar_lea.hbm %s10233_s6, 16 }
  0xc1   :  { %p7567_p10 = scmp.ne.s32.totalorder %s10233_s6, %s7566_s13  ;;  %p7570_p11 = scmp.lt.u32.totalorder %s7566_s13, %s10233_s6 }
  0xc3   :  { %p7572_p12 = pnand %p7570_p11, %p7567_p10 }
  0xc5   :  { %7575 = shalt.err (!%p7572_p12)
}
  0xc6   :  { %s7576_s4 = scalar_lea.vmem %s108_s19, 16  ;;  %s7580_s23 = scalar_lea.vmem %s108_s19, 32 }
  0xc7   :  { %p7577_p13 = scmp.ne.s32.totalorder %s108_s19, %s7576_s4  ;;  %p7581_p0 = scmp.lt.s32.totalorder %s108_s19, %s108_s19 }
  0xc8   :  { %p7582_p1 = scmp.lt.s32.totalorder %s7580_s23, %s7576_s4 }
  0xca   :  { %p7583_p2 = por %p7582_p1, %p7581_p0 }
  0xcc   :  { %p7584_p3 = pnand %p7583_p2, %p7577_p13 }
  0xce   :  { %7587 = shalt.err (!%p7584_p3)
}
  0xcf   :  { %110 = dma.hbm_to_vmem [thread:$0]  %s10233_s6, 16, %s108_s19, [#allocation12]  }
  0xd0   :  { %s7588_s18 = scalar_lea.hbm %s10235_s8, 3072 }
  0xd1   :  { %p7589_p4 = scmp.ne.s32.totalorder %s10235_s8, %s7588_s18  ;;  %p7592_p5 = scmp.lt.u32.totalorder %s7588_s18, %s10235_s8 }
  0xd3   :  { %p7594_p6 = pnand %p7592_p5, %p7589_p4 }
  0xd5   :  { %7597 = shalt.err (!%p7594_p6)
}
  0xd6   :  { %s7598_s29 = scalar_lea.vmem %s8037_s27, 3072  ;;  %p7603_p8 = scmp.lt.s32.totalorder %s8037_s27, %s8037_s27 }
  0xd7   :  { %p7599_p7 = scmp.ne.s32.totalorder %s8037_s27, %s7598_s29  ;;  %p7604_p9 = scmp.lt.s32.totalorder %s7598_s29, %s7598_s29 }
  0xd9   :  { %p7605_p10 = por %p7604_p9, %p7603_p8 }
  0xdb   :  { %p7606_p11 = pnand %p7605_p10, %p7599_p7 }
  0xdd   :  { %7609 = shalt.err (!%p7606_p11)
}
  0xde   :  { %132 = dma.hbm_to_vmem [thread:$0]  %s10235_s8, 3072, %s8037_s27, [#allocation15], %s7772_s26, %s7772_s26, %s7773_s22  }
  0xdf   :  { %s7780_s9 = smov [#allocation19]   ;;  %s7781_s20 = smov [#allocation22]  }
  0xe0   :  { %s150_s13 = sshll.u32 %s7780_s9, 4  ;;  %s173_s11 = sshll.u32 %s7781_s20, 4  ;;  %s151_s13 = int_to_ptr.vmem [resolvable:$true] %s150_s13  ;;  %s174_s11 = int_to_ptr.vmem [resolvable:$true] %s173_s11 }
  0xe1   :  { %s7610_s4 = scalar_lea.hbm %s10237_s10, 3072 }
  0xe2   :  { %p7611_p12 = scmp.ne.s32.totalorder %s10237_s10, %s7610_s4  ;;  %p7614_p13 = scmp.lt.u32.totalorder %s7610_s4, %s10237_s10 }
  0xe4   :  { %p7616_p0 = pnand %p7614_p13, %p7611_p12 }
  0xe6   :  { %7619 = shalt.err (!%p7616_p0)
}
  0xe7   :  { %s7620_s8 = scalar_lea.vmem %s151_s13, 3072  ;;  %p7625_p2 = scmp.lt.s32.totalorder %s151_s13, %s151_s13 }
  0xe8   :  { %p7621_p1 = scmp.ne.s32.totalorder %s151_s13, %s7620_s8  ;;  %p7626_p3 = scmp.lt.s32.totalorder %s7620_s8, %s7620_s8 }
  0xea   :  { %p7627_p4 = por %p7626_p3, %p7625_p2 }
  0xec   :  { %p7628_p5 = pnand %p7627_p4, %p7621_p1 }
  0xee   :  { %7631 = shalt.err (!%p7628_p5)
}
  0xef   :  { %156 = dma.hbm_to_vmem [thread:$0]  %s10237_s10, 3072, %s151_s13, [#allocation18], %s7772_s26, %s7772_s26, %s7773_s22  }
  0xf0   :  { %s7632_s24 = scalar_lea.hbm %s10239_s12, 16 }
  0xf1   :  { %p7633_p6 = scmp.ne.s32.totalorder %s10239_s12, %s7632_s24  ;;  %p7636_p7 = scmp.lt.u32.totalorder %s7632_s24, %s10239_s12 }
  0xf3   :  { %p7638_p8 = pnand %p7636_p7, %p7633_p6 }
  0xf5   :  { %7641 = shalt.err (!%p7638_p8)
}
  0xf6   :  { %s7642_s19 = scalar_lea.vmem %s174_s11, 16  ;;  %s7646_s9 = scalar_lea.vmem %s174_s11, 32 }
  0xf7   :  { %p7643_p9 = scmp.ne.s32.totalorder %s174_s11, %s7642_s19  ;;  %p7647_p10 = scmp.lt.s32.totalorder %s174_s11, %s174_s11 }
  0xf8   :  { %p7648_p11 = scmp.lt.s32.totalorder %s7646_s9, %s7642_s19 }
  0xfa   :  { %p7649_p12 = por %p7648_p11, %p7647_p10 }
  0xfc   :  { %p7650_p13 = pnand %p7649_p12, %p7643_p9 }
  0xfe   :  { %7653 = shalt.err (!%p7650_p13)
}
  0xff   :  { %176 = dma.hbm_to_vmem [thread:$0]  %s10239_s12, 16, %s174_s11, [#allocation21]  }
 0x100   :  { %s7782_s22 = smov [#allocation25]   ;;  %s7654_s3 = scalar_lea.hbm %s10241_s14, 16 }
 0x101   :  { %s193_s13 = sshll.u32 %s7782_s22, 4  ;;  %p7655_p0 = scmp.ne.s32.totalorder %s10241_s14, %s7654_s3  ;;  %s194_s13 = int_to_ptr.vmem [resolvable:$true] %s193_s13 }
 0x102   :  { %p7658_p1 = scmp.lt.u32.totalorder %s7654_s3, %s10241_s14 }
 0x104   :  { %p7660_p2 = pnand %p7658_p1, %p7655_p0 }
 0x106   :  { %7663 = shalt.err (!%p7660_p2)
}
 0x107   :  { %s7664_s15 = scalar_lea.vmem %s194_s13, 16  ;;  %s7668_s12 = scalar_lea.vmem %s194_s13, 32 }
 0x108   :  { %p7665_p3 = scmp.ne.s32.totalorder %s194_s13, %s7664_s15  ;;  %p7669_p4 = scmp.lt.s32.totalorder %s194_s13, %s194_s13 }
 0x109   :  { %p7670_p5 = scmp.lt.s32.totalorder %s7668_s12, %s7664_s15 }
 0x10b   :  { %p7671_p6 = por %p7670_p5, %p7669_p4 }
 0x10d   :  { %p7672_p7 = pnand %p7671_p6, %p7665_p3 }
 0x10f   :  { %7675 = shalt.err (!%p7672_p7)
}
 0x110   :  { %196 = dma.hbm_to_vmem [thread:$0]  %s10241_s14, 16, %s194_s13, [#allocation24]  }
 0x111   :  { %7742 = dma.done.wait [#allocation3], 128  }
 0x112   :  { %7743 = vsyncadd [#allocation3], 4294967168 }
 0x113   :  { %7744 = dma.done.wait [#allocation6], 16512  }
 0x114   :  { %7745 = vsyncadd [#allocation6], 4294950784 }
 0x115   :  { %7746 = dma.done.wait [#allocation9], 3072  }
 0x116   :  { %7747 = vsyncadd [#allocation9], 4294964224 }
 0x117   :  { %7748 = dma.done.wait [#allocation12], 2064  }
 0x118   :  { %7749 = vsyncadd [#allocation12], 4294965232 }
 0x119   :  { %7750 = dma.done.wait [#allocation15], 3088  }
 0x11a   :  { %7751 = vsyncadd [#allocation15], 4294964208 }
 0x11b   :  { %7752 = dma.done.wait [#allocation18], 9216  }
 0x11c   :  { %7753 = vsyncadd [#allocation18], 4294958080 }
 0x11d   :  { %7754 = dma.done.wait [#allocation21], 32  }
 0x11e   :  { %7755 = vsyncadd [#allocation21], 4294967264 }
 0x11f   :  { %7756 = dma.done.wait [#allocation24], 32  }
 0x120   :  { %7757 = vsyncadd [#allocation24], 4294967264  ;;  %v10248_v0 = vmov 0.0   ;;  %v10250_v1 = vmov 0   ;;  %vm7785_vm0 = vmmov 0   ;;  %v6633_v2 = vld [vmem:[#allocation10] sm:$0xff]  }
 0x121   :  { %6514 = vmatprep.subr.bf16.mxu0 %v10248_v0  ;;  %6574 = vmatprep.subr.bf16.mxu1 %v10250_v1  ;;  %v6634_v3 = vld [vmem:[#allocation11] sm:$0xff]   ;;  %v6635_v4 = vld [vmem:[#allocation10 + $0x8] sm:$0xff]   ;;  %v6637_v6 = vld [vmem:[#allocation10 + $0x10] sm:$0xff]   ;;  %vm3247_vm1 = vcmask 1041409   ;;  %vm3249_vm2 = vcmask 1042434   ;;  %vm3251_vm3 = vcmask 1043459  }
 0x122   :  { %6530 = vmatprep.mubr.msk.bf16.mxu0 %vm7785_vm0, %v10248_v0  ;;  %6515 = vmatpush3.bf16.msra.mxu0 %v6633_v2  ;;  %v6636_v5 = vld [vmem:[#allocation11 + $0x8] sm:$0xff]   ;;  %v6638_v7 = vld [vmem:[#allocation11 + $0x10] sm:$0xff]   ;;  %v6639_v8 = vld [vmem:[#allocation10 + $0x18] sm:$0xff]   ;;  %vm3253_vm4 = vcmask 1044484   ;;  %vm3255_vm5 = vcmask 1045509   ;;  %vm3257_vm6 = vcmask 1046534  }
 0x123   :  { %6590 = vmatpush1.bf16.msra.mxu1 %v6634_v3  ;;  %6516 = vmatprep.subr.bf16.mxu0 %v10248_v0  ;;  %v6640_v9 = vld [vmem:[#allocation11 + $0x18] sm:$0xff]   ;;  %v6641_v10 = vld [vmem:[#allocation10 + $0x20] sm:$0xff]   ;;  %v6643_v12 = vld [vmem:[#allocation10 + $0x28] sm:$0xff]   ;;  %vm3259_vm7 = vcmask 1047559   ;;  %vm3398_vm11 = vcmask 64512   ;;  %s7786_s14 = smov [#allocation27]  }
 0x124   :  { %6575 = vmatprep.subr.bf16.mxu1 %v10250_v1  ;;  %v6642_v11 = vld [vmem:[#allocation11 + $0x20] sm:$0xff]   ;;  %v6644_v13 = vld [vmem:[#allocation11 + $0x28] sm:$0xff]   ;;  %v6645_v14 = vld [vmem:[#allocation10 + $0x30] sm:$0xff]   ;;  %s6174_s27 = sshll.u32 %s7786_s14, 4  ;;  %s6175_s27 = int_to_ptr.vmem [resolvable:$true] %s6174_s27 }
 0x125   :  { %v6646_v15 = vld [vmem:[#allocation11 + $0x30] sm:$0xff]   ;;  %v8128_v17 = vld [vmem:[#allocation7 + $0x138] sm:$0xff]  ;;  %v8133_v22 = vld [vmem:[#allocation7] sm:$0xff]  ;;  %s7676_s0 = scalar_lea.vmem %s6175_s27, 256  ;;  %p7681_p9 = scmp.lt.s32.totalorder %s6175_s27, %s6175_s27 }
 0x126   :  { %6517 = vmatpush3.bf16.msra.mxu0 %v6635_v4  ;;  %v8126_v16 = vld [vmem:[#allocation7 + $0x130] sm:$0xff]  ;;  %v6647_v19 = vld [vmem:[#allocation10 + $0x38] sm:$0xff]   ;;  %v8135_v23 = vld [vmem:[#allocation7 + $0x8] sm:$0xff]  ;;  %p7677_p8 = scmp.ne.s32.totalorder %s6175_s27, %s7676_s0  ;;  %p7682_p10 = scmp.lt.s32.totalorder %s7676_s0, %s7676_s0 }
 0x127   :  { %6591 = vmatpush1.bf16.msra.mxu1 %v6636_v5  ;;  %6518 = vmatprep.subr.bf16.mxu0 %v10248_v0  ;;  %v6256_v18 = vcombine.high %v8126_v16, %v8128_v17  ;;  %v244_v20 = vld [vmem:[#allocation5] sm:$0xff]  ;;  %v6218_v25 = vcombine.high %v8133_v22, %v8135_v23  ;;  %v6649_v26 = vld [vmem:[#allocation11 + $0x40] sm:$0xff]   ;;  %v6650_v27 = vld [vmem:[#allocation11 + $0x48] sm:$0xff]   ;;  %v6255_v36 = vcombine.low %v8126_v16, %v8128_v17 }
 0x128   :  { %6576 = vmatprep.subr.bf16.mxu1 %v10250_v1  ;;  %v6648_v21 = vld [vmem:[#allocation11 + $0x38] sm:$0xff]   ;;  %v8138_v24 = vpack.c.bf16 %v244_v20, %v244_v20  ;;  %v6651_v28 = vld [vmem:[#allocation11 + $0x50] sm:$0xff]   ;;  %v6653_v30 = vld [vmem:[#allocation11 + $0x60] sm:$0xff]   ;;  %v6217_v54 = vcombine.low %v8133_v22, %v8135_v23  ;;  %p7683_p11 = por %p7682_p10, %p7681_p9 }
 0x129   :  { %1446 = vmatprep.mubr.bf16.mxu1 %v6256_v18  ;;  %v6652_v29 = vld [vmem:[#allocation11 + $0x58] sm:$0xff]   ;;  %v6654_v31 = vld [vmem:[#allocation11 + $0x68] sm:$0xff]   ;;  %v6655_v32 = vld [vmem:[#allocation11 + $0x70] sm:$0xff]  }
 0x12a   :  { %6519 = vmatpush3.bf16.msra.mxu0 %v6637_v6  ;;  %10261 = vst [vmem:[#allocation40_spill] sm:$0xff] %v8138_v24  ;;  %v6656_v33 = vld [vmem:[#allocation11 + $0x78] sm:$0xff]   ;;  %v285_v34 = vld [vmem:[#allocation7 + $0x140] sm:$0xff]  ;;  %v286_v35 = vld [vmem:[#allocation7 + $0x148] sm:$0xff]  ;;  %p7684_p12 = pnand %p7683_p11, %p7677_p8 }
 0x12b   :  { %6592 = vmatpush1.bf16.msra.mxu1 %v6638_v7  ;;  %6520 = vmatprep.subr.bf16.mxu0 %v10248_v0  ;;  %v6258_v37 = vcombine.high %v285_v34, %v286_v35  ;;  %v287_v38 = vld [vmem:[#allocation7 + $0x150] sm:$0xff]  ;;  %v288_v39 = vld [vmem:[#allocation7 + $0x158] sm:$0xff]  ;;  %v6257_v40 = vcombine.low %v285_v34, %v286_v35  ;;  %v289_v42 = vld [vmem:[#allocation7 + $0x160] sm:$0xff] }
 0x12c   :  { %6577 = vmatprep.subr.bf16.mxu1 %v10250_v1  ;;  %v6260_v41 = vcombine.high %v287_v38, %v288_v39  ;;  %v290_v43 = vld [vmem:[#allocation7 + $0x168] sm:$0xff]  ;;  %v6259_v44 = vcombine.low %v287_v38, %v288_v39  ;;  %v291_v46 = vld [vmem:[#allocation7 + $0x170] sm:$0xff]  ;;  %v292_v47 = vld [vmem:[#allocation7 + $0x178] sm:$0xff] }
 0x12d   :  { %v6262_v45 = vcombine.high %v289_v42, %v290_v43  ;;  %v6261_v48 = vcombine.low %v289_v42, %v290_v43  ;;  %v6264_v49 = vcombine.high %v291_v46, %v292_v47  ;;  %v247_v50 = vld [vmem:[#allocation7 + $0x10] sm:$0xff]  ;;  %v248_v51 = vld [vmem:[#allocation7 + $0x18] sm:$0xff]  ;;  %v293_v52 = vld [vmem:[#allocation7 + $0x180] sm:$0xff]  ;;  %v6263_v55 = vcombine.low %v291_v46, %v292_v47 }
 0x12e   :  { %6521 = vmatpush3.bf16.msra.mxu0 %v6639_v8  ;;  %v294_v53 = vld [vmem:[#allocation7 + $0x188] sm:$0xff]  ;;  %v6220_v56 = vcombine.high %v247_v50, %v248_v51  ;;  %v249_v58 = vld [vmem:[#allocation7 + $0x20] sm:$0xff]  ;;  %v295_v60 = vld [vmem:[#allocation7 + $0x190] sm:$0xff]  ;;  %v6219_v62 = vcombine.low %v247_v50, %v248_v51 }
 0x12f   :  { %6593 = vmatpush1.bf16.msra.mxu1 %v6640_v9  ;;  %6522 = vmatprep.subr.bf16.mxu0 %v10248_v0  ;;  %v6266_v57 = vcombine.high %v293_v52, %v294_v53  ;;  %v250_v59 = vld [vmem:[#allocation7 + $0x28] sm:$0xff]  ;;  %v296_v61 = vld [vmem:[#allocation7 + $0x198] sm:$0xff]  ;;  %v6265_v63 = vcombine.low %v293_v52, %v294_v53  ;;  %v251_v4 = vld [vmem:[#allocation7 + $0x30] sm:$0xff] }
 0x130   :  { %6578 = vmatprep.subr.bf16.mxu1 %v10250_v1  ;;  %v6222_v2 = vcombine.high %v249_v58, %v250_v59  ;;  %v297_v6 = vld [vmem:[#allocation7 + $0x1a0] sm:$0xff]  ;;  %v6221_v8 = vcombine.low %v249_v58, %v250_v59  ;;  %v255_v20 = vld [vmem:[#allocation7 + $0x50] sm:$0xff]  ;;  %v302_v23 = vld [vmem:[#allocation7 + $0x1c8] sm:$0xff] }
 0x131   :  { %v301_v22 = vld [vmem:[#allocation7 + $0x1c0] sm:$0xff]  ;;  %v260_v38 = vld [vmem:[#allocation7 + $0x78] sm:$0xff]  ;;  %v262_v46 = vld [vmem:[#allocation7 + $0x88] sm:$0xff] }
 0x132   :  { %6523 = vmatpush3.bf16.msra.mxu0 %v6641_v10  ;;  %v6273_v34 = vcombine.low %v301_v22, %v302_v23  ;;  %v305_v39 = vld [vmem:[#allocation7 + $0x1e0] sm:$0xff]  ;;  %v307_v47 = vld [vmem:[#allocation7 + $0x1f0] sm:$0xff] }
 0x133   :  { %6594 = vmatpush1.bf16.msra.mxu1 %v6642_v11  ;;  %6524 = vmatprep.subr.bf16.mxu0 %v10248_v0  ;;  %v263_v53 = vld [vmem:[#allocation7 + $0x90] sm:$0xff] }
 0x134   :  { %6579 = vmatprep.subr.bf16.mxu1 %v10250_v1 }
 0x136   :  { %6525 = vmatpush3.bf16.msra.mxu0 %v6643_v12  ;;  %v253_v12 = vld [vmem:[#allocation7 + $0x40] sm:$0xff] }
 0x137   :  { %6595 = vmatpush1.bf16.msra.mxu1 %v6644_v13  ;;  %6526 = vmatprep.subr.bf16.mxu0 %v10248_v0 }
 0x138   :  { %6580 = vmatprep.subr.bf16.mxu1 %v10250_v1 }
 0x13a   :  { %6527 = vmatpush3.bf16.msra.mxu0 %v6645_v14  ;;  %v299_v14 = vld [vmem:[#allocation7 + $0x1b0] sm:$0xff] }
 0x13b   :  { %6596 = vmatpush1.bf16.msra.mxu1 %v6646_v15  ;;  %6528 = vmatprep.subr.bf16.mxu0 %v10248_v0 }
 0x13c   :  { %6581 = vmatprep.subr.bf16.mxu1 %v10250_v1 }
 0x13e   :  { %6529 = vmatpush3.bf16.msra.mxu0 %v6647_v19 }
 0x13f   :  { %6597 = vmatpush1.bf16.msra.mxu1 %v6648_v21  ;;  %1262 = vmatprep.subr.bf16.mxu0 %v10250_v1 }
 0x140   :  { %6582 = vmatprep.subr.bf16.mxu1 %v10250_v1 }
 0x141   :  { %6531 = vmatmul.mubr.bf16.vlgmr.msra.gmra.mrb[0].mxu0 %v8138_v24 }
 0x142   :  { %1263 = vmatpush1.bf16.msra.mxu0 %v6634_v3  ;;  %1294 = vmatprep.mubr.bf16.mxu0 %v6218_v25  ;;  %v6268_v3 = vcombine.high %v295_v60, %v296_v61 }
 0x143   :  { %6598 = vmatpush1.bf16.msra.mxu1 %v6649_v26  ;;  %1264 = vmatprep.subr.bf16.mxu0 %v10250_v1 }
 0x144   :  { %6583 = vmatprep.subr.bf16.mxu1 %v10250_v1 }
 0x146   :  { %1265 = vmatpush1.bf16.msra.mxu0 %v6636_v5  ;;  %v252_v5 = vld [vmem:[#allocation7 + $0x38] sm:$0xff] }
 0x147   :  { %6599 = vmatpush1.bf16.msra.mxu1 %v6650_v27  ;;  %1266 = vmatprep.subr.bf16.mxu0 %v10250_v1  ;;  %v6224_v10 = vcombine.high %v251_v4, %v252_v5  ;;  %v6223_v16 = vcombine.low %v251_v4, %v252_v5 }
 0x148   :  { %6584 = vmatprep.subr.bf16.mxu1 %v10250_v1 }
 0x14a   :  { %1267 = vmatpush1.bf16.msra.mxu0 %v6638_v7  ;;  %v298_v7 = vld [vmem:[#allocation7 + $0x1a8] sm:$0xff] }
 0x14b   :  { %6600 = vmatpush1.bf16.msra.mxu1 %v6651_v28  ;;  %1268 = vmatprep.subr.bf16.mxu0 %v10250_v1  ;;  %v6269_v17 = vcombine.low %v297_v6, %v298_v7 }
 0x14c   :  { %6585 = vmatprep.subr.bf16.mxu1 %v10250_v1 }
 0x14e   :  { %1269 = vmatpush1.bf16.msra.mxu0 %v6640_v9  ;;  %v6267_v9 = vcombine.low %v295_v60, %v296_v61  ;;  %v265_v61 = vld [vmem:[#allocation7 + $0xa0] sm:$0xff] }
 0x14f   :  { %6601 = vmatpush1.bf16.msra.mxu1 %v6652_v29  ;;  %1270 = vmatprep.subr.bf16.mxu0 %v10250_v1 }
 0x150   :  { %6586 = vmatprep.subr.bf16.mxu1 %v10250_v1 }
 0x152   :  { %1271 = vmatpush1.bf16.msra.mxu0 %v6642_v11  ;;  %v6270_v11 = vcombine.high %v297_v6, %v298_v7  ;;  %v267_v7 = vld [vmem:[#allocation7 + $0xb0] sm:$0xff] }
 0x153   :  { %6602 = vmatpush1.bf16.msra.mxu1 %v6653_v30  ;;  %1272 = vmatprep.subr.bf16.mxu0 %v10250_v1 }
 0x154   :  { %6587 = vmatprep.subr.bf16.mxu1 %v10250_v1 }
 0x156   :  { %1273 = vmatpush1.bf16.msra.mxu0 %v6644_v13  ;;  %v254_v13 = vld [vmem:[#allocation7 + $0x48] sm:$0xff] }
 0x157   :  { %6603 = vmatpush1.bf16.msra.mxu1 %v6654_v31  ;;  %1274 = vmatprep.subr.bf16.mxu0 %v10250_v1  ;;  %v6226_v18 = vcombine.high %v253_v12, %v254_v13  ;;  %v6225_v25 = vcombine.low %v253_v12, %v254_v13 }
 0x158   :  { %6588 = vmatprep.subr.bf16.mxu1 %v10250_v1 }
 0x15a   :  { %1275 = vmatpush1.bf16.msra.mxu0 %v6646_v15  ;;  %v300_v15 = vld [vmem:[#allocation7 + $0x1b8] sm:$0xff] }
 0x15b   :  { %6604 = vmatpush1.bf16.msra.mxu1 %v6655_v32  ;;  %1276 = vmatprep.subr.bf16.mxu0 %v10250_v1  ;;  %v6272_v19 = vcombine.high %v299_v14, %v300_v15 }
 0x15c   :  { %6589 = vmatprep.subr.bf16.mxu1 %v10250_v1 }
 0x15e   :  { %1277 = vmatpush1.bf16.msra.mxu0 %v6648_v21  ;;  %v256_v21 = vld [vmem:[#allocation7 + $0x58] sm:$0xff] }
 0x15f   :  { %6605 = vmatpush1.bf16.msra.mxu1 %v6656_v33  ;;  %1278 = vmatprep.subr.bf16.mxu0 %v10250_v1 }
 0x162   :  { %1447 = vmatmul.mubr.bf16.vlgmr.msra.gmra.mrb[0].mxu1 %v6255_v36  ;;  %1279 = vmatpush1.bf16.msra.mxu0 %v6649_v26  ;;  %v6271_v26 = vcombine.low %v299_v14, %v300_v15  ;;  %v269_v15 = vld [vmem:[#allocation7 + $0xc0] sm:$0xff] }
 0x163   :  { %1280 = vmatprep.subr.bf16.mxu0 %v10250_v1  ;;  %1454 = vmatprep.mubr.bf16.mxu1 %v6258_v37  ;;  %v259_v37 = vld [vmem:[#allocation7 + $0x70] sm:$0xff] }
 0x164   :  { %v6232_v43 = vcombine.high %v259_v37, %v260_v38 }
 0x166   :  { %1281 = vmatpush1.bf16.msra.mxu0 %v6650_v27  ;;  %v6228_v27 = vcombine.high %v255_v20, %v256_v21 }
 0x167   :  { %1282 = vmatprep.subr.bf16.mxu0 %v10250_v1 }
 0x16a   :  { %1455 = vmatmul.mubr.bf16.gmra.mrb[4].mxu1 %v6257_v40  ;;  %1283 = vmatpush1.bf16.msra.mxu0 %v6651_v28  ;;  %v6274_v28 = vcombine.high %v301_v22, %v302_v23  ;;  %v306_v40 = vld [vmem:[#allocation7 + $0x1e8] sm:$0xff]  ;;  %v271_v23 = vld [vmem:[#allocation7 + $0xd0] sm:$0xff] }
 0x16b   :  { %1284 = vmatprep.subr.bf16.mxu0 %v10250_v1  ;;  %1462 = vmatprep.mubr.bf16.mxu1 %v6260_v41  ;;  %v6277_v50 = vcombine.low %v305_v39, %v306_v40 }
 0x16e   :  { %1285 = vmatpush1.bf16.msra.mxu0 %v6652_v29  ;;  %v257_v29 = vld [vmem:[#allocation7 + $0x60] sm:$0xff] }
 0x16f   :  { %1286 = vmatprep.subr.bf16.mxu0 %v10250_v1 }
 0x172   :  { %1463 = vmatmul.mubr.bf16.gmra.mrb[8].mxu1 %v6259_v44  ;;  %1287 = vmatpush1.bf16.msra.mxu0 %v6653_v30  ;;  %v258_v30 = vld [vmem:[#allocation7 + $0x68] sm:$0xff]  ;;  %v6278_v44 = vcombine.high %v305_v39, %v306_v40  ;;  %v275_v40 = vld [vmem:[#allocation7 + $0xf0] sm:$0xff] }
 0x173   :  { %1288 = vmatprep.subr.bf16.mxu0 %v10250_v1  ;;  %1470 = vmatprep.mubr.bf16.mxu1 %v6262_v45  ;;  %v6230_v35 = vcombine.high %v257_v29, %v258_v30  ;;  %v6229_v41 = vcombine.low %v257_v29, %v258_v30  ;;  %v261_v45 = vld [vmem:[#allocation7 + $0x80] sm:$0xff] }
 0x174   :  { %v6234_v51 = vcombine.high %v261_v45, %v262_v46 }
 0x176   :  { %1289 = vmatpush1.bf16.msra.mxu0 %v6654_v31  ;;  %v303_v31 = vld [vmem:[#allocation7 + $0x1d0] sm:$0xff] }
 0x177   :  { %1290 = vmatprep.subr.bf16.mxu0 %v10250_v1 }
 0x17a   :  { %1471 = vmatmul.mubr.bf16.gmra.mrb[12].mxu1 %v6261_v48  ;;  %1291 = vmatpush1.bf16.msra.mxu0 %v6655_v32  ;;  %v304_v32 = vld [vmem:[#allocation7 + $0x1d8] sm:$0xff] }
 0x17b   :  { %1292 = vmatprep.subr.bf16.mxu0 %v10250_v1  ;;  %1478 = vmatprep.mubr.bf16.mxu1 %v6264_v49  ;;  %v6276_v36 = vcombine.high %v303_v31, %v304_v32  ;;  %v6275_v42 = vcombine.low %v303_v31, %v304_v32  ;;  %v308_v48 = vld [vmem:[#allocation7 + $0x1f8] sm:$0xff]  ;;  %v6231_v49 = vcombine.low %v259_v37, %v260_v38  ;;  %v273_v32 = vld [vmem:[#allocation7 + $0xe0] sm:$0xff] }
 0x17c   :  { %v6280_v52 = vcombine.high %v307_v47, %v308_v48  ;;  %v6279_v58 = vcombine.low %v307_v47, %v308_v48  ;;  %v277_v48 = vld [vmem:[#allocation7 + $0x100] sm:$0xff] }
 0x17e   :  { %1293 = vmatpush1.bf16.msra.mxu0 %v6656_v33  ;;  %v6227_v33 = vcombine.low %v255_v20, %v256_v21 }
 0x181   :  { %1295 = vmatmul.mubr.bf16.vlgmr.msra.gmra.mrb[4].mxu0 %v6217_v54  ;;  %v264_v54 = vld [vmem:[#allocation7 + $0x98] sm:$0xff] }
 0x182   :  { %1479 = vmatmul.mubr.bf16.gmra.mrb[16].mxu1 %v6263_v55  ;;  %1302 = vmatprep.mubr.bf16.mxu0 %v6220_v56  ;;  %v309_v55 = vld [vmem:[#allocation7 + $0x200] sm:$0xff]  ;;  %v310_v56 = vld [vmem:[#allocation7 + $0x208] sm:$0xff]  ;;  %v6236_v59 = vcombine.high %v263_v53, %v264_v54 }
 0x183   :  { %1486 = vmatprep.mubr.bf16.mxu1 %v6266_v57  ;;  %v6233_v57 = vcombine.low %v261_v45, %v262_v46  ;;  %v6282_v60 = vcombine.high %v309_v55, %v310_v56  ;;  %v6281_v4 = vcombine.low %v309_v55, %v310_v56  ;;  %v279_v56 = vld [vmem:[#allocation7 + $0x110] sm:$0xff] }
 0x189   :  { %1303 = vmatmul.mubr.bf16.gmra.mrb[8].mxu0 %v6219_v62  ;;  %v266_v62 = vld [vmem:[#allocation7 + $0xa8] sm:$0xff] }
 0x18a   :  { %1487 = vmatmul.mubr.bf16.gmra.mrb[20].mxu1 %v6265_v63  ;;  %1310 = vmatprep.mubr.bf16.mxu0 %v6222_v2  ;;  %v311_v63 = vld [vmem:[#allocation7 + $0x210] sm:$0xff]  ;;  %v312_v2 = vld [vmem:[#allocation7 + $0x218] sm:$0xff]  ;;  %v6238_v5 = vcombine.high %v265_v61, %v266_v62 }
 0x18b   :  { %1494 = vmatprep.mubr.bf16.mxu1 %v6268_v3  ;;  %v6235_v3 = vcombine.low %v263_v53, %v264_v54  ;;  %v6284_v6 = vcombine.high %v311_v63, %v312_v2  ;;  %v6283_v12 = vcombine.low %v311_v63, %v312_v2  ;;  %v281_v2 = vld [vmem:[#allocation7 + $0x120] sm:$0xff] }
 0x191   :  { %1311 = vmatmul.mubr.bf16.gmra.mrb[12].mxu0 %v6221_v8  ;;  %v268_v8 = vld [vmem:[#allocation7 + $0xb8] sm:$0xff] }
 0x192   :  { %1495 = vmatmul.mubr.bf16.gmra.mrb[24].mxu1 %v6267_v9  ;;  %1318 = vmatprep.mubr.bf16.mxu0 %v6224_v10  ;;  %v313_v9 = vld [vmem:[#allocation7 + $0x220] sm:$0xff]  ;;  %v314_v10 = vld [vmem:[#allocation7 + $0x228] sm:$0xff]  ;;  %v6240_v13 = vcombine.high %v267_v7, %v268_v8 }
 0x193   :  { %1502 = vmatprep.mubr.bf16.mxu1 %v6270_v11  ;;  %v6237_v11 = vcombine.low %v265_v61, %v266_v62  ;;  %v6286_v14 = vcombine.high %v313_v9, %v314_v10  ;;  %v6285_v20 = vcombine.low %v313_v9, %v314_v10  ;;  %v329_v10 = vld [vmem:[#allocation7 + $0x2a0] sm:$0xff] }
 0x199   :  { %1319 = vmatmul.mubr.bf16.gmra.mrb[16].mxu0 %v6223_v16  ;;  %v270_v16 = vld [vmem:[#allocation7 + $0xc8] sm:$0xff] }
 0x19a   :  { %1503 = vmatmul.mubr.bf16.gmra.mrb[28].mxu1 %v6269_v17  ;;  %1326 = vmatprep.mubr.bf16.mxu0 %v6226_v18  ;;  %v315_v17 = vld [vmem:[#allocation7 + $0x230] sm:$0xff]  ;;  %v316_v18 = vld [vmem:[#allocation7 + $0x238] sm:$0xff]  ;;  %v6242_v21 = vcombine.high %v269_v15, %v270_v16 }
 0x19b   :  { %1510 = vmatprep.mubr.bf16.mxu1 %v6272_v19  ;;  %v6239_v19 = vcombine.low %v267_v7, %v268_v8  ;;  %v6288_v22 = vcombine.high %v315_v17, %v316_v18  ;;  %v6287_v29 = vcombine.low %v315_v17, %v316_v18 }
 0x1a1   :  { %1327 = vmatmul.mubr.bf16.gmra.mrb[20].mxu0 %v6225_v25  ;;  %v272_v25 = vld [vmem:[#allocation7 + $0xd8] sm:$0xff] }
 0x1a2   :  { %1511 = vmatmul.mubr.bf16.gmra.mrb[32].mxu1 %v6271_v26  ;;  %1334 = vmatprep.mubr.bf16.mxu0 %v6228_v27  ;;  %v317_v26 = vld [vmem:[#allocation7 + $0x240] sm:$0xff]  ;;  %v318_v27 = vld [vmem:[#allocation7 + $0x248] sm:$0xff]  ;;  %v6244_v30 = vcombine.high %v271_v23, %v272_v25 }
 0x1a3   :  { %1518 = vmatprep.mubr.bf16.mxu1 %v6274_v28  ;;  %v6241_v28 = vcombine.low %v269_v15, %v270_v16  ;;  %v6290_v31 = vcombine.high %v317_v26, %v318_v27  ;;  %v6289_v37 = vcombine.low %v317_v26, %v318_v27  ;;  %v331_v15 = vld [vmem:[#allocation7 + $0x2b0] sm:$0xff]  ;;  %v332_v16 = vld [vmem:[#allocation7 + $0x2b8] sm:$0xff] }
 0x1a4   :  { %v6303_v26 = vcombine.low %v331_v15, %v332_v16 }
 0x1a9   :  { %1335 = vmatmul.mubr.bf16.gmra.mrb[24].mxu0 %v6227_v33  ;;  %v274_v33 = vld [vmem:[#allocation7 + $0xe8] sm:$0xff] }
 0x1aa   :  { %1519 = vmatmul.mubr.bf16.gmra.mrb[36].mxu1 %v6273_v34  ;;  %1342 = vmatprep.mubr.bf16.mxu0 %v6230_v35  ;;  %v319_v34 = vld [vmem:[#allocation7 + $0x250] sm:$0xff]  ;;  %v320_v35 = vld [vmem:[#allocation7 + $0x258] sm:$0xff]  ;;  %v6246_v38 = vcombine.high %v273_v32, %v274_v33 }
 0x1ab   :  { %1526 = vmatprep.mubr.bf16.mxu1 %v6276_v36  ;;  %v6243_v36 = vcombine.low %v271_v23, %v272_v25  ;;  %v6292_v39 = vcombine.high %v319_v34, %v320_v35  ;;  %v6291_v45 = vcombine.low %v319_v34, %v320_v35  ;;  %v333_v23 = vld [vmem:[#allocation7 + $0x2c0] sm:$0xff]  ;;  %v334_v25 = vld [vmem:[#allocation7 + $0x2c8] sm:$0xff] }
 0x1ac   :  { %v6306_v27 = vcombine.high %v333_v23, %v334_v25 }
 0x1b1   :  { %1343 = vmatmul.mubr.bf16.gmra.mrb[28].mxu0 %v6229_v41  ;;  %v276_v41 = vld [vmem:[#allocation7 + $0xf8] sm:$0xff] }
 0x1b2   :  { %1527 = vmatmul.mubr.bf16.gmra.mrb[40].mxu1 %v6275_v42  ;;  %1350 = vmatprep.mubr.bf16.mxu0 %v6232_v43  ;;  %v321_v42 = vld [vmem:[#allocation7 + $0x260] sm:$0xff]  ;;  %v322_v43 = vld [vmem:[#allocation7 + $0x268] sm:$0xff]  ;;  %v6248_v46 = vcombine.high %v275_v40, %v276_v41 }
 0x1b3   :  { %1534 = vmatprep.mubr.bf16.mxu1 %v6278_v44  ;;  %v6245_v44 = vcombine.low %v273_v32, %v274_v33  ;;  %v6294_v47 = vcombine.high %v321_v42, %v322_v43  ;;  %v6293_v53 = vcombine.low %v321_v42, %v322_v43  ;;  %v337_v32 = vld [vmem:[#allocation7 + $0x2e0] sm:$0xff]  ;;  %v338_v33 = vld [vmem:[#allocation7 + $0x2e8] sm:$0xff] }
 0x1b4   :  { %v6310_v35 = vcombine.high %v337_v32, %v338_v33  ;;  %v6309_v42 = vcombine.low %v337_v32, %v338_v33 }
 0x1b9   :  { %1351 = vmatmul.mubr.bf16.gmra.mrb[32].mxu0 %v6231_v49  ;;  %v278_v49 = vld [vmem:[#allocation7 + $0x108] sm:$0xff] }
 0x1ba   :  { %1535 = vmatmul.mubr.bf16.gmra.mrb[44].mxu1 %v6277_v50  ;;  %1358 = vmatprep.mubr.bf16.mxu0 %v6234_v51  ;;  %v323_v50 = vld [vmem:[#allocation7 + $0x270] sm:$0xff]  ;;  %v324_v51 = vld [vmem:[#allocation7 + $0x278] sm:$0xff]  ;;  %v6250_v54 = vcombine.high %v277_v48, %v278_v49 }
 0x1bb   :  { %1542 = vmatprep.mubr.bf16.mxu1 %v6280_v52  ;;  %v6247_v52 = vcombine.low %v275_v40, %v276_v41  ;;  %v6296_v55 = vcombine.high %v323_v50, %v324_v51  ;;  %v6295_v61 = vcombine.low %v323_v50, %v324_v51  ;;  %v342_v50 = vld [vmem:[#allocation7 + $0x308] sm:$0xff] }
 0x1c1   :  { %1359 = vmatmul.mubr.bf16.gmra.mrb[36].mxu0 %v6233_v57  ;;  %v280_v57 = vld [vmem:[#allocation7 + $0x118] sm:$0xff] }
 0x1c2   :  { %1543 = vmatmul.mubr.bf16.gmra.mrb[48].mxu1 %v6279_v58  ;;  %1366 = vmatprep.mubr.bf16.mxu0 %v6236_v59  ;;  %v325_v58 = vld [vmem:[#allocation7 + $0x280] sm:$0xff]  ;;  %v326_v59 = vld [vmem:[#allocation7 + $0x288] sm:$0xff]  ;;  %v6252_v62 = vcombine.high %v279_v56, %v280_v57 }
 0x1c3   :  { %1550 = vmatprep.mubr.bf16.mxu1 %v6282_v60  ;;  %v6249_v60 = vcombine.low %v277_v48, %v278_v49  ;;  %v6298_v63 = vcombine.high %v325_v58, %v326_v59  ;;  %v6297_v7 = vcombine.low %v325_v58, %v326_v59  ;;  %v341_v49 = vld [vmem:[#allocation7 + $0x300] sm:$0xff] }
 0x1c9   :  { %1367 = vmatmul.mubr.bf16.gmra.mrb[40].mxu0 %v6235_v3  ;;  %v282_v3 = vld [vmem:[#allocation7 + $0x128] sm:$0xff] }
 0x1ca   :  { %1551 = vmatmul.mubr.bf16.gmra.mrb[52].mxu1 %v6281_v4  ;;  %1374 = vmatprep.mubr.bf16.mxu0 %v6238_v5  ;;  %v327_v4 = vld [vmem:[#allocation7 + $0x290] sm:$0xff]  ;;  %v328_v5 = vld [vmem:[#allocation7 + $0x298] sm:$0xff]  ;;  %v6254_v8 = vcombine.high %v281_v2, %v282_v3 }
 0x1cb   :  { %1558 = vmatprep.mubr.bf16.mxu1 %v6284_v6  ;;  %v6251_v6 = vcombine.low %v279_v56, %v280_v57  ;;  %v6300_v9 = vcombine.high %v327_v4, %v328_v5  ;;  %v6314_v56 = vcombine.high %v341_v49, %v342_v50 }
 0x1d1   :  { %1375 = vmatmul.mubr.bf16.gmra.mrb[44].mxu0 %v6237_v11  ;;  %v330_v11 = vld [vmem:[#allocation7 + $0x2a8] sm:$0xff] }
 0x1d2   :  { %1559 = vmatmul.mubr.bf16.gmra.mrb[56].mxu1 %v6283_v12  ;;  %1382 = vmatprep.mubr.bf16.mxu0 %v6240_v13  ;;  %v6253_v12 = vcombine.low %v281_v2, %v282_v3  ;;  %v6299_v13 = vcombine.low %v327_v4, %v328_v5  ;;  %v344_v2 = vld [vmem:[#allocation7 + $0x318] sm:$0xff] }
 0x1d3   :  { %1566 = vmatprep.mubr.bf16.mxu1 %v6286_v14  ;;  %v6302_v14 = vcombine.high %v329_v10, %v330_v11 }
 0x1d9   :  { %1383 = vmatmul.mubr.bf16.gmra.mrb[48].mxu0 %v6239_v19  ;;  %v6301_v19 = vcombine.low %v329_v10, %v330_v11 }
 0x1da   :  { %1567 = vmatmul.mubr.bf16.gmra.mrb[60].mxu1 %v6285_v20  ;;  %1390 = vmatprep.mubr.bf16.mxu0 %v6242_v21  ;;  %v6304_v21 = vcombine.high %v331_v15, %v332_v16 }
 0x1db   :  { %1574 = vmatprep.mubr.bf16.mxu1 %v6288_v22 }
 0x1e1   :  { %1391 = vmatmul.mubr.bf16.gmra.mrb[52].mxu0 %v6241_v28  ;;  %v335_v28 = vld [vmem:[#allocation7 + $0x2d0] sm:$0xff] }
 0x1e2   :  { %1575 = vmatmul.mubr.bf16.gmra.mrb[64].mxu1 %v6287_v29  ;;  %1398 = vmatprep.mubr.bf16.mxu0 %v6244_v30  ;;  %v336_v29 = vld [vmem:[#allocation7 + $0x2d8] sm:$0xff]  ;;  %v6305_v30 = vcombine.low %v333_v23, %v334_v25 }
 0x1e3   :  { %1582 = vmatprep.mubr.bf16.mxu1 %v6290_v31  ;;  %v6308_v31 = vcombine.high %v335_v28, %v336_v29  ;;  %v6307_v34 = vcombine.low %v335_v28, %v336_v29 }
 0x1e9   :  { %1399 = vmatmul.mubr.bf16.gmra.mrb[56].mxu0 %v6243_v36  ;;  %v339_v36 = vld [vmem:[#allocation7 + $0x2f0] sm:$0xff] }
 0x1ea   :  { %1583 = vmatmul.mubr.bf16.gmra.mrb[68].mxu1 %v6289_v37  ;;  %1406 = vmatprep.mubr.bf16.mxu0 %v6246_v38  ;;  %v340_v37 = vld [vmem:[#allocation7 + $0x2f8] sm:$0xff] }
 0x1eb   :  { %1590 = vmatprep.mubr.bf16.mxu1 %v6292_v39  ;;  %v8173_v39 = vld [vmem:[#allocation13] ss:$0 sm:$0xff] }
 0x1f1   :  { %1407 = vmatmul.mubr.bf16.gmra.mrb[60].mxu0 %v6245_v44  ;;  %v6312_v44 = vcombine.high %v339_v36, %v340_v37 }
 0x1f2   :  { %1591 = vmatmul.mubr.bf16.gmra.mrb[72].mxu1 %v6291_v45  ;;  %1414 = vmatprep.mubr.bf16.mxu0 %v6248_v46 }
 0x1f3   :  { %1598 = vmatprep.mubr.bf16.mxu1 %v6294_v47 }
 0x1f9   :  { %1415 = vmatmul.mubr.bf16.gmra.mrb[64].mxu0 %v6247_v52 }
 0x1fa   :  { %1599 = vmatmul.mubr.bf16.gmra.mrb[76].mxu1 %v6293_v53  ;;  %1422 = vmatprep.mubr.bf16.mxu0 %v6250_v54  ;;  %v6311_v54 = vcombine.low %v339_v36, %v340_v37  ;;  %v347_v36 = vld [vmem:[#allocation7 + $0x330] sm:$0xff]  ;;  %v348_v37 = vld [vmem:[#allocation7 + $0x338] sm:$0xff] }
 0x1fb   :  { %1606 = vmatprep.mubr.bf16.mxu1 %v6296_v55 }
 0x201   :  { %1423 = vmatmul.mubr.bf16.gmra.mrb[68].mxu0 %v6249_v60 }
 0x202   :  { %1607 = vmatmul.mubr.bf16.gmra.mrb[80].mxu1 %v6295_v61  ;;  %1430 = vmatprep.mubr.bf16.mxu0 %v6252_v62  ;;  %v8183_v61 = vld [vmem:[#allocation14] ss:$0 sm:$0xff] }
 0x203   :  { %1614 = vmatprep.mubr.bf16.mxu1 %v6298_v63  ;;  %v343_v63 = vld [vmem:[#allocation7 + $0x310] sm:$0xff] }
 0x204   :  { %v6316_v10 = vcombine.high %v343_v63, %v344_v2 }
 0x209   :  { %1431 = vmatmul.mubr.bf16.gmra.mrb[72].mxu0 %v6251_v6 }
 0x20a   :  { %1615 = vmatmul.mubr.bf16.gmra.mrb[84].mxu1 %v6297_v7  ;;  %1438 = vmatprep.mubr.bf16.mxu0 %v6254_v8  ;;  %v6313_v8 = vcombine.low %v341_v49, %v342_v50 }
 0x20b   :  { %1622 = vmatprep.mubr.bf16.mxu1 %v6300_v9 }
 0x211   :  { %1439 = vmatmul.mubr.bf16.gmra.mrb[76].mxu0 %v6253_v12 }
 0x212   :  { %1623 = vmatmul.mubr.bf16.gmra.mrb[88].mxu1 %v6299_v13 }
 0x213   :  { %1630 = vmatprep.mubr.bf16.mxu1 %v6302_v14 }
 0x214   :  { %v8171_v17 = vpop.f32.mrb[0].mxu0 }
 0x215   :  { %v6532_v18 = vpop.f32.mrb[1].mxu0 }
 0x216   :  { %v491_v20 = vpop.f32.mrb[2].mxu0  ;;  %v345_v18 = vld [vmem:[#allocation7 + $0x320] sm:$0xff] }
 0x217   :  { %v6533_v22 = vpop.f32.mrb[3].mxu0 }
 0x21a   :  { %1631 = vmatmul.mubr.bf16.gmra.mrb[92].mxu1 %v6301_v19  ;;  %v346_v19 = vld [vmem:[#allocation7 + $0x328] sm:$0xff] }
 0x21b   :  { %1638 = vmatprep.mubr.bf16.mxu1 %v6304_v21  ;;  %v6318_v29 = vcombine.high %v345_v18, %v346_v19 }
 0x222   :  { %1639 = vmatmul.mubr.bf16.gmra.mrb[96].mxu1 %v6303_v26  ;;  %v6315_v26 = vcombine.low %v343_v63, %v344_v2  ;;  %v350_v63 = vld [vmem:[#allocation7 + $0x348] sm:$0xff] }
 0x223   :  { %1646 = vmatprep.mubr.bf16.mxu1 %v6306_v27 }
 0x22a   :  { %1647 = vmatmul.mubr.bf16.gmra.mrb[100].mxu1 %v6305_v30 }
 0x22b   :  { %1654 = vmatprep.mubr.bf16.mxu1 %v6308_v31 }
 0x232   :  { %1655 = vmatmul.mubr.bf16.gmra.mrb[104].mxu1 %v6307_v34 }
 0x233   :  { %1662 = vmatprep.mubr.bf16.mxu1 %v6310_v35 }
 0x235   :  { %v1448_v38 = vpop.f32.mrb[0].mxu1 }
 0x236   :  { %v1845_v40 = vadd.f32 %v1448_v38, %v8171_v17  ;;  %v1450_v41 = vpop.f32.mrb[1].mxu1 }
 0x237   :  { %v1451_v43 = vpop.f32.mrb[2].mxu1 }
 0x238   :  { %v1980_v45 = vadd.f32 %v8173_v39, %v1845_v40  ;;  %v1846_v46 = vadd.f32 %v1451_v43, %v8171_v17  ;;  %v1453_v47 = vpop.f32.mrb[3].mxu1 }
 0x239   :  { %v6317_v47 = vcombine.low %v345_v18, %v346_v19 }
 0x23a   :  { %6913 = vtanh.f32 %v1980_v45  ;;  %v1981_v48 = vadd.f32 %v8173_v39, %v1846_v46  ;;  %1663 = vmatmul.mubr.bf16.gmra.mrb[108].mxu1 %v6309_v42 }
 0x23b   :  { %1670 = vmatprep.mubr.bf16.mxu1 %v6312_v44 }
 0x23c   :  { %6915 = vtanh.f32 %v1981_v48 }
 0x23d   :  { %v1456_v51 = vpop.f32.mrb[4].mxu1 }
 0x23e   :  { %v1847_v52 = vadd.f32 %v1456_v51, %v8171_v17  ;;  %v1458_v53 = vpop.f32.mrb[5].mxu1 }
 0x23f   :  { %v1459_v55 = vpop.f32.mrb[6].mxu1 }
 0x240   :  { %v1982_v57 = vadd.f32 %v8173_v39, %v1847_v52  ;;  %v1848_v58 = vadd.f32 %v1459_v55, %v8171_v17  ;;  %v1461_v59 = vpop.f32.mrb[7].mxu1  ;;  %v6320_v52 = vcombine.high %v347_v36, %v348_v37 }
 0x242   :  { %6917 = vtanh.f32 %v1982_v57  ;;  %v1983_v60 = vadd.f32 %v8173_v39, %v1848_v58  ;;  %1671 = vmatmul.mubr.bf16.gmra.mrb[112].mxu1 %v6311_v54 }
 0x243   :  { %1678 = vmatprep.mubr.bf16.mxu1 %v6314_v56 }
 0x244   :  { %v6914_v62 = vpop.eup %6913  ;;  %6919 = vtanh.f32 %v1983_v60 }
 0x245   :  { %v1464_v3 = vpop.f32.mrb[8].mxu1  ;;  %v2243_v4 = vmul.f32 %v6914_v62, %v8183_v61  ;;  %v349_v62 = vld [vmem:[#allocation7 + $0x340] sm:$0xff] }
 0x246   :  { %v6916_v5 = vpop.eup %6915  ;;  %v1849_v6 = vadd.f32 %v1464_v3, %v8171_v17  ;;  %v1466_v7 = vpop.f32.mrb[9].mxu1 }
 0x247   :  { %v1467_v9 = vpop.f32.mrb[10].mxu1  ;;  %2409 = vadd.xlane.f32.xlu0 %v2243_v4  ;;  %v2244_v14 = vmul.f32 %v6916_v5, %v8183_v61 }
 0x248   :  { %v1984_v11 = vadd.f32 %v8173_v39, %v1849_v6  ;;  %v1850_v12 = vadd.f32 %v1467_v9, %v8171_v17  ;;  %v1469_v13 = vpop.f32.mrb[11].mxu1 }
 0x24a   :  { %6921 = vtanh.f32 %v1984_v11  ;;  %v1985_v15 = vadd.f32 %v8173_v39, %v1850_v12  ;;  %1679 = vmatmul.mubr.bf16.gmra.mrb[116].mxu1 %v6313_v8 }
 0x24b   :  { %2411 = vadd.xlane.f32.xlu0 %v2244_v14  ;;  %1686 = vmatprep.mubr.bf16.mxu1 %v6316_v10  ;;  %v6319_v10 = vcombine.low %v347_v36, %v348_v37 }
 0x24c   :  { %v6918_v16 = vpop.eup %6917  ;;  %6923 = vtanh.f32 %v1985_v15  ;;  %v6322_v15 = vcombine.high %v349_v62, %v350_v63 }
 0x24d   :  { %v1472_v20 = vpop.f32.mrb[12].mxu1  ;;  %v2245_v21 = vmul.f32 %v6918_v16, %v8183_v61 }
 0x24e   :  { %v6920_v22 = vpop.eup %6919  ;;  %v1851_v23 = vadd.f32 %v1472_v20, %v8171_v17  ;;  %v1474_v25 = vpop.f32.mrb[13].mxu1 }
 0x24f   :  { %v1475_v27 = vpop.f32.mrb[14].mxu1  ;;  %2413 = vadd.xlane.f32.xlu0 %v2245_v21  ;;  %v2246_v28 = vmul.f32 %v6920_v22, %v8183_v61 }
 0x250   :  { %v1986_v30 = vadd.f32 %v8173_v39, %v1851_v23  ;;  %v1852_v31 = vadd.f32 %v1475_v27, %v8171_v17  ;;  %v1477_v32 = vpop.f32.mrb[15].mxu1 }
 0x251   :  { %2415 = vadd.xlane.f32.xlu1 %v2246_v28  ;;  %v351_v28 = vld [vmem:[#allocation7 + $0x350] sm:$0xff] }
 0x252   :  { %6925 = vtanh.f32 %v1986_v30  ;;  %v1987_v33 = vadd.f32 %v8173_v39, %v1852_v31  ;;  %1687 = vmatmul.mubr.bf16.gmra.mrb[120].mxu1 %v6315_v26 }
 0x253   :  { %1694 = vmatprep.mubr.bf16.mxu1 %v6318_v29  ;;  %v352_v29 = vld [vmem:[#allocation7 + $0x358] sm:$0xff] }
 0x254   :  { %v6922_v34 = vpop.eup %6921  ;;  %6927 = vtanh.f32 %v1987_v33  ;;  %v1296_v35 = vpop.f32.mrb[4].mxu0 }
 0x255   :  { %v1807_v38 = vadd.f32 %v1296_v35, %v8171_v17  ;;  %v1480_v40 = vpop.f32.mrb[16].mxu1  ;;  %v2247_v41 = vmul.f32 %v6922_v34, %v8183_v61  ;;  %v1298_v42 = vpop.f32.mrb[5].mxu0 }
 0x256   :  { %v6924_v43 = vpop.eup %6923  ;;  %v1853_v44 = vadd.f32 %v1480_v40, %v8171_v17  ;;  %v1482_v45 = vpop.f32.mrb[17].mxu1  ;;  %v6321_v40 = vcombine.low %v349_v62, %v350_v63 }
 0x257   :  { %v1299_v46 = vpop.f32.mrb[6].mxu0  ;;  %v1942_v48 = vadd.f32 %v8173_v39, %v1807_v38  ;;  %v1483_v49 = vpop.f32.mrb[18].mxu1  ;;  %2417 = vadd.xlane.f32.xlu1 %v2247_v41  ;;  %v2248_v57 = vmul.f32 %v6924_v43, %v8183_v61  ;;  %v6324_v45 = vcombine.high %v351_v28, %v352_v29 }
 0x258   :  { %v1808_v50 = vadd.f32 %v1299_v46, %v8171_v17  ;;  %v1301_v51 = vpop.f32.mrb[7].mxu0  ;;  %v1988_v53 = vadd.f32 %v8173_v39, %v1853_v44  ;;  %v1854_v54 = vadd.f32 %v1483_v49, %v8171_v17  ;;  %v1485_v55 = vpop.f32.mrb[19].mxu1 }
 0x259   :  { %6929 = vtanh.f32 %v1942_v48 }
 0x25a   :  { %v1943_v56 = vadd.f32 %v8173_v39, %v1808_v50  ;;  %6931 = vtanh.f32 %v1988_v53  ;;  %v1989_v58 = vadd.f32 %v8173_v39, %v1854_v54  ;;  %1695 = vmatmul.mubr.bf16.gmra.mrb[124].mxu1 %v6317_v47  ;;  %v353_v53 = vld [vmem:[#allocation7 + $0x360] sm:$0xff]  ;;  %v354_v54 = vld [vmem:[#allocation7 + $0x368] sm:$0xff] }
 0x25b   :  { %2419 = vadd.xlane.f32.xlu1 %v2248_v57  ;;  %1702 = vmatprep.mubr.bf16.mxu1 %v6320_v52 }
 0x25c   :  { %6933 = vtanh.f32 %v1943_v56  ;;  %v6926_v59 = vpop.eup %6925  ;;  %v1304_v60 = vpop.f32.mrb[8].mxu0 }
 0x25d   :  { %6935 = vtanh.f32 %v1989_v58  ;;  %v1809_v2 = vadd.f32 %v1304_v60, %v8171_v17  ;;  %v1488_v3 = vpop.f32.mrb[20].mxu1  ;;  %v1306_v4 = vpop.f32.mrb[9].mxu0  ;;  %v2249_v5 = vmul.f32 %v6926_v59, %v8183_v61 }
 0x25e   :  { %v6928_v6 = vpop.eup %6927  ;;  %v1855_v7 = vadd.f32 %v1488_v3, %v8171_v17  ;;  %v1490_v8 = vpop.f32.mrb[21].mxu1  ;;  %v6323_v3 = vcombine.low %v351_v28, %v352_v29  ;;  %v6325_v28 = vcombine.low %v353_v53, %v354_v54 }
 0x25f   :  { %v1307_v9 = vpop.f32.mrb[10].mxu0  ;;  %v1944_v11 = vadd.f32 %v8173_v39, %v1809_v2  ;;  %v1491_v12 = vpop.f32.mrb[22].mxu1  ;;  %2421 = vadd.xlane.f32.xlu1 %v2249_v5  ;;  %v2250_v20 = vmul.f32 %v6928_v6, %v8183_v61  ;;  %v6326_v8 = vcombine.high %v353_v53, %v354_v54 }
 0x260   :  { %v1810_v13 = vadd.f32 %v1307_v9, %v8171_v17  ;;  %v1309_v14 = vpop.f32.mrb[11].mxu0  ;;  %v1990_v16 = vadd.f32 %v8173_v39, %v1855_v7  ;;  %v1856_v18 = vadd.f32 %v1491_v12, %v8171_v17  ;;  %v1493_v19 = vpop.f32.mrb[23].mxu1 }
 0x262   :  { %6937 = vtanh.f32 %v1990_v16  ;;  %v1991_v21 = vadd.f32 %v8173_v39, %v1856_v18  ;;  %1703 = vmatmul.mubr.bf16.gmra.mrb[128].mxu1 %v6319_v10  ;;  %v1945_v25 = vadd.f32 %v8173_v39, %v1810_v13  ;;  %v355_v16 = vld [vmem:[#allocation7 + $0x370] sm:$0xff]  ;;  %v356_v18 = vld [vmem:[#allocation7 + $0x378] sm:$0xff] }
 0x263   :  { %v6930_v22 = vpop.eup %6929  ;;  %6939 = vtanh.f32 %v1944_v11  ;;  %2423 = vadd.xlane.f32.xlu1 %v2250_v20  ;;  %1710 = vmatprep.mubr.bf16.mxu1 %v6322_v15  ;;  %v6327_v53 = vcombine.low %v355_v16, %v356_v18 }
 0x264   :  { %v6932_v23 = vpop.eup %6931  ;;  %6941 = vtanh.f32 %v1991_v21  ;;  %v1312_v26 = vpop.f32.mrb[12].mxu0  ;;  %v2205_v27 = vmul.f32 %v6930_v22, %v8183_v61 }
 0x265   :  { %v1811_v31 = vadd.f32 %v1312_v26, %v8171_v17  ;;  %v1496_v32 = vpop.f32.mrb[24].mxu1  ;;  %v1314_v33 = vpop.f32.mrb[13].mxu0  ;;  %v2251_v34 = vmul.f32 %v6932_v23, %v8183_v61  ;;  %6943 = vtanh.f32 %v1945_v25 }
 0x266   :  { %v6934_v30 = vpop.eup %6933  ;;  %v1857_v36 = vadd.f32 %v1496_v32, %v8171_v17  ;;  %v1498_v37 = vpop.f32.mrb[25].mxu1  ;;  %2333 = vadd.xlane.f32.xlu0 %v2205_v27  ;;  %v6328_v33 = vcombine.high %v355_v16, %v356_v18 }
 0x267   :  { %v6936_v35 = vpop.eup %6935  ;;  %v1315_v38 = vpop.f32.mrb[14].mxu0  ;;  %v2206_v41 = vmul.f32 %v6934_v30, %v8183_v61  ;;  %2425 = vadd.xlane.f32.xlu1 %v2251_v34  ;;  %v1946_v51 = vadd.f32 %v8173_v39, %v1811_v31 }
 0x268   :  { %v1499_v42 = vpop.f32.mrb[26].mxu1  ;;  %v1812_v43 = vadd.f32 %v1315_v38, %v8171_v17  ;;  %v1317_v44 = vpop.f32.mrb[15].mxu0  ;;  %v1992_v46 = vadd.f32 %v8173_v39, %v1857_v36  ;;  %v2252_v49 = vmul.f32 %v6936_v35, %v8183_v61 }
 0x269   :  { %v1858_v47 = vadd.f32 %v1499_v42, %v8171_v17  ;;  %v1501_v48 = vpop.f32.mrb[27].mxu1  ;;  %v358_v44 = vld [vmem:[#allocation7 + $0x388] sm:$0xff] }
 0x26a   :  { %1711 = vmatmul.mubr.bf16.gmra.mrb[132].mxu1 %v6321_v40  ;;  %2335 = vadd.xlane.f32.xlu0 %v2206_v41  ;;  %6945 = vtanh.f32 %v1992_v46  ;;  %v1947_v14 = vadd.f32 %v8173_v39, %v1812_v43  ;;  %v357_v43 = vld [vmem:[#allocation7 + $0x380] sm:$0xff] }
 0x26b   :  { %2427 = vadd.xlane.f32.xlu1 %v2252_v49  ;;  %1718 = vmatprep.mubr.bf16.mxu1 %v6324_v45  ;;  %6947 = vtanh.f32 %v1946_v51  ;;  %v1993_v9 = vadd.f32 %v8173_v39, %v1858_v47 }
 0x26c   :  { %v6938_v50 = vpop.eup %6937  ;;  %v1320_v52 = vpop.f32.mrb[16].mxu0 }
 0x26d   :  { %v6940_v55 = vpop.eup %6939  ;;  %v1813_v56 = vadd.f32 %v1320_v52, %v8171_v17  ;;  %v1504_v57 = vpop.f32.mrb[28].mxu1  ;;  %v2253_v59 = vmul.f32 %v6938_v50, %v8183_v61  ;;  %6949 = vtanh.f32 %v1993_v9 }
 0x26e   :  { %v1322_v58 = vpop.f32.mrb[17].mxu0  ;;  %v6942_v60 = vpop.eup %6941  ;;  %v1859_v62 = vadd.f32 %v1504_v57, %v8171_v17  ;;  %v2207_v12 = vmul.f32 %v6940_v55, %v8183_v61  ;;  %6951 = vtanh.f32 %v1947_v14 }
 0x26f   :  { %v1506_v63 = vpop.f32.mrb[29].mxu1  ;;  %v1323_v2 = vpop.f32.mrb[18].mxu0  ;;  %2429 = vadd.xlane.f32.xlu0 %v2253_v59  ;;  %v2254_v6 = vmul.f32 %v6942_v60, %v8183_v61  ;;  %v1948_v41 = vadd.f32 %v8173_v39, %v1813_v56  ;;  %v6330_v59 = vcombine.high %v357_v43, %v358_v44 }
 0x270   :  { %v1507_v4 = vpop.f32.mrb[30].mxu1  ;;  %v8231_v5 = vadd.f32 %v1323_v2, %v8171_v17  ;;  %v1325_v7 = vpop.f32.mrb[19].mxu0  ;;  %v1994_v34 = vadd.f32 %v8173_v39, %v1859_v62 }
 0x271   :  { %v1860_v10 = vadd.f32 %v1507_v4, %v8171_v17  ;;  %v1509_v11 = vpop.f32.mrb[31].mxu1  ;;  %2431 = vadd.xlane.f32.xlu1 %v2254_v6  ;;  %v6944_v13 = vpop.eup %6943 }
 0x272   :  { %1719 = vmatmul.mubr.bf16.gmra.mrb[136].mxu1 %v6323_v3  ;;  %v2208_v22 = vmul.f32 %v6944_v13, %v8183_v61  ;;  %v1949_v3 = vadd.f32 %v8173_v39, %v8231_v5  ;;  %v8269_v11 = vld [vmem:[#allocation7 + $0x398] sm:$0xff] }
 0x273   :  { %2337 = vadd.xlane.f32.xlu0 %v2207_v12  ;;  %1726 = vmatprep.mubr.bf16.mxu1 %v6326_v8  ;;  %v1995_v54 = vadd.f32 %v8173_v39, %v1860_v10  ;;  %v8267_v10 = vld [vmem:[#allocation7 + $0x390] sm:$0xff] }
 0x274   :  { %v1328_v15 = vpop.f32.mrb[20].mxu0  ;;  %v6946_v23 = vpop.eup %6945 }
 0x275   :  { %v1815_v19 = vadd.f32 %v1328_v15, %v8171_v17  ;;  %v1512_v20 = vpop.f32.mrb[32].mxu1  ;;  %v1330_v21 = vpop.f32.mrb[21].mxu0  ;;  %v2255_v38 = vmul.f32 %v6946_v23, %v8183_v61 }
 0x276   :  { %v8241_v25 = vadd.f32 %v1512_v20, %v8171_v17  ;;  %v1514_v26 = vpop.f32.mrb[33].mxu1  ;;  %v1331_v27 = vpop.f32.mrb[22].mxu0  ;;  %v6329_v21 = vcombine.low %v357_v43, %v358_v44 }
 0x277   :  { %v1950_v29 = vadd.f32 %v8173_v39, %v1815_v19  ;;  %v1515_v30 = vpop.f32.mrb[34].mxu1  ;;  %2339 = vadd.xlane.f32.xlu0 %v2208_v22  ;;  %v1816_v31 = vadd.f32 %v1331_v27, %v8171_v17  ;;  %v1333_v32 = vpop.f32.mrb[23].mxu0  ;;  %v6332_v27 = vcombine.high %v8267_v10, %v8269_v11 }
 0x278   :  { %v8247_v35 = vadd.f32 %v1515_v30, %v8171_v17  ;;  %v1517_v36 = vpop.f32.mrb[35].mxu1  ;;  %v6948_v40 = vpop.eup %6947 }
 0x279   :  { %6953 = vtanh.f32 %v1950_v29  ;;  %v1951_v37 = vadd.f32 %v8173_v39, %v1816_v31  ;;  %v2209_v48 = vmul.f32 %v6948_v40, %v8183_v61  ;;  %v6950_v49 = vpop.eup %6949 }
 0x27a   :  { %1727 = vmatmul.mubr.bf16.gmra.mrb[140].mxu1 %v6325_v28  ;;  %v2256_v63 = vmul.f32 %v6950_v49, %v8183_v61  ;;  %v6952_v2 = vpop.eup %6951  ;;  %v1996_v28 = vadd.f32 %v8173_v39, %v8241_v25  ;;  %v1997_v25 = vadd.f32 %v8173_v39, %v8247_v35 }
 0x27b   :  { %6955 = vtanh.f32 %v1951_v37  ;;  %2433 = vadd.xlane.f32.xlu0 %v2255_v38  ;;  %1734 = vmatprep.mubr.bf16.mxu1 %v6328_v33  ;;  %v2210_v15 = vmul.f32 %v6952_v2, %v8183_v61 }
 0x27c   :  { %6957 = vtanh.f32 %v1994_v34  ;;  %v1336_v42 = vpop.f32.mrb[24].mxu0 }
 0x27d   :  { %v1817_v45 = vadd.f32 %v1336_v42, %v8171_v17  ;;  %v1520_v46 = vpop.f32.mrb[36].mxu1  ;;  %v1338_v47 = vpop.f32.mrb[25].mxu0  ;;  %6959 = vtanh.f32 %v1948_v41  ;;  %v8287_v41 = vld [vmem:[#allocation7 + $0x3a0] sm:$0xff]  ;;  %v8289_v42 = vld [vmem:[#allocation7 + $0x3a8] sm:$0xff] }
 0x27e   :  { %v8255_v50 = vadd.f32 %v1520_v46, %v8171_v17  ;;  %v1522_v51 = vpop.f32.mrb[37].mxu1  ;;  %v1339_v52 = vpop.f32.mrb[26].mxu0 }
 0x27f   :  { %v1952_v55 = vadd.f32 %v8173_v39, %v1817_v45  ;;  %v1523_v56 = vpop.f32.mrb[38].mxu1  ;;  %2341 = vadd.xlane.f32.xlu0 %v2209_v48  ;;  %v1818_v57 = vadd.f32 %v1339_v52, %v8171_v17  ;;  %v1341_v58 = vpop.f32.mrb[27].mxu0  ;;  %v6331_v52 = vcombine.low %v8267_v10, %v8269_v11 }
 0x280   :  { %v1864_v60 = vadd.f32 %v1523_v56, %v8171_v17  ;;  %v1525_v62 = vpop.f32.mrb[39].mxu1 }
 0x281   :  { %6961 = vtanh.f32 %v1952_v55  ;;  %v1953_v7 = vadd.f32 %v8173_v39, %v1818_v57  ;;  %v6334_v57 = vcombine.high %v8287_v41, %v8289_v42 }
 0x282   :  { %v1999_v4 = vadd.f32 %v8173_v39, %v1864_v60  ;;  %1735 = vmatmul.mubr.bf16.gmra.mrb[144].mxu1 %v6327_v53  ;;  %6963 = vtanh.f32 %v1995_v54 }
 0x283   :  { %v6954_v6 = vpop.eup %6953  ;;  %2435 = vadd.xlane.f32.xlu0 %v2256_v63  ;;  %1742 = vmatprep.mubr.bf16.mxu1 %v6330_v59  ;;  %v1998_v59 = vadd.f32 %v8173_v39, %v8255_v50 }
 0x284   :  { %6965 = vtanh.f32 %v1999_v4  ;;  %v1344_v8 = vpop.f32.mrb[28].mxu0  ;;  %v2213_v9 = vmul.f32 %v6954_v6, %v8183_v61  ;;  %v8312_v6 = vld [vmem:[#allocation7 + $0x3b0] sm:$0xff] }
 0x285   :  { %v6956_v12 = vpop.eup %6955  ;;  %v1819_v5 = vadd.f32 %v1344_v8, %v8171_v17  ;;  %v1528_v13 = vpop.f32.mrb[40].mxu1  ;;  %6967 = vtanh.f32 %v1949_v3 }
 0x286   :  { %v1346_v14 = vpop.f32.mrb[29].mxu0  ;;  %v6958_v16 = vpop.eup %6957  ;;  %v1865_v18 = vadd.f32 %v1528_v13, %v8171_v17  ;;  %2349 = vadd.xlane.f32.xlu1 %v2213_v9  ;;  %6969 = vtanh.f32 %v1953_v7  ;;  %v2214_v32 = vmul.f32 %v6956_v12, %v8183_v61  ;;  %v8314_v7 = vld [vmem:[#allocation7 + $0x3b8] sm:$0xff] }
 0x287   :  { %v1530_v19 = vpop.f32.mrb[41].mxu1  ;;  %v1347_v20 = vpop.f32.mrb[30].mxu0  ;;  %2343 = vadd.xlane.f32.xlu0 %v2210_v15  ;;  %v2257_v33 = vmul.f32 %v6958_v16, %v8183_v61  ;;  %v1954_v37 = vadd.f32 %v8173_v39, %v1819_v5 }
 0x288   :  { %v1531_v22 = vpop.f32.mrb[42].mxu1  ;;  %v1820_v23 = vadd.f32 %v1347_v20, %v8171_v17  ;;  %v1349_v26 = vpop.f32.mrb[31].mxu0  ;;  %v2000_v29 = vadd.f32 %v8173_v39, %v1865_v18  ;;  %v6333_v18 = vcombine.low %v8287_v41, %v8289_v42  ;;  %v6336_v19 = vcombine.high %v8312_v6, %v8314_v7 }
 0x289   :  { %v1866_v30 = vadd.f32 %v1531_v22, %v8171_v17  ;;  %v1533_v31 = vpop.f32.mrb[43].mxu1  ;;  %v6960_v34 = vpop.eup %6959 }
 0x28a   :  { %1743 = vmatmul.mubr.bf16.gmra.mrb[148].mxu1 %v6329_v21  ;;  %2351 = vadd.xlane.f32.xlu1 %v2214_v32  ;;  %6971 = vtanh.f32 %v2000_v29  ;;  %v2211_v47 = vmul.f32 %v6960_v34, %v8183_v61  ;;  %v1955_v4 = vadd.f32 %v8173_v39, %v1820_v23  ;;  %v8338_v34 = vld [vmem:[#allocation7 + $0x3c0] sm:$0xff] }
 0x28b   :  { %v6962_v36 = vpop.eup %6961  ;;  %2437 = vadd.xlane.f32.xlu0 %v2257_v33  ;;  %1750 = vmatprep.mubr.bf16.mxu1 %v6332_v27  ;;  %6973 = vtanh.f32 %v1996_v28  ;;  %v2001_v53 = vadd.f32 %v8173_v39, %v1866_v30 }
 0x28c   :  { %v1352_v38 = vpop.f32.mrb[32].mxu0  ;;  %v2215_v40 = vmul.f32 %v6962_v36, %v8183_v61  ;;  %v6964_v43 = vpop.eup %6963  ;;  %6975 = vtanh.f32 %v1954_v37  ;;  %v8340_v36 = vld [vmem:[#allocation7 + $0x3c8] sm:$0xff] }
 0x28d   :  { %v8292_v44 = vadd.f32 %v1352_v38, %v8171_v17  ;;  %v1536_v45 = vpop.f32.mrb[44].mxu1  ;;  %v1354_v46 = vpop.f32.mrb[33].mxu0  ;;  %6977 = vtanh.f32 %v1997_v25  ;;  %v2258_v3 = vmul.f32 %v6964_v43, %v8183_v61 }
 0x28e   :  { %v6966_v48 = vpop.eup %6965  ;;  %v1867_v49 = vadd.f32 %v1536_v45, %v8171_v17  ;;  %v1538_v51 = vpop.f32.mrb[45].mxu1  ;;  %2353 = vadd.xlane.f32.xlu1 %v2215_v40  ;;  %6979 = vtanh.f32 %v2001_v53 }
 0x28f   :  { %v1355_v35 = vpop.f32.mrb[34].mxu0  ;;  %v1539_v54 = vpop.f32.mrb[46].mxu1  ;;  %2345 = vadd.xlane.f32.xlu0 %v2211_v47  ;;  %v2262_v63 = vmul.f32 %v6966_v48, %v8183_v61  ;;  %6981 = vtanh.f32 %v1998_v59  ;;  %v1956_v33 = vadd.f32 %v8173_v39, %v8292_v44  ;;  %v6335_v48 = vcombine.low %v8312_v6, %v8314_v7 }
 0x290   :  { %v8300_v55 = vadd.f32 %v1355_v35, %v8171_v17  ;;  %v1357_v56 = vpop.f32.mrb[35].mxu0  ;;  %v6968_v58 = vpop.eup %6967  ;;  %v8307_v60 = vadd.f32 %v1539_v54, %v8171_v17  ;;  %6983 = vtanh.f32 %v1955_v4  ;;  %v2002_v20 = vadd.f32 %v8173_v39, %v1867_v49 }
 0x291   :  { %v1541_v62 = vpop.f32.mrb[47].mxu1  ;;  %v6970_v2 = vpop.eup %6969  ;;  %v2212_v5 = vmul.f32 %v6968_v58, %v8183_v61  ;;  %v6338_v49 = vcombine.high %v8338_v34, %v8340_v36 }
 0x292   :  { %1751 = vmatmul.mubr.bf16.gmra.mrb[152].mxu1 %v6331_v52  ;;  %2447 = vadd.xlane.f32.xlu1 %v2262_v63  ;;  %v2216_v8 = vmul.f32 %v6970_v2, %v8183_v61  ;;  %v2003_v51 = vadd.f32 %v8173_v39, %v8307_v60  ;;  %v1957_v2 = vadd.f32 %v8173_v39, %v8300_v55 }
 0x293   :  { %2439 = vadd.xlane.f32.xlu0 %v2258_v3  ;;  %1758 = vmatprep.mubr.bf16.mxu1 %v6334_v57 }
 0x294   :  { %v1360_v50 = vpop.f32.mrb[36].mxu0  ;;  %v6972_v9 = vpop.eup %6971 }
 0x295   :  { %v1823_v10 = vadd.f32 %v1360_v50, %v8171_v17  ;;  %v1544_v11 = vpop.f32.mrb[48].mxu1  ;;  %v1362_v12 = vpop.f32.mrb[37].mxu0  ;;  %v2263_v29 = vmul.f32 %v6972_v9, %v8183_v61  ;;  %v367_v50 = vld [vmem:[#allocation7 + $0x3d0] sm:$0xff] }
 0x296   :  { %v6974_v13 = vpop.eup %6973  ;;  %v8320_v14 = vadd.f32 %v1544_v11, %v8171_v17  ;;  %v1546_v15 = vpop.f32.mrb[49].mxu1  ;;  %2355 = vadd.xlane.f32.xlu1 %v2216_v8  ;;  %v368_v8 = vld [vmem:[#allocation7 + $0x3d8] sm:$0xff] }
 0x297   :  { %v1363_v16 = vpop.f32.mrb[38].mxu0  ;;  %v1958_v21 = vadd.f32 %v8173_v39, %v1823_v10  ;;  %v1547_v22 = vpop.f32.mrb[50].mxu1  ;;  %2347 = vadd.xlane.f32.xlu0 %v2212_v5  ;;  %v2259_v31 = vmul.f32 %v6974_v13, %v8183_v61  ;;  %v6337_v15 = vcombine.low %v8338_v34, %v8340_v36 }
 0x298   :  { %v8329_v23 = vadd.f32 %v1363_v16, %v8171_v17  ;;  %v1365_v26 = vpop.f32.mrb[39].mxu0  ;;  %v8332_v27 = vadd.f32 %v1547_v22, %v8171_v17  ;;  %v1549_v28 = vpop.f32.mrb[51].mxu1  ;;  %v2004_v16 = vadd.f32 %v8173_v39, %v8320_v14 }
 0x299   :  { %v6976_v30 = vpop.eup %6975  ;;  %6985 = vtanh.f32 %v1958_v21  ;;  %v6340_v21 = vcombine.high %v367_v50, %v368_v8 }
 0x29a   :  { %v6978_v32 = vpop.eup %6977  ;;  %1759 = vmatmul.mubr.bf16.gmra.mrb[156].mxu1 %v6333_v18  ;;  %2449 = vadd.xlane.f32.xlu1 %v2263_v29  ;;  %6987 = vtanh.f32 %v2002_v20  ;;  %v2217_v25 = vmul.f32 %v6976_v30, %v8183_v61  ;;  %v1959_v14 = vadd.f32 %v8173_v39, %v8329_v23 }
 0x29b   :  { %2441 = vadd.xlane.f32.xlu0 %v2259_v31  ;;  %1766 = vmatprep.mubr.bf16.mxu1 %v6336_v19  ;;  %v6980_v38 = vpop.eup %6979  ;;  %v2260_v43 = vmul.f32 %v6978_v32, %v8183_v61  ;;  %6989 = vtanh.f32 %v1956_v33 }
 0x29c   :  { %v1368_v37 = vpop.f32.mrb[40].mxu0  ;;  %v6982_v45 = vpop.eup %6981  ;;  %v2264_v59 = vmul.f32 %v6980_v38, %v8183_v61 }
 0x29d   :  { %v1825_v40 = vadd.f32 %v1368_v37, %v8171_v17  ;;  %v1552_v41 = vpop.f32.mrb[52].mxu1  ;;  %v1370_v42 = vpop.f32.mrb[41].mxu0  ;;  %v2261_v63 = vmul.f32 %v6982_v45, %v8183_v61  ;;  %v8380_v37 = vld [vmem:[#allocation7 + $0x3e0] sm:$0xff] }
 0x29e   :  { %v1871_v44 = vadd.f32 %v1552_v41, %v8171_v17  ;;  %v1554_v46 = vpop.f32.mrb[53].mxu1  ;;  %2357 = vadd.xlane.f32.xlu1 %v2217_v25  ;;  %v1371_v47 = vpop.f32.mrb[42].mxu0  ;;  %v8382_v25 = vld [vmem:[#allocation7 + $0x3e8] sm:$0xff] }
 0x29f   :  { %v1960_v35 = vadd.f32 %v8173_v39, %v1825_v40  ;;  %v1555_v52 = vpop.f32.mrb[54].mxu1  ;;  %2443 = vadd.xlane.f32.xlu0 %v2260_v43  ;;  %v1826_v53 = vadd.f32 %v1371_v47, %v8171_v17  ;;  %v1373_v54 = vpop.f32.mrb[43].mxu0  ;;  %v6339_v46 = vcombine.low %v367_v50, %v368_v8  ;;  %v2005_v47 = vadd.f32 %v8173_v39, %v8332_v27 }
 0x2a0   :  { %v2006_v56 = vadd.f32 %v8173_v39, %v1871_v44  ;;  %v8356_v57 = vadd.f32 %v1555_v52, %v8171_v17  ;;  %v1557_v58 = vpop.f32.mrb[55].mxu1  ;;  %v6984_v62 = vpop.eup %6983 }
 0x2a1   :  { %6991 = vtanh.f32 %v1960_v35  ;;  %v1961_v3 = vadd.f32 %v8173_v39, %v1826_v53  ;;  %v2218_v6 = vmul.f32 %v6984_v62, %v8183_v61  ;;  %v6342_v35 = vcombine.high %v8380_v37, %v8382_v25 }
 0x2a2   :  { %1767 = vmatmul.mubr.bf16.gmra.mrb[160].mxu1 %v6335_v48  ;;  %2451 = vadd.xlane.f32.xlu1 %v2264_v59  ;;  %6993 = vtanh.f32 %v2003_v51  ;;  %v2007_v62 = vadd.f32 %v8173_v39, %v8356_v57 }
 0x2a3   :  { %v6986_v60 = vpop.eup %6985  ;;  %2445 = vadd.xlane.f32.xlu0 %v2261_v63  ;;  %1774 = vmatprep.mubr.bf16.mxu1 %v6338_v49  ;;  %6995 = vtanh.f32 %v2006_v56 }
 0x2a4   :  { %v1376_v4 = vpop.f32.mrb[44].mxu0  ;;  %v2221_v7 = vmul.f32 %v6986_v60, %v8183_v61  ;;  %v6988_v9 = vpop.eup %6987  ;;  %6997 = vtanh.f32 %v1957_v2 }
 0x2a5   :  { %v1827_v10 = vadd.f32 %v1376_v4, %v8171_v17  ;;  %v1560_v11 = vpop.f32.mrb[56].mxu1  ;;  %v1378_v12 = vpop.f32.mrb[45].mxu0  ;;  %6999 = vtanh.f32 %v1961_v3  ;;  %v2265_v29 = vmul.f32 %v6988_v9, %v8183_v61  ;;  %v8405_v3 = vld [vmem:[#allocation7 + $0x3f0] sm:$0xff]  ;;  %v8407_v4 = vld [vmem:[#allocation7 + $0x3f8] sm:$0xff] }
 0x2a6   :  { %v1873_v5 = vadd.f32 %v1560_v11, %v8171_v17  ;;  %v1562_v55 = vpop.f32.mrb[57].mxu1  ;;  %2359 = vadd.xlane.f32.xlu1 %v2218_v6  ;;  %v1379_v13 = vpop.f32.mrb[46].mxu0  ;;  %7001 = vtanh.f32 %v2004_v16  ;;  %v6341_v12 = vcombine.low %v8380_v37, %v8382_v25  ;;  %v8421_v16 = vld [vmem:[#allocation13] ss:$0 sm:$0xff] }
 0x2a7   :  { %v1563_v18 = vpop.f32.mrb[58].mxu1  ;;  %2365 = vadd.xlane.f32.xlu0 %v2221_v7  ;;  %v1828_v19 = vadd.f32 %v1379_v13, %v8171_v17  ;;  %v1381_v20 = vpop.f32.mrb[47].mxu0  ;;  %v1962_v22 = vadd.f32 %v8173_v39, %v1827_v10 }
 0x2a8   :  { %v1874_v26 = vadd.f32 %v1563_v18, %v8171_v17  ;;  %v1565_v28 = vpop.f32.mrb[59].mxu1  ;;  %v6990_v30 = vpop.eup %6989  ;;  %v2008_v32 = vadd.f32 %v8173_v39, %v1873_v5 }
 0x2a9   :  { %7003 = vtanh.f32 %v1962_v22  ;;  %v2219_v34 = vmul.f32 %v6990_v30, %v8183_v61  ;;  %v1963_v52 = vadd.f32 %v8173_v39, %v1828_v19 }
 0x2aa   :  { %1775 = vmatmul.mubr.bf16.gmra.mrb[164].mxu1 %v6337_v15  ;;  %2453 = vadd.xlane.f32.xlu1 %v2265_v29  ;;  %7005 = vtanh.f32 %v1959_v14  ;;  %v2009_v63 = vadd.f32 %v8173_v39, %v1874_v26  ;;  %v6344_v15 = vcombine.high %v8405_v3, %v8407_v4 }
 0x2ab   :  { %v6992_v31 = vpop.eup %6991  ;;  %1782 = vmatprep.mubr.bf16.mxu1 %v6340_v21  ;;  %7007 = vtanh.f32 %v2008_v32 }
 0x2ac   :  { %v1384_v33 = vpop.f32.mrb[48].mxu0  ;;  %v2223_v36 = vmul.f32 %v6992_v31, %v8183_v61  ;;  %v6994_v38 = vpop.eup %6993  ;;  %7009 = vtanh.f32 %v2005_v47 }
 0x2ad   :  { %v1829_v40 = vadd.f32 %v1384_v33, %v8171_v17  ;;  %v1568_v41 = vpop.f32.mrb[60].mxu1  ;;  %v1386_v42 = vpop.f32.mrb[49].mxu0  ;;  %v2266_v56 = vmul.f32 %v6994_v38, %v8183_v61  ;;  %7011 = vtanh.f32 %v1963_v52 }
 0x2ae   :  { %v6996_v43 = vpop.eup %6995  ;;  %v8386_v23 = vadd.f32 %v1568_v41, %v8171_v17  ;;  %v1570_v45 = vpop.f32.mrb[61].mxu1  ;;  %2361 = vadd.xlane.f32.xlu1 %v2219_v34  ;;  %2369 = vadd.xlane.f32.xlu0 %v2223_v36  ;;  %7013 = vtanh.f32 %v2007_v62  ;;  %v6343_v42 = vcombine.low %v8405_v3, %v8407_v4 }
 0x2af   :  { %v1387_v44 = vpop.f32.mrb[50].mxu0  ;;  %v1571_v48 = vpop.f32.mrb[62].mxu1  ;;  %v2269_v27 = vmul.f32 %v6996_v43, %v8183_v61  ;;  %7015 = vtanh.f32 %v2009_v63  ;;  %v1964_v18 = vadd.f32 %v8421_v16, %v1829_v40 }
 0x2b0   :  { %v8391_v49 = vadd.f32 %v1387_v44, %v8171_v17  ;;  %v1389_v51 = vpop.f32.mrb[51].mxu0  ;;  %v8397_v53 = vadd.f32 %v1571_v48, %v8171_v17  ;;  %v1573_v54 = vpop.f32.mrb[63].mxu1  ;;  %v2010_v30 = vadd.f32 %v8421_v16, %v8386_v23  ;;  %v8445_v48 = vld [vmem:[#allocation14] ss:$0 sm:$0xff] }
 0x2b1   :  { %v6998_v58 = vpop.eup %6997 }
 0x2b2   :  { %v7000_v59 = vpop.eup %6999  ;;  %1783 = vmatmul.mubr.bf16.gmra.mrb[168].mxu1 %v6339_v46  ;;  %2455 = vadd.xlane.f32.xlu1 %v2266_v56  ;;  %v2220_v2 = vmul.f32 %v6998_v58, %v8183_v61 }
 0x2b3   :  { %2461 = vadd.xlane.f32.xlu0 %v2269_v27  ;;  %1790 = vmatprep.mubr.bf16.mxu1 %v6342_v35  ;;  %v7002_v6 = vpop.eup %7001  ;;  %v2224_v57 = vmul.f32 %v7000_v59, %v8183_v61 }
 0x2b4   :  { %v1392_v60 = vpop.f32.mrb[52].mxu0  ;;  %v7004_v9 = vpop.eup %7003  ;;  %v2267_v21 = vmul.f32 %v7002_v6, %v8183_v61 }
 0x2b5   :  { %v8410_v7 = vadd.f32 %v1392_v60, %v8171_v17  ;;  %v1576_v50 = vpop.f32.mrb[64].mxu1  ;;  %v1394_v8 = vpop.f32.mrb[53].mxu0  ;;  %v2225_v28 = vmul.f32 %v7004_v9, %v8183_v61 }
 0x2b6   :  { %v8414_v10 = vadd.f32 %v1576_v50, %v8171_v17  ;;  %v1578_v39 = vpop.f32.mrb[65].mxu1  ;;  %2363 = vadd.xlane.f32.xlu1 %v2220_v2  ;;  %v1395_v11 = vpop.f32.mrb[54].mxu0 }
 0x2b7   :  { %v1579_v5 = vpop.f32.mrb[66].mxu1  ;;  %2371 = vadd.xlane.f32.xlu0 %v2224_v57  ;;  %v1832_v55 = vadd.f32 %v1395_v11, %v8171_v17  ;;  %v1397_v13 = vpop.f32.mrb[55].mxu0  ;;  %v1966_v11 = vadd.f32 %v8421_v16, %v8410_v7 }
 0x2b8   :  { %v8425_v19 = vadd.f32 %v1579_v5, %v8171_v17  ;;  %v1581_v20 = vpop.f32.mrb[67].mxu1  ;;  %v7006_v22 = vpop.eup %7005 }
 0x2b9   :  { %v1967_v26 = vadd.f32 %v8421_v16, %v1832_v55  ;;  %v7008_v29 = vpop.eup %7007  ;;  %v2222_v14 = vmul.f32 %v7006_v22, %v8183_v61 }
 0x2ba   :  { %1791 = vmatmul.mubr.bf16.gmra.mrb[172].mxu1 %v6341_v12  ;;  %2457 = vadd.xlane.f32.xlu1 %v2267_v21  ;;  %v7010_v32 = vpop.eup %7009  ;;  %v2271_v37 = vmul.f32 %v7008_v29, %v8183_v61  ;;  %v1965_v61 = vadd.f32 %v8421_v16, %v8391_v49  ;;  %v2011_v49 = vadd.f32 %v8421_v16, %v8397_v53 }
 0x2bb   :  { %7017 = vtanh.f32 %v1967_v26  ;;  %2373 = vadd.xlane.f32.xlu0 %v2225_v28  ;;  %1798 = vmatprep.mubr.bf16.mxu1 %v6344_v15  ;;  %v7012_v25 = vpop.eup %7011  ;;  %v2268_v51 = vmul.f32 %v8445_v48, %v7010_v32  ;;  %v2012_v21 = vadd.f32 %v8421_v16, %v8414_v10 }
 0x2bc   :  { %7019 = vtanh.f32 %v1964_v18  ;;  %v1400_v31 = vpop.f32.mrb[56].mxu0  ;;  %v7014_v35 = vpop.eup %7013  ;;  %v2226_v54 = vmul.f32 %v8445_v48, %v7012_v25 }
 0x2bd   :  { %v1833_v33 = vadd.f32 %v1400_v31, %v8171_v17  ;;  %v1584_v34 = vpop.f32.mrb[68].mxu1  ;;  %v1402_v36 = vpop.f32.mrb[57].mxu0  ;;  %7021 = vtanh.f32 %v2010_v30  ;;  %v2270_v59 = vmul.f32 %v8445_v48, %v7014_v35 }
 0x2be   :  { %v8436_v38 = vadd.f32 %v1584_v34, %v8171_v17  ;;  %v1586_v40 = vpop.f32.mrb[69].mxu1  ;;  %2367 = vadd.xlane.f32.xlu1 %v2222_v14  ;;  %v1403_v41 = vpop.f32.mrb[58].mxu0 }
 0x2bf   :  { %v1968_v43 = vadd.f32 %v8421_v16, %v1833_v33  ;;  %v1587_v23 = vpop.f32.mrb[70].mxu1  ;;  %2465 = vadd.xlane.f32.xlu0 %v2271_v37  ;;  %v1834_v45 = vadd.f32 %v1403_v41, %v8171_v17  ;;  %v1405_v44 = vpop.f32.mrb[59].mxu0  ;;  %v2013_v40 = vadd.f32 %v8421_v16, %v8425_v19 }
 0x2c0   :  { %v1880_v46 = vadd.f32 %v1587_v23, %v8171_v17  ;;  %v1589_v47 = vpop.f32.mrb[71].mxu1  ;;  %v7016_v56 = vpop.eup %7015 }
 0x2c1   :  { %7023 = vtanh.f32 %v1968_v43  ;;  %v1969_v52 = vadd.f32 %v8421_v16, %v1834_v45  ;;  %v2272_v3 = vmul.f32 %v8445_v48, %v7016_v56 }
 0x2c2   :  { %1799 = vmatmul.mubr.bf16.gmra.mrb[176].mxu1 %v6343_v42  ;;  %2459 = vadd.xlane.f32.xlu1 %v2268_v51  ;;  %v2015_v58 = vadd.f32 %v8421_v16, %v1880_v46  ;;  %v2014_v46 = vadd.f32 %v8421_v16, %v8436_v38 }
 0x2c3   :  { %7025 = vtanh.f32 %v1969_v52  ;;  %2375 = vadd.xlane.f32.xlu0 %v2226_v54 }
 0x2c4   :  { %7027 = vtanh.f32 %v1965_v61  ;;  %v1408_v27 = vpop.f32.mrb[60].mxu0 }
 0x2c5   :  { %v7018_v62 = vpop.eup %7017  ;;  %v1835_v63 = vadd.f32 %v1408_v27, %v8171_v17  ;;  %v1592_v60 = vpop.f32.mrb[72].mxu1  ;;  %7029 = vtanh.f32 %v2015_v58 }
 0x2c6   :  { %v1410_v2 = vpop.f32.mrb[61].mxu0  ;;  %v7020_v4 = vpop.eup %7019  ;;  %v1881_v6 = vadd.f32 %v1592_v60, %v8171_v17  ;;  %2463 = vadd.xlane.f32.xlu1 %v2270_v59  ;;  %7031 = vtanh.f32 %v2011_v49  ;;  %v2230_v55 = vmul.f32 %v8445_v48, %v7018_v62 }
 0x2c7   :  { %v1594_v50 = vpop.f32.mrb[73].mxu1  ;;  %v1411_v8 = vpop.f32.mrb[62].mxu0  ;;  %v1970_v53 = vadd.f32 %v8421_v16, %v1835_v63  ;;  %2467 = vadd.xlane.f32.xlu0 %v2272_v3  ;;  %v2227_v13 = vmul.f32 %v8445_v48, %v7020_v4 }
 0x2c8   :  { %v1595_v57 = vpop.f32.mrb[74].mxu1  ;;  %v1836_v9 = vadd.f32 %v1411_v8, %v8171_v17  ;;  %v1413_v39 = vpop.f32.mrb[63].mxu0  ;;  %v2016_v20 = vadd.f32 %v8421_v16, %v1881_v6 }
 0x2c9   :  { %v1882_v12 = vadd.f32 %v1595_v57, %v8171_v17  ;;  %v1597_v5 = vpop.f32.mrb[75].mxu1  ;;  %v7022_v15 = vpop.eup %7021  ;;  %7033 = vtanh.f32 %v1970_v53 }
 0x2ca   :  { %2383 = vadd.xlane.f32.xlu1 %v2230_v55  ;;  %7035 = vtanh.f32 %v1966_v11  ;;  %v2273_v31 = vmul.f32 %v8445_v48, %v7022_v15  ;;  %v1971_v36 = vadd.f32 %v8421_v16, %v1836_v9 }
 0x2cb   :  { %v7024_v18 = vpop.eup %7023  ;;  %2377 = vadd.xlane.f32.xlu0 %v2227_v13  ;;  %7037 = vtanh.f32 %v2016_v20  ;;  %v2017_v61 = vadd.f32 %v8421_v16, %v1882_v12 }
 0x2cc   :  { %v1416_v22 = vpop.f32.mrb[64].mxu0  ;;  %v2231_v7 = vmul.f32 %v8445_v48, %v7024_v18  ;;  %7039 = vtanh.f32 %v2012_v21 }
 0x2cd   :  { %v7026_v26 = vpop.eup %7025  ;;  %v1837_v28 = vadd.f32 %v1416_v22, %v8171_v17  ;;  %v1600_v29 = vpop.f32.mrb[76].mxu1  ;;  %7041 = vtanh.f32 %v1971_v36 }
 0x2ce   :  { %v1418_v30 = vpop.f32.mrb[65].mxu0  ;;  %v7028_v14 = vpop.eup %7027  ;;  %v1883_v32 = vadd.f32 %v1600_v29, %v8171_v17  ;;  %2385 = vadd.xlane.f32.xlu1 %v2231_v7  ;;  %v2232_v43 = vmul.f32 %v8445_v48, %v7026_v26  ;;  %7043 = vtanh.f32 %v2013_v40 }
 0x2cf   :  { %v1602_v33 = vpop.f32.mrb[77].mxu1  ;;  %v1419_v34 = vpop.f32.mrb[66].mxu0  ;;  %2469 = vadd.xlane.f32.xlu0 %v2273_v31  ;;  %v2228_v45 = vmul.f32 %v8445_v48, %v7028_v14  ;;  %7045 = vtanh.f32 %v2017_v61  ;;  %v1972_v38 = vadd.f32 %v8421_v16, %v1837_v28 }
 0x2d0   :  { %v1603_v10 = vpop.f32.mrb[78].mxu1  ;;  %v1838_v37 = vadd.f32 %v1419_v34, %v8171_v17  ;;  %v1421_v25 = vpop.f32.mrb[67].mxu0  ;;  %7047 = vtanh.f32 %v2014_v46  ;;  %v2018_v57 = vadd.f32 %v8421_v16, %v1883_v32 }
 0x2d1   :  { %v8476_v41 = vadd.f32 %v1603_v10, %v8171_v17  ;;  %v1605_v42 = vpop.f32.mrb[79].mxu1  ;;  %v7030_v23 = vpop.eup %7029  ;;  %7049 = vtanh.f32 %v1972_v38 }
 0x2d2   :  { %v7032_v44 = vpop.eup %7031  ;;  %2387 = vadd.xlane.f32.xlu1 %v2232_v43  ;;  %v2278_v47 = vmul.f32 %v8445_v48, %v7030_v23  ;;  %v1973_v21 = vadd.f32 %v8421_v16, %v1838_v37 }
 0x2d3   :  { %2379 = vadd.xlane.f32.xlu0 %v2228_v45  ;;  %v7034_v51 = vpop.eup %7033  ;;  %v2274_v56 = vmul.f32 %v8445_v48, %v7032_v44  ;;  %v2019_v10 = vadd.f32 %v8421_v16, %v8476_v41 }
 0x2d4   :  { %v1424_v19 = vpop.f32.mrb[68].mxu0  ;;  %v7036_v58 = vpop.eup %7035  ;;  %v2233_v6 = vmul.f32 %v8445_v48, %v7034_v51 }
 0x2d5   :  { %v1839_v35 = vadd.f32 %v1424_v19, %v8171_v17  ;;  %v1608_v52 = vpop.f32.mrb[80].mxu1  ;;  %v1426_v54 = vpop.f32.mrb[69].mxu0  ;;  %v2229_v8 = vmul.f32 %v8445_v48, %v7036_v58 }
 0x2d6   :  { %v8487_v49 = vadd.f32 %v1608_v52, %v8171_v17  ;;  %v1610_v27 = vpop.f32.mrb[81].mxu1  ;;  %2479 = vadd.xlane.f32.xlu1 %v2278_v47  ;;  %v1427_v59 = vpop.f32.mrb[70].mxu0 }
 0x2d7   :  { %v1611_v62 = vpop.f32.mrb[82].mxu1  ;;  %2471 = vadd.xlane.f32.xlu0 %v2274_v56  ;;  %v8491_v63 = vadd.f32 %v1427_v59, %v8171_v17  ;;  %v1429_v60 = vpop.f32.mrb[71].mxu0  ;;  %v1974_v2 = vadd.f32 %v8421_v16, %v1839_v35 }
 0x2d8   :  { %v8495_v3 = vadd.f32 %v1611_v62, %v8171_v17  ;;  %v1613_v4 = vpop.f32.mrb[83].mxu1  ;;  %v7038_v50 = vpop.eup %7037  ;;  %v2020_v51 = vadd.f32 %v8421_v16, %v8487_v49 }
 0x2d9   :  { %v7040_v53 = vpop.eup %7039  ;;  %7051 = vtanh.f32 %v1974_v2  ;;  %v2279_v39 = vmul.f32 %v8445_v48, %v7038_v50  ;;  %v8515_v37 = vpop.xlane.xlu0 %2409  ;;  %v1975_v4 = vadd.f32 %v8421_v16, %v8491_v63 }
 0x2da   :  { %2389 = vadd.xlane.f32.xlu1 %v2233_v6  ;;  %v7042_v11 = vpop.eup %7041  ;;  %v2275_v13 = vmul.f32 %v8445_v48, %v7040_v53  ;;  %7053 = vtanh.f32 %v2018_v57  ;;  %v2021_v63 = vadd.f32 %v8421_v16, %v8495_v3 }
 0x2db   :  { %2381 = vadd.xlane.f32.xlu0 %v2229_v8  ;;  %v7044_v15 = vpop.eup %7043  ;;  %v2234_v14 = vmul.f32 %v8445_v48, %v7042_v11 }
 0x2dc   :  { %v1432_v9 = vpop.f32.mrb[72].mxu0  ;;  %v7046_v33 = vpop.eup %7045  ;;  %v2276_v34 = vmul.f32 %v8445_v48, %v7044_v15 }
 0x2dd   :  { %v1841_v12 = vadd.f32 %v1432_v9, %v8171_v17  ;;  %v1616_v5 = vpop.f32.mrb[84].mxu1  ;;  %v1434_v55 = vpop.f32.mrb[73].mxu0  ;;  %v2280_v42 = vmul.f32 %v8445_v48, %v7046_v33 }
 0x2de   :  { %v1887_v18 = vadd.f32 %v1616_v5, %v8171_v17  ;;  %v1618_v20 = vpop.f32.mrb[85].mxu1  ;;  %2481 = vadd.xlane.f32.xlu1 %v2279_v39  ;;  %v1435_v26 = vpop.f32.mrb[74].mxu0 }
 0x2df   :  { %v1976_v22 = vadd.f32 %v8421_v16, %v1841_v12  ;;  %v1619_v7 = vpop.f32.mrb[86].mxu1  ;;  %2473 = vadd.xlane.f32.xlu0 %v2275_v13  ;;  %v1842_v30 = vadd.f32 %v1435_v26, %v8171_v17  ;;  %v1437_v32 = vpop.f32.mrb[75].mxu0 }
 0x2e0   :  { %v2022_v28 = vadd.f32 %v8421_v16, %v1887_v18  ;;  %v8508_v29 = vadd.f32 %v1619_v7, %v8171_v17  ;;  %v1621_v31 = vpop.f32.mrb[87].mxu1  ;;  %v7048_v36 = vpop.eup %7047 }
 0x2e1   :  { %7055 = vtanh.f32 %v1976_v22  ;;  %v1977_v25 = vadd.f32 %v8421_v16, %v1842_v30  ;;  %v7050_v43 = vpop.eup %7049  ;;  %v2277_v61 = vmul.f32 %v8445_v48, %v7048_v36  ;;  %v8528_v62 = vpop.xlane.xlu0 %2411 }
 0x2e2   :  { %2391 = vadd.xlane.f32.xlu1 %v2234_v14  ;;  %7057 = vtanh.f32 %v1973_v21  ;;  %v2235_v59 = vmul.f32 %v8445_v48, %v7050_v43  ;;  %10262 = vst [vmem:[#allocation41_spill] sm:$0xff] %v8528_v62  ;;  %v8530_v60 = vpop.xlane.xlu1 %2415  ;;  %v2023_v3 = vadd.f32 %v8421_v16, %v8508_v29 }
 0x2e3   :  { %2475 = vadd.xlane.f32.xlu0 %v2276_v34  ;;  %7059 = vtanh.f32 %v2022_v28  ;;  %v7052_v46 = vpop.eup %7051 }
 0x2e4   :  { %v1440_v40 = vpop.f32.mrb[76].mxu0  ;;  %7061 = vtanh.f32 %v2019_v10  ;;  %v7054_v38 = vpop.eup %7053  ;;  %v2237_v49 = vmul.f32 %v8445_v48, %v7052_v46 }
 0x2e5   :  { %v1843_v23 = vadd.f32 %v1440_v40, %v8171_v17  ;;  %v1624_v45 = vpop.f32.mrb[88].mxu1  ;;  %v1442_v44 = vpop.f32.mrb[77].mxu0  ;;  %7063 = vtanh.f32 %v1977_v25  ;;  %v2281_v50 = vmul.f32 %v8445_v48, %v7054_v38 }
 0x2e6   :  { %v1889_v41 = vadd.f32 %v1624_v45, %v8171_v17  ;;  %v1626_v19 = vpop.f32.mrb[89].mxu1  ;;  %2483 = vadd.xlane.f32.xlu1 %v2280_v42  ;;  %v1443_v47 = vpop.f32.mrb[78].mxu0  ;;  %7065 = vtanh.f32 %v2020_v51 }
 0x2e7   :  { %v1627_v35 = vpop.f32.mrb[90].mxu1  ;;  %2477 = vadd.xlane.f32.xlu0 %v2277_v61  ;;  %v1844_v52 = vadd.f32 %v1443_v47, %v8171_v17  ;;  %v1445_v54 = vpop.f32.mrb[79].mxu0  ;;  %v1978_v56 = vadd.f32 %v8421_v16, %v1843_v23 }
 0x2e8   :  { %v1890_v58 = vadd.f32 %v1627_v35, %v8171_v17  ;;  %v1629_v27 = vpop.f32.mrb[91].mxu1  ;;  %v2024_v6 = vadd.f32 %v8421_v16, %v1889_v41  ;;  %v8538_v57 = vpop.xlane.xlu1 %2417 }
 0x2e9   :  { %7067 = vtanh.f32 %v1978_v56  ;;  %v8543_v5 = vpop.xlane.xlu0 %2413  ;;  %v1979_v13 = vadd.f32 %v8421_v16, %v1844_v52 }
 0x2ea   :  { %2393 = vadd.xlane.f32.xlu1 %v2235_v59  ;;  %7069 = vtanh.f32 %v1975_v4  ;;  %v2025_v30 = vadd.f32 %v8421_v16, %v1890_v58 }
 0x2eb   :  { %v7056_v2 = vpop.eup %7055  ;;  %2397 = vadd.xlane.f32.xlu0 %v2237_v49  ;;  %7071 = vtanh.f32 %v2024_v6 }
 0x2ec   :  { %v2239_v8 = vmul.f32 %v8445_v48, %v7056_v2  ;;  %v7058_v53 = vpop.eup %7057  ;;  %7073 = vtanh.f32 %v2021_v63  ;;  %v8551_v26 = vpop.xlane.xlu1 %2419 }
 0x2ed   :  { %v1632_v9 = vpop.f32.mrb[92].mxu1  ;;  %v7060_v39 = vpop.eup %7059  ;;  %v2236_v20 = vmul.f32 %v8445_v48, %v7058_v53  ;;  %7075 = vtanh.f32 %v1979_v13 }
 0x2ee   :  { %v1891_v11 = vadd.f32 %v1632_v9, %v8171_v17  ;;  %v1634_v12 = vpop.f32.mrb[93].mxu1  ;;  %2485 = vadd.xlane.f32.xlu1 %v2281_v50  ;;  %v7062_v21 = vpop.eup %7061  ;;  %v2285_v22 = vmul.f32 %v8445_v48, %v7060_v39  ;;  %7077 = vtanh.f32 %v2023_v3 }
 0x2ef   :  { %v1635_v55 = vpop.f32.mrb[94].mxu1  ;;  %2401 = vadd.xlane.f32.xlu0 %v2239_v8  ;;  %v7064_v7 = vpop.eup %7063  ;;  %v2282_v31 = vmul.f32 %v8445_v48, %v7062_v21  ;;  %7079 = vtanh.f32 %v2025_v30 }
 0x2f0   :  { %v1892_v15 = vadd.f32 %v1635_v55, %v8171_v17  ;;  %v1637_v18 = vpop.f32.mrb[95].mxu1  ;;  %v7066_v14 = vpop.eup %7065  ;;  %v2240_v33 = vmul.f32 %v8445_v48, %v7064_v7  ;;  %v2026_v40 = vadd.f32 %v8421_v16, %v1891_v11 }
 0x2f1   :  { %v2283_v23 = vmul.f32 %v8445_v48, %v7066_v14  ;;  %v8564_v44 = vpop.xlane.xlu1 %2421 }
 0x2f2   :  { %2395 = vadd.xlane.f32.xlu1 %v2236_v20  ;;  %7081 = vtanh.f32 %v2026_v40  ;;  %v2027_v41 = vadd.f32 %v8421_v16, %v1892_v15 }
 0x2f3   :  { %2493 = vadd.xlane.f32.xlu0 %v2285_v22  ;;  %v8553_v28 = vpop.xlane.xlu0 %2333  ;;  %v7068_v34 = vpop.eup %7067 }
 0x2f4   :  { %v7070_v45 = vpop.eup %7069  ;;  %v2241_v61 = vmul.f32 %v8445_v48, %v7068_v34  ;;  %7083 = vtanh.f32 %v2027_v41 }
 0x2f5   :  { %v1640_v32 = vpop.f32.mrb[96].mxu1  ;;  %v7072_v46 = vpop.eup %7071  ;;  %v2238_v47 = vmul.f32 %v8445_v48, %v7070_v45 }
 0x2f6   :  { %v1893_v36 = vadd.f32 %v1640_v32, %v8171_v17  ;;  %v1642_v10 = vpop.f32.mrb[97].mxu1  ;;  %2487 = vadd.xlane.f32.xlu1 %v2282_v31  ;;  %v7074_v51 = vpop.eup %7073  ;;  %v2287_v52 = vmul.f32 %v8445_v48, %v7072_v46 }
 0x2f7   :  { %v1643_v29 = vpop.f32.mrb[98].mxu1  ;;  %2403 = vadd.xlane.f32.xlu0 %v2240_v33  ;;  %v8559_v25 = vpop.xlane.xlu0 %2335  ;;  %v2284_v6 = vmul.f32 %v8445_v48, %v7074_v51 }
 0x2f8   :  { %v1894_v42 = vadd.f32 %v1643_v29, %v8171_v17  ;;  %v1645_v43 = vpop.f32.mrb[99].mxu1  ;;  %v7076_v54 = vpop.eup %7075  ;;  %v2028_v59 = vadd.f32 %v8421_v16, %v1893_v36 }
 0x2f9   :  { %v8573_v27 = vpop.xlane.xlu1 %2423  ;;  %v7078_v50 = vpop.eup %7077  ;;  %v2242_v8 = vmul.f32 %v8445_v48, %v7076_v54 }
 0x2fa   :  { %2489 = vadd.xlane.f32.xlu1 %v2283_v23  ;;  %v7080_v53 = vpop.eup %7079  ;;  %7085 = vtanh.f32 %v2028_v59  ;;  %v2029_v39 = vadd.f32 %v8421_v16, %v1894_v42  ;;  %v2286_v12 = vmul.f32 %v8445_v48, %v7078_v50 }
 0x2fb   :  { %2405 = vadd.xlane.f32.xlu0 %v2241_v61  ;;  %v2288_v13 = vmul.f32 %v8445_v48, %v7080_v53 }
 0x2fc   :  { %v8568_v19 = vpop.xlane.xlu0 %2429  ;;  %v7082_v15 = vpop.eup %7081 }
 0x2fd   :  { %v1648_v35 = vpop.f32.mrb[100].mxu1  ;;  %v8586_v63 = vpop.xlane.xlu1 %2425  ;;  %v2289_v14 = vmul.f32 %v8445_v48, %v7082_v15 }
 0x2fe   :  { %v1895_v56 = vadd.f32 %v1648_v35, %v8171_v17  ;;  %v1650_v58 = vpop.f32.mrb[101].mxu1  ;;  %2399 = vadd.xlane.f32.xlu1 %v2238_v47  ;;  %v7084_v32 = vpop.eup %7083 }
 0x2ff   :  { %v1651_v38 = vpop.f32.mrb[102].mxu1  ;;  %2497 = vadd.xlane.f32.xlu0 %v2287_v52  ;;  %v2290_v40 = vmul.f32 %v8445_v48, %v7084_v32 }
 0x300   :  { %v1896_v49 = vadd.f32 %v1651_v38, %v8171_v17  ;;  %v1653_v2 = vpop.f32.mrb[103].mxu1  ;;  %v8577_v4 = vpop.xlane.xlu0 %2337  ;;  %v2030_v21 = vadd.f32 %v8421_v16, %v1895_v56 }
 0x301   :  { %v8597_v34 = vpop.xlane.xlu1 %2427 }
 0x302   :  { %v2031_v9 = vadd.f32 %v8421_v16, %v1896_v49  ;;  %2491 = vadd.xlane.f32.xlu1 %v2284_v6 }
 0x303   :  { %2407 = vadd.xlane.f32.xlu0 %v2242_v8 }
 0x304   :  { %7087 = vtanh.f32 %v2031_v9  ;;  %v8583_v11 = vpop.xlane.xlu0 %2339  ;;  %v7086_v10 = vpop.eup %7085 }
 0x305   :  { %v1656_v55 = vpop.f32.mrb[104].mxu1  ;;  %7089 = vtanh.f32 %v2029_v39  ;;  %v8603_v45 = vpop.xlane.xlu1 %2431  ;;  %v2291_v52 = vmul.f32 %v8445_v48, %v7086_v10 }
 0x306   :  { %v1897_v18 = vadd.f32 %v1656_v55, %v8171_v17  ;;  %v1658_v20 = vpop.f32.mrb[105].mxu1  ;;  %2495 = vadd.xlane.f32.xlu1 %v2286_v12 }
 0x307   :  { %v1659_v22 = vpop.f32.mrb[106].mxu1  ;;  %2499 = vadd.xlane.f32.xlu0 %v2288_v13 }
 0x308   :  { %v2032_v7 = vadd.f32 %v8421_v16, %v1897_v18  ;;  %v1898_v3 = vadd.f32 %v1659_v22, %v8171_v17  ;;  %v1661_v30 = vpop.f32.mrb[107].mxu1  ;;  %v8593_v31 = vpop.xlane.xlu0 %2433 }
 0x30a   :  { %7091 = vtanh.f32 %v2032_v7  ;;  %v2033_v33 = vadd.f32 %v8421_v16, %v1898_v3 }
 0x30b   :  { %7093 = vtanh.f32 %v2030_v21  ;;  %2501 = vadd.xlane.f32.xlu0 %v2289_v14 }
 0x30c   :  { %7095 = vtanh.f32 %v2033_v33  ;;  %v8599_v36 = vpop.xlane.xlu0 %2341 }
 0x30d   :  { %v1664_v29 = vpop.f32.mrb[108].mxu1 }
 0x30e   :  { %v7088_v42 = vpop.eup %7087  ;;  %v1899_v43 = vadd.f32 %v1664_v29, %v8171_v17  ;;  %v1666_v23 = vpop.f32.mrb[109].mxu1 }
 0x30f   :  { %v1667_v61 = vpop.f32.mrb[110].mxu1  ;;  %2503 = vadd.xlane.f32.xlu0 %v2290_v40  ;;  %v2294_v46 = vmul.f32 %v8445_v48, %v7088_v42  ;;  %v7090_v54 = vpop.eup %7089 }
 0x310   :  { %v2034_v41 = vadd.f32 %v8421_v16, %v1899_v43  ;;  %v1900_v47 = vadd.f32 %v1667_v61, %v8171_v17  ;;  %v1669_v51 = vpop.f32.mrb[111].mxu1  ;;  %v8608_v35 = vpop.xlane.xlu0 %2435  ;;  %v2292_v50 = vmul.f32 %v8445_v48, %v7090_v54 }
 0x311   :  { %2511 = vadd.xlane.f32.xlu1 %v2294_v46 }
 0x312   :  { %7097 = vtanh.f32 %v2034_v41  ;;  %v2035_v56 = vadd.f32 %v8421_v16, %v1900_v47 }
 0x313   :  { %2505 = vadd.xlane.f32.xlu0 %v2291_v52  ;;  %v8612_v58 = vpop.xlane.xlu1 %2349 }
 0x314   :  { %v7092_v59 = vpop.eup %7091  ;;  %7099 = vtanh.f32 %v2035_v56  ;;  %v8614_v38 = vpop.xlane.xlu0 %2343 }
 0x315   :  { %v7094_v49 = vpop.eup %7093  ;;  %v1672_v2 = vpop.f32.mrb[112].mxu1  ;;  %v2295_v6 = vmul.f32 %v8445_v48, %v7092_v59 }
 0x316   :  { %v7096_v8 = vpop.eup %7095  ;;  %v1901_v53 = vadd.f32 %v1672_v2, %v8171_v17  ;;  %v1674_v9 = vpop.f32.mrb[113].mxu1  ;;  %v2293_v21 = vmul.f32 %v8445_v48, %v7094_v49 }
 0x317   :  { %v1675_v39 = vpop.f32.mrb[114].mxu1  ;;  %2513 = vadd.xlane.f32.xlu1 %v2295_v6  ;;  %2507 = vadd.xlane.f32.xlu0 %v2292_v50  ;;  %v8619_v12 = vpop.xlane.xlu1 %2351  ;;  %v2296_v20 = vmul.f32 %v8445_v48, %v7096_v8 }
 0x318   :  { %v2036_v55 = vadd.f32 %v8421_v16, %v1901_v53  ;;  %v1902_v13 = vadd.f32 %v1675_v39, %v8171_v17  ;;  %v1677_v15 = vpop.f32.mrb[115].mxu1  ;;  %v8623_v18 = vpop.xlane.xlu0 %2437 }
 0x31a   :  { %7101 = vtanh.f32 %v2036_v55  ;;  %v2037_v22 = vadd.f32 %v8421_v16, %v1902_v13 }
 0x31b   :  { %2515 = vadd.xlane.f32.xlu1 %v2296_v20  ;;  %2509 = vadd.xlane.f32.xlu0 %v2293_v21  ;;  %v8628_v7 = vpop.xlane.xlu1 %2353 }
 0x31c   :  { %v7098_v3 = vpop.eup %7097  ;;  %7103 = vtanh.f32 %v2037_v22  ;;  %v8630_v30 = vpop.xlane.xlu0 %2345 }
 0x31d   :  { %v1680_v14 = vpop.f32.mrb[116].mxu1  ;;  %v2297_v32 = vmul.f32 %v8445_v48, %v7098_v3 }
 0x31e   :  { %v7100_v33 = vpop.eup %7099  ;;  %v1903_v10 = vadd.f32 %v1680_v14, %v8171_v17  ;;  %v1682_v29 = vpop.f32.mrb[117].mxu1 }
 0x31f   :  { %v1683_v40 = vpop.f32.mrb[118].mxu1  ;;  %2517 = vadd.xlane.f32.xlu1 %v2297_v32  ;;  %v8634_v42 = vpop.xlane.xlu1 %2447  ;;  %v2298_v41 = vmul.f32 %v8445_v48, %v7100_v33 }
 0x320   :  { %v2038_v43 = vadd.f32 %v8421_v16, %v1903_v10  ;;  %v1904_v23 = vadd.f32 %v1683_v40, %v8171_v17  ;;  %v1685_v61 = vpop.f32.mrb[119].mxu1  ;;  %v8638_v46 = vpop.xlane.xlu0 %2439 }
 0x322   :  { %7105 = vtanh.f32 %v2038_v43  ;;  %v2039_v47 = vadd.f32 %v8421_v16, %v1904_v23 }
 0x323   :  { %2519 = vadd.xlane.f32.xlu1 %v2298_v41  ;;  %v8642_v51 = vpop.xlane.xlu1 %2355 }
 0x324   :  { %v7102_v52 = vpop.eup %7101  ;;  %7107 = vtanh.f32 %v2039_v47  ;;  %v8644_v54 = vpop.xlane.xlu0 %2347 }
 0x325   :  { %v1688_v56 = vpop.f32.mrb[120].mxu1  ;;  %v2299_v59 = vmul.f32 %v8445_v48, %v7102_v52 }
 0x326   :  { %v7104_v49 = vpop.eup %7103  ;;  %v1905_v2 = vadd.f32 %v1688_v56, %v8171_v17  ;;  %v1690_v6 = vpop.f32.mrb[121].mxu1 }
 0x327   :  { %v1691_v50 = vpop.f32.mrb[122].mxu1  ;;  %2521 = vadd.xlane.f32.xlu1 %v2299_v59  ;;  %v8648_v8 = vpop.xlane.xlu1 %2449  ;;  %v2300_v13 = vmul.f32 %v8445_v48, %v7104_v49 }
 0x328   :  { %v2040_v53 = vadd.f32 %v8421_v16, %v1905_v2  ;;  %v1906_v9 = vadd.f32 %v1691_v50, %v8171_v17  ;;  %v1693_v39 = vpop.f32.mrb[123].mxu1  ;;  %v8652_v55 = vpop.xlane.xlu0 %2441 }
 0x32a   :  { %7109 = vtanh.f32 %v2040_v53  ;;  %v2041_v15 = vadd.f32 %v8421_v16, %v1906_v9 }
 0x32b   :  { %2523 = vadd.xlane.f32.xlu1 %v2300_v13  ;;  %v8658_v22 = vpop.xlane.xlu1 %2357 }
 0x32c   :  { %v7106_v20 = vpop.eup %7105  ;;  %7111 = vtanh.f32 %v2041_v15  ;;  %v8656_v21 = vpop.xlane.xlu0 %2443 }
 0x32d   :  { %v1696_v3 = vpop.f32.mrb[124].mxu1  ;;  %v2301_v14 = vmul.f32 %v8445_v48, %v7106_v20 }
 0x32e   :  { %v7108_v32 = vpop.eup %7107  ;;  %v1907_v33 = vadd.f32 %v1696_v3, %v8171_v17  ;;  %v1698_v10 = vpop.f32.mrb[125].mxu1 }
 0x32f   :  { %v1699_v29 = vpop.f32.mrb[126].mxu1  ;;  %2525 = vadd.xlane.f32.xlu0 %v2301_v14  ;;  %v2302_v40 = vmul.f32 %v8445_v48, %v7108_v32  ;;  %v8668_v52 = vpop.xlane.xlu1 %2451 }
 0x330   :  { %v2042_v43 = vadd.f32 %v8421_v16, %v1907_v33  ;;  %v1908_v23 = vadd.f32 %v1699_v29, %v8171_v17  ;;  %v1701_v61 = vpop.f32.mrb[127].mxu1  ;;  %v8665_v41 = vpop.xlane.xlu0 %2445 }
 0x331   :  { %2527 = vadd.xlane.f32.xlu1 %v2302_v40 }
 0x332   :  { %7113 = vtanh.f32 %v2042_v43  ;;  %v2043_v47 = vadd.f32 %v8421_v16, %v1908_v23 }
 0x333   :  { %v8674_v39 = vpop.xlane.xlu1 %2359 }
 0x334   :  { %v7110_v56 = vpop.eup %7109  ;;  %7115 = vtanh.f32 %v2043_v47  ;;  %v8672_v53 = vpop.xlane.xlu0 %2365 }
 0x335   :  { %v1704_v59 = vpop.f32.mrb[128].mxu1  ;;  %v2303_v49 = vmul.f32 %v8445_v48, %v7110_v56 }
 0x336   :  { %v7112_v2 = vpop.eup %7111  ;;  %v1909_v6 = vadd.f32 %v1704_v59, %v8171_v17  ;;  %v1706_v50 = vpop.f32.mrb[129].mxu1 }
 0x337   :  { %v1707_v9 = vpop.f32.mrb[130].mxu1  ;;  %2529 = vadd.xlane.f32.xlu0 %v2303_v49  ;;  %v2304_v3 = vmul.f32 %v8445_v48, %v7112_v2  ;;  %v8684_v40 = vpop.xlane.xlu1 %2453 }
 0x338   :  { %v2044_v13 = vadd.f32 %v8421_v16, %v1909_v6  ;;  %v8678_v15 = vadd.f32 %v1707_v9, %v8171_v17  ;;  %v1709_v20 = vpop.f32.mrb[131].mxu1 }
 0x33a   :  { %7117 = vtanh.f32 %v2044_v13 }
 0x33b   :  { %2531 = vadd.xlane.f32.xlu0 %v2304_v3  ;;  %v8681_v14 = vpop.xlane.xlu0 %2369  ;;  %v8693_v9 = vpop.xlane.xlu1 %2361 }
 0x33c   :  { %v7114_v32 = vpop.eup %7113 }
 0x33d   :  { %v1712_v33 = vpop.f32.mrb[132].mxu1  ;;  %v2305_v10 = vmul.f32 %v8445_v48, %v7114_v32 }
 0x33e   :  { %v7116_v29 = vpop.eup %7115  ;;  %v1911_v43 = vadd.f32 %v1712_v33, %v8171_v17  ;;  %v1714_v23 = vpop.f32.mrb[133].mxu1 }
 0x33f   :  { %v1715_v61 = vpop.f32.mrb[134].mxu1  ;;  %2533 = vadd.xlane.f32.xlu0 %v2305_v10  ;;  %v2306_v2 = vmul.f32 %v8445_v48, %v7116_v29 }
 0x340   :  { %v2046_v47 = vadd.f32 %v8421_v16, %v1911_v43  ;;  %v1912_v56 = vadd.f32 %v1715_v61, %v8171_v17  ;;  %v1717_v59 = vpop.f32.mrb[135].mxu1  ;;  %v8689_v49 = vpop.xlane.xlu0 %2461 }
 0x341   :  { %10263 = vst [vmem:[#allocation42_spill] sm:$0xff] %v8689_v49 }
 0x342   :  { %7119 = vtanh.f32 %v2046_v47  ;;  %v2047_v6 = vadd.f32 %v8421_v16, %v1912_v56  ;;  %v8703_v47 = vpop.xlane.xlu1 %2455 }
 0x343   :  { %2535 = vadd.xlane.f32.xlu0 %v2306_v2 }
 0x344   :  { %v7118_v50 = vpop.eup %7117  ;;  %7121 = vtanh.f32 %v2047_v6  ;;  %v8695_v13 = vpop.xlane.xlu0 %2371 }
 0x345   :  { %v1720_v20 = vpop.f32.mrb[136].mxu1  ;;  %v2307_v3 = vmul.f32 %v8445_v48, %v7118_v50 }
 0x346   :  { %v1913_v32 = vadd.f32 %v1720_v20, %v8171_v17  ;;  %v1722_v33 = vpop.f32.mrb[137].mxu1 }
 0x347   :  { %v1723_v10 = vpop.f32.mrb[138].mxu1  ;;  %2537 = vadd.xlane.f32.xlu0 %v2307_v3 }
 0x348   :  { %v2048_v29 = vadd.f32 %v8421_v16, %v1913_v32  ;;  %v1914_v43 = vadd.f32 %v1723_v10, %v8171_v17  ;;  %v1725_v23 = vpop.f32.mrb[139].mxu1  ;;  %v8701_v61 = vpop.xlane.xlu0 %2373 }
 0x349   :  { %10264 = vst [vmem:[#allocation43_spill] sm:$0xff] %v8701_v61  ;;  %v8711_v23 = vpop.xlane.xlu1 %2363 }
 0x34a   :  { %7123 = vtanh.f32 %v2048_v29  ;;  %v2049_v56 = vadd.f32 %v8421_v16, %v1914_v43 }
 0x34c   :  { %v7120_v59 = vpop.eup %7119  ;;  %7125 = vtanh.f32 %v2049_v56  ;;  %v8707_v20 = vpop.xlane.xlu0 %2465 }
 0x34d   :  { %v1728_v2 = vpop.f32.mrb[140].mxu1  ;;  %v2309_v6 = vmul.f32 %v8445_v48, %v7120_v59  ;;  %10265 = vst [vmem:[#allocation44_spill] sm:$0xff] %v8707_v20 }
 0x34e   :  { %v7122_v50 = vpop.eup %7121  ;;  %v1915_v3 = vadd.f32 %v1728_v2, %v8171_v17  ;;  %v1730_v32 = vpop.f32.mrb[141].mxu1 }
 0x34f   :  { %v1731_v33 = vpop.f32.mrb[142].mxu1  ;;  %2541 = vadd.xlane.f32.xlu0 %v2309_v6  ;;  %v2310_v10 = vmul.f32 %v8445_v48, %v7122_v50  ;;  %v8719_v50 = vpop.xlane.xlu1 %2457 }
 0x350   :  { %v2050_v29 = vadd.f32 %v8421_v16, %v1915_v3  ;;  %v1916_v43 = vadd.f32 %v1731_v33, %v8171_v17  ;;  %v1733_v56 = vpop.f32.mrb[143].mxu1  ;;  %v8716_v1 = vpop.xlane.xlu0 %2375 }
 0x351   :  { %2543 = vadd.xlane.f32.xlu1 %v2310_v10  ;;  %10266 = vst [vmem:[#allocation45_spill] sm:$0xff] %v8716_v1 }
 0x352   :  { %7127 = vtanh.f32 %v2050_v29  ;;  %v2051_v59 = vadd.f32 %v8421_v16, %v1916_v43 }
 0x354   :  { %v7124_v0 = vpop.eup %7123  ;;  %7129 = vtanh.f32 %v2051_v59  ;;  %v8725_v56 = vpop.xlane.xlu0 %2467 }
 0x355   :  { %v1736_v2 = vpop.f32.mrb[144].mxu1  ;;  %v2311_v6 = vmul.f32 %v8445_v48, %v7124_v0  ;;  %10267 = vst [vmem:[#allocation46_spill] sm:$0xff] %v8725_v56  ;;  %v8727_v59 = vpop.xlane.xlu1 %2367 }
 0x356   :  { %v7126_v32 = vpop.eup %7125  ;;  %v1917_v24 = vadd.f32 %v1736_v2, %v8171_v17  ;;  %v1738_v3 = vpop.f32.mrb[145].mxu1 }
 0x357   :  { %v1739_v62 = vpop.f32.mrb[146].mxu1  ;;  %2545 = vadd.xlane.f32.xlu1 %v2311_v6  ;;  %v2312_v43 = vmul.f32 %v8445_v48, %v7126_v32 }
 0x358   :  { %v2052_v33 = vadd.f32 %v8421_v16, %v1917_v24  ;;  %v1918_v10 = vadd.f32 %v1739_v62, %v8171_v17  ;;  %v1741_v29 = vpop.f32.mrb[147].mxu1  ;;  %v8731_v16 = vpop.xlane.xlu0 %2377  ;;  %v8733_v62 = vld [vmem:[#allocation13] ss:$0 sm:$0xff] }
 0x359   :  { %10268 = vst [vmem:[#allocation47_spill] sm:$0xff] %v8731_v16  ;;  %v8738_v56 = vpop.xlane.xlu1 %2459 }
 0x35a   :  { %7131 = vtanh.f32 %v2052_v33  ;;  %10269 = vst [vmem:[#allocation48_spill] sm:$0xff] %v8738_v56 }
 0x35b   :  { %2547 = vadd.xlane.f32.xlu1 %v2312_v43 }
 0x35c   :  { %v7128_v0 = vpop.eup %7127 }
 0x35d   :  { %v1744_v20 = vpop.f32.mrb[148].mxu1  ;;  %v2313_v2 = vmul.f32 %v8445_v48, %v7128_v0  ;;  %v2053_v0 = vadd.f32 %v8733_v62, %v1918_v10  ;;  %v8746_v56 = vpop.xlane.xlu1 %2463 }
 0x35e   :  { %v7130_v3 = vpop.eup %7129  ;;  %v1919_v6 = vadd.f32 %v1744_v20, %v8171_v17  ;;  %v1746_v1 = vpop.f32.mrb[149].mxu1 }
 0x35f   :  { %v1747_v24 = vpop.f32.mrb[150].mxu1  ;;  %2549 = vadd.xlane.f32.xlu1 %v2313_v2  ;;  %v2314_v43 = vmul.f32 %v8445_v48, %v7130_v3 }
 0x360   :  { %v2054_v32 = vadd.f32 %v8733_v62, %v1919_v6  ;;  %v1920_v33 = vadd.f32 %v1747_v24, %v8171_v17  ;;  %v1749_v29 = vpop.f32.mrb[151].mxu1  ;;  %v8743_v6 = vpop.xlane.xlu0 %2469 }
 0x361   :  { %10270 = vst [vmem:[#allocation49_spill] sm:$0xff] %v8743_v6 }
 0x362   :  { %7133 = vtanh.f32 %v2054_v32  ;;  %v2055_v1 = vadd.f32 %v8733_v62, %v1920_v33 }
 0x363   :  { %2551 = vadd.xlane.f32.xlu1 %v2314_v43 }
 0x364   :  { %v7132_v20 = vpop.eup %7131  ;;  %7135 = vtanh.f32 %v2055_v1 }
 0x365   :  { %v1752_v2 = vpop.f32.mrb[152].mxu1  ;;  %v2315_v16 = vmul.f32 %v8445_v48, %v7132_v20  ;;  %7137 = vtanh.f32 %v2053_v0  ;;  %v8751_v48 = vpop.xlane.xlu0 %2379  ;;  %v8753_v20 = vld [vmem:[#allocation14] ss:$0 sm:$0xff] }
 0x366   :  { %v1921_v24 = vadd.f32 %v1752_v2, %v8171_v17  ;;  %v1754_v29 = vpop.f32.mrb[153].mxu1  ;;  %10271 = vst [vmem:[#allocation50_spill] sm:$0xff] %v8751_v48 }
 0x367   :  { %v1755_v3 = vpop.f32.mrb[154].mxu1  ;;  %2553 = vadd.xlane.f32.xlu1 %v2315_v16  ;;  %v8756_v29 = vpop.xlane.xlu1 %2383 }
 0x368   :  { %v2056_v10 = vadd.f32 %v8733_v62, %v1921_v24  ;;  %v1922_v32 = vadd.f32 %v1755_v3, %v8171_v17  ;;  %v1757_v33 = vpop.f32.mrb[155].mxu1  ;;  %10272 = vst [vmem:[#allocation51_spill] sm:$0xff] %v8756_v29 }
 0x369   :  { %v8762_v61 = vpop.xlane.xlu0 %2471 }
 0x36a   :  { %7139 = vtanh.f32 %v2056_v10  ;;  %v2057_v43 = vadd.f32 %v8733_v62, %v1922_v32  ;;  %10273 = vst [vmem:[#allocation52_spill] sm:$0xff] %v8762_v61 }
 0x36c   :  { %v7134_v1 = vpop.eup %7133  ;;  %7141 = vtanh.f32 %v2057_v43 }
 0x36d   :  { %v1760_v0 = vpop.f32.mrb[156].mxu1  ;;  %v2317_v2 = vmul.f32 %v8753_v20, %v7134_v1  ;;  %v8770_v61 = vpop.xlane.xlu0 %2381 }
 0x36e   :  { %v7136_v16 = vpop.eup %7135  ;;  %v1923_v24 = vadd.f32 %v1760_v0, %v8171_v17  ;;  %v1762_v6 = vpop.f32.mrb[157].mxu1  ;;  %10275 = vst [vmem:[#allocation54_spill] sm:$0xff] %v8770_v61 }
 0x36f   :  { %v1763_v3 = vpop.f32.mrb[158].mxu1  ;;  %2557 = vadd.xlane.f32.xlu0 %v2317_v2  ;;  %v2318_v10 = vmul.f32 %v8753_v20, %v7136_v16  ;;  %v7138_v32 = vpop.eup %7137 }
 0x370   :  { %v2058_v33 = vadd.f32 %v8733_v62, %v1923_v24  ;;  %v1924_v43 = vadd.f32 %v1763_v3, %v8171_v17  ;;  %v1765_v48 = vpop.f32.mrb[159].mxu1  ;;  %v2316_v29 = vmul.f32 %v8753_v20, %v7138_v32  ;;  %v8766_v6 = vpop.xlane.xlu1 %2385 }
 0x371   :  { %2559 = vadd.xlane.f32.xlu1 %v2318_v10  ;;  %10274 = vst [vmem:[#allocation53_spill] sm:$0xff] %v8766_v6  ;;  %v8778_v49 = vpop.xlane.xlu0 %2473 }
 0x372   :  { %7143 = vtanh.f32 %v2058_v33  ;;  %v2059_v1 = vadd.f32 %v8733_v62, %v1924_v43  ;;  %10277 = vst [vmem:[#allocation56_spill] sm:$0xff] %v8778_v49 }
 0x374   :  { %v7140_v0 = vpop.eup %7139  ;;  %7145 = vtanh.f32 %v2059_v1  ;;  %v8775_v1 = vpop.xlane.xlu1 %2387 }
 0x375   :  { %v1768_v2 = vpop.f32.mrb[160].mxu1  ;;  %2555 = vadd.xlane.f32.xlu1 %v2316_v29  ;;  %v2319_v16 = vmul.f32 %v8753_v20, %v7140_v0  ;;  %10276 = vst [vmem:[#allocation55_spill] sm:$0xff] %v8775_v1 }
 0x376   :  { %v7142_v24 = vpop.eup %7141  ;;  %v1925_v3 = vadd.f32 %v1768_v2, %v8171_v17  ;;  %v1770_v48 = vpop.f32.mrb[161].mxu1 }
 0x377   :  { %v1771_v10 = vpop.f32.mrb[162].mxu1  ;;  %2561 = vadd.xlane.f32.xlu0 %v2319_v16  ;;  %v2320_v6 = vmul.f32 %v8753_v20, %v7142_v24 }
 0x378   :  { %v2060_v33 = vadd.f32 %v8733_v62, %v1925_v3  ;;  %v1926_v32 = vadd.f32 %v1771_v10, %v8171_v17  ;;  %v1773_v43 = vpop.f32.mrb[163].mxu1  ;;  %v2045_v3 = vadd.f32 %v8733_v62, %v8678_v15  ;;  %v8783_v24 = vpop.xlane.xlu1 %2479 }
 0x379   :  { %10278 = vst [vmem:[#allocation57_spill] sm:$0xff] %v8783_v24 }
 0x37a   :  { %7147 = vtanh.f32 %v2060_v33  ;;  %v2061_v15 = vadd.f32 %v8733_v62, %v1926_v32 }
 0x37b   :  { %2563 = vadd.xlane.f32.xlu0 %v2320_v6 }
 0x37c   :  { %v7144_v29 = vpop.eup %7143 }
 0x37d   :  { %v1776_v0 = vpop.f32.mrb[164].mxu1  ;;  %v2321_v2 = vmul.f32 %v8753_v20, %v7144_v29 }
 0x37e   :  { %v7146_v48 = vpop.eup %7145  ;;  %v1927_v16 = vadd.f32 %v1776_v0, %v8171_v17  ;;  %v1778_v61 = vpop.f32.mrb[165].mxu1 }
 0x37f   :  { %v1779_v10 = vpop.f32.mrb[166].mxu1  ;;  %2565 = vadd.xlane.f32.xlu0 %v2321_v2  ;;  %v2322_v29 = vmul.f32 %v8753_v20, %v7146_v48  ;;  %v8789_v0 = vpop.xlane.xlu0 %2475 }
 0x380   :  { %v2062_v33 = vadd.f32 %v8733_v62, %v1927_v16  ;;  %v1928_v6 = vadd.f32 %v1779_v10, %v8171_v17  ;;  %v1781_v43 = vpop.f32.mrb[167].mxu1  ;;  %10279 = vst [vmem:[#allocation58_spill] sm:$0xff] %v8789_v0  ;;  %v8793_v16 = vpop.xlane.xlu1 %2389 }
 0x381   :  { %10280 = vst [vmem:[#allocation59_spill] sm:$0xff] %v8793_v16 }
 0x382   :  { %7149 = vtanh.f32 %v2062_v33  ;;  %v2063_v49 = vadd.f32 %v8733_v62, %v1928_v6 }
 0x383   :  { %7151 = vtanh.f32 %v2045_v3  ;;  %2567 = vadd.xlane.f32.xlu0 %v2322_v29  ;;  %v8798_v29 = vpop.xlane.xlu0 %2477 }
 0x384   :  { %v7148_v61 = vpop.eup %7147  ;;  %7153 = vtanh.f32 %v2063_v49  ;;  %10281 = vst [vmem:[#allocation60_spill] sm:$0xff] %v8798_v29 }
 0x385   :  { %v1784_v2 = vpop.f32.mrb[168].mxu1  ;;  %v2323_v24 = vmul.f32 %v8753_v20, %v7148_v61  ;;  %7155 = vtanh.f32 %v2061_v15  ;;  %v8801_v61 = vpop.xlane.xlu1 %2481 }
 0x386   :  { %v1929_v10 = vadd.f32 %v1784_v2, %v8171_v17  ;;  %v1786_v43 = vpop.f32.mrb[169].mxu1  ;;  %10282 = vst [vmem:[#allocation61_spill] sm:$0xff] %v8801_v61 }
 0x387   :  { %v1787_v48 = vpop.f32.mrb[170].mxu1  ;;  %2569 = vadd.xlane.f32.xlu0 %v2323_v24 }
 0x388   :  { %v2064_v3 = vadd.f32 %v8733_v62, %v1929_v10  ;;  %v1930_v33 = vadd.f32 %v1787_v48, %v8171_v17  ;;  %v1789_v6 = vpop.f32.mrb[171].mxu1 }
 0x389   :  { %v8806_v6 = vpop.xlane.xlu0 %2397 }
 0x38a   :  { %7157 = vtanh.f32 %v2064_v3  ;;  %v2065_v49 = vadd.f32 %v8733_v62, %v1930_v33 }
 0x38c   :  { %v7150_v32 = vpop.eup %7149  ;;  %7159 = vtanh.f32 %v2065_v49 }
 0x38d   :  { %v7152_v0 = vpop.eup %7151  ;;  %v1792_v2 = vpop.f32.mrb[172].mxu1  ;;  %v2325_v43 = vmul.f32 %v8753_v20, %v7150_v32 }
 0x38e   :  { %v7154_v24 = vpop.eup %7153  ;;  %v1931_v15 = vadd.f32 %v1792_v2, %v8171_v17  ;;  %v1794_v10 = vpop.f32.mrb[173].mxu1  ;;  %v2308_v49 = vmul.f32 %v8753_v20, %v7152_v0 }
 0x38f   :  { %v1795_v16 = vpop.f32.mrb[174].mxu1  ;;  %2573 = vadd.xlane.f32.xlu0 %v2325_v43  ;;  %v2326_v48 = vmul.f32 %v8753_v20, %v7154_v24  ;;  %v7156_v1 = vpop.eup %7155 }
 0x390   :  { %v2066_v3 = vadd.f32 %v8733_v62, %v1931_v15  ;;  %v1932_v33 = vadd.f32 %v1795_v16, %v8171_v17  ;;  %v1797_v61 = vpop.f32.mrb[175].mxu1  ;;  %v8811_v32 = vpop.xlane.xlu1 %2391  ;;  %v2324_v15 = vmul.f32 %v8753_v20, %v7156_v1 }
 0x391   :  { %2575 = vadd.xlane.f32.xlu1 %v2326_v48  ;;  %10283 = vst [vmem:[#allocation62_spill] sm:$0xff] %v8811_v32  ;;  %v8816_v16 = vpop.xlane.xlu0 %2401 }
 0x392   :  { %7161 = vtanh.f32 %v2066_v3  ;;  %v2067_v2 = vadd.f32 %v8733_v62, %v1932_v33  ;;  %10284 = vst [vmem:[#allocation63_spill] sm:$0xff] %v8816_v16 }
 0x393   :  { %2539 = vadd.xlane.f32.xlu0 %v2308_v49 }
 0x394   :  { %v7158_v43 = vpop.eup %7157  ;;  %7163 = vtanh.f32 %v2067_v2  ;;  %v8819_v3 = vpop.xlane.xlu1 %2483 }
 0x395   :  { %v1800_v24 = vpop.f32.mrb[176].mxu1  ;;  %v2327_v10 = vmul.f32 %v8753_v20, %v7158_v43  ;;  %10285 = vst [vmem:[#allocation64_spill] sm:$0xff] %v8819_v3  ;;  %v8825_v16 = vpop.xlane.xlu0 %2493 }
 0x396   :  { %v7160_v29 = vpop.eup %7159  ;;  %v1933_v61 = vadd.f32 %v1800_v24, %v8171_v17  ;;  %v1802_v0 = vpop.f32.mrb[177].mxu1  ;;  %10286 = vst [vmem:[#allocation65_spill] sm:$0xff] %v8825_v16 }
 0x397   :  { %v1803_v48 = vpop.f32.mrb[178].mxu1  ;;  %2577 = vadd.xlane.f32.xlu1 %v2327_v10  ;;  %2571 = vadd.xlane.f32.xlu0 %v2324_v15  ;;  %v2328_v43 = vmul.f32 %v8753_v20, %v7160_v29 }
 0x398   :  { %v2068_v33 = vadd.f32 %v8733_v62, %v1933_v61  ;;  %v1934_v49 = vadd.f32 %v1803_v48, %v8171_v17  ;;  %v1805_v2 = vpop.f32.mrb[179].mxu1  ;;  %v8828_v15 = vpop.xlane.xlu1 %2393 }
 0x399   :  { %v8831_v17 = vpop.xlane.xlu0 %2403 }
 0x39a   :  { %7165 = vtanh.f32 %v2068_v33  ;;  %v2069_v1 = vadd.f32 %v8733_v62, %v1934_v49 }
 0x39b   :  { %2579 = vadd.xlane.f32.xlu1 %v2328_v43 }
 0x39c   :  { %v7162_v32 = vpop.eup %7161  ;;  %7167 = vtanh.f32 %v2069_v1  ;;  %v8833_v0 = vpop.xlane.xlu1 %2485 }
 0x39d   :  { %v2329_v24 = vmul.f32 %v8753_v20, %v7162_v32  ;;  %v8836_v33 = vpop.xlane.xlu0 %2405 }
 0x39e   :  { %v7164_v10 = vpop.eup %7163 }
 0x39f   :  { %2581 = vadd.xlane.f32.xlu1 %v2329_v24  ;;  %v2330_v61 = vmul.f32 %v8753_v20, %v7164_v10 }
 0x3a0   :  { %v8839_v49 = vpop.xlane.xlu1 %2395 }
 0x3a1   :  { %v8841_v2 = vpop.xlane.xlu0 %2497 }
 0x3a2   :  { %10287 = vst [vmem:[#allocation66_spill] sm:$0xff] %v8841_v2 }
 0x3a3   :  { %2583 = vadd.xlane.f32.xlu1 %v2330_v61 }
 0x3a4   :  { %v7166_v29 = vpop.eup %7165  ;;  %v8843_v43 = vpop.xlane.xlu1 %2487 }
 0x3a5   :  { %v2331_v62 = vmul.f32 %v8753_v20, %v7166_v29  ;;  %10288 = vst [vmem:[#allocation67_spill] sm:$0xff] %v8843_v43  ;;  %v8845_v1 = vpop.xlane.xlu0 %2407 }
 0x3a6   :  { %v7168_v48 = vpop.eup %7167  ;;  %10289 = vst [vmem:[#allocation68_spill] sm:$0xff] %v8845_v1 }
 0x3a7   :  { %2585 = vadd.xlane.f32.xlu1 %v2331_v62  ;;  %v2332_v32 = vmul.f32 %v8753_v20, %v7168_v48 }
 0x3a8   :  { %v8847_v24 = vpop.xlane.xlu1 %2489 }
 0x3a9   :  { %10290 = vst [vmem:[#allocation69_spill] sm:$0xff] %v8847_v24  ;;  %v8849_v10 = vpop.xlane.xlu0 %2499 }
 0x3aa   :  { %10291 = vst [vmem:[#allocation70_spill] sm:$0xff] %v8849_v10 }
 0x3ab   :  { %2587 = vadd.xlane.f32.xlu1 %v2332_v32 }
 0x3ac   :  { %v8851_v61 = vpop.xlane.xlu1 %2399 }
 0x3ad   :  { %v8853_v29 = vpop.xlane.xlu0 %2501 }
 0x3ae   :  { %10292 = vst [vmem:[#allocation71_spill] sm:$0xff] %v8853_v29 }
 0x3b0   :  { %v8855_v62 = vpop.xlane.xlu1 %2491 }
 0x3b1   :  { %10293 = vst [vmem:[#allocation72_spill] sm:$0xff] %v8855_v62  ;;  %v8857_v20 = vpop.xlane.xlu0 %2503  ;;  %v2733_v62 = vlaneseq }
 0x3b2   :  { %10294 = vst [vmem:[#allocation73_spill] sm:$0xff] %v8857_v20 }
 0x3b3   :  { %v8881_v3 = vshrl.u32 %v2733_v62, 7 }
 0x3b4   :  { %v8859_v48 = vpop.xlane.xlu1 %2495 }
 0x3b5   :  { %10295 = vst [vmem:[#allocation74_spill] sm:$0xff] %v8859_v48  ;;  %v8863_v2 = vpop.xlane.xlu0 %2505  ;;  %10303 = vst [vmem:[#allocation82_spill] sm:$0xff] %v8881_v3 }
 0x3b6   :  { %10297 = vst [vmem:[#allocation76_spill] sm:$0xff] %v8863_v2 }
 0x3b8   :  { %v8861_v32 = vpop.xlane.xlu1 %2511 }
 0x3b9   :  { %10296 = vst [vmem:[#allocation75_spill] sm:$0xff] %v8861_v32  ;;  %v8867_v1 = vpop.xlane.xlu0 %2507  ;;  %v2734_v32 = vand.u32 127, %v2733_v62 }
 0x3ba   :  { %10298 = vst [vmem:[#allocation77_spill] sm:$0xff] %v8867_v1 }
 0x3bb   :  { %v8886_v1 = vsub.s32 %v2734_v32, %v8881_v3 }
 0x3bc   :  { %v8865_v16 = vpop.xlane.xlu1 %2513 }
 0x3bd   :  { %v8871_v10 = vpop.xlane.xlu0 %2509  ;;  %v2910_v62 = vrot.slane %v8551_v26, %v8886_v1  ;;  %v2742_v3 = vrot.slane %v8559_v25, %v8886_v1  ;;  %v2746_v26 = vrot.slane %v8577_v4, %v8886_v1  ;;  %v2914_v25 = vrot.slane %v8564_v44, %v8886_v1 }
 0x3be   :  { %v2754_v4 = vrot.slane %v8599_v36, %v8886_v1  ;;  %v2758_v44 = vrot.slane %v8614_v38, %v8886_v1 }
 0x3c0   :  { %v8869_v24 = vpop.xlane.xlu1 %2515 }
 0x3c1   :  { %10299 = vst [vmem:[#allocation78_spill] sm:$0xff] %v8869_v24  ;;  %v8875_v29 = vpop.xlane.xlu0 %2525 }
 0x3c2   :  { %10301 = vst [vmem:[#allocation80_spill] sm:$0xff] %v8875_v29  ;;  %v2906_v29 = vrot.slane %v8538_v57, %v8886_v1 }
 0x3c4   :  { %v8873_v43 = vpop.xlane.xlu1 %2517 }
 0x3c5   :  { %10300 = vst [vmem:[#allocation79_spill] sm:$0xff] %v8873_v43  ;;  %v8877_v20 = vpop.xlane.xlu0 %2529  ;;  %v2902_v43 = vrot.slane %v8530_v60, %v8886_v1  ;;  %v2738_v60 = vrot.slane %v8553_v28, %v8886_v1  ;;  %v2750_v28 = vrot.slane %v8583_v11, %v8886_v1  ;;  %v2942_v11 = vrot.slane %v8608_v35, %v8886_v1 }
 0x3c6   :  { %10302 = vst [vmem:[#allocation81_spill] sm:$0xff] %v8877_v20  ;;  %v2898_v20 = vrot.slane %v8543_v5, %v8886_v1 }
 0x3c8   :  { %v8879_v48 = vpop.xlane.xlu1 %2519  ;;  %v3289_v32 = vsel %vm3247_vm1, %v2902_v43, %v2898_v20  ;;  %v2934_v43 = vrot.slane %v8603_v45, %v8886_v1  ;;  %v2938_v20 = vrot.slane %v8593_v31, %v8886_v1  ;;  %v2930_v45 = vrot.slane %v8568_v19, %v8886_v1 }
 0x3c9   :  { %v8883_v2 = vpop.xlane.xlu0 %2531  ;;  %v3290_v5 = vsel %vm3249_vm2, %v2906_v29, %v3289_v32  ;;  %v2918_v29 = vrot.slane %v8573_v27, %v8886_v1  ;;  %v2922_v31 = vrot.slane %v8586_v63, %v8886_v1  ;;  %v2762_v19 = vrot.slane %v8630_v30, %v8886_v1 }
 0x3ca   :  { %10304 = vst [vmem:[#allocation83_spill] sm:$0xff] %v8883_v2  ;;  %v3296_v35 = vsel %vm3247_vm1, %v2934_v43, %v2930_v45  ;;  %v2926_v63 = vrot.slane %v8597_v34, %v8886_v1  ;;  %v2954_v30 = vrot.slane %v8652_v55, %v8886_v1 }
 0x3cc   :  { %v8888_v24 = vpop.xlane.xlu1 %2521 }
 0x3cd   :  { %v8898_v2 = vpop.xlane.xlu0 %2533 }
 0x3ce   :  { %10305 = vst [vmem:[#allocation84_spill] sm:$0xff] %v8898_v2  ;;  %v3291_v2 = vsel %vm3251_vm3, %v2910_v62, %v3290_v5  ;;  %v3248_v62 = vsel %vm3247_vm1, %v2742_v3, %v2738_v60  ;;  %v2946_v3 = vrot.slane %v8623_v18, %v8886_v1  ;;  %v378_v60 = vld [vmem:[#allocation8 + $0x28] sm:$0xff]  ;;  %v2950_v5 = vrot.slane %v8638_v46, %v8886_v1 }
 0x3cf   :  { %v3250_v36 = vsel %vm3249_vm2, %v2746_v26, %v3248_v62  ;;  %v3297_v26 = vsel %vm3249_vm2, %v2938_v20, %v3296_v35  ;;  %v373_v62 = vld [vmem:[#allocation8] sm:$0xff]  ;;  %v3292_v43 = vsel %vm3253_vm4, %v2914_v25, %v3291_v2  ;;  %vm2594_vm8 = vcmp.eq.f32.partialorder %v378_v60, 0.0 }
 0x3d0   :  { %v8905_v57 = vpop.xlane.xlu1 %2523  ;;  %v3252_v38 = vsel %vm3251_vm3, %v2750_v28, %v3250_v36  ;;  %v3298_v28 = vsel %vm3251_vm3, %v2942_v11, %v3297_v26  ;;  %v3293_v34 = vsel %vm3255_vm5, %v2918_v29, %v3292_v43  ;;  %v379_v36 = vld [vmem:[#allocation8 + $0x30] sm:$0xff]  ;;  %vm2589_vm9 = vcmp.eq.f32.partialorder %v373_v62, 0.0 }
 0x3d1   :  { %v8932_v27 = vpop.xlane.xlu0 %2535  ;;  %v3254_v18 = vsel %vm3253_vm4, %v2754_v4, %v3252_v38  ;;  %v3299_v20 = vsel %vm3253_vm4, %v2946_v3, %v3298_v28  ;;  %v3294_v55 = vsel %vm3257_vm6, %v2922_v31, %v3293_v34  ;;  %v2774_v29 = vrot.slane %v8619_v12, %v8886_v1 }
 0x3d2   :  { %10306 = vst [vmem:[#allocation85_spill] sm:$0xff] %v8932_v27  ;;  %v2766_v27 = vrot.slane %v8644_v54, %v8886_v1  ;;  %v3256_v46 = vsel %vm3255_vm5, %v2758_v44, %v3254_v18  ;;  %v2958_v54 = vrot.slane %v8656_v21, %v8886_v1  ;;  %v3300_v2 = vsel %vm3255_vm5, %v2950_v5, %v3299_v20 }
 0x3d3   :  { %v3258_v4 = vsel %vm3257_vm6, %v2762_v19, %v3256_v46  ;;  %v3295_v21 = vsel %vm3259_vm7, %v2926_v63, %v3294_v55  ;;  %v3301_v44 = vsel %vm3257_vm6, %v2954_v30, %v3300_v2  ;;  %v2962_v3 = vrot.slane %v8665_v41, %v8886_v1  ;;  %v8987_v41 = vld [vmem:[#allocation8 + $0x8] sm:$0xff] }
 0x3d4   :  { %v8930_v32 = vpop.xlane.xlu1 %2527  ;;  %v3260_v25 = vsel %vm3259_vm7, %v2766_v27, %v3258_v4  ;;  %vm2595_vm10 = vcmp.eq.f32.partialorder %v379_v36, 0.0  ;;  %v3302_v31 = vsel %vm3259_vm7, %v2958_v54, %v3301_v44  ;;  %v2806_v19 = vrot.slane %v8727_v59, %v8886_v1  ;;  %v9026_v4 = vld [vmem:[#allocation8 + $0x38] sm:$0xff] }
 0x3d5   :  { %v8966_v11 = vpop.xlane.xlu0 %2537  ;;  %v2770_v27 = vrot.slane %v8612_v58, %v8886_v1  ;;  %v2778_v38 = vrot.slane %v8628_v7, %v8886_v1  ;;  %v2966_v12 = vrot.slane %v8634_v42, %v8886_v1  ;;  %v8985_v5 = vsel %vm2589_vm9, -1e+10, %v3260_v25 }
 0x3d6   :  { %v8990_v63 = vsel %vm2594_vm8, -1e+10, %v3295_v21  ;;  %v2782_v59 = vrot.slane %v8642_v51, %v8886_v1  ;;  %v2802_v58 = vrot.slane %v8672_v53, %v8886_v1  ;;  %v2890_v7 = vrot.slane %v8515_v37, %v8886_v1  ;;  %v9037_v21 = vld [vmem:[#allocation8 + $0x10] sm:$0xff]  ;;  %v10340_v37 = vld [vmem:[#allocation71_spill] sm:$0xff] }
 0x3d7   :  { %v3261_v42 = vsel %vm3247_vm1, %v2774_v29, %v2770_v27  ;;  %v9002_v18 = vsel %vm2595_vm10, -1e+10, %v3302_v31  ;;  %v3303_v60 = vsel %vm3247_vm1, %v2966_v12, %v2962_v3  ;;  %v3399_v62 = vsel %vm3398_vm11, %v8985_v5, -inf }
 0x3d8   :  { %v2970_v51 = vrot.slane %v8648_v8, %v8886_v1  ;;  %v2786_v53 = vrot.slane %v8658_v22, %v8886_v1  ;;  %vm2590_vm12 = vcmp.eq.f32.partialorder %v8987_v41, 0.0  ;;  %v3268_v30 = vsel %vm3247_vm1, %v2806_v19, %v2802_v58  ;;  %v10308_v58 = vld [vmem:[#allocation42_spill] sm:$0xff] }
 0x3d9   :  { %v3405_v43 = vsel %vm3398_vm11, %v8990_v63, -inf  ;;  %v3262_v28 = vsel %vm3249_vm2, %v2778_v38, %v3261_v42  ;;  %v2790_v46 = vrot.slane %v8674_v39, %v8886_v1  ;;  %v2810_v54 = vrot.slane %v8681_v14, %v8886_v1 }
 0x3da   :  { %v3263_v8 = vsel %vm3251_vm3, %v2782_v59, %v3262_v28  ;;  %v3407_v22 = vsel %vm3398_vm11, %v9002_v18, -inf  ;;  %v3304_v34 = vsel %vm3249_vm2, %v2970_v51, %v3303_v60  ;;  %v2978_v20 = vrot.slane %v8684_v40, %v8886_v1  ;;  %v10312_v28 = vld [vmem:[#allocation51_spill] sm:$0xff] }
 0x3db   :  { %v3406_v39 = vmax.f32 %v3399_v62, %v3405_v43  ;;  %v2974_v14 = vrot.slane %v8668_v52, %v8886_v1  ;;  %v2794_v2 = vrot.slane %v8693_v9, %v8886_v1  ;;  %v3269_v25 = vsel %vm3249_vm2, %v2810_v54, %v3268_v30  ;;  %v10310_v62 = vld [vmem:[#allocation48_spill] sm:$0xff]  ;;  %v10311_v30 = vld [vmem:[#allocation45_spill] sm:$0xff] }
 0x3dc   :  { %v8996_v26 = vpop.xlane.xlu0 %2541  ;;  %v3264_v29 = vsel %vm3253_vm4, %v2786_v53, %v3263_v8  ;;  %v2982_v40 = vrot.slane %v8703_v47, %v8886_v1  ;;  %v2798_v44 = vrot.slane %v8711_v23, %v8886_v1  ;;  %v2814_v3 = vrot.slane %v8695_v13, %v8886_v1  ;;  %v10307_v13 = vld [vmem:[#allocation54_spill] sm:$0xff] }
 0x3dd   :  { %v9046_v31 = vmax.f32 %v3406_v39, %v3407_v22  ;;  %v3305_v52 = vsel %vm3251_vm3, %v2974_v14, %v3304_v34  ;;  %v3265_v9 = vsel %vm3255_vm5, %v2790_v46, %v3264_v29  ;;  %vm2596_vm13 = vcmp.eq.f32.partialorder %v9026_v4, 0.0  ;;  %v10313_v34 = vld [vmem:[#allocation47_spill] sm:$0xff]  ;;  %v10315_v29 = vld [vmem:[#allocation50_spill] sm:$0xff] }
 0x3de   :  { %v8958_v45 = vpop.xlane.xlu1 %2543  ;;  %v2998_v19 = vrot.slane %v8746_v56, %v8886_v1  ;;  %v3306_v27 = vsel %vm3253_vm4, %v2978_v20, %v3305_v52  ;;  %v2986_v47 = vrot.slane %v8719_v50, %v8886_v1  ;;  %v3270_v23 = vsel %vm3251_vm3, %v2814_v3, %v3269_v25  ;;  %v10309_v56 = vld [vmem:[#allocation43_spill] sm:$0xff] }
 0x3df   :  { %vm2591_vm14 = vcmp.eq.f32.partialorder %v9037_v21, 0.0  ;;  %v2834_v38 = vrot.slane %v10307_v13, %v8886_v1  ;;  %v3266_v59 = vsel %vm3257_vm6, %v2794_v2, %v3265_v9  ;;  %v2994_v42 = vrot.slane %v10308_v58, %v8886_v1  ;;  %v10314_v2 = vld [vmem:[#allocation44_spill] sm:$0xff]  ;;  %v10316_v9 = vld [vmem:[#allocation53_spill] sm:$0xff]  ;;  %v10328_v21 = vld [vmem:[#allocation62_spill] sm:$0xff] }
 0x3e0   :  { %v2818_v60 = vrot.slane %v10309_v56, %v8886_v1  ;;  %v2990_v50 = vrot.slane %v10310_v62, %v8886_v1  ;;  %v3307_v51 = vsel %vm3255_vm5, %v2982_v40, %v3306_v27  ;;  %v3267_v53 = vsel %vm3259_vm7, %v2798_v44, %v3266_v59  ;;  %v9104_v59 = vld [vmem:[#allocation8 + $0x40] sm:$0xff]  ;;  %v9112_v62 = vld [vmem:[#allocation8 + $0x18] sm:$0xff] }
 0x3e1   :  { %v2822_v43 = vrot.slane %v10311_v30, %v8886_v1  ;;  %v2838_v46 = vrot.slane %v10312_v28, %v8886_v1  ;;  %v3310_v22 = vsel %vm3247_vm1, %v2998_v19, %v2994_v42  ;;  %v2826_v20 = vrot.slane %v10313_v34, %v8886_v1 }
 0x3e2   :  { %v3271_v8 = vsel %vm3253_vm4, %v2818_v60, %v3270_v23  ;;  %v2870_v39 = vrot.slane %v8851_v61, %v8886_v1  ;;  %v3308_v14 = vsel %vm3257_vm6, %v2986_v47, %v3307_v51  ;;  %v3002_v25 = vrot.slane %v10314_v2, %v8886_v1  ;;  %v10317_v23 = vld [vmem:[#allocation46_spill] sm:$0xff]  ;;  %v10324_v2 = vld [vmem:[#allocation56_spill] sm:$0xff] }
 0x3e3   :  { %v2830_v40 = vrot.slane %v10315_v29, %v8886_v1  ;;  %v3275_v44 = vsel %vm3247_vm1, %v2838_v46, %v2834_v38  ;;  %v9091_v3 = vsel %vm2590_vm12, -1e+10, %v3267_v53  ;;  %v3309_v52 = vsel %vm3259_vm7, %v2990_v50, %v3308_v14  ;;  %v10318_v38 = vld [vmem:[#allocation49_spill] sm:$0xff]  ;;  %v10320_v53 = vld [vmem:[#allocation55_spill] sm:$0xff] }
 0x3e4   :  { %v8977_v35 = vpop.xlane.xlu1 %2545  ;;  %v2842_v19 = vrot.slane %v10316_v9, %v8886_v1  ;;  %v2866_v61 = vrot.slane %v8806_v6, %v8886_v1  ;;  %v3272_v27 = vsel %vm3255_vm5, %v2822_v43, %v3271_v8  ;;  %v3311_v47 = vsel %vm3249_vm2, %v3002_v25, %v3310_v22  ;;  %v10319_v6 = vld [vmem:[#allocation60_spill] sm:$0xff]  ;;  %v10322_v46 = vld [vmem:[#allocation63_spill] sm:$0xff] }
 0x3e5   :  { %v3006_v13 = vrot.slane %v10317_v23, %v8886_v1  ;;  %v3010_v41 = vrot.slane %v10318_v38, %v8886_v1  ;;  %v3273_v42 = vsel %vm3257_vm6, %v2826_v20, %v3272_v27  ;;  %v3026_v60 = vrot.slane %v10319_v6, %v8886_v1  ;;  %v10321_v43 = vld [vmem:[#allocation52_spill] sm:$0xff]  ;;  %v10326_v23 = vld [vmem:[#allocation61_spill] sm:$0xff]  ;;  %v10327_v38 = vld [vmem:[#allocation58_spill] sm:$0xff] }
 0x3e6   :  { %v3276_v56 = vsel %vm3249_vm2, %v2842_v19, %v3275_v44  ;;  %v3282_v50 = vsel %vm3247_vm1, %v2870_v39, %v2866_v61  ;;  %v3274_v51 = vsel %vm3259_vm7, %v2830_v40, %v3273_v42  ;;  %v2846_v30 = vrot.slane %v10320_v53, %v8886_v1  ;;  %v10323_v39 = vld [vmem:[#allocation57_spill] sm:$0xff]  ;;  %v10325_v61 = vld [vmem:[#allocation59_spill] sm:$0xff] }
 0x3e7   :  { %v3014_v28 = vrot.slane %v10321_v43, %v8886_v1  ;;  %v2874_v8 = vrot.slane %v10322_v46, %v8886_v1  ;;  %v3400_v34 = vsel %vm3398_vm11, %v9091_v3, -inf  ;;  %v3312_v20 = vsel %vm3251_vm3, %v3006_v13, %v3311_v47  ;;  %v10329_v46 = vld [vmem:[#allocation64_spill] sm:$0xff] }
 0x3e8   :  { %v9028_v36 = vpop.xlane.xlu1 %2547  ;;  %v3030_v14 = vrot.slane %v10323_v39, %v8886_v1  ;;  %v3018_v25 = vrot.slane %v10324_v2, %v8886_v1  ;;  %vm2597_vm15 = vcmp.eq.f32.partialorder %v9104_v59, 0.0  ;;  %v9134_v29 = vsel %vm2596_vm13, -1e+10, %v3309_v52  ;;  %v10331_v39 = vld [vmem:[#allocation68_spill] sm:$0xff]  ;;  %v10332_v2 = vld [vmem:[#allocation74_spill] sm:$0xff]  ;;  %v10337_v59 = vld [vmem:[#allocation41_spill] sm:$0xff] }
 0x3e9   :  { %v3313_v40 = vsel %vm3253_vm4, %v3010_v41, %v3312_v20  ;;  %v3277_v44 = vsel %vm3251_vm3, %v2846_v30, %v3276_v56  ;;  %vm2592_vm8 = vcmp.eq.f32.partialorder %v9112_v62, 0.0  ;;  %v3283_v9 = vsel %vm3249_vm2, %v2874_v8, %v3282_v50 }
 0x3ea   :  { %v9142_v19 = vsel %vm2591_vm14, -1e+10, %v3274_v51  ;;  %v2850_v27 = vrot.slane %v10325_v61, %v8886_v1  ;;  %v3317_v47 = vsel %vm3247_vm1, %v3030_v14, %v3026_v60  ;;  %v2878_v4 = vrot.slane %v8831_v17, %v8886_v1 }
 0x3eb   :  { %v3314_v52 = vsel %vm3255_vm5, %v3014_v28, %v3313_v40  ;;  %v3034_v13 = vrot.slane %v10326_v23, %v8886_v1  ;;  %v3022_v41 = vrot.slane %v10327_v38, %v8886_v1  ;;  %v2854_v42 = vrot.slane %v10328_v21, %v8886_v1  ;;  %v382_v21 = vld [vmem:[#allocation8 + $0x48] sm:$0xff] }
 0x3ec   :  { %v9075_v54 = vpop.xlane.xlu1 %2549  ;;  %v3278_v6 = vsel %vm3253_vm4, %v2850_v27, %v3277_v44  ;;  %v3315_v60 = vsel %vm3257_vm6, %v3018_v25, %v3314_v52  ;;  %v2858_v17 = vrot.slane %v8828_v15, %v8886_v1  ;;  %v3284_v50 = vsel %vm3251_vm3, %v2878_v4, %v3283_v9  ;;  %v10330_v15 = vld [vmem:[#allocation67_spill] sm:$0xff]  ;;  %v10334_v27 = vld [vmem:[#allocation65_spill] sm:$0xff]  ;;  %v10335_v4 = vld [vmem:[#allocation72_spill] sm:$0xff] }
 0x3ed   :  { %v3318_v51 = vsel %vm3249_vm2, %v3034_v13, %v3317_v47  ;;  %v3042_v53 = vrot.slane %v8833_v0, %v8886_v1  ;;  %v2862_v30 = vrot.slane %v8839_v49, %v8886_v1  ;;  %v2882_v43 = vrot.slane %v8836_v33, %v8886_v1  ;;  %v10333_v33 = vld [vmem:[#allocation69_spill] sm:$0xff] }
 0x3ee   :  { %v3038_v8 = vrot.slane %v10329_v46, %v8886_v1  ;;  %v3046_v20 = vrot.slane %v10330_v15, %v8886_v1  ;;  %v2886_v14 = vrot.slane %v10331_v39, %v8886_v1  ;;  %v3062_v0 = vrot.slane %v10332_v2, %v8886_v1 }
 0x3ef   :  { %v3316_v25 = vsel %vm3259_vm7, %v3022_v41, %v3315_v60  ;;  %v3279_v49 = vsel %vm3255_vm5, %v2854_v42, %v3278_v6  ;;  %v3050_v40 = vrot.slane %v10333_v33, %v8886_v1  ;;  %v3285_v44 = vsel %vm3253_vm4, %v2882_v43, %v3284_v50  ;;  %v377_v43 = vld [vmem:[#allocation8 + $0x20] sm:$0xff] }
 0x3f0   :  { %v9122_v22 = vpop.xlane.xlu1 %2551  ;;  %v3319_v9 = vsel %vm3251_vm3, %v3038_v8, %v3318_v51  ;;  %v3280_v61 = vsel %vm3257_vm6, %v2858_v17, %v3279_v49  ;;  %v3058_v47 = vrot.slane %v10334_v27, %v8886_v1  ;;  %v3054_v52 = vrot.slane %v10335_v4, %v8886_v1  ;;  %v10339_v49 = vld [vmem:[#allocation70_spill] sm:$0xff] }
 0x3f1   :  { %v3410_v23 = vmax.f32 %v3400_v34, %v9046_v31  ;;  %v3409_v13 = vsel %vm3398_vm11, %v9134_v29, -inf  ;;  %v3320_v38 = vsel %vm3253_vm4, %v3042_v53, %v3319_v9  ;;  %v3281_v41 = vsel %vm3259_vm7, %v2862_v30, %v3280_v61  ;;  %v10336_v53 = vld [vmem:[#allocation66_spill] sm:$0xff] }
 0x3f2   :  { %v3401_v60 = vsel %vm3398_vm11, %v9142_v19, -inf  ;;  %v3321_v17 = vsel %vm3255_vm5, %v3046_v20, %v3320_v38  ;;  %v3286_v50 = vsel %vm3255_vm5, %v2886_v14, %v3285_v44  ;;  %v3324_v31 = vsel %vm3247_vm1, %v3062_v0, %v3058_v47 }
 0x3f3   :  { %v9207_v34 = vsel %vm2597_vm15, -1e+10, %v3316_v25  ;;  %v3322_v51 = vsel %vm3257_vm6, %v3050_v40, %v3321_v17  ;;  %v3066_v30 = vrot.slane %v10336_v53, %v8886_v1  ;;  %v3090_v46 = vrot.slane %v8871_v10, %v8886_v1  ;;  %v10338_v10 = vld [vmem:[#allocation75_spill] sm:$0xff] }
 0x3f4   :  { %v9170_v28 = vpop.xlane.xlu1 %2553  ;;  %v3414_v8 = vmax.f32 %v3409_v13, %v3410_v23  ;;  %v9216_v15 = vsel %vm2592_vm8, -1e+10, %v3281_v41  ;;  %vm2598_vm9 = vcmp.eq.f32.partialorder %v382_v21, 0.0  ;;  %v3323_v20 = vsel %vm3259_vm7, %v3054_v52, %v3322_v51  ;;  %v10341_v52 = vld [vmem:[#allocation73_spill] sm:$0xff]  ;;  %v10342_v41 = vld [vmem:[#allocation76_spill] sm:$0xff] }
 0x3f5   :  { %v2894_v39 = vrot.slane %v10337_v59, %v8886_v1  ;;  %v3287_v14 = vsel %vm3257_vm6, %v2890_v7, %v3286_v50  ;;  %v3325_v2 = vsel %vm3249_vm2, %v3066_v30, %v3324_v31  ;;  %v3094_v0 = vrot.slane %v10338_v10, %v8886_v1  ;;  %v10343_v50 = vld [vmem:[#allocation77_spill] sm:$0xff] }
 0x3f6   :  { %v3416_v25 = vmax.f32 %v3401_v60, %v3414_v8  ;;  %v3411_v62 = vsel %vm3398_vm11, %v9207_v34, -inf  ;;  %vm2593_vm10 = vcmp.eq.f32.partialorder %v377_v43, 0.0  ;;  %v3070_v33 = vrot.slane %v10339_v49, %v8886_v1  ;;  %v383_v60 = vld [vmem:[#allocation8 + $0x50] sm:$0xff] }
 0x3f7   :  { %v3402_v40 = vsel %vm3398_vm11, %v9216_v15, -inf  ;;  %v9234_v44 = vsel %vm2598_vm9, -1e+10, %v3323_v20  ;;  %v3074_v7 = vrot.slane %v10340_v37, %v8886_v1  ;;  %v3331_v9 = vsel %vm3247_vm1, %v3094_v0, %v3090_v46 }
 0x3f8   :  { %v3288_v47 = vsel %vm3259_vm7, %v2894_v39, %v3287_v14  ;;  %v3326_v4 = vsel %vm3251_vm3, %v3070_v33, %v3325_v2  ;;  %v3078_v23 = vrot.slane %v10341_v52, %v8886_v1  ;;  %v3098_v13 = vrot.slane %v8865_v16, %v8886_v1  ;;  %v10344_v16 = vld [vmem:[#allocation78_spill] sm:$0xff]  ;;  %v10345_v14 = vld [vmem:[#allocation79_spill] sm:$0xff] }
 0x3f9   :  { %v3418_v38 = vmax.f32 %v3411_v62, %v3416_v25  ;;  %v3082_v21 = vrot.slane %v10342_v41, %v8886_v1  ;;  %v3413_v17 = vsel %vm3398_vm11, %v9234_v44, -inf  ;;  %v3086_v31 = vrot.slane %v10343_v50, %v8886_v1  ;;  %v384_v62 = vld [vmem:[#allocation8 + $0x58] sm:$0xff] }
 0x3fa   :  { %v3332_v51 = vsel %vm3249_vm2, %v3098_v13, %v3331_v9  ;;  %v9257_v30 = vsel %vm2593_vm10, -1e+10, %v3288_v47  ;;  %v3327_v46 = vsel %vm3253_vm4, %v3074_v7, %v3326_v4  ;;  %v3102_v8 = vrot.slane %v10344_v16, %v8886_v1  ;;  %v10346_v9 = vld [vmem:[#allocation81_spill] sm:$0xff] }
 0x3fb   :  { %v3422_v53 = vmax.f32 %v3402_v40, %v3418_v38  ;;  %v3328_v39 = vsel %vm3255_vm5, %v3078_v23, %v3327_v46  ;;  %vm2599_vm12 = vcmp.eq.f32.partialorder %v383_v60, 0.0  ;;  %v3106_v2 = vrot.slane %v10345_v14, %v8886_v1  ;;  %v10347_v23 = vld [vmem:[#allocation80_spill] sm:$0xff] }
 0x3fc   :  { %v9030_v55 = vpop.xlane.xlu0 %2557  ;;  %v3329_v43 = vsel %vm3257_vm6, %v3082_v21, %v3328_v39  ;;  %v3333_v0 = vsel %vm3251_vm3, %v3102_v8, %v3332_v51  ;;  %v3110_v25 = vrot.slane %v8879_v48, %v8886_v1  ;;  %v9277_v49 = vsel %vm3398_vm11, %v9257_v30, -inf  ;;  %v9288_v48 = vld [vmem:[#allocation8 + $0x68] sm:$0xff] }
 0x3fd   :  { %v9269_v10 = vmax.f32 %v3413_v17, %v3422_v53  ;;  %v3330_v33 = vsel %vm3259_vm7, %v3086_v31, %v3329_v43  ;;  %v3114_v40 = vrot.slane %v8888_v24, %v8886_v1  ;;  %v3126_v37 = vrot.slane %v8930_v32, %v8886_v1  ;;  %v10348_v53 = vld [vmem:[#allocation83_spill] sm:$0xff]  ;;  %v10349_v8 = vld [vmem:[#allocation84_spill] sm:$0xff] }
 0x3fe   :  { %v9196_v42 = vpop.xlane.xlu1 %2559  ;;  %v3118_v7 = vrot.slane %v8905_v57, %v8886_v1  ;;  %v3130_v47 = vrot.slane %v10346_v9, %v8886_v1  ;;  %v3334_v52 = vsel %vm3253_vm4, %v3106_v2, %v3333_v0  ;;  %vm2600_vm13 = vcmp.eq.f32.partialorder %v384_v62, 0.0  ;;  %v10350_v2 = vld [vmem:[#allocation85_spill] sm:$0xff] }
 0x3ff   :  { %v3122_v13 = vrot.slane %v10347_v23, %v8886_v1  ;;  %v3158_v24 = vrot.slane %v8958_v45, %v8886_v1  ;;  %v3412_v32 = vmax.f32 %v9269_v10, %v9277_v49  ;;  %v9300_v57 = vsel %vm2599_vm12, -1e+10, %v3330_v33  ;;  %v388_v49 = vld [vmem:[#allocation8 + $0x78] sm:$0xff] }
 0x400   :  { %v3335_v38 = vsel %vm3255_vm5, %v3110_v25, %v3334_v52  ;;  %v3162_v41 = vrot.slane %v8977_v35, %v8886_v1  ;;  %v3154_v31 = vrot.slane %v8996_v26, %v8886_v1  ;;  %v3166_v45 = vrot.slane %v9028_v36, %v8886_v1 }
 0x401   :  { %v3336_v17 = vsel %vm3257_vm6, %v3114_v40, %v3335_v38  ;;  %v3338_v50 = vsel %vm3247_vm1, %v3126_v37, %v3122_v13  ;;  %vm2602_vm14 = vcmp.eq.f32.partialorder %v9288_v48, 0.0  ;;  %v3134_v35 = vrot.slane %v10348_v53, %v8886_v1 }
 0x402   :  { %v9239_v61 = vpop.xlane.xlu1 %2555  ;;  %v3337_v60 = vsel %vm3259_vm7, %v3118_v7, %v3336_v17  ;;  %v3339_v51 = vsel %vm3249_vm2, %v3130_v47, %v3338_v50  ;;  %v3170_v46 = vrot.slane %v9075_v54, %v8886_v1  ;;  %v3138_v26 = vrot.slane %v10349_v8, %v8886_v1  ;;  %v387_v50 = vld [vmem:[#allocation8 + $0x70] sm:$0xff] }
 0x403   :  { %v3345_v39 = vsel %vm3247_vm1, %v3158_v24, %v3154_v31  ;;  %v3174_v36 = vrot.slane %v9122_v22, %v8886_v1  ;;  %v3190_v14 = vrot.slane %v9196_v42, %v8886_v1  ;;  %v3142_v43 = vrot.slane %v10350_v2, %v8886_v1 }
 0x404   :  { %v9060_v12 = vpop.xlane.xlu0 %2561  ;;  %v3346_v0 = vsel %vm3249_vm2, %v3162_v41, %v3345_v39  ;;  %v3178_v54 = vrot.slane %v9170_v28, %v8886_v1  ;;  %v3186_v40 = vrot.slane %v9030_v55, %v8886_v1  ;;  %v3182_v22 = vrot.slane %v9239_v61, %v8886_v1 }
 0x405   :  { %v3194_v25 = vrot.slane %v9060_v12, %v8886_v1  ;;  %v3347_v33 = vsel %vm3251_vm3, %v3166_v45, %v3346_v0  ;;  %v3340_v37 = vsel %vm3251_vm3, %v3134_v35, %v3339_v51  ;;  %v3146_v7 = vrot.slane %v8966_v11, %v8886_v1 }
 0x406   :  { %v3348_v28 = vsel %vm3253_vm4, %v3170_v46, %v3347_v33  ;;  %v3352_v52 = vsel %vm3247_vm1, %v3190_v14, %v3186_v40  ;;  %v3341_v13 = vsel %vm3253_vm4, %v3138_v26, %v3340_v37  ;;  %vm2603_vm8 = vcmp.eq.f32.partialorder %v387_v50, 0.0 }
 0x407   :  { %v3349_v55 = vsel %vm3255_vm5, %v3174_v36, %v3348_v28  ;;  %v3353_v24 = vsel %vm3249_vm2, %v3194_v25, %v3352_v52  ;;  %v3342_v38 = vsel %vm3255_vm5, %v3142_v43, %v3341_v13 }
 0x408   :  { %v9106_v58 = vpop.xlane.xlu0 %2563  ;;  %v3350_v11 = vsel %vm3257_vm6, %v3178_v54, %v3349_v55  ;;  %v3343_v31 = vsel %vm3257_vm6, %v3146_v7, %v3342_v38 }
 0x409   :  { %v3198_v42 = vrot.slane %v9106_v58, %v8886_v1  ;;  %v385_v58 = vld [vmem:[#allocation8 + $0x60] sm:$0xff]  ;;  %v3351_v41 = vsel %vm3259_vm7, %v3182_v22, %v3350_v11 }
 0x40a   :  { %vm2601_vm15 = vcmp.eq.f32.partialorder %v385_v58, 0.0  ;;  %v9374_v62 = vsel %vm2602_vm14, -1e+10, %v3351_v41 }
 0x40b   :  { %v3354_v17 = vsel %vm3251_vm3, %v3198_v42, %v3353_v24  ;;  %v3421_v43 = vsel %vm3398_vm11, %v9374_v62, -inf }
 0x40c   :  { %v9156_v56 = vpop.xlane.xlu0 %2565 }
 0x40d   :  { %v3202_v12 = vrot.slane %v9156_v56, %v8886_v1 }
 0x40f   :  { %v3355_v45 = vsel %vm3253_vm4, %v3202_v12, %v3354_v17 }
 0x410   :  { %v9198_v6 = vpop.xlane.xlu0 %2567 }
 0x411   :  { %v3206_v61 = vrot.slane %v9198_v6, %v8886_v1 }
 0x413   :  { %v3356_v53 = vsel %vm3255_vm5, %v3206_v61, %v3355_v45 }
 0x414   :  { %v9241_v27 = vpop.xlane.xlu0 %2569 }
 0x415   :  { %v3210_v56 = vrot.slane %v9241_v27, %v8886_v1  ;;  %v3415_v27 = vsel %vm3398_vm11, %v9300_v57, -inf }
 0x416   :  { %v3420_v48 = vmax.f32 %v3412_v32, %v3415_v27 }
 0x41c   :  { %v9262_v20 = vpop.xlane.xlu0 %2573 }
 0x41d   :  { %v3218_v39 = vrot.slane %v9262_v20, %v8886_v1 }
 0x41e   :  { %v9264_v59 = vpop.xlane.xlu1 %2575 }
 0x41f   :  { %v3222_v35 = vrot.slane %v9264_v59, %v8886_v1 }
 0x420   :  { %v2540_v21 = vpop.xlane.xlu0 %2539 }
 0x421   :  { %v3150_v23 = vrot.slane %v2540_v21, %v8886_v1  ;;  %v9362_v21 = vsel %vm2600_vm13, -1e+10, %v3337_v60  ;;  %v3357_v60 = vsel %vm3257_vm6, %v3210_v56, %v3356_v53  ;;  %v3359_v0 = vsel %vm3247_vm1, %v3222_v35, %v3218_v39 }
 0x422   :  { %v3417_v26 = vsel %vm3398_vm11, %v9362_v21, -inf  ;;  %vm2604_vm1 = vcmp.eq.f32.partialorder %v388_v49, 0.0 }
 0x423   :  { %v3344_v46 = vsel %vm3259_vm7, %v3150_v23, %v3343_v31  ;;  %v3427_v54 = vmax.f32 %v3420_v48, %v3417_v26 }
 0x424   :  { %v9290_v4 = vpop.xlane.xlu1 %2577  ;;  %v2572_v9 = vpop.xlane.xlu0 %2571  ;;  %v9389_v14 = vsel %vm2601_vm15, -1e+10, %v3344_v46 }
 0x425   :  { %v3214_v6 = vrot.slane %v2572_v9, %v8886_v1  ;;  %v3226_v8 = vrot.slane %v9290_v4, %v8886_v1  ;;  %v3419_v32 = vsel %vm3398_vm11, %v9389_v14, -inf  ;;  %v3424_v40 = vmax.f32 %v3421_v43, %v3427_v54 }
 0x427   :  { %v3358_v59 = vsel %vm3259_vm7, %v3214_v6, %v3357_v60  ;;  %v3360_v25 = vsel %vm3249_vm2, %v3226_v8, %v3359_v0  ;;  %v3426_v12 = vmax.f32 %v3419_v32, %v3424_v40 }
 0x428   :  { %v9318_v16 = vpop.xlane.xlu1 %2579 }
 0x429   :  { %v3230_v36 = vrot.slane %v9318_v16, %v8886_v1  ;;  %v9397_v16 = vsel %vm2603_vm8, -1e+10, %v3358_v59 }
 0x42a   :  { %v3423_v37 = vsel %vm3398_vm11, %v9397_v16, -inf }
 0x42b   :  { %v3361_v33 = vsel %vm3251_vm3, %v3230_v36, %v3360_v25  ;;  %v3428_v55 = vmax.f32 %v3423_v37, %v3426_v12 }
 0x42c   :  { %v2582_v47 = vpop.xlane.xlu1 %2581 }
 0x42d   :  { %v3234_v4 = vrot.slane %v2582_v47, %v8886_v1 }
 0x42f   :  { %v3362_v22 = vsel %vm3253_vm4, %v3234_v4, %v3361_v33 }
 0x430   :  { %v2584_v51 = vpop.xlane.xlu1 %2583 }
 0x431   :  { %v3238_v20 = vrot.slane %v2584_v51, %v8886_v1 }
 0x433   :  { %v3363_v7 = vsel %vm3255_vm5, %v3238_v20, %v3362_v22 }
 0x434   :  { %v2586_v2 = vpop.xlane.xlu1 %2585 }
 0x435   :  { %v3242_v10 = vrot.slane %v2586_v2, %v8886_v1 }
 0x437   :  { %v3364_v9 = vsel %vm3257_vm6, %v3242_v10, %v3363_v7 }
 0x438   :  { %v2588_v42 = vpop.xlane.xlu1 %2587 }
 0x439   :  { %v3246_v28 = vrot.slane %v2588_v42, %v8886_v1 }
 0x43b   :  { %v3365_v47 = vsel %vm3259_vm7, %v3246_v28, %v3364_v9 }
 0x43c   :  { %v9410_v52 = vsel %vm2604_vm1, -1e+10, %v3365_v47 }
 0x43d   :  { %v3425_v61 = vsel %vm3398_vm11, %v9410_v52, -inf }
 0x43e   :  { %v3429_v58 = vmax.f32 %v3425_v61, %v3428_v55 }
 0x440   :  { %v3430_v23 = vrot.slane %v3429_v58, 4 }
 0x442   :  { %v3431_v13 = vmax.f32 %v3429_v58, %v3430_v23 }
 0x444   :  { %v3432_v11 = vrot.slane %v3431_v13, 2 }
 0x446   :  { %v3433_v24 = vmax.f32 %v3431_v13, %v3432_v11 }
 0x448   :  { %v3434_v56 = vrot.slane %v3433_v24, 1 }
 0x44a   :  { %v9414_v38 = vmax.f32 %v3433_v24, %v3434_v56 }
 0x44c   :  { %v3436_v1 = vsub.f32 %v8985_v5, %v9414_v38  ;;  %v3437_v41 = vsub.f32 %v9091_v3, %v9414_v38  ;;  %v3438_v17 = vsub.f32 %v9142_v19, %v9414_v38  ;;  %v3439_v50 = vsub.f32 %v9216_v15, %v9414_v38 }
 0x44d   :  { %v3440_v6 = vsub.f32 %v9257_v30, %v9414_v38  ;;  %v3441_v27 = vsub.f32 %v8990_v63, %v9414_v38  ;;  %v3442_v5 = vsub.f32 %v9002_v18, %v9414_v38  ;;  %v3443_v19 = vsub.f32 %v9134_v29, %v9414_v38 }
 0x44e   :  { %v3452_v31 = vmul.f32 1.442695, %v3436_v1  ;;  %v3454_v45 = vmul.f32 1.442695, %v3437_v41  ;;  %v3456_v51 = vmul.f32 1.442695, %v3438_v17  ;;  %v3444_v30 = vsub.f32 %v9207_v34, %v9414_v38 }
 0x44f   :  { %v3458_v53 = vmul.f32 1.442695, %v3439_v50  ;;  %v3460_v3 = vmul.f32 1.442695, %v3440_v6  ;;  %v3462_v15 = vmul.f32 1.442695, %v3441_v27  ;;  %v3445_v63 = vsub.f32 %v9234_v44, %v9414_v38 }
 0x450   :  { %7169 = vpow2.f32 %v3452_v31  ;;  %v3464_v35 = vmul.f32 1.442695, %v3442_v5  ;;  %v3466_v46 = vmul.f32 1.442695, %v3443_v19  ;;  %v3446_v18 = vsub.f32 %v9300_v57, %v9414_v38 }
 0x451   :  { %7171 = vpow2.f32 %v3454_v45  ;;  %v3468_v60 = vmul.f32 1.442695, %v3444_v30  ;;  %v3447_v26 = vsub.f32 %v9362_v21, %v9414_v38  ;;  %v3470_v34 = vmul.f32 1.442695, %v3445_v63 }
 0x452   :  { %7173 = vpow2.f32 %v3456_v51  ;;  %v3448_v36 = vsub.f32 %v9389_v14, %v9414_v38  ;;  %v3472_v48 = vmul.f32 1.442695, %v3446_v18  ;;  %v3449_v43 = vsub.f32 %v9374_v62, %v9414_v38 }
 0x453   :  { %7175 = vpow2.f32 %v3458_v53  ;;  %v3474_v0 = vmul.f32 1.442695, %v3447_v26  ;;  %v3450_v14 = vsub.f32 %v9397_v16, %v9414_v38  ;;  %v3451_v62 = vsub.f32 %v9410_v52, %v9414_v38 }
 0x454   :  { %7177 = vpow2.f32 %v3460_v3  ;;  %v3476_v10 = vmul.f32 1.442695, %v3448_v36  ;;  %v3478_v40 = vmul.f32 1.442695, %v3449_v43 }
 0x455   :  { %7179 = vpow2.f32 %v3462_v15  ;;  %v3480_v16 = vmul.f32 1.442695, %v3450_v14  ;;  %v3482_v9 = vmul.f32 1.442695, %v3451_v62 }
 0x456   :  { %7181 = vpow2.f32 %v3464_v35 }
 0x457   :  { %7183 = vpow2.f32 %v3466_v46 }
 0x458   :  { %7185 = vpow2.f32 %v3468_v60 }
 0x459   :  { %7187 = vpow2.f32 %v3470_v34  ;;  %v10351_v34 = vld [vmem:[#allocation82_spill] sm:$0xff] }
 0x45a   :  { %v9438_v8 = vpop.eup %7169  ;;  %7189 = vpow2.f32 %v3472_v48 }
 0x45b   :  { %v9440_v29 = vpop.eup %7171  ;;  %v3484_v39 = vsel %vm3398_vm11, %v9438_v8, 0.0  ;;  %7191 = vpow2.f32 %v3474_v0 }
 0x45c   :  { %v9446_v44 = vpop.eup %7173  ;;  %v3485_v59 = vsel %vm3398_vm11, %v9440_v29, 0.0  ;;  %7193 = vpow2.f32 %v3476_v10 }
 0x45d   :  { %v9450_v57 = vpop.eup %7175  ;;  %v3486_v4 = vadd.f32 %v3485_v59, %v3484_v39  ;;  %v3487_v21 = vsel %vm3398_vm11, %v9446_v44, 0.0  ;;  %7195 = vpow2.f32 %v3478_v40  ;;  %v9507_v39 = vsub.s32 1, %v10351_v34 }
 0x45e   :  { %v9456_v2 = vpop.eup %7177  ;;  %v3489_v54 = vsel %vm3398_vm11, %v9450_v57, 0.0  ;;  %7197 = vpow2.f32 %v3480_v16  ;;  %v9510_v59 = vsub.s32 0, %v10351_v34 }
 0x45f   :  { %v3488_v20 = vadd.f32 %v3487_v21, %v3486_v4  ;;  %v9462_v25 = vpop.eup %7179  ;;  %v3491_v32 = vsel %vm3398_vm11, %v9456_v2, 0.0  ;;  %7199 = vpow2.f32 %v3482_v9 }
 0x460   :  { %v7182_v33 = vpop.eup %7181  ;;  %v3493_v42 = vsel %vm3398_vm11, %v9462_v25, 0.0 }
 0x461   :  { %v3490_v49 = vadd.f32 %v3489_v54, %v3488_v20  ;;  %v9472_v37 = vpop.eup %7183  ;;  %v3495_v28 = vsel %vm3398_vm11, %v7182_v33, 0.0 }
 0x462   :  { %v9475_v12 = vpop.eup %7185  ;;  %v3497_v55 = vsel %vm3398_vm11, %v9472_v37, 0.0 }
 0x463   :  { %v3492_v22 = vadd.f32 %v3491_v32, %v3490_v49  ;;  %v9479_v52 = vpop.eup %7187  ;;  %v3499_v58 = vsel %vm3398_vm11, %v9475_v12, 0.0  ;;  %v9578_v49 = vsub.s32 6, %v10351_v34  ;;  %v9581_v32 = vsub.s32 5, %v10351_v34 }
 0x464   :  { %v9483_v23 = vpop.eup %7189  ;;  %v3501_v11 = vsel %vm3398_vm11, %v9479_v52, 0.0 }
 0x465   :  { %v3494_v7 = vadd.f32 %v3493_v42, %v3492_v22  ;;  %v9487_v24 = vpop.eup %7191  ;;  %v3503_v38 = vsel %vm3398_vm11, %v9483_v23, 0.0 }
 0x466   :  { %v9491_v1 = vpop.eup %7193  ;;  %v3505_v17 = vsel %vm3398_vm11, %v9487_v24, 0.0 }
 0x467   :  { %v3496_v47 = vadd.f32 %v3495_v28, %v3494_v7  ;;  %v9495_v50 = vpop.eup %7195  ;;  %v3507_v31 = vsel %vm3398_vm11, %v9491_v1, 0.0 }
 0x468   :  { %v9499_v45 = vpop.eup %7197  ;;  %v3509_v27 = vsel %vm3398_vm11, %v9495_v50, 0.0 }
 0x469   :  { %v3498_v61 = vadd.f32 %v3497_v55, %v3496_v47  ;;  %v7200_v53 = vpop.eup %7199  ;;  %v3511_v3 = vsel %vm3398_vm11, %v9499_v45, 0.0 }
 0x46a   :  { %v3513_v15 = vsel %vm3398_vm11, %v7200_v53, 0.0 }
 0x46b   :  { %v3500_v13 = vadd.f32 %v3499_v58, %v3498_v61 }
 0x46d   :  { %v3502_v56 = vadd.f32 %v3501_v11, %v3500_v13 }
 0x46f   :  { %v3504_v41 = vadd.f32 %v3503_v38, %v3502_v56 }
 0x471   :  { %v3506_v6 = vadd.f32 %v3505_v17, %v3504_v41 }
 0x473   :  { %v3508_v51 = vadd.f32 %v3507_v31, %v3506_v6 }
 0x475   :  { %v3510_v5 = vadd.f32 %v3509_v27, %v3508_v51 }
 0x477   :  { %v3512_v19 = vadd.f32 %v3511_v3, %v3510_v5 }
 0x479   :  { %v3514_v30 = vadd.f32 %v3513_v15, %v3512_v19 }
 0x47b   :  { %v3515_v35 = vrot.slane %v3514_v30, 4 }
 0x47d   :  { %v3516_v63 = vadd.f32 %v3515_v35, %v3514_v30 }
 0x47f   :  { %v3517_v46 = vrot.slane %v3516_v63, 2 }
 0x481   :  { %v3518_v18 = vadd.f32 %v3517_v46, %v3516_v63 }
 0x483   :  { %v3519_v60 = vrot.slane %v3518_v18, 1 }
 0x485   :  { %v3520_v26 = vadd.f32 %v3519_v60, %v3518_v18 }
 0x487   :  { %7201 = vrcp.f32 %v3520_v26 }
 0x491   :  { %v9512_v36 = vpop.eup %7201 }
 0x492   :  { %v9515_v48 = vmul.f32 %v9512_v36, %v7200_v53  ;;  %v9519_v4 = vmul.f32 %v9512_v36, %v9438_v8  ;;  %v9523_v21 = vmul.f32 %v9512_v36, %v9440_v29  ;;  %v9527_v43 = vmul.f32 %v9512_v36, %v9446_v44 }
 0x493   :  { %v9531_v0 = vmul.f32 %v9512_v36, %v9450_v57  ;;  %v9535_v20 = vmul.f32 %v9512_v36, %v9456_v2  ;;  %v9539_v8 = vmul.f32 %v9512_v36, %v9462_v25  ;;  %v9542_v54 = vmul.f32 %v9512_v36, %v7182_v33 }
 0x494   :  { %3553 = vst.msk [vmem:[#allocation29 + $0x78] sm:$0xff] %vm3398_vm11, %v9515_v48  ;;  %v3564_v29 = vrot.slane %v9519_v4, %v9507_v39  ;;  %3538 = vst.msk [vmem:[#allocation29] sm:$0xff] %vm3398_vm11, %v9519_v4  ;;  %v3557_v44 = vrot.slane %v9519_v4, %v9510_v59  ;;  %v9553_v57 = vsub.s32 2, %v10351_v34  ;;  %v9556_v2 = vsub.s32 4, %v10351_v34 }
 0x495   :  { %3539 = vst.msk [vmem:[#allocation29 + $0x8] sm:$0xff] %vm3398_vm11, %v9523_v21  ;;  %3540 = vst.msk [vmem:[#allocation29 + $0x10] sm:$0xff] %vm3398_vm11, %v9527_v43  ;;  %v9571_v25 = vsub.s32 3, %v10351_v34  ;;  %v9584_v33 = vsub.s32 7, %v10351_v34  ;;  %v3599_v40 = vrot.slane %v9519_v4, %v9578_v49  ;;  %v3592_v22 = vrot.slane %v9519_v4, %v9581_v32 }
 0x496   :  { %3541 = vst.msk [vmem:[#allocation29 + $0x18] sm:$0xff] %vm3398_vm11, %v9531_v0  ;;  %3542 = vst.msk [vmem:[#allocation29 + $0x20] sm:$0xff] %vm3398_vm11, %v9535_v20  ;;  %3566 = vbcast.lane.b32.xlu1 %v3564_v29, 256  ;;  %3559 = vbcast.lane.b32.xlu0 %v3557_v44, 256  ;;  %v3571_v14 = vrot.slane %v9519_v4, %v9553_v57  ;;  %v3585_v10 = vrot.slane %v9519_v4, %v9556_v2 }
 0x497   :  { %3543 = vst.msk [vmem:[#allocation29 + $0x28] sm:$0xff] %vm3398_vm11, %v9539_v8  ;;  %3544 = vst.msk [vmem:[#allocation29 + $0x30] sm:$0xff] %vm3398_vm11, %v9542_v54  ;;  %v3578_v62 = vrot.slane %v9519_v4, %v9571_v25  ;;  %v3613_v42 = vrot.slane %v9523_v21, %v9510_v59  ;;  %v3788_v16 = vrot.slane %v9535_v20, %v9507_v39 }
 0x498   :  { %v3809_v7 = vrot.slane %v9535_v20, %v9556_v2  ;;  %v3802_v28 = vrot.slane %v9535_v20, %v9571_v25  ;;  %v3823_v9 = vrot.slane %v9535_v20, %v9578_v49  ;;  %v3816_v47 = vrot.slane %v9535_v20, %v9581_v32 }
 0x499   :  { %v3837_v55 = vrot.slane %v9539_v8, %v9510_v59  ;;  %v3830_v61 = vrot.slane %v9535_v20, %v9584_v33  ;;  %v3851_v58 = vrot.slane %v9539_v8, %v9553_v57  ;;  %v3844_v13 = vrot.slane %v9539_v8, %v9507_v39 }
 0x49a   :  { %3573 = vbcast.lane.b32.xlu1 %v3571_v14, 256  ;;  %3587 = vbcast.lane.b32.xlu0 %v3585_v10, 256  ;;  %v3865_v11 = vrot.slane %v9539_v8, %v9556_v2  ;;  %v3858_v56 = vrot.slane %v9539_v8, %v9571_v25  ;;  %v3879_v38 = vrot.slane %v9539_v8, %v9578_v49 }
 0x49b   :  { %v3872_v41 = vrot.slane %v9539_v8, %v9581_v32  ;;  %v3893_v17 = vrot.slane %v9542_v54, %v9510_v59  ;;  %v3886_v6 = vrot.slane %v9539_v8, %v9584_v33  ;;  %v3907_v31 = vrot.slane %v9542_v54, %v9553_v57  ;;  %v6788_v8 = vld [vmem:[#allocation17 + $0x18] ss:$12 sps:$4 sm:$0xff]  }
 0x49c   :  { %v3900_v51 = vrot.slane %v9542_v54, %v9507_v39  ;;  %v3921_v27 = vrot.slane %v9542_v54, %v9556_v2  ;;  %v3914_v53 = vrot.slane %v9542_v54, %v9571_v25  ;;  %v3935_v5 = vrot.slane %v9542_v54, %v9578_v49 }
 0x49d   :  { %v3928_v3 = vrot.slane %v9542_v54, %v9581_v32  ;;  %v9638_v19 = vmul.f32 %v9512_v36, %v9472_v37  ;;  %v3606_v15 = vrot.slane %v9519_v4, %v9584_v33  ;;  %v3627_v30 = vrot.slane %v9523_v21, %v9553_v57 }
 0x49e   :  { %3580 = vbcast.lane.b32.xlu1 %v3578_v62, 256  ;;  %3601 = vbcast.lane.b32.xlu0 %v3599_v40, 256  ;;  %v3942_v35 = vrot.slane %v9542_v54, %v9584_v33  ;;  %v9648_v63 = vmul.f32 %v9512_v36, %v9475_v12  ;;  %v3620_v62 = vrot.slane %v9523_v21, %v9507_v39 }
 0x49f   :  { %3545 = vst.msk [vmem:[#allocation29 + $0x38] sm:$0xff] %vm3398_vm11, %v9638_v19  ;;  %v3949_v37 = vrot.slane %v9638_v19, %v9510_v59  ;;  %v3963_v46 = vrot.slane %v9638_v19, %v9553_v57  ;;  %v3956_v18 = vrot.slane %v9638_v19, %v9507_v39  ;;  %v3977_v60 = vrot.slane %v9638_v19, %v9556_v2 }
 0x4a0   :  { %v3970_v26 = vrot.slane %v9638_v19, %v9571_v25  ;;  %v3991_v12 = vrot.slane %v9638_v19, %v9578_v49  ;;  %v3984_v34 = vrot.slane %v9638_v19, %v9581_v32  ;;  %3546 = vst.msk [vmem:[#allocation29 + $0x40] sm:$0xff] %vm3398_vm11, %v9648_v63  ;;  %v4005_v4 = vrot.slane %v9648_v63, %v9510_v59 }
 0x4a1   :  { %v3998_v29 = vrot.slane %v9638_v19, %v9584_v33  ;;  %v3641_v40 = vrot.slane %v9523_v21, %v9556_v2  ;;  %v3634_v10 = vrot.slane %v9523_v21, %v9571_v25  ;;  %v3655_v14 = vrot.slane %v9523_v21, %v9578_v49 }
 0x4a2   :  { %3594 = vbcast.lane.b32.xlu1 %v3592_v22, 256  ;;  %3615 = vbcast.lane.b32.xlu0 %v3613_v42, 256  ;;  %v3669_v22 = vrot.slane %v9527_v43, %v9510_v59  ;;  %v9720_v42 = vmul.f32 %v9512_v36, %v9483_v23  ;;  %v9738_v44 = vmul.f32 %v9512_v36, %v9499_v45 }
 0x4a3   :  { %v3662_v23 = vrot.slane %v9523_v21, %v9584_v33  ;;  %v3739_v45 = vrot.slane %v9531_v0, %v9553_v57 }
 0x4a4   :  { %3548 = vst.msk [vmem:[#allocation29 + $0x50] sm:$0xff] %vm3398_vm11, %v9720_v42  ;;  %3552 = vst.msk [vmem:[#allocation29 + $0x70] sm:$0xff] %vm3398_vm11, %v9738_v44 }
 0x4a6   :  { %3608 = vbcast.lane.b32.xlu1 %v3606_v15, 256  ;;  %3629 = vbcast.lane.b32.xlu0 %v3627_v30, 256  ;;  %v9690_v30 = vmul.f32 %v9512_v36, %v9479_v52  ;;  %v3648_v52 = vrot.slane %v9523_v21, %v9581_v32  ;;  %v9734_v15 = vmul.f32 %v9512_v36, %v9495_v50 }
 0x4a7   :  { %v3697_v21 = vrot.slane %v9527_v43, %v9556_v2  ;;  %v3767_v50 = vrot.slane %v9531_v0, %v9578_v49 }
 0x4a8   :  { %3547 = vst.msk [vmem:[#allocation29 + $0x48] sm:$0xff] %vm3398_vm11, %v9690_v30  ;;  %3551 = vst.msk [vmem:[#allocation29 + $0x68] sm:$0xff] %vm3398_vm11, %v9734_v15 }
 0x4aa   :  { %3622 = vbcast.lane.b32.xlu1 %v3620_v62, 256  ;;  %3643 = vbcast.lane.b32.xlu0 %v3641_v40, 256  ;;  %v4089_v62 = vrot.slane %v9690_v30, %v9556_v2  ;;  %v9730_v40 = vmul.f32 %v9512_v36, %v9491_v1  ;;  %v3718_v1 = vrot.slane %v9527_v43, %v9584_v33 }
 0x4ac   :  { %3550 = vst.msk [vmem:[#allocation29 + $0x60] sm:$0xff] %vm3398_vm11, %v9730_v40 }
 0x4ae   :  { %3636 = vbcast.lane.b32.xlu1 %v3634_v10, 256  ;;  %3657 = vbcast.lane.b32.xlu0 %v3655_v14, 256  ;;  %v9726_v10 = vmul.f32 %v9512_v36, %v9487_v24  ;;  %v3683_v14 = vrot.slane %v9527_v43, %v9553_v57  ;;  %v3676_v36 = vrot.slane %v9527_v43, %v9507_v39 }
 0x4af   :  { %v3711_v24 = vrot.slane %v9527_v43, %v9578_v49 }
 0x4b0   :  { %3549 = vst.msk [vmem:[#allocation29 + $0x58] sm:$0xff] %vm3398_vm11, %v9726_v10 }
 0x4b2   :  { %3650 = vbcast.lane.b32.xlu1 %v3648_v52, 256  ;;  %3671 = vbcast.lane.b32.xlu0 %v3669_v22, 256  ;;  %v3690_v22 = vrot.slane %v9527_v43, %v9571_v25  ;;  %v3725_v52 = vrot.slane %v9531_v0, %v9510_v59 }
 0x4b6   :  { %3664 = vbcast.lane.b32.xlu1 %v3662_v23, 256  ;;  %3685 = vbcast.lane.b32.xlu0 %v3683_v14, 256  ;;  %v3704_v14 = vrot.slane %v9527_v43, %v9581_v32  ;;  %v4418_v23 = vrot.slane %v9515_v48, %v9571_v25  ;;  %v3760_v43 = vrot.slane %v9531_v0, %v9581_v32 }
 0x4ba   :  { %3678 = vbcast.lane.b32.xlu1 %v3676_v36, 256  ;;  %3699 = vbcast.lane.b32.xlu0 %v3697_v21, 256  ;;  %v4355_v21 = vrot.slane %v9738_v44, %v9553_v57  ;;  %v4383_v36 = vrot.slane %v9738_v44, %v9578_v49 }
 0x4be   :  { %3692 = vbcast.lane.b32.xlu1 %v3690_v22, 256  ;;  %3713 = vbcast.lane.b32.xlu0 %v3711_v24, 256  ;;  %v4439_v24 = vrot.slane %v9515_v48, %v9578_v49  ;;  %v3746_v22 = vrot.slane %v9531_v0, %v9571_v25 }
 0x4c2   :  { %3706 = vbcast.lane.b32.xlu1 %v3704_v14, 256  ;;  %3727 = vbcast.lane.b32.xlu0 %v3725_v52, 256  ;;  %v3732_v52 = vrot.slane %v9531_v0, %v9507_v39  ;;  %v3753_v14 = vrot.slane %v9531_v0, %v9556_v2 }
 0x4c6   :  { %3720 = vbcast.lane.b32.xlu1 %v3718_v1, 256  ;;  %3741 = vbcast.lane.b32.xlu0 %v3739_v45, 256  ;;  %v3781_v1 = vrot.slane %v9535_v20, %v9510_v59  ;;  %v3774_v45 = vrot.slane %v9531_v0, %v9584_v33  ;;  %v6785_v0 = vld [vmem:[#allocation17] ss:$12 sps:$4 sm:$0xff]  }
 0x4ca   :  { %3734 = vbcast.lane.b32.xlu1 %v3732_v52, 256  ;;  %3755 = vbcast.lane.b32.xlu0 %v3753_v14, 256  ;;  %v3795_v52 = vrot.slane %v9535_v20, %v9553_v57  ;;  %v6787_v20 = vld [vmem:[#allocation17 + $0x4] ss:$12 sps:$4 sm:$0xff]  }
 0x4cb   :  { %5573 = vmatprep.subr.bf16.mxu0 %v6787_v20 }
 0x4cc   :  { %5574 = vmatpush1.bf16.msra.mxu0 %v6785_v0 }
 0x4ce   :  { %3748 = vbcast.lane.b32.xlu1 %v3746_v22, 256  ;;  %3769 = vbcast.lane.b32.xlu0 %v3767_v50, 256  ;;  %v7221_v50 = vld [vmem:[#allocation7 + $0x20] sm:$0xff] }
 0x4cf   :  { %v4458_v22 = vunpack.c.l.bf16 %v7221_v50  ;;  %v4459_v14 = vunpack.c.h.bf16 %v7221_v50 }
 0x4d2   :  { %3762 = vbcast.lane.b32.xlu1 %v3760_v43, 256  ;;  %3783 = vbcast.lane.b32.xlu0 %v3781_v1, 256 }
 0x4d6   :  { %3776 = vbcast.lane.b32.xlu1 %v3774_v45, 256  ;;  %3797 = vbcast.lane.b32.xlu0 %v3795_v52, 256  ;;  %v7222_v45 = vld [vmem:[#allocation7 + $0x28] sm:$0xff] }
 0x4d7   :  { %v4460_v52 = vunpack.c.l.bf16 %v7222_v45  ;;  %v4461_v0 = vunpack.c.h.bf16 %v7222_v45 }
 0x4da   :  { %3790 = vbcast.lane.b32.xlu1 %v3788_v16, 256  ;;  %3811 = vbcast.lane.b32.xlu0 %v3809_v7, 256  ;;  %v6790_v16 = vld [vmem:[#allocation17 + $0x1c] ss:$12 sps:$4 sm:$0xff]  }
 0x4db   :  { %v7217_v7 = vld [vmem:[#allocation7 + $0x8] sm:$0xff]  ;;  %5575 = vmatprep.subr.bf16.mxu0 %v6790_v16 }
 0x4dc   :  { %5576 = vmatpush1.bf16.msra.mxu0 %v6788_v8 }
 0x4de   :  { %3804 = vbcast.lane.b32.xlu1 %v3802_v28, 256  ;;  %3825 = vbcast.lane.b32.xlu0 %v3823_v9, 256  ;;  %v4452_v28 = vunpack.c.l.bf16 %v7217_v7  ;;  %v4453_v9 = vunpack.c.h.bf16 %v7217_v7  ;;  %v7223_v7 = vld [vmem:[#allocation7 + $0x30] sm:$0xff] }
 0x4e2   :  { %3818 = vbcast.lane.b32.xlu1 %v3816_v47, 256  ;;  %3839 = vbcast.lane.b32.xlu0 %v3837_v55, 256  ;;  %v7218_v47 = vld [vmem:[#allocation7] sm:$0xff] }
 0x4e3   :  { %v4450_v55 = vunpack.c.l.bf16 %v7218_v47 }
 0x4e6   :  { %3832 = vbcast.lane.b32.xlu1 %v3830_v61, 256  ;;  %3853 = vbcast.lane.b32.xlu0 %v3851_v58, 256  ;;  %v4451_v61 = vunpack.c.h.bf16 %v7218_v47 }
 0x4ea   :  { %3846 = vbcast.lane.b32.xlu1 %v3844_v13, 256  ;;  %3867 = vbcast.lane.b32.xlu0 %v3865_v11, 256  ;;  %v7219_v11 = vld [vmem:[#allocation7 + $0x10] sm:$0xff] }
 0x4ee   :  { %3860 = vbcast.lane.b32.xlu1 %v3858_v56, 256  ;;  %3881 = vbcast.lane.b32.xlu0 %v3879_v38, 256  ;;  %v4454_v56 = vunpack.c.l.bf16 %v7219_v11  ;;  %v4455_v38 = vunpack.c.h.bf16 %v7219_v11  ;;  %v7224_v11 = vld [vmem:[#allocation7 + $0x38] sm:$0xff] }
 0x4f2   :  { %3874 = vbcast.lane.b32.xlu1 %v3872_v41, 256  ;;  %3895 = vbcast.lane.b32.xlu0 %v3893_v17, 256 }
 0x4f6   :  { %3888 = vbcast.lane.b32.xlu1 %v3886_v6, 256  ;;  %3909 = vbcast.lane.b32.xlu0 %v3907_v31, 256 }
 0x4fa   :  { %3902 = vbcast.lane.b32.xlu1 %v3900_v51, 256  ;;  %3923 = vbcast.lane.b32.xlu0 %v3921_v27, 256 }
 0x4fe   :  { %3916 = vbcast.lane.b32.xlu1 %v3914_v53, 256  ;;  %3937 = vbcast.lane.b32.xlu0 %v3935_v5, 256  ;;  %v7220_v5 = vld [vmem:[#allocation7 + $0x18] sm:$0xff] }
 0x502   :  { %3930 = vbcast.lane.b32.xlu1 %v3928_v3, 256  ;;  %3951 = vbcast.lane.b32.xlu0 %v3949_v37, 256  ;;  %v4456_v3 = vunpack.c.l.bf16 %v7220_v5  ;;  %v6791_v37 = vld [vmem:[#allocation17 + $0x30] ss:$12 sps:$4 sm:$0xff]  }
 0x506   :  { %3944 = vbcast.lane.b32.xlu1 %v3942_v35, 256  ;;  %3965 = vbcast.lane.b32.xlu0 %v3963_v46, 256  ;;  %v4457_v35 = vunpack.c.h.bf16 %v7220_v5  ;;  %v6793_v46 = vld [vmem:[#allocation17 + $0x34] ss:$12 sps:$4 sm:$0xff]  }
 0x507   :  { %5577 = vmatprep.subr.bf16.mxu0 %v6793_v46 }
 0x508   :  { %v3567_v58 = vpop.permute.xlu1 %3566  ;;  %v3560_v13 = vpop.permute.xlu0 %3559  ;;  %5578 = vmatpush1.bf16.msra.mxu0 %v6791_v37 }
 0x509   :  { %v4708_v54 = vmul.f32 %v4452_v28, %v3567_v58  ;;  %v4709_v41 = vmul.f32 %v4453_v9, %v3567_v58  ;;  %v4706_v17 = vmul.f32 %v4450_v55, %v3560_v13  ;;  %v4707_v6 = vmul.f32 %v4451_v61, %v3560_v13 }
 0x50a   :  { %3958 = vbcast.lane.b32.xlu1 %v3956_v18, 256  ;;  %3979 = vbcast.lane.b32.xlu0 %v3977_v60, 256  ;;  %v4462_v28 = vunpack.c.l.bf16 %v7223_v7  ;;  %v4463_v9 = vunpack.c.h.bf16 %v7223_v7 }
 0x50b   :  { %v4962_v18 = vadd.f32 %v4708_v54, %v4706_v17  ;;  %v5089_v60 = vadd.f32 %v4709_v41, %v4707_v6 }
 0x50c   :  { %v3574_v31 = vpop.permute.xlu1 %3573  ;;  %v3588_v51 = vpop.permute.xlu0 %3587 }
 0x50d   :  { %v4710_v27 = vmul.f32 %v4454_v56, %v3574_v31  ;;  %v4711_v53 = vmul.f32 %v4455_v38, %v3574_v31  ;;  %v4715_v47 = vmul.f32 %v4459_v14, %v3588_v51  ;;  %v4464_v56 = vunpack.c.l.bf16 %v7224_v11  ;;  %v6794_v31 = vld [vmem:[#allocation17 + $0x48] ss:$12 sps:$4 sm:$0xff]  }
 0x50e   :  { %3972 = vbcast.lane.b32.xlu1 %v3970_v26, 256  ;;  %3993 = vbcast.lane.b32.xlu0 %v3991_v12, 256  ;;  %v4714_v12 = vmul.f32 %v4458_v22, %v3588_v51  ;;  %v4465_v38 = vunpack.c.h.bf16 %v7224_v11 }
 0x50f   :  { %v4963_v20 = vadd.f32 %v4962_v18, %v4710_v27  ;;  %v5090_v8 = vadd.f32 %v5089_v60, %v4711_v53  ;;  %v6796_v27 = vld [vmem:[#allocation17 + $0x4c] ss:$12 sps:$4 sm:$0xff]   ;;  %v7226_v60 = vld [vmem:[#allocation7 + $0x48] sm:$0xff] }
 0x510   :  { %v3581_v43 = vpop.permute.xlu1 %3580  ;;  %v3602_v1 = vpop.permute.xlu0 %3601  ;;  %5579 = vmatprep.subr.bf16.mxu0 %v6796_v27  ;;  %v4468_v50 = vunpack.c.l.bf16 %v7226_v60  ;;  %v4469_v22 = vunpack.c.h.bf16 %v7226_v60 }
 0x511   :  { %v4712_v16 = vmul.f32 %v4456_v3, %v3581_v43  ;;  %v4713_v26 = vmul.f32 %v4457_v35, %v3581_v43  ;;  %v4718_v51 = vmul.f32 %v4462_v28, %v3602_v1  ;;  %v4719_v3 = vmul.f32 %v4463_v9, %v3602_v1  ;;  %5580 = vmatpush1.bf16.msra.mxu0 %v6794_v31 }
 0x512   :  { %3986 = vbcast.lane.b32.xlu1 %v3984_v34, 256  ;;  %4007 = vbcast.lane.b32.xlu0 %v4005_v4, 256  ;;  %v7225_v34 = vld [vmem:[#allocation7 + $0x40] sm:$0xff]  ;;  %v10352_v4 = vrot.slane %v9648_v63, %v9553_v57  ;;  %v10354_v1 = vrot.slane %v9648_v63, %v9556_v2 }
 0x513   :  { %v4964_v55 = vadd.f32 %v4963_v20, %v4712_v16  ;;  %v5091_v61 = vadd.f32 %v5090_v8, %v4713_v26  ;;  %v4466_v53 = vunpack.c.l.bf16 %v7225_v34  ;;  %v4467_v5 = vunpack.c.h.bf16 %v7225_v34 }
 0x514   :  { %v3595_v58 = vpop.permute.xlu1 %3594  ;;  %v3616_v13 = vpop.permute.xlu0 %3615  ;;  %v10353_v20 = vrot.slane %v9648_v63, %v9507_v39 }
 0x515   :  { %v4965_v54 = vadd.f32 %v4964_v55, %v4714_v12  ;;  %v5092_v41 = vadd.f32 %v5091_v61, %v4715_v47  ;;  %v4716_v17 = vmul.f32 %v4460_v52, %v3595_v58  ;;  %v4717_v6 = vmul.f32 %v4461_v0, %v3595_v58  ;;  %v7228_v12 = vld [vmem:[#allocation7 + $0x58] sm:$0xff] }
 0x516   :  { %4000 = vbcast.lane.b32.xlu1 %v3998_v29, 256  ;;  %4021 = vbcast.lane.b32.xlu0 %v10352_v4, 256  ;;  %v7227_v29 = vld [vmem:[#allocation7 + $0x50] sm:$0xff]  ;;  %v4722_v8 = vmul.f32 %v4466_v53, %v3616_v13  ;;  %v4723_v16 = vmul.f32 %v4467_v5, %v3616_v13  ;;  %v4472_v47 = vunpack.c.l.bf16 %v7228_v12  ;;  %v4473_v55 = vunpack.c.h.bf16 %v7228_v12 }
 0x517   :  { %v4966_v35 = vadd.f32 %v4965_v54, %v4716_v17  ;;  %v5093_v37 = vadd.f32 %v5092_v41, %v4717_v6  ;;  %v4470_v52 = vunpack.c.l.bf16 %v7227_v29  ;;  %v4471_v0 = vunpack.c.h.bf16 %v7227_v29  ;;  %v6797_v53 = vld [vmem:[#allocation17 + $0x60] ss:$12 sps:$4 sm:$0xff]   ;;  %v6799_v5 = vld [vmem:[#allocation17 + $0x64] ss:$12 sps:$4 sm:$0xff]  }
 0x518   :  { %v3609_v46 = vpop.permute.xlu1 %3608  ;;  %v3630_v18 = vpop.permute.xlu0 %3629  ;;  %v10355_v17 = vrot.slane %v9648_v63, %v9571_v25  ;;  %v10356_v13 = vrot.slane %v9648_v63, %v9578_v49  ;;  %5581 = vmatprep.subr.bf16.mxu0 %v6799_v5 }
 0x519   :  { %v4967_v14 = vadd.f32 %v4966_v35, %v4718_v51  ;;  %v5094_v43 = vadd.f32 %v5093_v37, %v4719_v3  ;;  %v4720_v45 = vmul.f32 %v4464_v56, %v3609_v46  ;;  %v4721_v19 = vmul.f32 %v4465_v38, %v3609_v46  ;;  %v7229_v38 = vld [vmem:[#allocation7 + $0x60] sm:$0xff]  ;;  %v7230_v3 = vld [vmem:[#allocation7 + $0x68] sm:$0xff]  ;;  %5582 = vmatpush1.bf16.msra.mxu0 %v6797_v53 }
 0x51a   :  { %4014 = vbcast.lane.b32.xlu1 %v10353_v20, 256  ;;  %4035 = vbcast.lane.b32.xlu0 %v10354_v1, 256  ;;  %v4474_v54 = vunpack.c.l.bf16 %v7229_v38  ;;  %v4475_v41 = vunpack.c.h.bf16 %v7229_v38  ;;  %v4726_v6 = vmul.f32 %v4470_v52, %v3630_v18  ;;  %v4727_v31 = vmul.f32 %v4471_v0, %v3630_v18 }
 0x51b   :  { %v4968_v26 = vadd.f32 %v4967_v14, %v4720_v45  ;;  %v5095_v7 = vadd.f32 %v5094_v43, %v4721_v19  ;;  %v4476_v35 = vunpack.c.l.bf16 %v7230_v3  ;;  %v4477_v37 = vunpack.c.h.bf16 %v7230_v3  ;;  %v7231_v14 = vld [vmem:[#allocation7 + $0x70] sm:$0xff] }
 0x51c   :  { %v3623_v28 = vpop.permute.xlu1 %3622  ;;  %v3644_v9 = vpop.permute.xlu0 %3643  ;;  %v4478_v43 = vunpack.c.l.bf16 %v7231_v14  ;;  %v4479_v45 = vunpack.c.h.bf16 %v7231_v14  ;;  %v10357_v18 = vrot.slane %v9648_v63, %v9581_v32  ;;  %v10358_v19 = vrot.slane %v9690_v30, %v9510_v59 }
 0x51d   :  { %v4969_v61 = vadd.f32 %v4968_v26, %v4722_v8  ;;  %v5096_v58 = vadd.f32 %v5095_v7, %v4723_v16  ;;  %v4724_v11 = vmul.f32 %v4468_v50, %v3623_v28  ;;  %v4725_v56 = vmul.f32 %v4469_v22, %v3623_v28  ;;  %v7232_v16 = vld [vmem:[#allocation7 + $0x78] sm:$0xff] }
 0x51e   :  { %4028 = vbcast.lane.b32.xlu1 %v10355_v17, 256  ;;  %4049 = vbcast.lane.b32.xlu0 %v10356_v13, 256  ;;  %v4730_v29 = vmul.f32 %v4474_v54, %v3644_v9  ;;  %v4731_v52 = vmul.f32 %v4475_v41, %v3644_v9  ;;  %v4480_v26 = vunpack.c.l.bf16 %v7232_v16  ;;  %v4481_v7 = vunpack.c.h.bf16 %v7232_v16  ;;  %v6800_v13 = vld [vmem:[#allocation17 + $0x78] ss:$12 sps:$4 sm:$0xff]  }
 0x51f   :  { %v4970_v27 = vadd.f32 %v4969_v61, %v4724_v11  ;;  %v5097_v34 = vadd.f32 %v5096_v58, %v4725_v56  ;;  %v7233_v61 = vld [vmem:[#allocation7 + $0x80] sm:$0xff]  ;;  %v10359_v56 = vrot.slane %v9648_v63, %v9584_v33  ;;  %v10360_v9 = vrot.slane %v9690_v30, %v9553_v57 }
 0x520   :  { %v3637_v4 = vpop.permute.xlu1 %3636  ;;  %v3658_v51 = vpop.permute.xlu0 %3657  ;;  %v4482_v58 = vunpack.c.l.bf16 %v7233_v61  ;;  %v4483_v11 = vunpack.c.h.bf16 %v7233_v61 }
 0x521   :  { %v4971_v46 = vadd.f32 %v4970_v27, %v4726_v6  ;;  %v5098_v60 = vadd.f32 %v5097_v34, %v4727_v31  ;;  %v4728_v50 = vmul.f32 %v4472_v47, %v3637_v4  ;;  %v4729_v22 = vmul.f32 %v4473_v55, %v3637_v4  ;;  %v6802_v6 = vld [vmem:[#allocation17 + $0x7c] ss:$12 sps:$4 sm:$0xff]  }
 0x522   :  { %4042 = vbcast.lane.b32.xlu1 %v10357_v18, 256  ;;  %4063 = vbcast.lane.b32.xlu0 %v10358_v19, 256  ;;  %v4734_v38 = vmul.f32 %v4478_v43, %v3658_v51  ;;  %v4735_v54 = vmul.f32 %v4479_v45, %v3658_v51  ;;  %v7234_v34 = vld [vmem:[#allocation7 + $0x88] sm:$0xff]  ;;  %v10361_v51 = vrot.slane %v9690_v30, %v9507_v39  ;;  %v7236_v19 = vld [vmem:[#allocation7 + $0x98] sm:$0xff] }
 0x523   :  { %v4972_v0 = vadd.f32 %v4971_v46, %v4728_v50  ;;  %v5099_v20 = vadd.f32 %v5098_v60, %v4729_v22  ;;  %v4484_v53 = vunpack.c.l.bf16 %v7234_v34  ;;  %v4485_v5 = vunpack.c.h.bf16 %v7234_v34  ;;  %5583 = vmatprep.subr.bf16.mxu0 %v6802_v6  ;;  %v7239_v34 = vld [vmem:[#allocation7 + $0xb0] sm:$0xff] }
 0x524   :  { %v3651_v1 = vpop.permute.xlu1 %3650  ;;  %v3672_v8 = vpop.permute.xlu0 %3671  ;;  %5584 = vmatpush1.bf16.msra.mxu0 %v6800_v13 }
 0x525   :  { %v4973_v28 = vadd.f32 %v4972_v0, %v4730_v29  ;;  %v5100_v12 = vadd.f32 %v5099_v20, %v4731_v52  ;;  %v4732_v47 = vmul.f32 %v4476_v35, %v3651_v1  ;;  %v4733_v55 = vmul.f32 %v4477_v37, %v3651_v1  ;;  %v7235_v37 = vld [vmem:[#allocation7 + $0x90] sm:$0xff] }
 0x526   :  { %4056 = vbcast.lane.b32.xlu1 %v10359_v56, 256  ;;  %4077 = vbcast.lane.b32.xlu0 %v10360_v9, 256  ;;  %v4486_v46 = vunpack.c.l.bf16 %v7235_v37  ;;  %v4487_v60 = vunpack.c.h.bf16 %v7235_v37  ;;  %v4738_v50 = vmul.f32 %v4482_v58, %v3672_v8  ;;  %v4739_v22 = vmul.f32 %v4483_v11, %v3672_v8  ;;  %v6803_v58 = vld [vmem:[#allocation17 + $0x90] ss:$12 sps:$4 sm:$0xff]   ;;  %v6805_v11 = vld [vmem:[#allocation17 + $0x94] ss:$12 sps:$4 sm:$0xff]  }
 0x527   :  { %v4974_v41 = vadd.f32 %v4973_v28, %v4732_v47  ;;  %v5101_v17 = vadd.f32 %v5100_v12, %v4733_v55  ;;  %v4488_v29 = vunpack.c.l.bf16 %v7236_v19  ;;  %v4489_v52 = vunpack.c.h.bf16 %v7236_v19  ;;  %5585 = vmatprep.subr.bf16.mxu0 %v6805_v11 }
 0x528   :  { %v3665_v31 = vpop.permute.xlu1 %3664  ;;  %v3686_v27 = vpop.permute.xlu0 %3685  ;;  %v10363_v8 = vrot.slane %v9690_v30, %v9578_v49  ;;  %5586 = vmatpush1.bf16.msra.mxu0 %v6803_v58 }
 0x529   :  { %v4975_v4 = vadd.f32 %v4974_v41, %v4734_v38  ;;  %v5102_v3 = vadd.f32 %v5101_v17, %v4735_v54  ;;  %v4736_v35 = vmul.f32 %v4480_v26, %v3665_v31  ;;  %v4737_v63 = vmul.f32 %v4481_v7, %v3665_v31  ;;  %v7237_v26 = vld [vmem:[#allocation7 + $0xa0] sm:$0xff]  ;;  %v7238_v38 = vld [vmem:[#allocation7 + $0xa8] sm:$0xff] }
 0x52a   :  { %4070 = vbcast.lane.b32.xlu1 %v10361_v51, 256  ;;  %4091 = vbcast.lane.b32.xlu0 %v4089_v62, 256  ;;  %v4490_v7 = vunpack.c.l.bf16 %v7237_v26  ;;  %v4491_v28 = vunpack.c.h.bf16 %v7237_v26  ;;  %v10362_v62 = vrot.slane %v9690_v30, %v9571_v25  ;;  %v4742_v12 = vmul.f32 %v4486_v46, %v3686_v27  ;;  %v7240_v51 = vld [vmem:[#allocation7 + $0xb8] sm:$0xff] }
 0x52b   :  { %v4976_v14 = vadd.f32 %v4975_v4, %v4736_v35  ;;  %v5103_v43 = vadd.f32 %v5102_v3, %v4737_v63  ;;  %v4743_v47 = vmul.f32 %v4487_v60, %v3686_v27  ;;  %v4492_v54 = vunpack.c.l.bf16 %v7238_v38 }
 0x52c   :  { %v3679_v45 = vpop.permute.xlu1 %3678  ;;  %v3700_v18 = vpop.permute.xlu0 %3699  ;;  %v4493_v41 = vunpack.c.h.bf16 %v7238_v38  ;;  %v10364_v27 = vrot.slane %v9690_v30, %v9581_v32  ;;  %v10365_v4 = vrot.slane %v9720_v42, %v9510_v59 }
 0x52d   :  { %v4977_v0 = vadd.f32 %v4976_v14, %v4738_v50  ;;  %v5104_v20 = vadd.f32 %v5103_v43, %v4739_v22  ;;  %v4740_v1 = vmul.f32 %v4484_v53, %v3679_v45  ;;  %v4741_v16 = vmul.f32 %v4485_v5, %v3679_v45 }
 0x52e   :  { %4084 = vbcast.lane.b32.xlu1 %v10362_v62, 256  ;;  %4105 = vbcast.lane.b32.xlu0 %v10363_v8, 256  ;;  %v4494_v53 = vunpack.c.l.bf16 %v7239_v34  ;;  %v4495_v5 = vunpack.c.h.bf16 %v7239_v34  ;;  %v4746_v3 = vmul.f32 %v4490_v7, %v3700_v18  ;;  %v4747_v35 = vmul.f32 %v4491_v28, %v3700_v18  ;;  %v7242_v8 = vld [vmem:[#allocation7 + $0xc8] sm:$0xff]  ;;  %v6808_v34 = vld [vmem:[#allocation17 + $0xac] ss:$12 sps:$4 sm:$0xff]  }
 0x52f   :  { %v4978_v55 = vadd.f32 %v4977_v0, %v4740_v1  ;;  %v5105_v61 = vadd.f32 %v5104_v20, %v4741_v16  ;;  %v4496_v50 = vunpack.c.l.bf16 %v7240_v51  ;;  %v4497_v22 = vunpack.c.h.bf16 %v7240_v51  ;;  %5587 = vmatprep.subr.bf16.mxu0 %v6808_v34  ;;  %v7245_v51 = vld [vmem:[#allocation7 + $0xe0] sm:$0xff] }
 0x530   :  { %v3693_v56 = vpop.permute.xlu1 %3692  ;;  %v3714_v9 = vpop.permute.xlu0 %3713  ;;  %v10366_v20 = vrot.slane %v9690_v30, %v9584_v33  ;;  %v10367_v18 = vrot.slane %v9720_v42, %v9553_v57 }
 0x531   :  { %v4979_v17 = vadd.f32 %v4978_v55, %v4742_v12  ;;  %v5106_v13 = vadd.f32 %v5105_v61, %v4743_v47  ;;  %v4744_v6 = vmul.f32 %v4488_v29, %v3693_v56  ;;  %v4745_v31 = vmul.f32 %v4489_v52, %v3693_v56  ;;  %v7241_v29 = vld [vmem:[#allocation7 + $0xc0] sm:$0xff]  ;;  %v7243_v56 = vld [vmem:[#allocation7 + $0xd0] sm:$0xff] }
 0x532   :  { %4098 = vbcast.lane.b32.xlu1 %v10364_v27, 256  ;;  %4119 = vbcast.lane.b32.xlu0 %v10365_v4, 256  ;;  %v4498_v52 = vunpack.c.l.bf16 %v7241_v29  ;;  %v4499_v0 = vunpack.c.h.bf16 %v7241_v29  ;;  %v4750_v1 = vmul.f32 %v4494_v53, %v3714_v9  ;;  %v4751_v16 = vmul.f32 %v4495_v5, %v3714_v9  ;;  %v7244_v27 = vld [vmem:[#allocation7 + $0xd8] sm:$0xff] }
 0x533   :  { %v4980_v63 = vadd.f32 %v4979_v17, %v4744_v6  ;;  %v5107_v37 = vadd.f32 %v5106_v13, %v4745_v31  ;;  %v4500_v12 = vunpack.c.l.bf16 %v7242_v8  ;;  %v4501_v47 = vunpack.c.h.bf16 %v7242_v8  ;;  %v6806_v31 = vld [vmem:[#allocation17 + $0xa8] ss:$12 sps:$4 sm:$0xff]   ;;  %v7247_v8 = vld [vmem:[#allocation7 + $0xf0] sm:$0xff] }
 0x534   :  { %v3707_v46 = vpop.permute.xlu1 %3706  ;;  %v3728_v60 = vpop.permute.xlu0 %3727  ;;  %v4502_v30 = vunpack.c.l.bf16 %v7243_v56  ;;  %v4503_v38 = vunpack.c.h.bf16 %v7243_v56  ;;  %v10369_v9 = vrot.slane %v9720_v42, %v9556_v2  ;;  %v4504_v4 = vunpack.c.l.bf16 %v7244_v27  ;;  %5588 = vmatpush1.bf16.msra.mxu0 %v6806_v31 }
 0x535   :  { %v4981_v14 = vadd.f32 %v4980_v63, %v4746_v3  ;;  %v5108_v43 = vadd.f32 %v5107_v37, %v4747_v35  ;;  %v4748_v45 = vmul.f32 %v4492_v54, %v3707_v46  ;;  %v4749_v19 = vmul.f32 %v4493_v41, %v3707_v46 }
 0x536   :  { %4112 = vbcast.lane.b32.xlu1 %v10366_v20, 256  ;;  %4133 = vbcast.lane.b32.xlu0 %v10367_v18, 256  ;;  %v10368_v54 = vrot.slane %v9720_v42, %v9507_v39  ;;  %v4754_v41 = vmul.f32 %v4498_v52, %v3728_v60  ;;  %v4755_v17 = vmul.f32 %v4499_v0, %v3728_v60  ;;  %v4505_v3 = vunpack.c.h.bf16 %v7244_v27  ;;  %v7246_v20 = vld [vmem:[#allocation7 + $0xe8] sm:$0xff]  ;;  %v7249_v27 = vld [vmem:[#allocation7 + $0x100] sm:$0xff] }
 0x537   :  { %v4982_v26 = vadd.f32 %v4981_v14, %v4748_v45  ;;  %v5109_v7 = vadd.f32 %v5108_v43, %v4749_v19  ;;  %v10370_v60 = vrot.slane %v9720_v42, %v9571_v25  ;;  %v10371_v14 = vrot.slane %v9720_v42, %v9578_v49 }
 0x538   :  { %v3721_v28 = vpop.permute.xlu1 %3720  ;;  %v3742_v62 = vpop.permute.xlu0 %3741  ;;  %v4508_v18 = vunpack.c.l.bf16 %v7246_v20 }
 0x539   :  { %v4983_v55 = vadd.f32 %v4982_v26, %v4750_v1  ;;  %v5110_v61 = vadd.f32 %v5109_v7, %v4751_v16  ;;  %v4752_v58 = vmul.f32 %v4496_v50, %v3721_v28  ;;  %v4753_v11 = vmul.f32 %v4497_v22, %v3721_v28 }
 0x53a   :  { %4126 = vbcast.lane.b32.xlu1 %v10368_v54, 256  ;;  %4147 = vbcast.lane.b32.xlu0 %v10369_v9, 256  ;;  %v4506_v50 = vunpack.c.l.bf16 %v7245_v51  ;;  %v4507_v22 = vunpack.c.h.bf16 %v7245_v51  ;;  %v4758_v43 = vmul.f32 %v4502_v30, %v3742_v62  ;;  %v4759_v45 = vmul.f32 %v4503_v38, %v3742_v62  ;;  %v6809_v30 = vld [vmem:[#allocation17 + $0xc0] ss:$12 sps:$4 sm:$0xff]   ;;  %v6811_v38 = vld [vmem:[#allocation17 + $0xc4] ss:$12 sps:$4 sm:$0xff]  }
 0x53b   :  { %v4984_v13 = vadd.f32 %v4983_v55, %v4752_v58  ;;  %v5111_v6 = vadd.f32 %v5110_v61, %v4753_v11  ;;  %v4509_v1 = vunpack.c.h.bf16 %v7246_v20  ;;  %v10372_v55 = vrot.slane %v9720_v42, %v9581_v32  ;;  %5589 = vmatprep.subr.bf16.mxu0 %v6811_v38 }
 0x53c   :  { %v3735_v53 = vpop.permute.xlu1 %3734  ;;  %v3756_v5 = vpop.permute.xlu0 %3755  ;;  %v10373_v62 = vrot.slane %v9726_v10, %v9510_v59  ;;  %5590 = vmatpush1.bf16.msra.mxu0 %v6809_v30  ;;  %v7253_v30 = vld [vmem:[#allocation7 + $0x120] sm:$0xff] }
 0x53d   :  { %v4985_v35 = vadd.f32 %v4984_v13, %v4754_v41  ;;  %v5112_v63 = vadd.f32 %v5111_v6, %v4755_v17  ;;  %v4756_v37 = vmul.f32 %v4500_v12, %v3735_v53  ;;  %v4757_v46 = vmul.f32 %v4501_v47, %v3735_v53  ;;  %v7248_v41 = vld [vmem:[#allocation7 + $0xf8] sm:$0xff] }
 0x53e   :  { %4140 = vbcast.lane.b32.xlu1 %v10370_v60, 256  ;;  %4161 = vbcast.lane.b32.xlu0 %v10371_v14, 256  ;;  %v4510_v12 = vunpack.c.l.bf16 %v7247_v8  ;;  %v4511_v47 = vunpack.c.h.bf16 %v7247_v8  ;;  %v4762_v61 = vmul.f32 %v4506_v50, %v3756_v5  ;;  %v4763_v58 = vmul.f32 %v4507_v22, %v3756_v5  ;;  %v7250_v60 = vld [vmem:[#allocation7 + $0x108] sm:$0xff] }
 0x53f   :  { %v4986_v19 = vadd.f32 %v4985_v35, %v4756_v37  ;;  %v5113_v29 = vadd.f32 %v5112_v63, %v4757_v46  ;;  %v4512_v17 = vunpack.c.l.bf16 %v7248_v41  ;;  %v4513_v13 = vunpack.c.h.bf16 %v7248_v41 }
 0x540   :  { %v3749_v52 = vpop.permute.xlu1 %3748  ;;  %v3770_v0 = vpop.permute.xlu0 %3769  ;;  %v10374_v5 = vrot.slane %v9720_v42, %v9584_v33  ;;  %v10375_v35 = vrot.slane %v9726_v10, %v9553_v57  ;;  %v4516_v14 = vunpack.c.l.bf16 %v7250_v60  ;;  %v7251_v42 = vld [vmem:[#allocation7 + $0x110] sm:$0xff]  ;;  %v4522_v38 = vunpack.c.l.bf16 %v7253_v30 }
 0x541   :  { %v4987_v16 = vadd.f32 %v4986_v19, %v4758_v43  ;;  %v5114_v26 = vadd.f32 %v5113_v29, %v4759_v45  ;;  %v4760_v7 = vmul.f32 %v4504_v4, %v3749_v52  ;;  %v4761_v28 = vmul.f32 %v4505_v3, %v3749_v52 }
 0x542   :  { %4154 = vbcast.lane.b32.xlu1 %v10372_v55, 256  ;;  %4175 = vbcast.lane.b32.xlu0 %v10373_v62, 256  ;;  %v4514_v4 = vunpack.c.l.bf16 %v7249_v27  ;;  %v4515_v3 = vunpack.c.h.bf16 %v7249_v27  ;;  %v4766_v63 = vmul.f32 %v4510_v12, %v3770_v0  ;;  %v4767_v37 = vmul.f32 %v4511_v47, %v3770_v0  ;;  %v7252_v47 = vld [vmem:[#allocation7 + $0x118] sm:$0xff] }
 0x543   :  { %v4988_v11 = vadd.f32 %v4987_v16, %v4760_v7  ;;  %v5115_v56 = vadd.f32 %v5114_v26, %v4761_v28  ;;  %v4517_v43 = vunpack.c.h.bf16 %v7250_v60  ;;  %v4518_v20 = vunpack.c.l.bf16 %v7251_v42 }
 0x544   :  { %v3763_v54 = vpop.permute.xlu1 %3762  ;;  %v3784_v9 = vpop.permute.xlu0 %3783  ;;  %v10377_v0 = vrot.slane %v9726_v10, %v9556_v2  ;;  %v4520_v55 = vunpack.c.l.bf16 %v7252_v47  ;;  %v4521_v62 = vunpack.c.h.bf16 %v7252_v47  ;;  %v10378_v41 = vrot.slane %v9726_v10, %v9571_v25 }
 0x545   :  { %v4989_v6 = vadd.f32 %v4988_v11, %v4762_v61  ;;  %v5116_v31 = vadd.f32 %v5115_v56, %v4763_v58  ;;  %v4764_v34 = vmul.f32 %v4508_v18, %v3763_v54  ;;  %v4765_v53 = vmul.f32 %v4509_v1, %v3763_v54 }
 0x546   :  { %4168 = vbcast.lane.b32.xlu1 %v10374_v5, 256  ;;  %4189 = vbcast.lane.b32.xlu0 %v10375_v35, 256  ;;  %v4519_v18 = vunpack.c.h.bf16 %v7251_v42  ;;  %v10376_v1 = vrot.slane %v9726_v10, %v9507_v39  ;;  %v4770_v16 = vmul.f32 %v4514_v4, %v3784_v9  ;;  %v4771_v26 = vmul.f32 %v4515_v3, %v3784_v9  ;;  %v7254_v3 = vld [vmem:[#allocation7 + $0x128] sm:$0xff] }
 0x547   :  { %v4990_v46 = vadd.f32 %v4989_v6, %v4764_v34  ;;  %v5117_v51 = vadd.f32 %v5116_v31, %v4765_v53  ;;  %v4523_v54 = vunpack.c.h.bf16 %v7253_v30  ;;  %v10379_v9 = vrot.slane %v9726_v10, %v9578_v49  ;;  %v6812_v34 = vld [vmem:[#allocation17 + $0xd8] ss:$12 sps:$4 sm:$0xff]   ;;  %v6814_v53 = vld [vmem:[#allocation17 + $0xdc] ss:$12 sps:$4 sm:$0xff]  }
 0x548   :  { %v3777_v50 = vpop.permute.xlu1 %3776  ;;  %v3798_v22 = vpop.permute.xlu0 %3797  ;;  %v4524_v5 = vunpack.c.l.bf16 %v7254_v3  ;;  %v4525_v35 = vunpack.c.h.bf16 %v7254_v3  ;;  %5591 = vmatprep.subr.bf16.mxu0 %v6814_v53  ;;  %v6815_v30 = vld [vmem:[#allocation17 + $0xf0] ss:$12 sps:$4 sm:$0xff]  }
 0x549   :  { %v4991_v45 = vadd.f32 %v4990_v46, %v4766_v63  ;;  %v5118_v19 = vadd.f32 %v5117_v51, %v4767_v37  ;;  %v4768_v29 = vmul.f32 %v4512_v17, %v3777_v50  ;;  %v4769_v52 = vmul.f32 %v4513_v13, %v3777_v50  ;;  %v7255_v50 = vld [vmem:[#allocation7 + $0x130] sm:$0xff]  ;;  %5592 = vmatpush1.bf16.msra.mxu0 %v6812_v34 }
 0x54a   :  { %4182 = vbcast.lane.b32.xlu1 %v10376_v1, 256  ;;  %4203 = vbcast.lane.b32.xlu0 %v10377_v0, 256  ;;  %v4774_v17 = vmul.f32 %v4518_v20, %v3798_v22  ;;  %v4775_v13 = vmul.f32 %v4519_v18, %v3798_v22  ;;  %v4526_v60 = vunpack.c.l.bf16 %v7255_v50  ;;  %v10380_v22 = vrot.slane %v9726_v10, %v9581_v32  ;;  %v7256_v18 = vld [vmem:[#allocation7 + $0x138] sm:$0xff]  ;;  %v7259_v53 = vld [vmem:[#allocation7 + $0x150] sm:$0xff] }
 0x54b   :  { %v4992_v7 = vadd.f32 %v4991_v45, %v4768_v29  ;;  %v5119_v28 = vadd.f32 %v5118_v19, %v4769_v52  ;;  %v4528_v1 = vunpack.c.l.bf16 %v7256_v18  ;;  %v4529_v0 = vunpack.c.h.bf16 %v7256_v18 }
 0x54c   :  { %v3791_v8 = vpop.permute.xlu1 %3790  ;;  %v3812_v12 = vpop.permute.xlu0 %3811  ;;  %v4535_v3 = vunpack.c.h.bf16 %v7259_v53 }
 0x54d   :  { %v4993_v61 = vadd.f32 %v4992_v7, %v4770_v16  ;;  %v5120_v58 = vadd.f32 %v5119_v28, %v4771_v26  ;;  %v4772_v11 = vmul.f32 %v4516_v14, %v3791_v8  ;;  %v4773_v56 = vmul.f32 %v4517_v43, %v3791_v8  ;;  %v7257_v8 = vld [vmem:[#allocation7 + $0x140] sm:$0xff] }
 0x54e   :  { %4196 = vbcast.lane.b32.xlu1 %v10378_v41, 256  ;;  %4217 = vbcast.lane.b32.xlu0 %v10379_v9, 256  ;;  %v4527_v14 = vunpack.c.h.bf16 %v7255_v50  ;;  %v10381_v43 = vrot.slane %v9730_v40, %v9510_v59  ;;  %v4778_v45 = vmul.f32 %v4522_v38, %v3812_v12  ;;  %v4779_v19 = vmul.f32 %v4523_v54, %v3812_v12  ;;  %v6817_v38 = vld [vmem:[#allocation17 + $0xf4] ss:$12 sps:$4 sm:$0xff]   ;;  %v7258_v9 = vld [vmem:[#allocation7 + $0x148] sm:$0xff] }
 0x54f   :  { %v4994_v6 = vadd.f32 %v4993_v61, %v4772_v11  ;;  %v5121_v31 = vadd.f32 %v5120_v58, %v4773_v56  ;;  %v4530_v47 = vunpack.c.l.bf16 %v7257_v8  ;;  %v10383_v12 = vrot.slane %v9730_v40, %v9553_v57  ;;  %5593 = vmatprep.subr.bf16.mxu0 %v6817_v38  ;;  %v7263_v38 = vld [vmem:[#allocation7 + $0x170] sm:$0xff] }
 0x550   :  { %v3805_v27 = vpop.permute.xlu1 %3804  ;;  %v3826_v4 = vpop.permute.xlu0 %3825  ;;  %5594 = vmatpush1.bf16.msra.mxu0 %v6815_v30 }
 0x551   :  { %v4995_v63 = vadd.f32 %v4994_v6, %v4774_v17  ;;  %v5122_v37 = vadd.f32 %v5121_v31, %v4775_v13  ;;  %v4776_v46 = vmul.f32 %v4520_v55, %v3805_v27  ;;  %v4777_v51 = vmul.f32 %v4521_v62, %v3805_v27 }
 0x552   :  { %4210 = vbcast.lane.b32.xlu1 %v10380_v22, 256  ;;  %4231 = vbcast.lane.b32.xlu0 %v10381_v43, 256  ;;  %v4531_v55 = vunpack.c.h.bf16 %v7257_v8  ;;  %v10382_v62 = vrot.slane %v9726_v10, %v9584_v33  ;;  %v4782_v61 = vmul.f32 %v4526_v60, %v3826_v4  ;;  %v4783_v58 = vmul.f32 %v4527_v14, %v3826_v4  ;;  %v7260_v60 = vld [vmem:[#allocation7 + $0x158] sm:$0xff] }
 0x553   :  { %v4996_v29 = vadd.f32 %v4995_v63, %v4776_v46  ;;  %v5123_v52 = vadd.f32 %v5122_v37, %v4777_v51  ;;  %v4532_v17 = vunpack.c.l.bf16 %v7258_v9  ;;  %v4533_v13 = vunpack.c.h.bf16 %v7258_v9  ;;  %v6820_v8 = vld [vmem:[#allocation17 + $0x10c] ss:$12 sps:$4 sm:$0xff]  }
 0x554   :  { %v3819_v42 = vpop.permute.xlu1 %3818  ;;  %v3840_v20 = vpop.permute.xlu0 %3839  ;;  %v4534_v27 = vunpack.c.l.bf16 %v7259_v53  ;;  %v10384_v4 = vrot.slane %v9730_v40, %v9507_v39  ;;  %v4536_v14 = vunpack.c.l.bf16 %v7260_v60  ;;  %v4537_v22 = vunpack.c.h.bf16 %v7260_v60  ;;  %5595 = vmatprep.subr.bf16.mxu0 %v6820_v8 }
 0x555   :  { %v4997_v16 = vadd.f32 %v4996_v29, %v4778_v45  ;;  %v5124_v26 = vadd.f32 %v5123_v52, %v4779_v19  ;;  %v4780_v7 = vmul.f32 %v4524_v5, %v3819_v42  ;;  %v4781_v28 = vmul.f32 %v4525_v35, %v3819_v42  ;;  %v7261_v52 = vld [vmem:[#allocation7 + $0x160] sm:$0xff] }
 0x556   :  { %4224 = vbcast.lane.b32.xlu1 %v10382_v62, 256  ;;  %4245 = vbcast.lane.b32.xlu0 %v10383_v12, 256  ;;  %v10385_v5 = vrot.slane %v9730_v40, %v9556_v2  ;;  %v4786_v35 = vmul.f32 %v4530_v47, %v3840_v20  ;;  %v4787_v63 = vmul.f32 %v4531_v55, %v3840_v20  ;;  %v4538_v42 = vunpack.c.l.bf16 %v7261_v52  ;;  %v7262_v62 = vld [vmem:[#allocation7 + $0x168] sm:$0xff] }
 0x557   :  { %v4998_v11 = vadd.f32 %v4997_v16, %v4780_v7  ;;  %v5125_v56 = vadd.f32 %v5124_v26, %v4781_v28  ;;  %v4539_v18 = vunpack.c.h.bf16 %v7261_v52  ;;  %v10387_v20 = vrot.slane %v9730_v40, %v9578_v49  ;;  %v6818_v28 = vld [vmem:[#allocation17 + $0x108] ss:$12 sps:$4 sm:$0xff]  }
 0x558   :  { %v3833_v54 = vpop.permute.xlu1 %3832  ;;  %v3854_v41 = vpop.permute.xlu0 %3853  ;;  %v4540_v12 = vunpack.c.l.bf16 %v7262_v62  ;;  %v4543_v9 = vunpack.c.h.bf16 %v7263_v38  ;;  %5596 = vmatpush1.bf16.msra.mxu0 %v6818_v28  ;;  %v10392_v8 = vrot.slane %v9734_v15, %v9507_v39 }
 0x559   :  { %v4999_v6 = vadd.f32 %v4998_v11, %v4782_v61  ;;  %v5126_v31 = vadd.f32 %v5125_v56, %v4783_v58  ;;  %v4784_v34 = vmul.f32 %v4528_v1, %v3833_v54  ;;  %v4785_v10 = vmul.f32 %v4529_v0, %v3833_v54 }
 0x55a   :  { %4238 = vbcast.lane.b32.xlu1 %v10384_v4, 256  ;;  %4259 = vbcast.lane.b32.xlu0 %v10385_v5, 256  ;;  %v10386_v1 = vrot.slane %v9730_v40, %v9571_v25  ;;  %v4790_v0 = vmul.f32 %v4534_v27, %v3854_v41  ;;  %v4791_v16 = vmul.f32 %v4535_v3, %v3854_v41  ;;  %v4541_v61 = vunpack.c.h.bf16 %v7262_v62  ;;  %v7264_v27 = vld [vmem:[#allocation7 + $0x178] sm:$0xff] }
 0x55b   :  { %v5000_v37 = vadd.f32 %v4999_v6, %v4784_v34  ;;  %v5127_v46 = vadd.f32 %v5126_v31, %v4785_v10  ;;  %v4542_v54 = vunpack.c.l.bf16 %v7263_v38  ;;  %v10388_v41 = vrot.slane %v9730_v40, %v9581_v32  ;;  %v7268_v38 = vld [vmem:[#allocation7 + $0x198] sm:$0xff] }
 0x55c   :  { %v3847_v51 = vpop.permute.xlu1 %3846  ;;  %v3868_v50 = vpop.permute.xlu0 %3867  ;;  %v4544_v3 = vunpack.c.l.bf16 %v7264_v27  ;;  %v4545_v4 = vunpack.c.h.bf16 %v7264_v27  ;;  %v10395_v27 = vrot.slane %v9734_v15, %v9578_v49  ;;  %v10408_v49 = vrot.slane %v9515_v48, %v9581_v32 }
 0x55d   :  { %v5001_v43 = vadd.f32 %v5000_v37, %v4786_v35  ;;  %v5128_v45 = vadd.f32 %v5127_v46, %v4787_v63  ;;  %v4788_v19 = vmul.f32 %v4532_v17, %v3847_v51  ;;  %v4789_v29 = vmul.f32 %v4533_v13, %v3847_v51  ;;  %v7265_v46 = vld [vmem:[#allocation7 + $0x180] sm:$0xff] }
 0x55e   :  { %4252 = vbcast.lane.b32.xlu1 %v10386_v1, 256  ;;  %4273 = vbcast.lane.b32.xlu0 %v10387_v20, 256  ;;  %v10389_v17 = vrot.slane %v9734_v15, %v9510_v59  ;;  %v4794_v13 = vmul.f32 %v4538_v42, %v3868_v50  ;;  %v4795_v6 = vmul.f32 %v4539_v18, %v3868_v50  ;;  %v4546_v51 = vunpack.c.l.bf16 %v7265_v46  ;;  %v7266_v42 = vld [vmem:[#allocation7 + $0x188] sm:$0xff] }
 0x55f   :  { %v5002_v26 = vadd.f32 %v5001_v43, %v4788_v19  ;;  %v5129_v7 = vadd.f32 %v5128_v45, %v4789_v29  ;;  %v4547_v60 = vunpack.c.h.bf16 %v7265_v46  ;;  %v10391_v50 = vrot.slane %v9734_v15, %v9553_v57  ;;  %v7270_v46 = vld [vmem:[#allocation7 + $0x1a8] sm:$0xff] }
 0x560   :  { %v3861_v47 = vpop.permute.xlu1 %3860  ;;  %v3882_v55 = vpop.permute.xlu0 %3881  ;;  %v4548_v18 = vunpack.c.l.bf16 %v7266_v42  ;;  %v4549_v1 = vunpack.c.h.bf16 %v7266_v42  ;;  %v10396_v42 = vrot.slane %v9734_v15, %v9581_v32 }
 0x561   :  { %v5003_v58 = vadd.f32 %v5002_v26, %v4790_v0  ;;  %v5130_v11 = vadd.f32 %v5129_v7, %v4791_v16  ;;  %v4792_v56 = vmul.f32 %v4536_v14, %v3861_v47  ;;  %v4793_v30 = vmul.f32 %v4537_v22, %v3861_v47  ;;  %v7267_v7 = vld [vmem:[#allocation7 + $0x190] sm:$0xff] }
 0x562   :  { %4266 = vbcast.lane.b32.xlu1 %v10388_v41, 256  ;;  %4287 = vbcast.lane.b32.xlu0 %v10389_v17, 256  ;;  %v10390_v14 = vrot.slane %v9730_v40, %v9584_v33  ;;  %v4798_v22 = vmul.f32 %v4542_v54, %v3882_v55  ;;  %v4799_v43 = vmul.f32 %v4543_v9, %v3882_v55  ;;  %v4550_v40 = vunpack.c.l.bf16 %v7267_v7 }
 0x563   :  { %v5004_v31 = vadd.f32 %v5003_v58, %v4792_v56  ;;  %v5131_v34 = vadd.f32 %v5130_v11, %v4793_v30  ;;  %v4551_v28 = vunpack.c.h.bf16 %v7267_v7  ;;  %v10393_v47 = vrot.slane %v9734_v15, %v9556_v2  ;;  %v6821_v58 = vld [vmem:[#allocation17 + $0x120] ss:$12 sps:$4 sm:$0xff]   ;;  %v6823_v11 = vld [vmem:[#allocation17 + $0x124] ss:$12 sps:$4 sm:$0xff]  }
 0x564   :  { %v3875_v10 = vpop.permute.xlu1 %3874  ;;  %v3896_v53 = vpop.permute.xlu0 %3895  ;;  %v4552_v54 = vunpack.c.l.bf16 %v7268_v38  ;;  %v4553_v9 = vunpack.c.h.bf16 %v7268_v38  ;;  %5597 = vmatprep.subr.bf16.mxu0 %v6823_v11 }
 0x565   :  { %v5005_v5 = vadd.f32 %v5004_v31, %v4794_v13  ;;  %v5132_v35 = vadd.f32 %v5131_v34, %v4795_v6  ;;  %v4796_v63 = vmul.f32 %v4540_v12, %v3875_v10  ;;  %v4797_v37 = vmul.f32 %v4541_v61, %v3875_v10  ;;  %v7269_v31 = vld [vmem:[#allocation7 + $0x1a0] sm:$0xff]  ;;  %5598 = vmatpush1.bf16.msra.mxu0 %v6821_v58 }
 0x566   :  { %4280 = vbcast.lane.b32.xlu1 %v10390_v14, 256  ;;  %4301 = vbcast.lane.b32.xlu0 %v10391_v50, 256  ;;  %v4802_v55 = vmul.f32 %v4546_v51, %v3896_v53  ;;  %v4803_v62 = vmul.f32 %v4547_v60, %v3896_v53  ;;  %v4554_v34 = vunpack.c.l.bf16 %v7269_v31  ;;  %v4555_v10 = vunpack.c.h.bf16 %v7269_v31  ;;  %v7273_v58 = vld [vmem:[#allocation7 + $0x1c0] sm:$0xff] }
 0x567   :  { %v5006_v45 = vadd.f32 %v5005_v5, %v4796_v63  ;;  %v5133_v19 = vadd.f32 %v5132_v35, %v4797_v37  ;;  %v10394_v53 = vrot.slane %v9734_v15, %v9571_v25  ;;  %v4556_v51 = vunpack.c.l.bf16 %v7270_v46 }
 0x568   :  { %v3889_v29 = vpop.permute.xlu1 %3888  ;;  %v3910_v52 = vpop.permute.xlu0 %3909  ;;  %v4557_v60 = vunpack.c.h.bf16 %v7270_v46  ;;  %v4562_v11 = vunpack.c.l.bf16 %v7273_v58 }
 0x569   :  { %v5007_v20 = vadd.f32 %v5006_v45, %v4798_v22  ;;  %v5134_v0 = vadd.f32 %v5133_v19, %v4799_v43  ;;  %v4800_v16 = vmul.f32 %v4544_v3, %v3889_v29  ;;  %v4801_v26 = vmul.f32 %v4545_v4, %v3889_v29  ;;  %v7271_v45 = vld [vmem:[#allocation7 + $0x1b0] sm:$0xff] }
 0x56a   :  { %4294 = vbcast.lane.b32.xlu1 %v10392_v8, 256  ;;  %4315 = vbcast.lane.b32.xlu0 %v10393_v47, 256  ;;  %v4806_v3 = vmul.f32 %v4550_v40, %v3910_v52  ;;  %v4807_v4 = vmul.f32 %v4551_v28, %v3910_v52  ;;  %v4558_v19 = vunpack.c.l.bf16 %v7271_v45  ;;  %v4559_v29 = vunpack.c.h.bf16 %v7271_v45  ;;  %v7272_v28 = vld [vmem:[#allocation7 + $0x1b8] sm:$0xff] }
 0x56b   :  { %v5008_v12 = vadd.f32 %v5007_v20, %v4800_v16  ;;  %v5135_v61 = vadd.f32 %v5134_v0, %v4801_v26  ;;  %v10397_v52 = vrot.slane %v9738_v44, %v9510_v59  ;;  %v6824_v16 = vld [vmem:[#allocation17 + $0x138] ss:$12 sps:$4 sm:$0xff]   ;;  %v6826_v26 = vld [vmem:[#allocation17 + $0x13c] ss:$12 sps:$4 sm:$0xff]   ;;  %v4560_v8 = vunpack.c.l.bf16 %v7272_v28 }
 0x56c   :  { %v3903_v56 = vpop.permute.xlu1 %3902  ;;  %v3924_v30 = vpop.permute.xlu0 %3923  ;;  %v4561_v47 = vunpack.c.h.bf16 %v7272_v28  ;;  %5599 = vmatprep.subr.bf16.mxu0 %v6826_v26 }
 0x56d   :  { %v5009_v41 = vadd.f32 %v5008_v12, %v4802_v55  ;;  %v5136_v17 = vadd.f32 %v5135_v61, %v4803_v62  ;;  %v4804_v13 = vmul.f32 %v4548_v18, %v3903_v56  ;;  %v4805_v6 = vmul.f32 %v4549_v1, %v3903_v56  ;;  %5600 = vmatpush1.bf16.msra.mxu0 %v6824_v16 }
 0x56e   :  { %4308 = vbcast.lane.b32.xlu1 %v10394_v53, 256  ;;  %4329 = vbcast.lane.b32.xlu0 %v10395_v27, 256  ;;  %v4810_v18 = vmul.f32 %v4554_v34, %v3924_v30  ;;  %v4811_v1 = vmul.f32 %v4555_v10, %v3924_v30  ;;  %v4563_v56 = vunpack.c.h.bf16 %v7273_v58  ;;  %v10398_v30 = vrot.slane %v9734_v15, %v9584_v33  ;;  %v7275_v15 = vld [vmem:[#allocation7 + $0x1d0] sm:$0xff] }
 0x56f   :  { %v5010_v5 = vadd.f32 %v5009_v41, %v4804_v13  ;;  %v5137_v35 = vadd.f32 %v5136_v17, %v4805_v6  ;;  %v7274_v6 = vld [vmem:[#allocation7 + $0x1c8] sm:$0xff]  ;;  %v10401_v16 = vrot.slane %v9738_v44, %v9571_v25  ;;  %v7287_v25 = vld [vmem:[#allocation7 + $0x230] sm:$0xff] }
 0x570   :  { %v3917_v63 = vpop.permute.xlu1 %3916  ;;  %v3938_v37 = vpop.permute.xlu0 %3937  ;;  %v4564_v31 = vunpack.c.l.bf16 %v7274_v6  ;;  %v4565_v34 = vunpack.c.h.bf16 %v7274_v6 }
 0x571   :  { %v5011_v14 = vadd.f32 %v5010_v5, %v4806_v3  ;;  %v5138_v50 = vadd.f32 %v5137_v35, %v4807_v4  ;;  %v4808_v22 = vmul.f32 %v4552_v54, %v3917_v63  ;;  %v4809_v43 = vmul.f32 %v4553_v9, %v3917_v63 }
 0x572   :  { %4322 = vbcast.lane.b32.xlu1 %v10396_v42, 256  ;;  %4343 = vbcast.lane.b32.xlu0 %v10397_v52, 256  ;;  %v4814_v38 = vmul.f32 %v4558_v19, %v3938_v37  ;;  %v4815_v54 = vmul.f32 %v4559_v29, %v3938_v37  ;;  %v4566_v4 = vunpack.c.l.bf16 %v7275_v15  ;;  %v4567_v5 = vunpack.c.h.bf16 %v7275_v15 }
 0x573   :  { %v5012_v20 = vadd.f32 %v5011_v14, %v4808_v22  ;;  %v5139_v0 = vadd.f32 %v5138_v50, %v4809_v43  ;;  %v10400_v35 = vrot.slane %v9738_v44, %v9556_v2  ;;  %v6829_v14 = vld [vmem:[#allocation17 + $0x154] ss:$12 sps:$4 sm:$0xff]  }
 0x574   :  { %v3931_v7 = vpop.permute.xlu1 %3930  ;;  %v3952_v40 = vpop.permute.xlu0 %3951  ;;  %v7276_v43 = vld [vmem:[#allocation7 + $0x1d8] sm:$0xff]  ;;  %5601 = vmatprep.subr.bf16.mxu0 %v6829_v14 }
 0x575   :  { %v5013_v55 = vadd.f32 %v5012_v20, %v4810_v18  ;;  %v5140_v62 = vadd.f32 %v5139_v0, %v4811_v1  ;;  %v4812_v12 = vmul.f32 %v4556_v51, %v3931_v7  ;;  %v4813_v61 = vmul.f32 %v4557_v60, %v3931_v7  ;;  %v6827_v60 = vld [vmem:[#allocation17 + $0x150] ss:$12 sps:$4 sm:$0xff]  }
 0x576   :  { %4336 = vbcast.lane.b32.xlu1 %v10398_v30, 256  ;;  %4357 = vbcast.lane.b32.xlu0 %v4355_v21, 256  ;;  %v10399_v21 = vrot.slane %v9738_v44, %v9507_v39  ;;  %v4818_v63 = vmul.f32 %v4562_v11, %v3952_v40  ;;  %v4819_v37 = vmul.f32 %v4563_v56, %v3952_v40  ;;  %v4568_v45 = vunpack.c.l.bf16 %v7276_v43  ;;  %v7277_v1 = vld [vmem:[#allocation7 + $0x1e0] sm:$0xff]  ;;  %v7279_v30 = vld [vmem:[#allocation7 + $0x1f0] sm:$0xff] }
 0x577   :  { %v5014_v9 = vadd.f32 %v5013_v55, %v4812_v12  ;;  %v5141_v41 = vadd.f32 %v5140_v62, %v4813_v61  ;;  %v4569_v19 = vunpack.c.h.bf16 %v7276_v43  ;;  %v4570_v20 = vunpack.c.l.bf16 %v7277_v1  ;;  %5602 = vmatpush1.bf16.msra.mxu0 %v6827_v60  ;;  %v7278_v55 = vld [vmem:[#allocation7 + $0x1e8] sm:$0xff] }
 0x578   :  { %v3945_v17 = vpop.permute.xlu1 %3944  ;;  %v3966_v13 = vpop.permute.xlu0 %3965  ;;  %v4571_v0 = vunpack.c.h.bf16 %v7277_v1  ;;  %v4572_v62 = vunpack.c.l.bf16 %v7278_v55  ;;  %v4573_v12 = vunpack.c.h.bf16 %v7278_v55 }
 0x579   :  { %v5015_v10 = vadd.f32 %v5014_v9, %v4814_v38  ;;  %v5142_v53 = vadd.f32 %v5141_v41, %v4815_v54  ;;  %v4816_v27 = vmul.f32 %v4560_v8, %v3945_v17  ;;  %v4817_v3 = vmul.f32 %v4561_v47, %v3945_v17 }
 0x57a   :  { %4350 = vbcast.lane.b32.xlu1 %v10399_v21, 256  ;;  %4371 = vbcast.lane.b32.xlu0 %v10400_v35, 256  ;;  %v4822_v26 = vmul.f32 %v4566_v4, %v3966_v13  ;;  %v4823_v7 = vmul.f32 %v4567_v5, %v3966_v13  ;;  %v4574_v38 = vunpack.c.l.bf16 %v7279_v30  ;;  %v4575_v54 = vunpack.c.h.bf16 %v7279_v30  ;;  %v7281_v21 = vld [vmem:[#allocation7 + $0x200] sm:$0xff] }
 0x57b   :  { %v5016_v46 = vadd.f32 %v5015_v10, %v4816_v27  ;;  %v5143_v51 = vadd.f32 %v5142_v53, %v4817_v3  ;;  %v10403_v9 = vrot.slane %v9515_v48, %v9510_v59  ;;  %v7280_v10 = vld [vmem:[#allocation7 + $0x1f8] sm:$0xff]  ;;  %v4578_v35 = vunpack.c.l.bf16 %v7281_v21 }
 0x57c   :  { %v3959_v50 = vpop.permute.xlu1 %3958  ;;  %v3980_v22 = vpop.permute.xlu0 %3979  ;;  %v4576_v53 = vunpack.c.l.bf16 %v7280_v10  ;;  %v4577_v27 = vunpack.c.h.bf16 %v7280_v10  ;;  %v10404_v59 = vrot.slane %v9738_v44, %v9584_v33 }
 0x57d   :  { %v5017_v29 = vadd.f32 %v5016_v46, %v4818_v63  ;;  %v5144_v42 = vadd.f32 %v5143_v51, %v4819_v37  ;;  %v4820_v52 = vmul.f32 %v4564_v31, %v3959_v50  ;;  %v4821_v18 = vmul.f32 %v4565_v34, %v3959_v50  ;;  %v6830_v50 = vld [vmem:[#allocation17 + $0x168] ss:$12 sps:$4 sm:$0xff]  }
 0x57e   :  { %4364 = vbcast.lane.b32.xlu1 %v10401_v16, 256  ;;  %4385 = vbcast.lane.b32.xlu0 %v4383_v36, 256  ;;  %v10402_v36 = vrot.slane %v9738_v44, %v9581_v32  ;;  %v4826_v41 = vmul.f32 %v4570_v20, %v3980_v22  ;;  %v4827_v17 = vmul.f32 %v4571_v0, %v3980_v22  ;;  %v4579_v63 = vunpack.c.h.bf16 %v7281_v21  ;;  %v6832_v22 = vld [vmem:[#allocation17 + $0x16c] ss:$12 sps:$4 sm:$0xff]  }
 0x57f   :  { %v5018_v40 = vadd.f32 %v5017_v29, %v4820_v52  ;;  %v5145_v28 = vadd.f32 %v5144_v42, %v4821_v18  ;;  %v10405_v37 = vrot.slane %v9515_v48, %v9553_v57  ;;  %5603 = vmatprep.subr.bf16.mxu0 %v6832_v22  ;;  %v7283_v20 = vld [vmem:[#allocation7 + $0x210] sm:$0xff]  ;;  %v10406_v16 = vrot.slane %v9515_v48, %v9507_v39  ;;  %v7285_v39 = vld [vmem:[#allocation7 + $0x220] sm:$0xff] }
 0x580   :  { %v3973_v8 = vpop.permute.xlu1 %3972  ;;  %v3994_v47 = vpop.permute.xlu0 %3993  ;;  %v4582_v0 = vunpack.c.l.bf16 %v7283_v20  ;;  %v4583_v57 = vunpack.c.h.bf16 %v7283_v20  ;;  %5604 = vmatpush1.bf16.msra.mxu0 %v6830_v50  ;;  %v10409_v32 = vrot.slane %v9515_v48, %v9584_v33  ;;  %v7290_v20 = vld [vmem:[#allocation7 + $0x248] sm:$0xff] }
 0x581   :  { %v5019_v61 = vadd.f32 %v5018_v40, %v4822_v26  ;;  %v5146_v58 = vadd.f32 %v5145_v28, %v4823_v7  ;;  %v4824_v11 = vmul.f32 %v4568_v45, %v3973_v8  ;;  %v4825_v56 = vmul.f32 %v4569_v19, %v3973_v8  ;;  %v7282_v19 = vld [vmem:[#allocation7 + $0x208] sm:$0xff] }
 0x582   :  { %4378 = vbcast.lane.b32.xlu1 %v10402_v36, 256  ;;  %4399 = vbcast.lane.b32.xlu0 %v10403_v9, 256  ;;  %v4830_v46 = vmul.f32 %v4574_v38, %v3994_v47  ;;  %v4831_v51 = vmul.f32 %v4575_v54, %v3994_v47  ;;  %v4580_v29 = vunpack.c.l.bf16 %v7282_v19  ;;  %v4581_v42 = vunpack.c.h.bf16 %v7282_v19 }
 0x583   :  { %v5020_v13 = vadd.f32 %v5019_v61, %v4824_v11  ;;  %v5147_v6 = vadd.f32 %v5146_v58, %v4825_v56  ;;  %v10407_v26 = vrot.slane %v9515_v48, %v9556_v2  ;;  %v4586_v38 = vunpack.c.l.bf16 %v7285_v39 }
 0x584   :  { %v3987_v31 = vpop.permute.xlu1 %3986  ;;  %v4008_v34 = vpop.permute.xlu0 %4007  ;;  %v4587_v54 = vunpack.c.h.bf16 %v7285_v39 }
 0x585   :  { %v5021_v3 = vadd.f32 %v5020_v13, %v4826_v41  ;;  %v5148_v15 = vadd.f32 %v5147_v6, %v4827_v17  ;;  %v4828_v4 = vmul.f32 %v4572_v62, %v3987_v31  ;;  %v4829_v5 = vmul.f32 %v4573_v12, %v3987_v31  ;;  %v7284_v62 = vld [vmem:[#allocation7 + $0x218] sm:$0xff]  ;;  %v7286_v31 = vld [vmem:[#allocation7 + $0x228] sm:$0xff] }
 0x586   :  { %4392 = vbcast.lane.b32.xlu1 %v10404_v59, 256  ;;  %4413 = vbcast.lane.b32.xlu0 %v10405_v37, 256  ;;  %v4834_v7 = vmul.f32 %v4578_v35, %v4008_v34  ;;  %v4835_v40 = vmul.f32 %v4579_v63, %v4008_v34  ;;  %v4584_v12 = vunpack.c.l.bf16 %v7284_v62  ;;  %v4585_v61 = vunpack.c.h.bf16 %v7284_v62  ;;  %v6833_v17 = vld [vmem:[#allocation17 + $0xc8] ss:$12 sps:$4 sm:$0xff]  }
 0x587   :  { %v5022_v60 = vadd.f32 %v5021_v3, %v4828_v4  ;;  %v5149_v14 = vadd.f32 %v5148_v15, %v4829_v5  ;;  %v4588_v34 = vunpack.c.l.bf16 %v7286_v31  ;;  %v4589_v10 = vunpack.c.h.bf16 %v7286_v31  ;;  %6474 = vmatprep.subr.bf16.mxu0 %v6833_v17  ;;  %v7288_v37 = vld [vmem:[#allocation7 + $0x238] sm:$0xff] }
 0x588   :  { %v4001_v43 = vpop.permute.xlu1 %4000  ;;  %v4022_v45 = vpop.permute.xlu0 %4021  ;;  %v4591_v4 = vunpack.c.h.bf16 %v7287_v25 }
 0x589   :  { %v5023_v52 = vadd.f32 %v5022_v60, %v4830_v46  ;;  %v5150_v18 = vadd.f32 %v5149_v14, %v4831_v51  ;;  %v4832_v1 = vmul.f32 %v4576_v53, %v4001_v43  ;;  %v4833_v44 = vmul.f32 %v4577_v27, %v4001_v43  ;;  %v7289_v43 = vld [vmem:[#allocation7 + $0x240] sm:$0xff] }
 0x58a   :  { %4406 = vbcast.lane.b32.xlu1 %v10406_v16, 256  ;;  %4427 = vbcast.lane.b32.xlu0 %v10407_v26, 256  ;;  %v4838_v2 = vmul.f32 %v4582_v0, %v4022_v45  ;;  %v4839_v36 = vmul.f32 %v4583_v57, %v4022_v45  ;;  %v4592_v46 = vunpack.c.l.bf16 %v7288_v37  ;;  %v4593_v51 = vunpack.c.h.bf16 %v7288_v37 }
 0x58b   :  { %v5024_v28 = vadd.f32 %v5023_v52, %v4832_v1  ;;  %v5151_v8 = vadd.f32 %v5150_v18, %v4833_v44  ;;  %v4594_v45 = vunpack.c.l.bf16 %v7289_v43  ;;  %v4595_v19 = vunpack.c.h.bf16 %v7289_v43 }
 0x58c   :  { %v4015_v47 = vpop.permute.xlu1 %4014  ;;  %v4036_v55 = vpop.permute.xlu0 %4035  ;;  %v4596_v0 = vunpack.c.l.bf16 %v7290_v20  ;;  %v4597_v57 = vunpack.c.h.bf16 %v7290_v20  ;;  %v7298_v20 = vld [vmem:[#allocation7 + $0x288] sm:$0xff] }
 0x58d   :  { %v5025_v58 = vadd.f32 %v5024_v28, %v4834_v7  ;;  %v5152_v11 = vadd.f32 %v5151_v8, %v4835_v40  ;;  %v4836_v56 = vmul.f32 %v4580_v29, %v4015_v47  ;;  %v4837_v30 = vmul.f32 %v4581_v42, %v4015_v47  ;;  %v7291_v28 = vld [vmem:[#allocation7 + $0x250] sm:$0xff] }
 0x58e   :  { %4420 = vbcast.lane.b32.xlu1 %v4418_v23, 256  ;;  %4441 = vbcast.lane.b32.xlu0 %v4439_v24, 256  ;;  %v4590_v23 = vunpack.c.l.bf16 %v7287_v25  ;;  %v4842_v24 = vmul.f32 %v4586_v38, %v4036_v55  ;;  %v4843_v5 = vmul.f32 %v4587_v54, %v4036_v55  ;;  %v4598_v8 = vunpack.c.l.bf16 %v7291_v28 }
 0x58f   :  { %v5026_v9 = vadd.f32 %v5025_v58, %v4836_v56  ;;  %v5153_v41 = vadd.f32 %v5152_v11, %v4837_v30  ;;  %v4599_v47 = vunpack.c.h.bf16 %v7291_v28  ;;  %v7292_v58 = vld [vmem:[#allocation7 + $0x258] sm:$0xff]  ;;  %v7299_v28 = vld [vmem:[#allocation7 + $0x290] sm:$0xff] }
 0x590   :  { %v4029_v13 = vpop.permute.xlu1 %4028  ;;  %v4050_v6 = vpop.permute.xlu0 %4049  ;;  %v4600_v11 = vunpack.c.l.bf16 %v7292_v58  ;;  %v4601_v56 = vunpack.c.h.bf16 %v7292_v58  ;;  %v7300_v58 = vld [vmem:[#allocation7 + $0x298] sm:$0xff] }
 0x591   :  { %v5027_v53 = vadd.f32 %v5026_v9, %v4838_v2  ;;  %v5154_v27 = vadd.f32 %v5153_v41, %v4839_v36  ;;  %v4840_v3 = vmul.f32 %v4584_v12, %v4029_v13  ;;  %v4841_v15 = vmul.f32 %v4585_v61, %v4029_v13  ;;  %v7293_v2 = vld [vmem:[#allocation7 + $0x260] sm:$0xff] }
 0x592   :  { %4434 = vbcast.lane.b32.xlu1 %v10408_v49, 256  ;;  %v4846_v29 = vmul.f32 %v4590_v23, %v4050_v6  ;;  %v4847_v42 = vmul.f32 %v4591_v4, %v4050_v6  ;;  %v4602_v36 = vunpack.c.l.bf16 %v7293_v2  ;;  %v4603_v9 = vunpack.c.h.bf16 %v7293_v2  ;;  %v7295_v4 = vld [vmem:[#allocation7 + $0x270] sm:$0xff]  ;;  %v7301_v2 = vld [vmem:[#allocation7 + $0x2a0] sm:$0xff] }
 0x593   :  { %v5028_v21 = vadd.f32 %v5027_v53, %v4840_v3  ;;  %v5155_v35 = vadd.f32 %v5154_v27, %v4841_v15  ;;  %v4606_v49 = vunpack.c.l.bf16 %v7295_v4 }
 0x594   :  { %v4043_v63 = vpop.permute.xlu1 %4042  ;;  %v4064_v59 = vpop.permute.xlu0 %4063 }
 0x595   :  { %v5029_v60 = vadd.f32 %v5028_v21, %v4842_v24  ;;  %v5156_v14 = vadd.f32 %v5155_v35, %v4843_v5  ;;  %v4844_v50 = vmul.f32 %v4588_v34, %v4043_v63  ;;  %v4845_v22 = vmul.f32 %v4589_v10, %v4043_v63  ;;  %v7294_v10 = vld [vmem:[#allocation7 + $0x268] sm:$0xff] }
 0x596   :  { %4448 = vbcast.lane.b32.xlu1 %v10409_v32, 256  ;;  %v4850_v55 = vmul.f32 %v4594_v45, %v4064_v59  ;;  %v4851_v62 = vmul.f32 %v4595_v19, %v4064_v59  ;;  %v4604_v53 = vunpack.c.l.bf16 %v7294_v10  ;;  %v4605_v27 = vunpack.c.h.bf16 %v7294_v10  ;;  %v7297_v45 = vld [vmem:[#allocation7 + $0x280] sm:$0xff]  ;;  %v7302_v10 = vld [vmem:[#allocation7 + $0x2a8] sm:$0xff] }
 0x597   :  { %v5030_v52 = vadd.f32 %v5029_v60, %v4844_v50  ;;  %v5157_v18 = vadd.f32 %v5156_v14, %v4845_v22  ;;  %v4607_v24 = vunpack.c.h.bf16 %v7295_v4  ;;  %v4610_v19 = vunpack.c.l.bf16 %v7297_v45  ;;  %v7303_v4 = vld [vmem:[#allocation7 + $0x2b0] sm:$0xff] }
 0x598   :  { %v4057_v1 = vpop.permute.xlu1 %4056  ;;  %v4078_v44 = vpop.permute.xlu0 %4077  ;;  %v4611_v32 = vunpack.c.h.bf16 %v7297_v45  ;;  %v7305_v45 = vld [vmem:[#allocation7 + $0x2c0] sm:$0xff] }
 0x599   :  { %v4848_v16 = vmul.f32 %v4592_v46, %v4057_v1  ;;  %v4849_v26 = vmul.f32 %v4593_v51, %v4057_v1  ;;  %v5031_v7 = vadd.f32 %v5030_v52, %v4846_v29  ;;  %v5158_v40 = vadd.f32 %v5157_v18, %v4847_v42  ;;  %v7296_v46 = vld [vmem:[#allocation7 + $0x278] sm:$0xff] }
 0x59a   :  { %v4854_v41 = vmul.f32 %v4598_v8, %v4078_v44  ;;  %v4855_v17 = vmul.f32 %v4599_v47, %v4078_v44  ;;  %v4608_v51 = vunpack.c.l.bf16 %v7296_v46  ;;  %v4609_v60 = vunpack.c.h.bf16 %v7296_v46  ;;  %v7304_v46 = vld [vmem:[#allocation7 + $0x2b8] sm:$0xff] }
 0x59b   :  { %v5032_v48 = vadd.f32 %v5031_v7, %v4848_v16  ;;  %v5159_v33 = vadd.f32 %v5158_v40, %v4849_v26  ;;  %v4614_v8 = vunpack.c.l.bf16 %v7299_v28  ;;  %v4615_v47 = vunpack.c.h.bf16 %v7299_v28  ;;  %v7307_v28 = vld [vmem:[#allocation7 + $0x2d0] sm:$0xff] }
 0x59c   :  { %v4071_v12 = vpop.permute.xlu1 %4070  ;;  %v4092_v61 = vpop.permute.xlu0 %4091 }
 0x59d   :  { %v4852_v30 = vmul.f32 %v4596_v0, %v4071_v12  ;;  %v4853_v39 = vmul.f32 %v4597_v57, %v4071_v12  ;;  %v5033_v38 = vadd.f32 %v5032_v48, %v4850_v55  ;;  %v5160_v54 = vadd.f32 %v5159_v33, %v4851_v62 }
 0x59e   :  { %v4858_v5 = vmul.f32 %v4602_v36, %v4092_v61  ;;  %v4859_v21 = vmul.f32 %v4603_v9, %v4092_v61  ;;  %v4612_v0 = vunpack.c.l.bf16 %v7298_v20  ;;  %v4613_v57 = vunpack.c.h.bf16 %v7298_v20  ;;  %v7306_v20 = vld [vmem:[#allocation7 + $0x2c8] sm:$0xff] }
 0x59f   :  { %v5034_v13 = vadd.f32 %v5033_v38, %v4852_v30  ;;  %v5161_v6 = vadd.f32 %v5160_v54, %v4853_v39  ;;  %v4618_v36 = vunpack.c.l.bf16 %v7301_v2  ;;  %v4619_v9 = vunpack.c.h.bf16 %v7301_v2  ;;  %v7309_v2 = vld [vmem:[#allocation7 + $0x2e0] sm:$0xff] }
 0x5a0   :  { %v4085_v31 = vpop.permute.xlu1 %4084  ;;  %v4106_v34 = vpop.permute.xlu0 %4105 }
 0x5a1   :  { %v4856_v3 = vmul.f32 %v4600_v11, %v4085_v31  ;;  %v4857_v15 = vmul.f32 %v4601_v56, %v4085_v31  ;;  %v5035_v25 = vadd.f32 %v5034_v13, %v4854_v41  ;;  %v5162_v23 = vadd.f32 %v5161_v6, %v4855_v17 }
 0x5a2   :  { %v4862_v29 = vmul.f32 %v4606_v49, %v4106_v34  ;;  %v4863_v42 = vmul.f32 %v4607_v24, %v4106_v34  ;;  %v4616_v11 = vunpack.c.l.bf16 %v7300_v58  ;;  %v4617_v56 = vunpack.c.h.bf16 %v7300_v58  ;;  %v7308_v58 = vld [vmem:[#allocation7 + $0x2d8] sm:$0xff] }
 0x5a3   :  { %v5036_v35 = vadd.f32 %v5035_v25, %v4856_v3  ;;  %v5163_v63 = vadd.f32 %v5162_v23, %v4857_v15  ;;  %v4622_v49 = vunpack.c.l.bf16 %v7303_v4  ;;  %v4623_v24 = vunpack.c.h.bf16 %v7303_v4  ;;  %v7311_v4 = vld [vmem:[#allocation7 + $0x2f0] sm:$0xff] }
 0x5a4   :  { %v4099_v59 = vpop.permute.xlu1 %4098  ;;  %v4120_v37 = vpop.permute.xlu0 %4119 }
 0x5a5   :  { %v4860_v14 = vmul.f32 %v4604_v53, %v4099_v59  ;;  %v4861_v50 = vmul.f32 %v4605_v27, %v4099_v59  ;;  %v5037_v22 = vadd.f32 %v5036_v35, %v4858_v5  ;;  %v5164_v43 = vadd.f32 %v5163_v63, %v4859_v21 }
 0x5a6   :  { %v4866_v55 = vmul.f32 %v4610_v19, %v4120_v37  ;;  %v4867_v62 = vmul.f32 %v4611_v32, %v4120_v37  ;;  %v4620_v53 = vunpack.c.l.bf16 %v7302_v10  ;;  %v4621_v27 = vunpack.c.h.bf16 %v7302_v10  ;;  %v7310_v10 = vld [vmem:[#allocation7 + $0x2e8] sm:$0xff] }
 0x5a7   :  { %v5038_v52 = vadd.f32 %v5037_v22, %v4860_v14  ;;  %v5165_v18 = vadd.f32 %v5164_v43, %v4861_v50  ;;  %v4626_v19 = vunpack.c.l.bf16 %v7305_v45  ;;  %v4627_v32 = vunpack.c.h.bf16 %v7305_v45  ;;  %v7313_v45 = vld [vmem:[#allocation7 + $0x300] sm:$0xff] }
 0x5a8   :  { %v4113_v1 = vpop.permute.xlu1 %4112  ;;  %v4134_v44 = vpop.permute.xlu0 %4133 }
 0x5a9   :  { %v4864_v16 = vmul.f32 %v4608_v51, %v4113_v1  ;;  %v4865_v26 = vmul.f32 %v4609_v60, %v4113_v1  ;;  %v5039_v7 = vadd.f32 %v5038_v52, %v4862_v29  ;;  %v5166_v40 = vadd.f32 %v5165_v18, %v4863_v42 }
 0x5aa   :  { %v4870_v41 = vmul.f32 %v4614_v8, %v4134_v44  ;;  %v4871_v17 = vmul.f32 %v4615_v47, %v4134_v44  ;;  %v4624_v51 = vunpack.c.l.bf16 %v7304_v46  ;;  %v4625_v60 = vunpack.c.h.bf16 %v7304_v46  ;;  %v7312_v46 = vld [vmem:[#allocation7 + $0x2f8] sm:$0xff] }
 0x5ab   :  { %v5040_v48 = vadd.f32 %v5039_v7, %v4864_v16  ;;  %v5167_v33 = vadd.f32 %v5166_v40, %v4865_v26  ;;  %v4630_v8 = vunpack.c.l.bf16 %v7307_v28  ;;  %v4631_v47 = vunpack.c.h.bf16 %v7307_v28  ;;  %v7315_v28 = vld [vmem:[#allocation7 + $0x310] sm:$0xff] }
 0x5ac   :  { %v4127_v12 = vpop.permute.xlu1 %4126  ;;  %v4148_v61 = vpop.permute.xlu0 %4147 }
 0x5ad   :  { %v4868_v30 = vmul.f32 %v4612_v0, %v4127_v12  ;;  %v4869_v39 = vmul.f32 %v4613_v57, %v4127_v12  ;;  %v5041_v38 = vadd.f32 %v5040_v48, %v4866_v55  ;;  %v5168_v54 = vadd.f32 %v5167_v33, %v4867_v62 }
 0x5ae   :  { %v4874_v5 = vmul.f32 %v4618_v36, %v4148_v61  ;;  %v4875_v21 = vmul.f32 %v4619_v9, %v4148_v61  ;;  %v4628_v0 = vunpack.c.l.bf16 %v7306_v20  ;;  %v4629_v57 = vunpack.c.h.bf16 %v7306_v20  ;;  %v7314_v20 = vld [vmem:[#allocation7 + $0x308] sm:$0xff] }
 0x5af   :  { %v5042_v13 = vadd.f32 %v5041_v38, %v4868_v30  ;;  %v5169_v6 = vadd.f32 %v5168_v54, %v4869_v39  ;;  %v4634_v36 = vunpack.c.l.bf16 %v7309_v2  ;;  %v4635_v9 = vunpack.c.h.bf16 %v7309_v2  ;;  %v7317_v2 = vld [vmem:[#allocation7 + $0x320] sm:$0xff] }
 0x5b0   :  { %v4141_v31 = vpop.permute.xlu1 %4140  ;;  %v4162_v34 = vpop.permute.xlu0 %4161 }
 0x5b1   :  { %v4872_v3 = vmul.f32 %v4616_v11, %v4141_v31  ;;  %v4873_v15 = vmul.f32 %v4617_v56, %v4141_v31  ;;  %v5043_v25 = vadd.f32 %v5042_v13, %v4870_v41  ;;  %v5170_v23 = vadd.f32 %v5169_v6, %v4871_v17 }
 0x5b2   :  { %v4878_v29 = vmul.f32 %v4622_v49, %v4162_v34  ;;  %v4879_v42 = vmul.f32 %v4623_v24, %v4162_v34  ;;  %v4632_v11 = vunpack.c.l.bf16 %v7308_v58  ;;  %v4633_v56 = vunpack.c.h.bf16 %v7308_v58  ;;  %v7316_v58 = vld [vmem:[#allocation7 + $0x318] sm:$0xff] }
 0x5b3   :  { %v5044_v35 = vadd.f32 %v5043_v25, %v4872_v3  ;;  %v5171_v63 = vadd.f32 %v5170_v23, %v4873_v15  ;;  %v4638_v49 = vunpack.c.l.bf16 %v7311_v4  ;;  %v4639_v24 = vunpack.c.h.bf16 %v7311_v4  ;;  %v7319_v4 = vld [vmem:[#allocation7 + $0x330] sm:$0xff] }
 0x5b4   :  { %v4155_v59 = vpop.permute.xlu1 %4154  ;;  %v4176_v37 = vpop.permute.xlu0 %4175 }
 0x5b5   :  { %v4876_v14 = vmul.f32 %v4620_v53, %v4155_v59  ;;  %v4877_v50 = vmul.f32 %v4621_v27, %v4155_v59  ;;  %v5045_v22 = vadd.f32 %v5044_v35, %v4874_v5  ;;  %v5172_v43 = vadd.f32 %v5171_v63, %v4875_v21 }
 0x5b6   :  { %v4882_v55 = vmul.f32 %v4626_v19, %v4176_v37  ;;  %v4883_v62 = vmul.f32 %v4627_v32, %v4176_v37  ;;  %v4636_v53 = vunpack.c.l.bf16 %v7310_v10  ;;  %v4637_v27 = vunpack.c.h.bf16 %v7310_v10  ;;  %v7318_v10 = vld [vmem:[#allocation7 + $0x328] sm:$0xff] }
 0x5b7   :  { %v5046_v52 = vadd.f32 %v5045_v22, %v4876_v14  ;;  %v5173_v18 = vadd.f32 %v5172_v43, %v4877_v50  ;;  %v4642_v19 = vunpack.c.l.bf16 %v7313_v45  ;;  %v4643_v32 = vunpack.c.h.bf16 %v7313_v45  ;;  %v7321_v45 = vld [vmem:[#allocation7 + $0x340] sm:$0xff] }
 0x5b8   :  { %v4169_v1 = vpop.permute.xlu1 %4168  ;;  %v4190_v44 = vpop.permute.xlu0 %4189 }
 0x5b9   :  { %v4880_v16 = vmul.f32 %v4624_v51, %v4169_v1  ;;  %v4881_v26 = vmul.f32 %v4625_v60, %v4169_v1  ;;  %v5047_v7 = vadd.f32 %v5046_v52, %v4878_v29  ;;  %v5174_v40 = vadd.f32 %v5173_v18, %v4879_v42 }
 0x5ba   :  { %v4886_v41 = vmul.f32 %v4630_v8, %v4190_v44  ;;  %v4887_v17 = vmul.f32 %v4631_v47, %v4190_v44  ;;  %v4640_v51 = vunpack.c.l.bf16 %v7312_v46  ;;  %v4641_v60 = vunpack.c.h.bf16 %v7312_v46  ;;  %v7320_v46 = vld [vmem:[#allocation7 + $0x338] sm:$0xff] }
 0x5bb   :  { %v5048_v48 = vadd.f32 %v5047_v7, %v4880_v16  ;;  %v5175_v33 = vadd.f32 %v5174_v40, %v4881_v26  ;;  %v4646_v8 = vunpack.c.l.bf16 %v7315_v28  ;;  %v4647_v47 = vunpack.c.h.bf16 %v7315_v28  ;;  %v7323_v28 = vld [vmem:[#allocation7 + $0x350] sm:$0xff] }
 0x5bc   :  { %v4183_v12 = vpop.permute.xlu1 %4182  ;;  %v4204_v61 = vpop.permute.xlu0 %4203 }
 0x5bd   :  { %v4884_v30 = vmul.f32 %v4628_v0, %v4183_v12  ;;  %v4885_v39 = vmul.f32 %v4629_v57, %v4183_v12  ;;  %v5049_v38 = vadd.f32 %v5048_v48, %v4882_v55  ;;  %v5176_v54 = vadd.f32 %v5175_v33, %v4883_v62 }
 0x5be   :  { %v4890_v5 = vmul.f32 %v4634_v36, %v4204_v61  ;;  %v4891_v21 = vmul.f32 %v4635_v9, %v4204_v61  ;;  %v4644_v0 = vunpack.c.l.bf16 %v7314_v20  ;;  %v4645_v57 = vunpack.c.h.bf16 %v7314_v20  ;;  %v7322_v20 = vld [vmem:[#allocation7 + $0x348] sm:$0xff] }
 0x5bf   :  { %v5050_v13 = vadd.f32 %v5049_v38, %v4884_v30  ;;  %v5177_v6 = vadd.f32 %v5176_v54, %v4885_v39  ;;  %v4650_v36 = vunpack.c.l.bf16 %v7317_v2  ;;  %v4651_v9 = vunpack.c.h.bf16 %v7317_v2  ;;  %v7325_v2 = vld [vmem:[#allocation7 + $0x360] sm:$0xff] }
 0x5c0   :  { %v4197_v31 = vpop.permute.xlu1 %4196  ;;  %v4218_v34 = vpop.permute.xlu0 %4217 }
 0x5c1   :  { %v4888_v3 = vmul.f32 %v4632_v11, %v4197_v31  ;;  %v4889_v15 = vmul.f32 %v4633_v56, %v4197_v31  ;;  %v5051_v25 = vadd.f32 %v5050_v13, %v4886_v41  ;;  %v5178_v23 = vadd.f32 %v5177_v6, %v4887_v17 }
 0x5c2   :  { %v4894_v29 = vmul.f32 %v4638_v49, %v4218_v34  ;;  %v4895_v42 = vmul.f32 %v4639_v24, %v4218_v34  ;;  %v4648_v11 = vunpack.c.l.bf16 %v7316_v58  ;;  %v4649_v56 = vunpack.c.h.bf16 %v7316_v58  ;;  %v7324_v58 = vld [vmem:[#allocation7 + $0x358] sm:$0xff] }
 0x5c3   :  { %v5052_v35 = vadd.f32 %v5051_v25, %v4888_v3  ;;  %v5179_v63 = vadd.f32 %v5178_v23, %v4889_v15  ;;  %v4654_v49 = vunpack.c.l.bf16 %v7319_v4  ;;  %v4655_v24 = vunpack.c.h.bf16 %v7319_v4  ;;  %v7327_v4 = vld [vmem:[#allocation7 + $0x370] sm:$0xff] }
 0x5c4   :  { %v4211_v59 = vpop.permute.xlu1 %4210  ;;  %v4232_v37 = vpop.permute.xlu0 %4231 }
 0x5c5   :  { %v4892_v14 = vmul.f32 %v4636_v53, %v4211_v59  ;;  %v4893_v50 = vmul.f32 %v4637_v27, %v4211_v59  ;;  %v5053_v22 = vadd.f32 %v5052_v35, %v4890_v5  ;;  %v5180_v43 = vadd.f32 %v5179_v63, %v4891_v21 }
 0x5c6   :  { %v4898_v55 = vmul.f32 %v4642_v19, %v4232_v37  ;;  %v4899_v62 = vmul.f32 %v4643_v32, %v4232_v37  ;;  %v4652_v53 = vunpack.c.l.bf16 %v7318_v10  ;;  %v4653_v27 = vunpack.c.h.bf16 %v7318_v10  ;;  %v7326_v10 = vld [vmem:[#allocation7 + $0x368] sm:$0xff] }
 0x5c7   :  { %v5054_v52 = vadd.f32 %v5053_v22, %v4892_v14  ;;  %v5181_v18 = vadd.f32 %v5180_v43, %v4893_v50  ;;  %v4658_v19 = vunpack.c.l.bf16 %v7321_v45  ;;  %v4659_v32 = vunpack.c.h.bf16 %v7321_v45  ;;  %v7329_v45 = vld [vmem:[#allocation7 + $0x380] sm:$0xff] }
 0x5c8   :  { %v4225_v1 = vpop.permute.xlu1 %4224  ;;  %v4246_v44 = vpop.permute.xlu0 %4245 }
 0x5c9   :  { %v4896_v16 = vmul.f32 %v4640_v51, %v4225_v1  ;;  %v4897_v26 = vmul.f32 %v4641_v60, %v4225_v1  ;;  %v5055_v7 = vadd.f32 %v5054_v52, %v4894_v29  ;;  %v5182_v40 = vadd.f32 %v5181_v18, %v4895_v42 }
 0x5ca   :  { %v4902_v41 = vmul.f32 %v4646_v8, %v4246_v44  ;;  %v4903_v17 = vmul.f32 %v4647_v47, %v4246_v44  ;;  %v4656_v51 = vunpack.c.l.bf16 %v7320_v46  ;;  %v4657_v60 = vunpack.c.h.bf16 %v7320_v46  ;;  %v7328_v46 = vld [vmem:[#allocation7 + $0x378] sm:$0xff] }
 0x5cb   :  { %v5056_v48 = vadd.f32 %v5055_v7, %v4896_v16  ;;  %v5183_v33 = vadd.f32 %v5182_v40, %v4897_v26  ;;  %v4662_v8 = vunpack.c.l.bf16 %v7323_v28  ;;  %v4663_v47 = vunpack.c.h.bf16 %v7323_v28  ;;  %v7331_v28 = vld [vmem:[#allocation7 + $0x390] sm:$0xff] }
 0x5cc   :  { %v4239_v12 = vpop.permute.xlu1 %4238  ;;  %v4260_v61 = vpop.permute.xlu0 %4259 }
 0x5cd   :  { %v4900_v30 = vmul.f32 %v4644_v0, %v4239_v12  ;;  %v4901_v39 = vmul.f32 %v4645_v57, %v4239_v12  ;;  %v5057_v38 = vadd.f32 %v5056_v48, %v4898_v55  ;;  %v5184_v54 = vadd.f32 %v5183_v33, %v4899_v62 }
 0x5ce   :  { %v4906_v5 = vmul.f32 %v4650_v36, %v4260_v61  ;;  %v4907_v21 = vmul.f32 %v4651_v9, %v4260_v61  ;;  %v4660_v0 = vunpack.c.l.bf16 %v7322_v20  ;;  %v4661_v57 = vunpack.c.h.bf16 %v7322_v20  ;;  %v7330_v20 = vld [vmem:[#allocation7 + $0x388] sm:$0xff] }
 0x5cf   :  { %v5058_v13 = vadd.f32 %v5057_v38, %v4900_v30  ;;  %v5185_v6 = vadd.f32 %v5184_v54, %v4901_v39  ;;  %v4666_v36 = vunpack.c.l.bf16 %v7325_v2  ;;  %v4667_v9 = vunpack.c.h.bf16 %v7325_v2  ;;  %v7333_v2 = vld [vmem:[#allocation7 + $0x3a0] sm:$0xff] }
 0x5d0   :  { %v4253_v31 = vpop.permute.xlu1 %4252  ;;  %v4274_v34 = vpop.permute.xlu0 %4273 }
 0x5d1   :  { %v4904_v3 = vmul.f32 %v4648_v11, %v4253_v31  ;;  %v4905_v15 = vmul.f32 %v4649_v56, %v4253_v31  ;;  %v5059_v25 = vadd.f32 %v5058_v13, %v4902_v41  ;;  %v5186_v23 = vadd.f32 %v5185_v6, %v4903_v17 }
 0x5d2   :  { %v4910_v29 = vmul.f32 %v4654_v49, %v4274_v34  ;;  %v4911_v42 = vmul.f32 %v4655_v24, %v4274_v34  ;;  %v4664_v11 = vunpack.c.l.bf16 %v7324_v58  ;;  %v4665_v56 = vunpack.c.h.bf16 %v7324_v58  ;;  %v7332_v58 = vld [vmem:[#allocation7 + $0x398] sm:$0xff] }
 0x5d3   :  { %v5060_v35 = vadd.f32 %v5059_v25, %v4904_v3  ;;  %v5187_v63 = vadd.f32 %v5186_v23, %v4905_v15  ;;  %v4670_v49 = vunpack.c.l.bf16 %v7327_v4  ;;  %v4671_v24 = vunpack.c.h.bf16 %v7327_v4  ;;  %v7335_v4 = vld [vmem:[#allocation7 + $0x3b0] sm:$0xff] }
 0x5d4   :  { %v4267_v59 = vpop.permute.xlu1 %4266  ;;  %v4288_v37 = vpop.permute.xlu0 %4287 }
 0x5d5   :  { %v4908_v14 = vmul.f32 %v4652_v53, %v4267_v59  ;;  %v4909_v50 = vmul.f32 %v4653_v27, %v4267_v59  ;;  %v5061_v22 = vadd.f32 %v5060_v35, %v4906_v5  ;;  %v5188_v43 = vadd.f32 %v5187_v63, %v4907_v21 }
 0x5d6   :  { %v4914_v55 = vmul.f32 %v4658_v19, %v4288_v37  ;;  %v4915_v62 = vmul.f32 %v4659_v32, %v4288_v37  ;;  %v4668_v53 = vunpack.c.l.bf16 %v7326_v10  ;;  %v4669_v27 = vunpack.c.h.bf16 %v7326_v10  ;;  %v7334_v10 = vld [vmem:[#allocation7 + $0x3a8] sm:$0xff] }
 0x5d7   :  { %v5062_v52 = vadd.f32 %v5061_v22, %v4908_v14  ;;  %v5189_v18 = vadd.f32 %v5188_v43, %v4909_v50  ;;  %v4674_v19 = vunpack.c.l.bf16 %v7329_v45  ;;  %v4675_v32 = vunpack.c.h.bf16 %v7329_v45  ;;  %v7337_v45 = vld [vmem:[#allocation7 + $0x3c0] sm:$0xff] }
 0x5d8   :  { %v4281_v1 = vpop.permute.xlu1 %4280  ;;  %v4302_v44 = vpop.permute.xlu0 %4301 }
 0x5d9   :  { %v4912_v16 = vmul.f32 %v4656_v51, %v4281_v1  ;;  %v4913_v26 = vmul.f32 %v4657_v60, %v4281_v1  ;;  %v5063_v7 = vadd.f32 %v5062_v52, %v4910_v29  ;;  %v5190_v40 = vadd.f32 %v5189_v18, %v4911_v42 }
 0x5da   :  { %v4918_v41 = vmul.f32 %v4662_v8, %v4302_v44  ;;  %v4919_v17 = vmul.f32 %v4663_v47, %v4302_v44  ;;  %v4672_v51 = vunpack.c.l.bf16 %v7328_v46  ;;  %v4673_v60 = vunpack.c.h.bf16 %v7328_v46  ;;  %v7336_v46 = vld [vmem:[#allocation7 + $0x3b8] sm:$0xff] }
 0x5db   :  { %v5064_v48 = vadd.f32 %v5063_v7, %v4912_v16  ;;  %v5191_v33 = vadd.f32 %v5190_v40, %v4913_v26  ;;  %v4678_v8 = vunpack.c.l.bf16 %v7331_v28  ;;  %v4679_v47 = vunpack.c.h.bf16 %v7331_v28  ;;  %v7339_v28 = vld [vmem:[#allocation7 + $0x3d0] sm:$0xff] }
 0x5dc   :  { %v4295_v12 = vpop.permute.xlu1 %4294  ;;  %v4316_v61 = vpop.permute.xlu0 %4315 }
 0x5dd   :  { %v4916_v30 = vmul.f32 %v4660_v0, %v4295_v12  ;;  %v4917_v39 = vmul.f32 %v4661_v57, %v4295_v12  ;;  %v5065_v38 = vadd.f32 %v5064_v48, %v4914_v55  ;;  %v5192_v54 = vadd.f32 %v5191_v33, %v4915_v62 }
 0x5de   :  { %v4922_v5 = vmul.f32 %v4666_v36, %v4316_v61  ;;  %v4923_v21 = vmul.f32 %v4667_v9, %v4316_v61  ;;  %v4676_v0 = vunpack.c.l.bf16 %v7330_v20  ;;  %v4677_v57 = vunpack.c.h.bf16 %v7330_v20  ;;  %v7338_v20 = vld [vmem:[#allocation7 + $0x3c8] sm:$0xff] }
 0x5df   :  { %v5066_v13 = vadd.f32 %v5065_v38, %v4916_v30  ;;  %v5193_v6 = vadd.f32 %v5192_v54, %v4917_v39  ;;  %v4682_v36 = vunpack.c.l.bf16 %v7333_v2  ;;  %v4683_v9 = vunpack.c.h.bf16 %v7333_v2 }
 0x5e0   :  { %v4309_v31 = vpop.permute.xlu1 %4308  ;;  %v4330_v34 = vpop.permute.xlu0 %4329 }
 0x5e1   :  { %v4920_v3 = vmul.f32 %v4664_v11, %v4309_v31  ;;  %v4921_v15 = vmul.f32 %v4665_v56, %v4309_v31  ;;  %v5067_v25 = vadd.f32 %v5066_v13, %v4918_v41  ;;  %v5194_v23 = vadd.f32 %v5193_v6, %v4919_v17 }
 0x5e2   :  { %v4926_v29 = vmul.f32 %v4670_v49, %v4330_v34  ;;  %v4927_v42 = vmul.f32 %v4671_v24, %v4330_v34  ;;  %v4680_v11 = vunpack.c.l.bf16 %v7332_v58  ;;  %v4681_v56 = vunpack.c.h.bf16 %v7332_v58 }
 0x5e3   :  { %v5068_v35 = vadd.f32 %v5067_v25, %v4920_v3  ;;  %v5195_v63 = vadd.f32 %v5194_v23, %v4921_v15  ;;  %v4686_v49 = vunpack.c.l.bf16 %v7335_v4  ;;  %v4687_v24 = vunpack.c.h.bf16 %v7335_v4 }
 0x5e4   :  { %v4323_v59 = vpop.permute.xlu1 %4322  ;;  %v4344_v37 = vpop.permute.xlu0 %4343 }
 0x5e5   :  { %v4924_v14 = vmul.f32 %v4668_v53, %v4323_v59  ;;  %v4925_v50 = vmul.f32 %v4669_v27, %v4323_v59  ;;  %v5069_v22 = vadd.f32 %v5068_v35, %v4922_v5  ;;  %v5196_v43 = vadd.f32 %v5195_v63, %v4923_v21 }
 0x5e6   :  { %v4930_v55 = vmul.f32 %v4674_v19, %v4344_v37  ;;  %v4931_v62 = vmul.f32 %v4675_v32, %v4344_v37  ;;  %v4684_v53 = vunpack.c.l.bf16 %v7334_v10  ;;  %v4685_v27 = vunpack.c.h.bf16 %v7334_v10 }
 0x5e7   :  { %v5070_v52 = vadd.f32 %v5069_v22, %v4924_v14  ;;  %v5197_v18 = vadd.f32 %v5196_v43, %v4925_v50  ;;  %v4690_v19 = vunpack.c.l.bf16 %v7337_v45  ;;  %v4691_v32 = vunpack.c.h.bf16 %v7337_v45 }
 0x5e8   :  { %v4337_v1 = vpop.permute.xlu1 %4336  ;;  %v4358_v44 = vpop.permute.xlu0 %4357 }
 0x5e9   :  { %v4928_v16 = vmul.f32 %v4672_v51, %v4337_v1  ;;  %v4929_v26 = vmul.f32 %v4673_v60, %v4337_v1  ;;  %v5071_v7 = vadd.f32 %v5070_v52, %v4926_v29  ;;  %v5198_v40 = vadd.f32 %v5197_v18, %v4927_v42 }
 0x5ea   :  { %v4934_v41 = vmul.f32 %v4678_v8, %v4358_v44  ;;  %v4935_v17 = vmul.f32 %v4679_v47, %v4358_v44  ;;  %v4688_v51 = vunpack.c.l.bf16 %v7336_v46  ;;  %v4689_v60 = vunpack.c.h.bf16 %v7336_v46 }
 0x5eb   :  { %v5072_v48 = vadd.f32 %v5071_v7, %v4928_v16  ;;  %v5199_v33 = vadd.f32 %v5198_v40, %v4929_v26  ;;  %v4694_v8 = vunpack.c.l.bf16 %v7339_v28  ;;  %v4695_v47 = vunpack.c.h.bf16 %v7339_v28  ;;  %v6838_v28 = vld [vmem:[#allocation17 + $0x38] ss:$12 sps:$4 sm:$0xff]  }
 0x5ec   :  { %v4351_v12 = vpop.permute.xlu1 %4350  ;;  %v4372_v61 = vpop.permute.xlu0 %4371 }
 0x5ed   :  { %v4932_v30 = vmul.f32 %v4676_v0, %v4351_v12  ;;  %v4933_v39 = vmul.f32 %v4677_v57, %v4351_v12  ;;  %v5073_v38 = vadd.f32 %v5072_v48, %v4930_v55  ;;  %v5200_v54 = vadd.f32 %v5199_v33, %v4931_v62 }
 0x5ee   :  { %v4938_v5 = vmul.f32 %v4682_v36, %v4372_v61  ;;  %v4939_v21 = vmul.f32 %v4683_v9, %v4372_v61  ;;  %v4692_v0 = vunpack.c.l.bf16 %v7338_v20  ;;  %v4693_v57 = vunpack.c.h.bf16 %v7338_v20  ;;  %v7340_v61 = vld [vmem:[#allocation7 + $0x3d8] sm:$0xff] }
 0x5ef   :  { %v5074_v13 = vadd.f32 %v5073_v38, %v4932_v30  ;;  %v5201_v6 = vadd.f32 %v5200_v54, %v4933_v39  ;;  %v4696_v58 = vunpack.c.l.bf16 %v7340_v61  ;;  %v7341_v54 = vld [vmem:[#allocation7 + $0x3e0] sm:$0xff] }
 0x5f0   :  { %v4365_v31 = vpop.permute.xlu1 %4364  ;;  %v4386_v34 = vpop.permute.xlu0 %4385  ;;  %v4698_v2 = vunpack.c.l.bf16 %v7341_v54  ;;  %v4699_v36 = vunpack.c.h.bf16 %v7341_v54  ;;  %v10410_v54 = vmov 0  }
 0x5f1   :  { %v4936_v3 = vmul.f32 %v4680_v11, %v4365_v31  ;;  %v4937_v15 = vmul.f32 %v4681_v56, %v4365_v31  ;;  %v5075_v25 = vadd.f32 %v5074_v13, %v4934_v41  ;;  %v5202_v23 = vadd.f32 %v5201_v6, %v4935_v17 }
 0x5f2   :  { %v4942_v29 = vmul.f32 %v4686_v49, %v4386_v34  ;;  %v4943_v42 = vmul.f32 %v4687_v24, %v4386_v34  ;;  %v4697_v11 = vunpack.c.h.bf16 %v7340_v61  ;;  %v7342_v34 = vld [vmem:[#allocation7 + $0x3e8] sm:$0xff] }
 0x5f3   :  { %v5076_v35 = vadd.f32 %v5075_v25, %v4936_v3  ;;  %v5203_v63 = vadd.f32 %v5202_v23, %v4937_v15  ;;  %v4700_v10 = vunpack.c.l.bf16 %v7342_v34  ;;  %v7343_v23 = vld [vmem:[#allocation7 + $0x3f0] sm:$0xff]  ;;  %v6846_v61 = vld [vmem:[#allocation17 + $0x98] ss:$12 sps:$4 sm:$0xff]  }
 0x5f4   :  { %v4379_v59 = vpop.permute.xlu1 %4378  ;;  %v4400_v37 = vpop.permute.xlu0 %4399  ;;  %v4702_v4 = vunpack.c.l.bf16 %v7343_v23  ;;  %v4703_v49 = vunpack.c.h.bf16 %v7343_v23  ;;  %v10411_v23 = vmov 0.0  }
 0x5f5   :  { %v4940_v14 = vmul.f32 %v4684_v53, %v4379_v59  ;;  %v4941_v50 = vmul.f32 %v4685_v27, %v4379_v59  ;;  %v5077_v22 = vadd.f32 %v5076_v35, %v4938_v5  ;;  %v5204_v43 = vadd.f32 %v5203_v63, %v4939_v21 }
 0x5f6   :  { %v4946_v55 = vmul.f32 %v4690_v19, %v4400_v37  ;;  %v4947_v62 = vmul.f32 %v4691_v32, %v4400_v37  ;;  %v4701_v53 = vunpack.c.h.bf16 %v7342_v34  ;;  %v7344_v37 = vld [vmem:[#allocation7 + $0x3f8] sm:$0xff] }
 0x5f7   :  { %v5078_v52 = vadd.f32 %v5077_v22, %v4940_v14  ;;  %v5205_v18 = vadd.f32 %v5204_v43, %v4941_v50  ;;  %v4704_v46 = vunpack.c.l.bf16 %v7344_v37  ;;  %v6869_v34 = vld [vmem:[#allocation16 + $0x94] ss:$12 sps:$4 sm:$0xff]  }
 0x5f8   :  { %v4393_v1 = vpop.permute.xlu1 %4392  ;;  %v4414_v44 = vpop.permute.xlu0 %4413 }
 0x5f9   :  { %v4944_v16 = vmul.f32 %v4688_v51, %v4393_v1  ;;  %v4945_v26 = vmul.f32 %v4689_v60, %v4393_v1  ;;  %v5079_v7 = vadd.f32 %v5078_v52, %v4942_v29  ;;  %v5206_v40 = vadd.f32 %v5205_v18, %v4943_v42 }
 0x5fa   :  { %v4950_v41 = vmul.f32 %v4694_v8, %v4414_v44  ;;  %v4951_v17 = vmul.f32 %v4695_v47, %v4414_v44  ;;  %v4705_v51 = vunpack.c.h.bf16 %v7344_v37  ;;  %v6839_v8 = vld [vmem:[#allocation17 + $0x110] ss:$12 sps:$4 sm:$0xff]   ;;  %v6881_v37 = vld [vmem:[#allocation19] ss:$12 sps:$4 sm:$0xff]  }
 0x5fb   :  { %v5080_v48 = vadd.f32 %v5079_v7, %v4944_v16  ;;  %v5207_v33 = vadd.f32 %v5206_v40, %v4945_v26  ;;  %v6834_v16 = vld [vmem:[#allocation17 + $0x8] ss:$12 sps:$4 sm:$0xff]   ;;  %v6835_v26 = vld [vmem:[#allocation17 + $0xe0] ss:$12 sps:$4 sm:$0xff]   ;;  %v6837_v40 = vld [vmem:[#allocation17 + $0xf8] ss:$12 sps:$4 sm:$0xff]  }
 0x5fc   :  { %v4407_v12 = vpop.permute.xlu1 %4406  ;;  %v4428_v9 = vpop.permute.xlu0 %4427  ;;  %v6836_v7 = vld [vmem:[#allocation17 + $0x20] ss:$12 sps:$4 sm:$0xff]   ;;  %v6840_v47 = vld [vmem:[#allocation17 + $0x50] ss:$12 sps:$4 sm:$0xff]  }
 0x5fd   :  { %v4948_v56 = vmul.f32 %v4692_v0, %v4407_v12  ;;  %v4949_v30 = vmul.f32 %v4693_v57, %v4407_v12  ;;  %v5081_v39 = vadd.f32 %v5080_v48, %v4946_v55  ;;  %v5208_v38 = vadd.f32 %v5207_v33, %v4947_v62  ;;  %v6841_v55 = vld [vmem:[#allocation17 + $0x128] ss:$12 sps:$4 sm:$0xff]   ;;  %v6843_v48 = vld [vmem:[#allocation17 + $0x140] ss:$12 sps:$4 sm:$0xff]   ;;  %v6845_v12 = vld [vmem:[#allocation17 + $0x158] ss:$12 sps:$4 sm:$0xff]  }
 0x5fe   :  { %v4954_v24 = vmul.f32 %v4698_v2, %v4428_v9  ;;  %v4955_v5 = vmul.f32 %v4699_v36, %v4428_v9  ;;  %v6842_v62 = vld [vmem:[#allocation17 + $0x68] ss:$12 sps:$4 sm:$0xff]   ;;  %v6844_v33 = vld [vmem:[#allocation17 + $0x80] ss:$12 sps:$4 sm:$0xff]   ;;  %v6855_v36 = vld [vmem:[#allocation16 + $0x30] ss:$12 sps:$4 sm:$0xff]  }
 0x5ff   :  { %v5082_v13 = vadd.f32 %v5081_v39, %v4948_v56  ;;  %v5209_v6 = vadd.f32 %v5208_v38, %v4949_v30  ;;  %v6851_v56 = vld [vmem:[#allocation16 + $0x4] ss:$12 sps:$4 sm:$0xff]   ;;  %v6849_v30 = vld [vmem:[#allocation16] ss:$12 sps:$4 sm:$0xff]   ;;  %v6854_v39 = vld [vmem:[#allocation16 + $0x1c] ss:$12 sps:$4 sm:$0xff]  }
 0x600   :  { %v4421_v31 = vpop.permute.xlu1 %4420  ;;  %v4442_v63 = vpop.permute.xlu0 %4441  ;;  %v6852_v38 = vld [vmem:[#allocation16 + $0x18] ss:$12 sps:$4 sm:$0xff]   ;;  %v6857_v2 = vld [vmem:[#allocation16 + $0x34] ss:$12 sps:$4 sm:$0xff]  }
 0x601   :  { %v4952_v27 = vmul.f32 %v4696_v58, %v4421_v31  ;;  %v4953_v3 = vmul.f32 %v4697_v11, %v4421_v31  ;;  %v5083_v15 = vadd.f32 %v5082_v13, %v4950_v41  ;;  %v5210_v25 = vadd.f32 %v5209_v6, %v4951_v17  ;;  %v6847_v58 = vld [vmem:[#allocation17 + $0x170] ss:$12 sps:$4 sm:$0xff]   ;;  %v6860_v9 = vld [vmem:[#allocation16 + $0x4c] ss:$12 sps:$4 sm:$0xff]   ;;  %v6858_v41 = vld [vmem:[#allocation16 + $0x48] ss:$12 sps:$4 sm:$0xff]  }
 0x602   :  { %v4958_v43 = vmul.f32 %v4702_v4, %v4442_v63  ;;  %v4959_v45 = vmul.f32 %v4703_v49, %v4442_v63  ;;  %v6848_v11 = vld [vmem:[#allocation17 + $0xb0] ss:$12 sps:$4 sm:$0xff]   ;;  %v6861_v13 = vld [vmem:[#allocation16 + $0x60] ss:$12 sps:$4 sm:$0xff]   ;;  %v6864_v31 = vld [vmem:[#allocation16 + $0x78] ss:$12 sps:$4 sm:$0xff]  }
 0x603   :  { %v5084_v21 = vadd.f32 %v5083_v15, %v4952_v27  ;;  %v5211_v35 = vadd.f32 %v5210_v25, %v4953_v3  ;;  %v6863_v17 = vld [vmem:[#allocation16 + $0x64] ss:$12 sps:$4 sm:$0xff]   ;;  %v6866_v6 = vld [vmem:[#allocation16 + $0x7c] ss:$12 sps:$4 sm:$0xff]   ;;  %v6874_v4 = vld [vmem:[#allocation16 + $0x20] ss:$12 sps:$4 sm:$0xff]  }
 0x604   :  { %v4435_v59 = vpop.permute.xlu1 %4434  ;;  %v6870_v27 = vld [vmem:[#allocation16 + $0xa8] ss:$12 sps:$4 sm:$0xff]   ;;  %v243_v3 = vld [vmem:[#allocation2] sm:$0xff]  ;;  %v6875_v49 = vld [vmem:[#allocation16 + $0x38] ss:$12 sps:$4 sm:$0xff]  }
 0x605   :  { %v4956_v60 = vmul.f32 %v4700_v10, %v4435_v59  ;;  %v4957_v14 = vmul.f32 %v4701_v53, %v4435_v59  ;;  %v5085_v50 = vadd.f32 %v5084_v21, %v4954_v24  ;;  %v5212_v22 = vadd.f32 %v5211_v35, %v4955_v5  ;;  %v6867_v10 = vld [vmem:[#allocation16 + $0x90] ss:$12 sps:$4 sm:$0xff]   ;;  %v6872_v53 = vld [vmem:[#allocation16 + $0xac] ss:$12 sps:$4 sm:$0xff]   ;;  %v6873_v25 = vld [vmem:[#allocation16 + $0x8] ss:$12 sps:$4 sm:$0xff]  }
 0x606   :  { %v5218_v15 = vpack.c.bf16 %v243_v3, %v243_v3  ;;  %v6876_v24 = vld [vmem:[#allocation16 + $0x50] ss:$12 sps:$4 sm:$0xff]   ;;  %v6877_v5 = vld [vmem:[#allocation16 + $0x68] ss:$12 sps:$4 sm:$0xff]   ;;  %v6878_v21 = vld [vmem:[#allocation16 + $0x80] ss:$12 sps:$4 sm:$0xff]  }
 0x607   :  { %v5086_v19 = vadd.f32 %v5085_v50, %v4956_v60  ;;  %v5213_v32 = vadd.f32 %v5212_v22, %v4957_v14  ;;  %v6879_v35 = vld [vmem:[#allocation16 + $0x98] ss:$12 sps:$4 sm:$0xff]   ;;  %v6880_v63 = vld [vmem:[#allocation16 + $0xb0] ss:$12 sps:$4 sm:$0xff]   ;;  %v6889_v60 = vld [vmem:[#allocation19 + $0x34] ss:$12 sps:$4 sm:$0xff]  }
 0x608   :  { %v4449_v29 = vpop.permute.xlu1 %4448  ;;  %v6883_v59 = vld [vmem:[#allocation19 + $0x4] ss:$12 sps:$4 sm:$0xff]   ;;  %v6892_v50 = vld [vmem:[#allocation19 + $0x4c] ss:$12 sps:$4 sm:$0xff]   ;;  %v6890_v22 = vld [vmem:[#allocation19 + $0x48] ss:$12 sps:$4 sm:$0xff]  }
 0x609   :  { %v4960_v42 = vmul.f32 %v4704_v46, %v4449_v29  ;;  %v4961_v52 = vmul.f32 %v4705_v51, %v4449_v29  ;;  %v5087_v18 = vadd.f32 %v5086_v19, %v4958_v43  ;;  %v5214_v1 = vadd.f32 %v5213_v32, %v4959_v45  ;;  %v6886_v46 = vld [vmem:[#allocation19 + $0x1c] ss:$12 sps:$4 sm:$0xff]   ;;  %v6884_v51 = vld [vmem:[#allocation19 + $0x18] ss:$12 sps:$4 sm:$0xff]   ;;  %v6893_v45 = vld [vmem:[#allocation19 + $0x60] ss:$12 sps:$4 sm:$0xff]  }
 0x60a   :  { %v6887_v14 = vld [vmem:[#allocation19 + $0x30] ss:$12 sps:$4 sm:$0xff]   ;;  %v6896_v32 = vld [vmem:[#allocation19 + $0x78] ss:$12 sps:$4 sm:$0xff]   ;;  %v6901_v29 = vld [vmem:[#allocation19 + $0x94] ss:$12 sps:$4 sm:$0xff]  }
 0x60b   :  { %v5088_v44 = vadd.f32 %v5087_v18, %v4960_v42  ;;  %v5215_v20 = vadd.f32 %v5214_v1, %v4961_v52  ;;  %v6895_v43 = vld [vmem:[#allocation19 + $0x64] ss:$12 sps:$4 sm:$0xff]   ;;  %v6898_v19 = vld [vmem:[#allocation19 + $0x7c] ss:$12 sps:$4 sm:$0xff]   ;;  %v6904_v52 = vld [vmem:[#allocation19 + $0xac] ss:$12 sps:$4 sm:$0xff]  }
 0x60c   :  { %v6899_v42 = vld [vmem:[#allocation19 + $0x90] ss:$12 sps:$4 sm:$0xff]   ;;  %v6902_v18 = vld [vmem:[#allocation19 + $0xa8] ss:$12 sps:$4 sm:$0xff]  }
 0x60d   :  { %v5251_v0 = vpack.c.bf16 %v5088_v44, %v5088_v44  ;;  %5216 = vst [vmem:[#allocation27] sm:$0xff] %v5088_v44  ;;  %5217 = vst [vmem:[#allocation27 + $0x8] sm:$0xff] %v5215_v20  ;;  %v5252_v57 = vpack.c.bf16 %v5215_v20, %v5215_v20  ;;  %v6905_v1 = vld [vmem:[#allocation19 + $0x8] ss:$12 sps:$4 sm:$0xff]   ;;  %v10412_v44 = vld [vmem:[#allocation40_spill] sm:$0xff] }
 0x60e   :  { %v6906_v20 = vld [vmem:[#allocation19 + $0x20] ss:$12 sps:$4 sm:$0xff]  }
 0x60f   :  { %5605 = vmatprep.mubr.bf16.mxu0 %v5252_v57 }
 0x610   :  { %5606 = vmatmul.mubr.bf16.vlgmr.msra.gmra.mrb[80].mxu0 %v5251_v0 }
 0x611   :  { %6475 = vmatpush3.bf16.msra.mxu0 %v6834_v16  ;;  %5646 = vmatprep.mubr.bf16.mxu0 %v5252_v57  ;;  %v6908_v57 = vld [vmem:[#allocation19 + $0x50] ss:$12 sps:$4 sm:$0xff]   ;;  %v6909_v16 = vld [vmem:[#allocation19 + $0x68] ss:$12 sps:$4 sm:$0xff]  }
 0x612   :  { %6476 = vmatprep.subr.bf16.mxu0 %v6835_v26  ;;  %v6910_v26 = vld [vmem:[#allocation19 + $0x80] ss:$12 sps:$4 sm:$0xff]  }
 0x615   :  { %6477 = vmatpush3.bf16.msra.mxu0 %v6836_v7  ;;  %v6911_v7 = vld [vmem:[#allocation19 + $0x98] ss:$12 sps:$4 sm:$0xff]  }
 0x616   :  { %6478 = vmatprep.subr.bf16.mxu0 %v6837_v40  ;;  %v6912_v40 = vld [vmem:[#allocation19 + $0xb0] ss:$12 sps:$4 sm:$0xff]  }
 0x619   :  { %6479 = vmatpush3.bf16.msra.mxu0 %v6838_v28 }
 0x61a   :  { %6480 = vmatprep.subr.bf16.mxu0 %v6839_v8 }
 0x61d   :  { %6481 = vmatpush3.bf16.msra.mxu0 %v6840_v47 }
 0x61e   :  { %6482 = vmatprep.subr.bf16.mxu0 %v6841_v55 }
 0x621   :  { %6483 = vmatpush3.bf16.msra.mxu0 %v6842_v62 }
 0x622   :  { %6484 = vmatprep.subr.bf16.mxu0 %v6843_v48 }
 0x625   :  { %6485 = vmatpush3.bf16.msra.mxu0 %v6844_v33 }
 0x626   :  { %6486 = vmatprep.subr.bf16.mxu0 %v6845_v12 }
 0x629   :  { %6487 = vmatpush3.bf16.msra.mxu0 %v6846_v61 }
 0x62a   :  { %6488 = vmatprep.subr.bf16.mxu0 %v6847_v58 }
 0x62d   :  { %6489 = vmatpush3.bf16.msra.mxu0 %v6848_v11 }
 0x62e   :  { %5782 = vmatprep.subr.bf16.mxu0 %v6851_v56 }
 0x630   :  { %5647 = vmatmul.mubr.bf16.vlgmr.msra.gmra.mrb[84].mxu0 %v5251_v0  ;;  %v6907_v0 = vld [vmem:[#allocation19 + $0x38] ss:$12 sps:$4 sm:$0xff]  }
 0x631   :  { %5783 = vmatpush1.bf16.msra.mxu0 %v6849_v30  ;;  %5814 = vmatprep.mubr.bf16.mxu0 %v10410_v54 }
 0x632   :  { %5784 = vmatprep.subr.bf16.mxu0 %v6854_v39 }
 0x635   :  { %5785 = vmatpush1.bf16.msra.mxu0 %v6852_v38 }
 0x636   :  { %5786 = vmatprep.subr.bf16.mxu0 %v6857_v2 }
 0x639   :  { %5787 = vmatpush1.bf16.msra.mxu0 %v6855_v36 }
 0x63a   :  { %5788 = vmatprep.subr.bf16.mxu0 %v6860_v9 }
 0x63d   :  { %5789 = vmatpush1.bf16.msra.mxu0 %v6858_v41 }
 0x63e   :  { %5790 = vmatprep.subr.bf16.mxu0 %v6863_v17 }
 0x641   :  { %5791 = vmatpush1.bf16.msra.mxu0 %v6861_v13 }
 0x642   :  { %5792 = vmatprep.subr.bf16.mxu0 %v6866_v6 }
 0x645   :  { %5793 = vmatpush1.bf16.msra.mxu0 %v6864_v31 }
 0x646   :  { %5794 = vmatprep.subr.bf16.mxu0 %v6869_v34 }
 0x649   :  { %5795 = vmatpush1.bf16.msra.mxu0 %v6867_v10 }
 0x64a   :  { %5796 = vmatprep.subr.bf16.mxu0 %v6872_v53 }
 0x64d   :  { %5797 = vmatpush1.bf16.msra.mxu0 %v6870_v27 }
 0x64e   :  { %6534 = vmatprep.subr.bf16.mxu0 %v10411_v23 }
 0x650   :  { %5815 = vmatmul.mubr.bf16.vlgmr.msra.gmra.mrb[88].mxu0 %v5218_v15 }
 0x651   :  { %6535 = vmatpush3.bf16.msra.mxu0 %v6873_v25  ;;  %6550 = vmatprep.mubr.msk.bf16.mxu0 %vm7785_vm0, %v10411_v23 }
 0x652   :  { %6536 = vmatprep.subr.bf16.mxu0 %v10411_v23 }
 0x655   :  { %6537 = vmatpush3.bf16.msra.mxu0 %v6874_v4 }
 0x656   :  { %6538 = vmatprep.subr.bf16.mxu0 %v10411_v23 }
 0x659   :  { %6539 = vmatpush3.bf16.msra.mxu0 %v6875_v49 }
 0x65a   :  { %6540 = vmatprep.subr.bf16.mxu0 %v10411_v23 }
 0x65d   :  { %6541 = vmatpush3.bf16.msra.mxu0 %v6876_v24 }
 0x65e   :  { %6542 = vmatprep.subr.bf16.mxu0 %v10411_v23 }
 0x661   :  { %6543 = vmatpush3.bf16.msra.mxu0 %v6877_v5 }
 0x662   :  { %6544 = vmatprep.subr.bf16.mxu0 %v10411_v23 }
 0x665   :  { %6545 = vmatpush3.bf16.msra.mxu0 %v6878_v21 }
 0x666   :  { %6546 = vmatprep.subr.bf16.mxu0 %v10411_v23 }
 0x669   :  { %6547 = vmatpush3.bf16.msra.mxu0 %v6879_v35 }
 0x66a   :  { %6548 = vmatprep.subr.bf16.mxu0 %v10411_v23 }
 0x66d   :  { %6549 = vmatpush3.bf16.msra.mxu0 %v6880_v63 }
 0x66e   :  { %6023 = vmatprep.subr.bf16.mxu0 %v6883_v59 }
 0x670   :  { %6551 = vmatmul.mubr.bf16.vlgmr.msra.gmra.mrb[92].mxu0 %v5218_v15 }
 0x671   :  { %6024 = vmatpush1.bf16.msra.mxu0 %v6881_v37  ;;  %6055 = vmatprep.mubr.bf16.mxu0 %v10410_v54 }
 0x672   :  { %6025 = vmatprep.subr.bf16.mxu0 %v6886_v46 }
 0x675   :  { %6026 = vmatpush1.bf16.msra.mxu0 %v6884_v51 }
 0x676   :  { %6027 = vmatprep.subr.bf16.mxu0 %v6889_v60 }
 0x679   :  { %6028 = vmatpush1.bf16.msra.mxu0 %v6887_v14 }
 0x67a   :  { %6029 = vmatprep.subr.bf16.mxu0 %v6892_v50 }
 0x67d   :  { %6030 = vmatpush1.bf16.msra.mxu0 %v6890_v22 }
 0x67e   :  { %6031 = vmatprep.subr.bf16.mxu0 %v6895_v43 }
 0x681   :  { %6032 = vmatpush1.bf16.msra.mxu0 %v6893_v45 }
 0x682   :  { %6033 = vmatprep.subr.bf16.mxu0 %v6898_v19 }
 0x685   :  { %6034 = vmatpush1.bf16.msra.mxu0 %v6896_v32 }
 0x686   :  { %6035 = vmatprep.subr.bf16.mxu0 %v6901_v29 }
 0x689   :  { %6036 = vmatpush1.bf16.msra.mxu0 %v6899_v42 }
 0x68a   :  { %6037 = vmatprep.subr.bf16.mxu0 %v6904_v52 }
 0x68d   :  { %6038 = vmatpush1.bf16.msra.mxu0 %v6902_v18 }
 0x68e   :  { %6554 = vmatprep.subr.bf16.mxu0 %v10411_v23 }
 0x690   :  { %6056 = vmatmul.mubr.bf16.vlgmr.msra.gmra.mrb[96].mxu0 %v10412_v44 }
 0x691   :  { %6555 = vmatpush3.bf16.msra.mxu0 %v6905_v1  ;;  %6570 = vmatprep.mubr.msk.bf16.mxu0 %vm7785_vm0, %v10411_v23 }
 0x692   :  { %6556 = vmatprep.subr.bf16.mxu0 %v10411_v23 }
 0x695   :  { %6557 = vmatpush3.bf16.msra.mxu0 %v6906_v20 }
 0x696   :  { %6558 = vmatprep.subr.bf16.mxu0 %v10411_v23 }
 0x699   :  { %6559 = vmatpush3.bf16.msra.mxu0 %v6907_v0 }
 0x69a   :  { %6560 = vmatprep.subr.bf16.mxu0 %v10411_v23 }
 0x69d   :  { %6561 = vmatpush3.bf16.msra.mxu0 %v6908_v57 }
 0x69e   :  { %6562 = vmatprep.subr.bf16.mxu0 %v10411_v23 }
 0x6a1   :  { %6563 = vmatpush3.bf16.msra.mxu0 %v6909_v16 }
 0x6a2   :  { %6564 = vmatprep.subr.bf16.mxu0 %v10411_v23 }
 0x6a5   :  { %6565 = vmatpush3.bf16.msra.mxu0 %v6910_v26 }
 0x6a6   :  { %6566 = vmatprep.subr.bf16.mxu0 %v10411_v23 }
 0x6a9   :  { %6567 = vmatpush3.bf16.msra.mxu0 %v6911_v7 }
 0x6aa   :  { %6568 = vmatprep.subr.bf16.mxu0 %v10411_v23 }
 0x6ad   :  { %6569 = vmatpush3.bf16.msra.mxu0 %v6912_v40 }
 0x6b0   :  { %6571 = vmatmul.mubr.bf16.vlgmr.msra.gmra.mrb[100].mxu0 %v10412_v44 }
 0x6e3   :  { %v5607_v28 = vpop.f32.mrb[80].mxu0 }
 0x6e4   :  { %v5609_v8 = vpop.f32.mrb[81].mxu0 }
 0x6e5   :  { %v5611_v47 = vpop.f32.mrb[82].mxu0 }
 0x6e6   :  { %v5612_v55 = vpop.f32.mrb[83].mxu0 }
 0x703   :  { %v6490_v62 = vpop.f32.mrb[84].mxu0 }
 0x704   :  { %v6491_v48 = vpop.f32.mrb[85].mxu0 }
 0x705   :  { %v6492_v33 = vadd.f32 %v6491_v48, %v6490_v62  ;;  %v6493_v12 = vpop.f32.mrb[86].mxu0 }
 0x706   :  { %v6494_v61 = vpop.f32.mrb[87].mxu0 }
 0x707   :  { %7687 = shalt.err (!%p7684_p12)
}
 0x708   :  { %s7688_s24 = scalar_lea.hbm %s10243_s16, 256 }
 0x709   :  { %p7689_p13 = scmp.ne.s32.totalorder %s10243_s16, %s7688_s24  ;;  %p7692_p0 = scmp.lt.u32.totalorder %s7688_s24, %s10243_s16 }
 0x70b   :  { %p7694_p1 = pnand %p7692_p0, %p7689_p13 }
 0x70d   :  { %7697 = shalt.err (!%p7694_p1)
}
 0x70e   :  { %6177 = dma.vmem_to_hbm [thread:$0]  %s6175_s27, 256, %s10243_s16, [#allocation28]  }
 0x70f   :  { %s7787_s10 = smov [#allocation29]  }
 0x710   :  { %s6183_s26 = sshll.u32 %s7787_s10, 4  ;;  %s6184_s26 = int_to_ptr.vmem [resolvable:$true] %s6183_s26 }
 0x711   :  { %s7698_s22 = scalar_lea.vmem %s6184_s26, 2048  ;;  %p7703_p3 = scmp.lt.s32.totalorder %s6184_s26, %s6184_s26 }
 0x712   :  { %p7699_p2 = scmp.ne.s32.totalorder %s6184_s26, %s7698_s22  ;;  %p7704_p4 = scmp.lt.s32.totalorder %s7698_s22, %s7698_s22 }
 0x714   :  { %p7705_p5 = por %p7704_p4, %p7703_p3 }
 0x716   :  { %p7706_p6 = pnand %p7705_p5, %p7699_p2 }
 0x718   :  { %7709 = shalt.err (!%p7706_p6)
}
 0x719   :  { %s7710_s21 = scalar_lea.hbm %s10244_s17, 2048 }
 0x71a   :  { %p7711_p7 = scmp.ne.s32.totalorder %s10244_s17, %s7710_s21  ;;  %p7714_p8 = scmp.lt.u32.totalorder %s7710_s21, %s10244_s17 }
 0x71c   :  { %p7716_p9 = pnand %p7714_p8, %p7711_p7 }
 0x71e   :  { %7719 = shalt.err (!%p7716_p9)
}
 0x71f   :  { %6189 = dma.vmem_to_hbm [thread:$0]  %s6184_s26, 2048, %s10244_s17, [#allocation28], %s7764_s25, %s7764_s25, %s7765_s28   ;;  %v6459_v13 = vld [vmem:[#allocation20] ss:$0 sm:$0xff]  ;;  %v6461_v15 = vld [vmem:[#allocation22] ss:$0 sm:$0xff] }
 0x720   :  { %v6464_v5 = vld [vmem:[#allocation25] ss:$0 sm:$0xff]  ;;  %v6463_v35 = vld [vmem:[#allocation23] ss:$0 sm:$0xff]  ;;  %s7788_s17 = smov [#allocation26]   ;;  %v7345_v29 = vld [vmem:[#allocation5] sm:$0xff] }
 0x721   :  { %s6164_s25 = sshll.u32 %s7788_s17, 4  ;;  %s6165_s25 = int_to_ptr.vmem [resolvable:$true] %s6164_s25 }
 0x722   :  { %s7720_s28 = scalar_lea.vmem %s6165_s25, 128  ;;  %p7725_p11 = scmp.lt.s32.totalorder %s6165_s25, %s6165_s25 }
 0x723   :  { %v5816_v58 = vpop.f32.mrb[88].mxu0  ;;  %p7721_p10 = scmp.ne.s32.totalorder %s6165_s25, %s7720_s28  ;;  %p7726_p12 = scmp.lt.s32.totalorder %s7720_s28, %s7720_s28 }
 0x724   :  { %v5817_v11 = vadd.f32 %v5816_v58, %v5607_v28  ;;  %v5818_v56 = vpop.f32.mrb[89].mxu0 }
 0x725   :  { %v5819_v30 = vadd.f32 %v5818_v56, %v5609_v8  ;;  %v5820_v39 = vpop.f32.mrb[90].mxu0  ;;  %p7727_p13 = por %p7726_p12, %p7725_p11 }
 0x726   :  { %v5821_v38 = vpop.f32.mrb[91].mxu0 }
 0x727   :  { %p7728_p0 = pnand %p7727_p13, %p7721_p10 }
 0x743   :  { %v5857_v54 = vpop.f32.mrb[92].mxu0 }
 0x744   :  { %v5858_v2 = vadd.f32 %v6492_v33, %v5857_v54  ;;  %v6552_v36 = vpop.f32.mrb[93].mxu0 }
 0x745   :  { %v5860_v9 = vpop.f32.mrb[94].mxu0 }
 0x746   :  { %v6553_v41 = vpop.f32.mrb[95].mxu0  ;;  %v6141_v60 = vadd.f32 %v6463_v35, %v5858_v2 }
 0x763   :  { %v6057_v17 = vpop.f32.mrb[96].mxu0 }
 0x764   :  { %v6104_v6 = vadd.f32 %v6057_v17, %v5817_v11  ;;  %v6059_v31 = vpop.f32.mrb[97].mxu0 }
 0x765   :  { %v6119_v34 = vadd.f32 %v6059_v31, %v5819_v30  ;;  %v6061_v10 = vpop.f32.mrb[98].mxu0 }
 0x766   :  { %v6112_v53 = vadd.f32 %v6459_v13, %v6104_v6  ;;  %v6062_v27 = vpop.f32.mrb[99].mxu0 }
 0x767   :  { %v6127_v25 = vadd.f32 %v6461_v15, %v6119_v34 }
 0x768   :  { %v6460_v3 = vmul.f32 -1.442695, %v6112_v53 }
 0x769   :  { %v6462_v23 = vmul.f32 -1.442695, %v6127_v25 }
 0x76a   :  { %7203 = vpow2.f32 %v6460_v3 }
 0x76b   :  { %7205 = vpow2.f32 %v6462_v23 }
 0x774   :  { %v7204_v4 = vpop.eup %7203 }
 0x775   :  { %v6116_v49 = vadd.f32 1.0, %v7204_v4  ;;  %v7206_v24 = vpop.eup %7205 }
 0x776   :  { %v6131_v21 = vadd.f32 1.0, %v7206_v24 }
 0x777   :  { %7207 = vrcp.f32 %v6116_v49 }
 0x778   :  { %7209 = vrcp.f32 %v6131_v21 }
 0x781   :  { %v7208_v46 = vpop.eup %7207 }
 0x782   :  { %v7210_v43 = vpop.eup %7209 }
 0x783   :  { %v6098_v63 = vpop.f32.mrb[100].mxu0  ;;  %v6153_v45 = vsub.f32 1.0, %v7210_v43  ;;  %v6155_v42 = vmul.f32 %v7345_v29, %v7210_v43 }
 0x784   :  { %v6149_v59 = vadd.f32 %v6464_v5, %v6098_v63  ;;  %v6572_v37 = vpop.f32.mrb[101].mxu0 }
 0x785   :  { %v6101_v51 = vpop.f32.mrb[102].mxu0 }
 0x786   :  { %v6150_v14 = vmul.f32 %v7208_v46, %v6149_v59  ;;  %v6573_v50 = vpop.f32.mrb[103].mxu0 }
 0x788   :  { %v6151_v22 = vadd.f32 %v6150_v14, %v6141_v60 }
 0x78a   :  { %7211 = vtanh.f32 %v6151_v22 }
 0x794   :  { %v7212_v19 = vpop.eup %7211 }
 0x795   :  { %v6154_v32 = vmul.f32 %v7212_v19, %v6153_v45 }
 0x797   :  { %v6156_v52 = vadd.f32 %v6155_v42, %v6154_v32 }
 0x799   :  { %6157 = vst [vmem:[#allocation26] sm:$0xff] %v6156_v52 }
 0x79a   :  { %7731 = shalt.err (!%p7728_p0)
}
 0x79b   :  { %s10413_s11 = sld [smem:[#allocation88_spill]] }
 0x7a1   :  { %s7732_s8 = scalar_lea.hbm %s10413_s11, 128 }
 0x7a2   :  { %p7733_p1 = scmp.ne.s32.totalorder %s10413_s11, %s7732_s8  ;;  %p7736_p2 = scmp.lt.u32.totalorder %s7732_s8, %s10413_s11 }
 0x7a4   :  { %p7738_p3 = pnand %p7736_p2, %p7733_p1 }
 0x7a6   :  { %7741 = shalt.err (!%p7738_p3)
}
 0x7a7   :  { %6167 = dma.vmem_to_hbm [thread:$0]  %s6165_s25, 128, %s10413_s11, [#allocation4]  }
 0x7a8   :  { %7758 = dma.done.wait [#allocation4], 128  }
 0x7a9   :  { %7759 = vsyncadd [#allocation4], 4294967168 }
 0x7aa   :  { %7760 = dma.done.wait [#allocation28], 2304  }
 0x7ab   :  { %7761 = vsyncadd [#allocation28], 4294964992 }
 0x7ac   :  { %6199 = vsyncpa [#allocation3], 1 }
 0x7ad   :  { %6200 = vsyncpa [#allocation6], 1 }
 0x7ae   :  { %6201 = vsyncpa [#allocation9], 1 }
 0x7af   :  { %6202 = vsyncpa [#allocation12], 1 }
 0x7b0   :  { %6203 = vsyncpa [#allocation15], 1 }
 0x7b1   :  { %6204 = vsyncpa [#allocation18], 1 }
 0x7b2   :  { %6205 = vsyncpa [#allocation21], 1 }
 0x7b3   :  { %6206 = vsyncpa [#allocation24], 1 }
 0x7b4   :  { %6207 = vsyncpa [#allocation4], 1 }
 0x7b5   :  { %6208 = vsyncpa [#allocation28], 1 }

</bundles_post_ra>
